<compile_context>
chip_gen: v5e
topology: v5e:2x2
jax: 0.10.0
libtpu: 0.0.40
codegen_flags: <defaults>
</compile_context>

<pallas_src>
import numpy as np

import jax
import jax.numpy as jnp
from jax import lax
from jax.experimental import pallas as pl
from jax.experimental.pallas import tpu as pltpu

BN_EPS = 1e-5

_WEIGHT_ORDER = ("g1", "g2", "g3", "g4", "w1", "w2",
                 "s1", "s2", "s3", "s4", "shifts")


# ----------------------------------------------------------------------------
# The fused Pallas kernel: one grid step == TB samples.
# ----------------------------------------------------------------------------
def _net_kernel(x_ref, g1_ref, g2_ref, g3_ref, g4_ref, w1_ref, w2_ref,
                s1_ref, s2_ref, s3_ref, s4_ref, sh_ref, o_ref):
    f32, bf16 = jnp.float32, jnp.bfloat16
    tb = o_ref.shape[0]                       # samples per grid step (static)

    def im2col_rows(a, taps, rows):
        """Row j of the result is [a[j], a[j+1], ..., a[j+taps-1]] (lane concat)."""
        return jnp.concatenate([a[i:i + rows, :] for i in range(taps)], axis=-1)

    def conv(a_bf, g_ref, shift, taps, rows):
        """K-fused banded conv: one bf16 MXU matmul + folded (bias+BN) shift."""
        lhs = im2col_rows(a_bf, taps, rows)
        return jnp.dot(lhs, g_ref[...], preferred_element_type=f32) + shift

    def pool_cols(y, c):
        # max over adjacent columns of the same channel (lane = w*c + ch)
        return jnp.maximum(y[:, :-c], y[:, c:])

    def rowmax_pairs(y):
        # max over adjacent rows; only even in-sample rows are selected later
        return jnp.maximum(y[:-1, :], y[1:, :])

    def select(s_ref, v):
        # exact 0/1 bf16 selection matmul (row compaction / placement / zero pad)
        return jnp.dot(s_ref[...], v.astype(bf16), preferred_element_type=f32)

    x = x_ref[...]                                          # (tb*28, 28) bf16

    # --- NetConvPart --------------------------------------------------------
    # conv1 + BN (folded): valid rows at 28*b + ho, ho in [0, 24)
    y = conv(x, g1_ref, sh_ref[0:1, 0:240], 5, tb * 28 - 4)      # (tb*28-4, 240)
    # fused 2x2 max-pool + ReLU; S1 compacts to 12 rows / sample
    y = jnp.maximum(select(s1_ref, rowmax_pairs(pool_cols(y, 10))), 0.0)
    y = y.astype(bf16)                                           # (tb*12, 230)

    # conv2 + BN: valid rows at 12*b + ho, ho in [0, 8)
    # TODO(synk): NetDNIPart (DNI synthesizer) and Dropout2d only act in
    # training mode; they are identity here.
    y = conv(y, g2_ref, sh_ref[1:2, 0:160], 5, tb * 12 - 4)      # (tb*12-4, 160)
    # pool + ReLU; S2 also re-places rows between 2 exact-zero padding rows
    # per sample, i.e. it builds the H-padded layout conv3 (padding=2) needs.
    y = jnp.maximum(select(s2_ref, rowmax_pairs(pool_cols(y, 20))), 0.0)
    y = y.astype(bf16)                                           # (tb*8, 140)

    # --- NetFCPart (conv3/conv4 use padding=2; W-padding is inside G) --------
    y = conv(y, g3_ref, sh_ref[2:3, 0:80], 5, tb * 8 - 4)        # (tb*8-4, 80)
    y = jnp.maximum(y, 0.0).astype(bf16)
    # S3 re-places the 4 valid rows / sample between zero padding rows for conv4
    y = select(s3_ref, y).astype(bf16)                           # (tb*8, 80)

    y = conv(y, g4_ref, sh_ref[3:4, 0:80], 5, tb * 8 - 4)        # (tb*8-4, 80)
    y = jnp.maximum(y, 0.0).astype(bf16)

    # fc1: the NCHW view(-1, 320) permutation is folded into w1 (320, 50), so
    # fc1 is just a 4-tap K-fused "conv" over the (4, 80) per-sample block.
    y = conv(y, w1_ref, sh_ref[4:5, 0:50], 4, tb * 8 - 7)        # (tb*8-7, 50)
    y = jnp.maximum(y, 0.0)
    # TODO(synk): F.dropout is identity at inference (training=False).
    # S4 compacts to exactly one row per sample.
    y = select(s4_ref, y).astype(bf16)                           # (tb, 50)

    # fc2 + BN, padded to 128 lanes; pad lanes carry a -1e30 shift so they
    # contribute exp()==0 to the log_softmax (no masking needed) and the
    # store below is a fully lane-dense (tb, 128) slab.
    z = jnp.dot(y, w2_ref[...], preferred_element_type=f32) + sh_ref[5:6, 0:128]
    m = jnp.max(z, axis=-1, keepdims=True)
    e = z - m
    o_ref[...] = e - jnp.log(jnp.sum(jnp.exp(e), axis=-1, keepdims=True))


# ----------------------------------------------------------------------------
# One-time parameter folding (off the hot path)
# ----------------------------------------------------------------------------
def fold_params(params, tb=8):
    """Fold BN + bias into weights, build the K-stacked banded conv matrices,
    the 0/1 selection matrices for the chosen per-step batch TB, and the
    packed shift table consumed by the fused kernel."""

    def bn_fold(bias, bn):
        gamma, beta, mean, var = (np.asarray(a, np.float32) for a in bn)
        scale = gamma / np.sqrt(var + BN_EPS)
        shift = (np.asarray(bias, np.float32) - mean) * scale + beta
        return scale, shift

    def conv_g(w_oihw, bias, bn, win, wstep, pad):
        """K-stacked banded matrix G (kh*L_in, Wout*Cout) so that
        conv+BN = im2col_rows(act, kh) @ G + tiled_shift, where the activation
        lane index is (wstep*w_in)*Cin + ci (wstep=2 encodes the un-compacted
        column layout left by the fused 2x2 pool)."""
        scale, shift = bn_fold(bias, bn)
        w = np.asarray(w_oihw, np.float32) * scale[:, None, None, None]
        cout, cin, kh, kw = w.shape
        wout = win - kw + 1 + 2 * pad
        l_in = (wstep * (win - 1) + 1) * cin
        g = np.zeros((kh, l_in, wout * cout), np.float32)
        for i in range(kh):
            for j in range(kw):
                blk = w[:, :, i, j].T                      # (Cin, Cout)
                for wo in range(wout):
                    wi = wo + j - pad
                    if 0 <= wi < win:
                        r0 = wstep * wi * cin
                        g[i, r0:r0 + cin, wo * cout:(wo + 1) * cout] = blk
        return g.reshape(kh * l_in, wout * cout), np.tile(shift, wout)

    g1, sh1 = conv_g(params["conv1_w"], params["conv1_b"], params["bn_c1"],
                     win=28, wstep=1, pad=0)               # (140, 240)
    g2, sh2 = conv_g(params["conv2_w"], params["conv2_b"], params["bn_c2"],
                     win=12, wstep=2, pad=0)               # (1150, 160)
    g3, sh3 = conv_g(params["conv3_w"], params["conv3_b"], params["bn_c3"],
                     win=4, wstep=2, pad=2)                # (700, 80)
    g4, sh4 = conv_g(params["conv4_w"], params["conv4_b"], params["bn_c4"],
                     win=4, wstep=1, pad=2)                # (400, 80)

    # fc1: fold BN scale + the NCHW view(-1, 320) permutation; the activation
    # lane layout is h*80 + (w*20 + ch).
    s_f1, sh_f1 = bn_fold(params["fc1_b"], params["bn_f1"])
    w1 = np.asarray(params["fc1_w"], np.float32) * s_f1[:, None]     # (50, 320)
    w1 = w1.reshape(50, 20, 4, 4).transpose(2, 3, 1, 0).reshape(320, 50)

    # fc2: fold BN scale, transpose, pad the class dim to 128 lanes (zeros).
    s_f2, sh_f2 = bn_fold(params["fc2_b"], params["bn_f2"])
    w2 = (np.asarray(params["fc2_w"], np.float32) * s_f2[:, None]).T  # (50, 10)
    w2p = np.zeros((50, 128), np.float32)
    w2p[:, :10] = w2

    # 0/1 selection matrices (exact in bf16).  Activation row layouts:
    #   conv1 out : 28*b + ho (ho<24)    pool1 out : 12*b + r   (r<12)
    #   conv2 out : 12*b + ho (ho<8)     pool2 out : 8*b + 2 + r (r<4), rest 0
    #   conv3/4 out: 8*b + ho (ho<4)     fc1 out   : 8*b
    def sel(rows_out, rows_in, pairs):
        s = np.zeros((rows_out, rows_in), np.float32)
        for o, i in pairs:
            s[o, i] = 1.0
        return s

    s1 = sel(tb * 12, tb * 28 - 5,
             [(12 * b + r, 28 * b + 2 * r) for b in range(tb) for r in range(12)])
    s2 = sel(tb * 8, tb * 12 - 5,
             [(8 * b + 2 + r, 12 * b + 2 * r) for b in range(tb) for r in range(4)])
    s3 = sel(tb * 8, tb * 8 - 4,
             [(8 * b + 2 + r, 8 * b + r) for b in range(tb) for r in range(4)])
    s4 = sel(tb, tb * 8 - 7, [(b, 8 * b) for b in range(tb)])

    shifts = np.zeros((6, 240), np.float32)
    for row, sh in enumerate([sh1, sh2, sh3, sh4, sh_f1]):
        shifts[row, :sh.shape[0]] = sh
    shifts[5, :10] = sh_f2
    shifts[5, 10:128] = -1e30      # padded class lanes: exp() == 0 in softmax

    bf = jnp.bfloat16
    return {
        "g1": jnp.asarray(g1, bf), "g2": jnp.asarray(g2, bf),
        "g3": jnp.asarray(g3, bf), "g4": jnp.asarray(g4, bf),
        "w1": jnp.asarray(w1, bf), "w2": jnp.asarray(w2p, bf),
        "s1": jnp.asarray(s1, bf), "s2": jnp.asarray(s2, bf),
        "s3": jnp.asarray(s3, bf), "s4": jnp.asarray(s4, bf),
        "shifts": jnp.asarray(shifts, jnp.float32),
    }


# ----------------------------------------------------------------------------
# Net.forward (inference) wrapper
# ----------------------------------------------------------------------------
def net_forward(folded, x_nchw):
    tb = folded["s4"].shape[0]                   # samples per grid step
    B = x_nchw.shape[0]
    nblk = max(1, -(-B // tb))
    b_pad = nblk * tb

    # Cin == 1, so NCHW -> (B, 28, 28) is a pure reshape; cast to bf16 here so
    # the per-step input DMA is halved and no in-kernel pack is needed.
    x = x_nchw.reshape(B, 28, 28).astype(jnp.bfloat16)
    if b_pad != B:
        x = jnp.pad(x, ((0, b_pad - B), (0, 0), (0, 0)))
    x2d = x.reshape(b_pad * 28, 28)

    in_specs = [pl.BlockSpec((tb * 28, 28), lambda g: (g, 0))]
    in_specs += [pl.BlockSpec(folded[n].shape, lambda g: (0, 0))
                 for n in _WEIGHT_ORDER]

    out = pl.pallas_call(
        _net_kernel,
        out_shape=jax.ShapeDtypeStruct((b_pad, 128), jnp.float32),
        grid=(nblk,),
        in_specs=in_specs,
        out_specs=pl.BlockSpec((tb, 128), lambda g: (g, 0)),
        compiler_params=pltpu.CompilerParams(
            dimension_semantics=("parallel",)),
    )(x2d, *[folded[n] for n in _WEIGHT_ORDER])
    return out[:B, :10]


# ----------------------------------------------------------------------------
# Pure-JAX (f32, XLA) reference of the PyTorch forward, for validation
# ----------------------------------------------------------------------------
def net_reference(params, x):
    def bn(v, bnp, axis):
        gamma, beta, mean, var = bnp
        shp = [1] * v.ndim
        shp[axis] = -1
        return ((v - mean.reshape(shp)) / jnp.sqrt(var.reshape(shp) + BN_EPS)
                * gamma.reshape(shp) + beta.reshape(shp))

    def conv(v, w, b, pad):
        y = lax.conv_general_dilated(
            v, w, (1, 1), [(pad, pad), (pad, pad)],
            dimension_numbers=("NCHW", "OIHW", "NCHW"))
        return y + b.reshape(1, -1, 1, 1)

    def pool(v):
        return lax.reduce_window(v, -jnp.inf, lax.max,
                                 (1, 1, 2, 2), (1, 1, 2, 2), "VALID")

    x = x.astype(jnp.float32)
    x = jnp.maximum(pool(bn(conv(x, params["conv1_w"], params["conv1_b"], 0),
                            params["bn_c1"], 1)), 0.0)
    x = jnp.maximum(pool(bn(conv(x, params["conv2_w"], params["conv2_b"], 0),
                            params["bn_c2"], 1)), 0.0)          # DNI/dropout: id
    x = jnp.maximum(bn(conv(x, params["conv3_w"], params["conv3_b"], 2),
                       params["bn_c3"], 1), 0.0)
    x = jnp.maximum(bn(conv(x, params["conv4_w"], params["conv4_b"], 2),
                       params["bn_c4"], 1), 0.0)
    x = x.reshape(x.shape[0], -1)                               # view(-1, 320)
    x = jnp.maximum(bn(x @ params["fc1_w"].T + params["fc1_b"],
                       params["bn_f1"], 1), 0.0)
    x = bn(x @ params["fc2_w"].T + params["fc2_b"], params["bn_f2"], 1)
    return jax.nn.log_softmax(x, axis=-1)


# ----------------------------------------------------------------------------
# Deterministic parameter construction (synthetic, matches nn.Module shapes)
# ----------------------------------------------------------------------------
def _bn_init(key, n):
    k0, k1, k2, k3 = jax.random.split(key, 4)
    gamma = 1.0 + 0.1 * jax.random.normal(k0, (n,), jnp.float32)
    beta = 0.1 * jax.random.normal(k1, (n,), jnp.float32)
    mean = 0.1 * jax.random.normal(k2, (n,), jnp.float32)
    var = 1.0 + 0.1 * jnp.abs(jax.random.normal(k3, (n,), jnp.float32))
    return (gamma, beta, mean, var)


def init_params(key):
    keys = jax.random.split(key, 14)
    w = lambda k, s: 0.1 * jax.random.normal(k, s, jnp.float32)
    p = {
        # NetConvPart
        "conv1_w": w(keys[0], (10, 1, 5, 5)),  "conv1_b": w(keys[1], (10,)),
        "bn_c1": _bn_init(keys[2], 10),
        "conv2_w": w(keys[3], (20, 10, 5, 5)), "conv2_b": w(keys[4], (20,)),
        "bn_c2": _bn_init(keys[5], 20),
        # NetFCPart
        "conv3_w": w(keys[6], (20, 20, 5, 5)), "conv3_b": w(keys[7], (20,)),
        "bn_c3": _bn_init(keys[8], 20),
        "conv4_w": w(keys[9], (20, 20, 5, 5)), "conv4_b": w(keys[10], (20,)),
        "bn_c4": _bn_init(keys[11], 20),
        "fc1_w": w(keys[12], (50, 320)),
        "fc2_w": w(keys[13], (10, 50)),
    }
    kf = jax.random.split(keys[13], 6)
    p["fc1_b"] = w(kf[0], (50,))
    p["bn_f1"] = _bn_init(kf[1], 50)
    p["fc2_b"] = w(kf[2], (10,))
    p["bn_f2"] = _bn_init(kf[3], 10)
    return p


if __name__ == "__main__":
    key = jax.random.PRNGKey(0)
    k_param, k_input = jax.random.split(key)
    params = init_params(k_param)
    folded = fold_params(params, tb=8)          # one-time weight prep, TB=8
    B = 32                                      # grid = 4 steps (even, >=2)
    x = jax.random.normal(k_input, (B, 1, 28, 28), dtype=jnp.float32)  # NCHW

    fwd = jax.jit(net_forward)
    out = jax.block_until_ready(fwd(folded, x))
    assert out.shape == (B, 10), out.shape

    # log_softmax rows must exponentiate to probability distributions.
    row_sums = jnp.sum(jnp.exp(out), axis=-1)
    assert bool(jnp.all(jnp.isfinite(out)))
    assert bool(jnp.all(jnp.abs(row_sums - 1.0) < 1e-2)), row_sums

    # Compare against the f32 XLA reference (bf16 MXU inputs, f32 accumulation
    # => small deviations expected).
    ref = jax.block_until_ready(jax.jit(net_reference)(params, x))
    np.testing.assert_allclose(np.asarray(out), np.asarray(ref),
                               atol=0.15, rtol=0.05)
    print("KERNEL_OK")
</pallas_src>

<mosaic_0001>
module attributes {stable_mosaic.version = 11 : i64} {
  func.func @_net_kernel(%arg0: i32, %arg1: memref<224x28xbf16, #tpu.memory_space<vmem>>, %arg2: memref<140x240xbf16, #tpu.memory_space<vmem>>, %arg3: memref<1150x160xbf16, #tpu.memory_space<vmem>>, %arg4: memref<700x80xbf16, #tpu.memory_space<vmem>>, %arg5: memref<400x80xbf16, #tpu.memory_space<vmem>>, %arg6: memref<320x50xbf16, #tpu.memory_space<vmem>>, %arg7: memref<50x128xbf16, #tpu.memory_space<vmem>>, %arg8: memref<96x219xbf16, #tpu.memory_space<vmem>>, %arg9: memref<64x91xbf16, #tpu.memory_space<vmem>>, %arg10: memref<64x60xbf16, #tpu.memory_space<vmem>>, %arg11: memref<8x57xbf16, #tpu.memory_space<vmem>>, %arg12: memref<6x240xf32, #tpu.memory_space<vmem>>, %arg13: memref<8x128xf32, #tpu.memory_space<vmem>>) attributes {dimension_semantics = [#tpu.dimension_semantics<parallel>], iteration_bounds = array<i64: 4>, scalar_prefetch = 0 : i64, scratch_operands = 0 : i64, tpu.core_type = #tpu.core_type<tc>, window_params = [{transform_indices = @transform_0, window_bounds = array<i64: 224, 28>}, {pipeline_mode = #tpu.pipeline_mode<synchronous>, transform_indices = @transform_1, window_bounds = array<i64: 140, 240>}, {pipeline_mode = #tpu.pipeline_mode<synchronous>, transform_indices = @transform_2, window_bounds = array<i64: 1150, 160>}, {pipeline_mode = #tpu.pipeline_mode<synchronous>, transform_indices = @transform_3, window_bounds = array<i64: 700, 80>}, {pipeline_mode = #tpu.pipeline_mode<synchronous>, transform_indices = @transform_4, window_bounds = array<i64: 400, 80>}, {pipeline_mode = #tpu.pipeline_mode<synchronous>, transform_indices = @transform_5, window_bounds = array<i64: 320, 50>}, {pipeline_mode = #tpu.pipeline_mode<synchronous>, transform_indices = @transform_6, window_bounds = array<i64: 50, 128>}, {pipeline_mode = #tpu.pipeline_mode<synchronous>, transform_indices = @transform_7, window_bounds = array<i64: 96, 219>}, {pipeline_mode = #tpu.pipeline_mode<synchronous>, transform_indices = @transform_8, window_bounds = array<i64: 64, 91>}, {pipeline_mode = #tpu.pipeline_mode<synchronous>, transform_indices = @transform_9, window_bounds = array<i64: 64, 60>}, {pipeline_mode = #tpu.pipeline_mode<synchronous>, transform_indices = @transform_10, window_bounds = array<i64: 8, 57>}, {pipeline_mode = #tpu.pipeline_mode<synchronous>, transform_indices = @transform_11, window_bounds = array<i64: 6, 240>}, {transform_indices = @transform_12, window_bounds = array<i64: 8, 128>}]} {
    %c0 = arith.constant 0 : index
    %c0_0 = arith.constant 0 : index
    %0 = vector.load %arg1[%c0, %c0_0] : memref<224x28xbf16, #tpu.memory_space<vmem>>, vector<224x28xbf16>
    %c0_1 = arith.constant 0 : index
    %c0_2 = arith.constant 0 : index
    %1 = vector.load %arg12[%c0_1, %c0_2] : memref<6x240xf32, #tpu.memory_space<vmem>>, vector<1x240xf32>
    %2 = vector.extract_strided_slice %0 {offsets = [0, 0], sizes = [220, 28], strides = [1, 1]} : vector<224x28xbf16> to vector<220x28xbf16>
    %3 = vector.extract_strided_slice %0 {offsets = [1, 0], sizes = [220, 28], strides = [1, 1]} : vector<224x28xbf16> to vector<220x28xbf16>
    %4 = vector.extract_strided_slice %0 {offsets = [2, 0], sizes = [220, 28], strides = [1, 1]} : vector<224x28xbf16> to vector<220x28xbf16>
    %5 = vector.extract_strided_slice %0 {offsets = [3, 0], sizes = [220, 28], strides = [1, 1]} : vector<224x28xbf16> to vector<220x28xbf16>
    %6 = vector.extract_strided_slice %0 {offsets = [4, 0], sizes = [220, 28], strides = [1, 1]} : vector<224x28xbf16> to vector<220x28xbf16>
    %7 = tpu.concatenate %2, %3, %4, %5, %6 in 1 : vector<220x28xbf16>, vector<220x28xbf16>, vector<220x28xbf16>, vector<220x28xbf16>, vector<220x28xbf16> -> vector<220x140xbf16>
    %c0_3 = arith.constant 0 : index
    %c0_4 = arith.constant 0 : index
    %8 = vector.load %arg2[%c0_3, %c0_4] : memref<140x240xbf16, #tpu.memory_space<vmem>>, vector<140x240xbf16>
    %cst = arith.constant dense<0.000000e+00> : vector<220x240xf32>
    %9 = tpu.matmul %7, %8, %cst {dimension_numbers = #tpu.dot_dimension_numbers<[1], [0], [0], [1], [0, 0, 1, 1], [], []>} : vector<220x140xbf16>, vector<140x240xbf16>, vector<220x240xf32> -> vector<220x240xf32>
    %10 = vector.broadcast %1 : vector<1x240xf32> to vector<220x240xf32>
    %11 = arith.addf %9, %10 : vector<220x240xf32>
    %12 = vector.extract_strided_slice %11 {offsets = [0, 0], sizes = [220, 230], strides = [1, 1]} : vector<220x240xf32> to vector<220x230xf32>
    %13 = vector.extract_strided_slice %11 {offsets = [0, 10], sizes = [220, 230], strides = [1, 1]} : vector<220x240xf32> to vector<220x230xf32>
    %14 = arith.maximumf %12, %13 : vector<220x230xf32>
    %15 = vector.extract_strided_slice %14 {offsets = [0, 0], sizes = [219, 230], strides = [1, 1]} : vector<220x230xf32> to vector<219x230xf32>
    %16 = vector.extract_strided_slice %14 {offsets = [1, 0], sizes = [219, 230], strides = [1, 1]} : vector<220x230xf32> to vector<219x230xf32>
    %17 = arith.maximumf %15, %16 : vector<219x230xf32>
    %c0_5 = arith.constant 0 : index
    %c0_6 = arith.constant 0 : index
    %18 = vector.load %arg8[%c0_5, %c0_6] : memref<96x219xbf16, #tpu.memory_space<vmem>>, vector<96x219xbf16>
    %19 = arith.truncf %17 : vector<219x230xf32> to vector<219x230xbf16>
    %cst_7 = arith.constant dense<0.000000e+00> : vector<96x230xf32>
    %20 = tpu.matmul %18, %19, %cst_7 {dimension_numbers = #tpu.dot_dimension_numbers<[1], [0], [0], [1], [0, 0, 1, 1], [], []>} : vector<96x219xbf16>, vector<219x230xbf16>, vector<96x230xf32> -> vector<96x230xf32>
    %cst_8 = arith.constant 0.000000e+00 : f32
    %21 = vector.broadcast %cst_8 : f32 to vector<96x230xf32>
    %22 = arith.maximumf %20, %21 : vector<96x230xf32>
    %23 = arith.truncf %22 : vector<96x230xf32> to vector<96x230xbf16>
    %c1 = arith.constant 1 : index
    %c0_9 = arith.constant 0 : index
    %24 = vector.load %arg12[%c1, %c0_9] : memref<6x240xf32, #tpu.memory_space<vmem>>, vector<1x160xf32>
    %25 = vector.extract_strided_slice %23 {offsets = [0, 0], sizes = [92, 230], strides = [1, 1]} : vector<96x230xbf16> to vector<92x230xbf16>
    %26 = vector.extract_strided_slice %23 {offsets = [1, 0], sizes = [92, 230], strides = [1, 1]} : vector<96x230xbf16> to vector<92x230xbf16>
    %27 = vector.extract_strided_slice %23 {offsets = [2, 0], sizes = [92, 230], strides = [1, 1]} : vector<96x230xbf16> to vector<92x230xbf16>
    %28 = vector.extract_strided_slice %23 {offsets = [3, 0], sizes = [92, 230], strides = [1, 1]} : vector<96x230xbf16> to vector<92x230xbf16>
    %29 = vector.extract_strided_slice %23 {offsets = [4, 0], sizes = [92, 230], strides = [1, 1]} : vector<96x230xbf16> to vector<92x230xbf16>
    %30 = tpu.concatenate %25, %26, %27, %28, %29 in 1 : vector<92x230xbf16>, vector<92x230xbf16>, vector<92x230xbf16>, vector<92x230xbf16>, vector<92x230xbf16> -> vector<92x1150xbf16>
    %c0_10 = arith.constant 0 : index
    %c0_11 = arith.constant 0 : index
    %31 = vector.load %arg3[%c0_10, %c0_11] : memref<1150x160xbf16, #tpu.memory_space<vmem>>, vector<1150x160xbf16>
    %cst_12 = arith.constant dense<0.000000e+00> : vector<92x160xf32>
    %32 = tpu.matmul %30, %31, %cst_12 {dimension_numbers = #tpu.dot_dimension_numbers<[1], [0], [0], [1], [0, 0, 1, 1], [], []>} : vector<92x1150xbf16>, vector<1150x160xbf16>, vector<92x160xf32> -> vector<92x160xf32>
    %33 = vector.broadcast %24 : vector<1x160xf32> to vector<92x160xf32>
    %34 = arith.addf %32, %33 : vector<92x160xf32>
    %35 = vector.extract_strided_slice %34 {offsets = [0, 0], sizes = [92, 140], strides = [1, 1]} : vector<92x160xf32> to vector<92x140xf32>
    %36 = vector.extract_strided_slice %34 {offsets = [0, 20], sizes = [92, 140], strides = [1, 1]} : vector<92x160xf32> to vector<92x140xf32>
    %37 = arith.maximumf %35, %36 : vector<92x140xf32>
    %38 = vector.extract_strided_slice %37 {offsets = [0, 0], sizes = [91, 140], strides = [1, 1]} : vector<92x140xf32> to vector<91x140xf32>
    %39 = vector.extract_strided_slice %37 {offsets = [1, 0], sizes = [91, 140], strides = [1, 1]} : vector<92x140xf32> to vector<91x140xf32>
    %40 = arith.maximumf %38, %39 : vector<91x140xf32>
    %c0_13 = arith.constant 0 : index
    %c0_14 = arith.constant 0 : index
    %41 = vector.load %arg9[%c0_13, %c0_14] : memref<64x91xbf16, #tpu.memory_space<vmem>>, vector<64x91xbf16>
    %42 = arith.truncf %40 : vector<91x140xf32> to vector<91x140xbf16>
    %cst_15 = arith.constant dense<0.000000e+00> : vector<64x140xf32>
    %43 = tpu.matmul %41, %42, %cst_15 {dimension_numbers = #tpu.dot_dimension_numbers<[1], [0], [0], [1], [0, 0, 1, 1], [], []>} : vector<64x91xbf16>, vector<91x140xbf16>, vector<64x140xf32> -> vector<64x140xf32>
    %cst_16 = arith.constant 0.000000e+00 : f32
    %44 = vector.broadcast %cst_16 : f32 to vector<64x140xf32>
    %45 = arith.maximumf %43, %44 : vector<64x140xf32>
    %46 = arith.truncf %45 : vector<64x140xf32> to vector<64x140xbf16>
    %c2 = arith.constant 2 : index
    %c0_17 = arith.constant 0 : index
    %47 = vector.load %arg12[%c2, %c0_17] : memref<6x240xf32, #tpu.memory_space<vmem>>, vector<1x80xf32>
    %48 = vector.extract_strided_slice %46 {offsets = [0, 0], sizes = [60, 140], strides = [1, 1]} : vector<64x140xbf16> to vector<60x140xbf16>
    %49 = vector.extract_strided_slice %46 {offsets = [1, 0], sizes = [60, 140], strides = [1, 1]} : vector<64x140xbf16> to vector<60x140xbf16>
    %50 = vector.extract_strided_slice %46 {offsets = [2, 0], sizes = [60, 140], strides = [1, 1]} : vector<64x140xbf16> to vector<60x140xbf16>
    %51 = vector.extract_strided_slice %46 {offsets = [3, 0], sizes = [60, 140], strides = [1, 1]} : vector<64x140xbf16> to vector<60x140xbf16>
    %52 = vector.extract_strided_slice %46 {offsets = [4, 0], sizes = [60, 140], strides = [1, 1]} : vector<64x140xbf16> to vector<60x140xbf16>
    %53 = tpu.concatenate %48, %49, %50, %51, %52 in 1 : vector<60x140xbf16>, vector<60x140xbf16>, vector<60x140xbf16>, vector<60x140xbf16>, vector<60x140xbf16> -> vector<60x700xbf16>
    %c0_18 = arith.constant 0 : index
    %c0_19 = arith.constant 0 : index
    %54 = vector.load %arg4[%c0_18, %c0_19] : memref<700x80xbf16, #tpu.memory_space<vmem>>, vector<700x80xbf16>
    %cst_20 = arith.constant dense<0.000000e+00> : vector<60x80xf32>
    %55 = tpu.matmul %53, %54, %cst_20 {dimension_numbers = #tpu.dot_dimension_numbers<[1], [0], [0], [1], [0, 0, 1, 1], [], []>} : vector<60x700xbf16>, vector<700x80xbf16>, vector<60x80xf32> -> vector<60x80xf32>
    %56 = vector.broadcast %47 : vector<1x80xf32> to vector<60x80xf32>
    %57 = arith.addf %55, %56 : vector<60x80xf32>
    %cst_21 = arith.constant 0.000000e+00 : f32
    %58 = vector.broadcast %cst_21 : f32 to vector<60x80xf32>
    %59 = arith.maximumf %57, %58 : vector<60x80xf32>
    %60 = arith.truncf %59 : vector<60x80xf32> to vector<60x80xbf16>
    %c0_22 = arith.constant 0 : index
    %c0_23 = arith.constant 0 : index
    %61 = vector.load %arg10[%c0_22, %c0_23] : memref<64x60xbf16, #tpu.memory_space<vmem>>, vector<64x60xbf16>
    %cst_24 = arith.constant dense<0.000000e+00> : vector<64x80xf32>
    %62 = tpu.matmul %61, %60, %cst_24 {dimension_numbers = #tpu.dot_dimension_numbers<[1], [0], [0], [1], [0, 0, 1, 1], [], []>} : vector<64x60xbf16>, vector<60x80xbf16>, vector<64x80xf32> -> vector<64x80xf32>
    %63 = arith.truncf %62 : vector<64x80xf32> to vector<64x80xbf16>
    %c3 = arith.constant 3 : index
    %c0_25 = arith.constant 0 : index
    %64 = vector.load %arg12[%c3, %c0_25] : memref<6x240xf32, #tpu.memory_space<vmem>>, vector<1x80xf32>
    %65 = vector.extract_strided_slice %63 {offsets = [0, 0], sizes = [60, 80], strides = [1, 1]} : vector<64x80xbf16> to vector<60x80xbf16>
    %66 = vector.extract_strided_slice %63 {offsets = [1, 0], sizes = [60, 80], strides = [1, 1]} : vector<64x80xbf16> to vector<60x80xbf16>
    %67 = vector.extract_strided_slice %63 {offsets = [2, 0], sizes = [60, 80], strides = [1, 1]} : vector<64x80xbf16> to vector<60x80xbf16>
    %68 = vector.extract_strided_slice %63 {offsets = [3, 0], sizes = [60, 80], strides = [1, 1]} : vector<64x80xbf16> to vector<60x80xbf16>
    %69 = vector.extract_strided_slice %63 {offsets = [4, 0], sizes = [60, 80], strides = [1, 1]} : vector<64x80xbf16> to vector<60x80xbf16>
    %70 = tpu.concatenate %65, %66, %67, %68, %69 in 1 : vector<60x80xbf16>, vector<60x80xbf16>, vector<60x80xbf16>, vector<60x80xbf16>, vector<60x80xbf16> -> vector<60x400xbf16>
    %c0_26 = arith.constant 0 : index
    %c0_27 = arith.constant 0 : index
    %71 = vector.load %arg5[%c0_26, %c0_27] : memref<400x80xbf16, #tpu.memory_space<vmem>>, vector<400x80xbf16>
    %cst_28 = arith.constant dense<0.000000e+00> : vector<60x80xf32>
    %72 = tpu.matmul %70, %71, %cst_28 {dimension_numbers = #tpu.dot_dimension_numbers<[1], [0], [0], [1], [0, 0, 1, 1], [], []>} : vector<60x400xbf16>, vector<400x80xbf16>, vector<60x80xf32> -> vector<60x80xf32>
    %73 = vector.broadcast %64 : vector<1x80xf32> to vector<60x80xf32>
    %74 = arith.addf %72, %73 : vector<60x80xf32>
    %cst_29 = arith.constant 0.000000e+00 : f32
    %75 = vector.broadcast %cst_29 : f32 to vector<60x80xf32>
    %76 = arith.maximumf %74, %75 : vector<60x80xf32>
    %77 = arith.truncf %76 : vector<60x80xf32> to vector<60x80xbf16>
    %c4 = arith.constant 4 : index
    %c0_30 = arith.constant 0 : index
    %78 = vector.load %arg12[%c4, %c0_30] : memref<6x240xf32, #tpu.memory_space<vmem>>, vector<1x50xf32>
    %79 = vector.extract_strided_slice %77 {offsets = [0, 0], sizes = [57, 80], strides = [1, 1]} : vector<60x80xbf16> to vector<57x80xbf16>
    %80 = vector.extract_strided_slice %77 {offsets = [1, 0], sizes = [57, 80], strides = [1, 1]} : vector<60x80xbf16> to vector<57x80xbf16>
    %81 = vector.extract_strided_slice %77 {offsets = [2, 0], sizes = [57, 80], strides = [1, 1]} : vector<60x80xbf16> to vector<57x80xbf16>
    %82 = vector.extract_strided_slice %77 {offsets = [3, 0], sizes = [57, 80], strides = [1, 1]} : vector<60x80xbf16> to vector<57x80xbf16>
    %83 = tpu.concatenate %79, %80, %81, %82 in 1 : vector<57x80xbf16>, vector<57x80xbf16>, vector<57x80xbf16>, vector<57x80xbf16> -> vector<57x320xbf16>
    %c0_31 = arith.constant 0 : index
    %c0_32 = arith.constant 0 : index
    %84 = vector.load %arg6[%c0_31, %c0_32] : memref<320x50xbf16, #tpu.memory_space<vmem>>, vector<320x50xbf16>
    %cst_33 = arith.constant dense<0.000000e+00> : vector<57x50xf32>
    %85 = tpu.matmul %83, %84, %cst_33 {dimension_numbers = #tpu.dot_dimension_numbers<[1], [0], [0], [1], [0, 0, 1, 1], [], []>} : vector<57x320xbf16>, vector<320x50xbf16>, vector<57x50xf32> -> vector<57x50xf32>
    %86 = vector.broadcast %78 : vector<1x50xf32> to vector<57x50xf32>
    %87 = arith.addf %85, %86 : vector<57x50xf32>
    %cst_34 = arith.constant 0.000000e+00 : f32
    %88 = vector.broadcast %cst_34 : f32 to vector<57x50xf32>
    %89 = arith.maximumf %87, %88 : vector<57x50xf32>
    %c0_35 = arith.constant 0 : index
    %c0_36 = arith.constant 0 : index
    %90 = vector.load %arg11[%c0_35, %c0_36] : memref<8x57xbf16, #tpu.memory_space<vmem>>, vector<8x57xbf16>
    %91 = arith.truncf %89 : vector<57x50xf32> to vector<57x50xbf16>
    %cst_37 = arith.constant dense<0.000000e+00> : vector<8x50xf32>
    %92 = tpu.matmul %90, %91, %cst_37 {dimension_numbers = #tpu.dot_dimension_numbers<[1], [0], [0], [1], [0, 0, 1, 1], [], []>} : vector<8x57xbf16>, vector<57x50xbf16>, vector<8x50xf32> -> vector<8x50xf32>
    %93 = arith.truncf %92 : vector<8x50xf32> to vector<8x50xbf16>
    %c0_38 = arith.constant 0 : index
    %c0_39 = arith.constant 0 : index
    %94 = vector.load %arg7[%c0_38, %c0_39] : memref<50x128xbf16, #tpu.memory_space<vmem>>, vector<50x128xbf16>
    %cst_40 = arith.constant dense<0.000000e+00> : vector<8x128xf32>
    %95 = tpu.matmul %93, %94, %cst_40 {dimension_numbers = #tpu.dot_dimension_numbers<[1], [0], [0], [1], [0, 0, 1, 1], [], []>} : vector<8x50xbf16>, vector<50x128xbf16>, vector<8x128xf32> -> vector<8x128xf32>
    %c5 = arith.constant 5 : index
    %c0_41 = arith.constant 0 : index
    %96 = vector.load %arg12[%c5, %c0_41] : memref<6x240xf32, #tpu.memory_space<vmem>>, vector<1x128xf32>
    %97 = vector.broadcast %96 : vector<1x128xf32> to vector<8x128xf32>
    %98 = arith.addf %95, %97 : vector<8x128xf32>
    %cst_42 = arith.constant dense<0xFF800000> : vector<8xf32>
    %99 = vector.multi_reduction <maximumf>, %98, %cst_42 [1] : vector<8x128xf32> to vector<8xf32>
    %100 = vector.shape_cast %99 : vector<8xf32> to vector<8x1xf32>
    %101 = vector.broadcast %100 : vector<8x1xf32> to vector<8x128xf32>
    %102 = arith.subf %98, %101 : vector<8x128xf32>
    %103 = math.exp %102 : vector<8x128xf32>
    %cst_43 = arith.constant dense<0.000000e+00> : vector<8xf32>
    %104 = vector.multi_reduction <add>, %103, %cst_43 [1] : vector<8x128xf32> to vector<8xf32>
    %105 = vector.shape_cast %104 : vector<8xf32> to vector<8x1xf32>
    %106 = math.log %105 : vector<8x1xf32>
    %107 = vector.broadcast %106 : vector<8x1xf32> to vector<8x128xf32>
    %108 = arith.subf %102, %107 : vector<8x128xf32>
    %c0_44 = arith.constant 0 : index
    %c0_45 = arith.constant 0 : index
    %109 = vector.load %arg13[%c0_44, %c0_45] : memref<8x128xf32, #tpu.memory_space<vmem>>, vector<8x128xf32>
    tpu.vector_store %arg13[%c0_44, %c0_45], %108 {strides = array<i32>} : memref<8x128xf32, #tpu.memory_space<vmem>>, vector<8x128xf32>,
    return
  }
  func.func @transform_0(%arg0: i32) -> (i32, i32) {
    %c0_i32 = arith.constant 0 : i32
    %c0_i32_0 = arith.constant 0 : i32
    return %arg0, %c0_i32 : i32, i32
  }
  func.func @transform_1(%arg0: i32) -> (i32, i32) {
    %c0_i32 = arith.constant 0 : i32
    %c0_i32_0 = arith.constant 0 : i32
    %c0_i32_1 = arith.constant 0 : i32
    return %c0_i32, %c0_i32_0 : i32, i32
  }
  func.func @transform_2(%arg0: i32) -> (i32, i32) {
    %c0_i32 = arith.constant 0 : i32
    %c0_i32_0 = arith.constant 0 : i32
    %c0_i32_1 = arith.constant 0 : i32
    return %c0_i32, %c0_i32_0 : i32, i32
  }
  func.func @transform_3(%arg0: i32) -> (i32, i32) {
    %c0_i32 = arith.constant 0 : i32
    %c0_i32_0 = arith.constant 0 : i32
    %c0_i32_1 = arith.constant 0 : i32
    return %c0_i32, %c0_i32_0 : i32, i32
  }
  func.func @transform_4(%arg0: i32) -> (i32, i32) {
    %c0_i32 = arith.constant 0 : i32
    %c0_i32_0 = arith.constant 0 : i32
    %c0_i32_1 = arith.constant 0 : i32
    return %c0_i32, %c0_i32_0 : i32, i32
  }
  func.func @transform_5(%arg0: i32) -> (i32, i32) {
    %c0_i32 = arith.constant 0 : i32
    %c0_i32_0 = arith.constant 0 : i32
    %c0_i32_1 = arith.constant 0 : i32
    return %c0_i32, %c0_i32_0 : i32, i32
  }
  func.func @transform_6(%arg0: i32) -> (i32, i32) {
    %c0_i32 = arith.constant 0 : i32
    %c0_i32_0 = arith.constant 0 : i32
    %c0_i32_1 = arith.constant 0 : i32
    return %c0_i32, %c0_i32_0 : i32, i32
  }
  func.func @transform_7(%arg0: i32) -> (i32, i32) {
    %c0_i32 = arith.constant 0 : i32
    %c0_i32_0 = arith.constant 0 : i32
    %c0_i32_1 = arith.constant 0 : i32
    return %c0_i32, %c0_i32_0 : i32, i32
  }
  func.func @transform_8(%arg0: i32) -> (i32, i32) {
    %c0_i32 = arith.constant 0 : i32
    %c0_i32_0 = arith.constant 0 : i32
    %c0_i32_1 = arith.constant 0 : i32
    return %c0_i32, %c0_i32_0 : i32, i32
  }
  func.func @transform_9(%arg0: i32) -> (i32, i32) {
    %c0_i32 = arith.constant 0 : i32
    %c0_i32_0 = arith.constant 0 : i32
    %c0_i32_1 = arith.constant 0 : i32
    return %c0_i32, %c0_i32_0 : i32, i32
  }
  func.func @transform_10(%arg0: i32) -> (i32, i32) {
    %c0_i32 = arith.constant 0 : i32
    %c0_i32_0 = arith.constant 0 : i32
    %c0_i32_1 = arith.constant 0 : i32
    return %c0_i32, %c0_i32_0 : i32, i32
  }
  func.func @transform_11(%arg0: i32) -> (i32, i32) {
    %c0_i32 = arith.constant 0 : i32
    %c0_i32_0 = arith.constant 0 : i32
    %c0_i32_1 = arith.constant 0 : i32
    return %c0_i32, %c0_i32_0 : i32, i32
  }
  func.func @transform_12(%arg0: i32) -> (i32, i32) {
    %c0_i32 = arith.constant 0 : i32
    %c0_i32_0 = arith.constant 0 : i32
    return %arg0, %c0_i32 : i32, i32
  }
}

</mosaic_0001>

<bundles_post_ra>
// kernel: net_forward.1
= control target key start
LH: loop header
LB: loop body
LE: loop exit
PB: predicated region body
PF: predicated region fallthrough
CT: control target
= control target key end

     0   :  { %s8637_s21 = smov 0   ;;  %s12626_s0 = inlined_call_operand.vmem [shape: bf16[896,28], index: 0, kind: input, shape index: {}]   ;;  %s12627_s1 = inlined_call_operand.vmem [shape: bf16[140,240], index: 1, kind: input, shape index: {}]   ;;  %s12628_s2 = inlined_call_operand.vmem [shape: bf16[1150,160], index: 2, kind: input, shape index: {}]   ;;  %s12629_s3 = inlined_call_operand.vmem [shape: bf16[700,80], index: 3, kind: input, shape index: {}]   ;;  %s12630_s4 = inlined_call_operand.vmem [shape: bf16[400,80], index: 4, kind: input, shape index: {}]   ;;  %s12631_s5 = inlined_call_operand.vmem [shape: bf16[320,50], index: 5, kind: input, shape index: {}]   ;;  %s12632_s6 = inlined_call_operand.vmem [shape: bf16[50,128], index: 6, kind: input, shape index: {}]   ;;  %s12633_s7 = inlined_call_operand.vmem [shape: bf16[96,219], index: 7, kind: input, shape index: {}]   ;;  %s12634_s8 = inlined_call_operand.vmem [shape: bf16[64,91], index: 8, kind: input, shape index: {}]   ;;  %s12635_s9 = inlined_call_operand.vmem [shape: bf16[64,60], index: 9, kind: input, shape index: {}]   ;;  %s12636_s10 = inlined_call_operand.vmem [shape: bf16[8,57], index: 10, kind: input, shape index: {}]   ;;  %s12637_s11 = inlined_call_operand.vmem [shape: f32[6,240], index: 11, kind: input, shape index: {}]   ;;  %s12638_s12 = inlined_call_operand.vmem [shape: f32[32,128], index: 12, kind: output, shape index: {}]  }
   0x1 LB: > { %s8643_s22 = sadd.s32 4294967295, %s8553_s21   ;;  %p6781_p0 = scmp.ge.s32.totalorder %s8553_s21, 1  ;;  %s8553_s21 = sphi %s8637_s21, %s22_s21  }
   0x2   : > { %p363_p1 = scmp.lt.s32.totalorder %s8553_s21, 5 }
   0x4   : > { %p364_p2 = pnand %p6781_p0, %p363_p1 }
   0x6   : > { %367 = sbr.rel (%p364_p2) target bundleno = 3581 (0xdfd), region = 68 }
   0xb   : > { %s404_s23 = smul.u32 28, %s8643_s22  ;;  %vm710_vm0 = vsmask.f32 6400  ;;  %vm514_vm1 = vsmask.f32 7424  ;;  %s8555_s28 = smov 84  }
   0xc   : > { %s8556_s29 = smov 28   ;;  %vm794_vm2 = vcmask 1045504   ;;  %vm654_vm3 = vcmask 1046528   ;;  %s8557_s30 = smov 112   ;;  %vm850_vm4 = vcmask 228352   ;;  %vm1091_vm5 = vcmask 97280  }
   0xd   : > { %p405_p3 = scmp.lt.s32.totalorder %s404_s23, 111  ;;  %s8558_s13 = smov 56   ;;  %vm879_vm6 = vcmask 457728   ;;  %vm908_vm7 = vcmask 687104   ;;  %vm937_vm8 = vcmask 916480   ;;  %vm1611_vm9 = vcmask 965632  }
   0xe   : > { %vm2144_vm10 = vcmask 1044480   ;;  %vm2125_vm11 = vcmask 744448   ;;  %s8561_s26 = smov 102   ;;  %vm2519_vm12 = vcmask 834560   ;;  %vm2578_vm13 = vcmask 621568   ;;  %s8565_s15 = smov 108  }
   0xf   : > { %s12829_s23 = smov (!%p405_p3, %s404_s23), 111  ;;  %vm2661_vm14 = vcmask 408576   ;;  %vm2720_vm15 = vcmask 195584   ;;  %s8567_s25 = smov 36  }
  0x10   : > { %s6782_s24 = sshll.u32 %s12829_s23, 2  ;;  %s8566_s23 = smov 12  }
  0x11   : > { %s8651_s27 = scalar_lea.vmem %s12626_s0, %s6782_s24  ;;  %s8562_s24 = smov 50  }
  0x12   : > { %v8654_v0 = vld [vmem:[%s8651_s27] sm:$0xff]  ;;  %v8657_v1 = vld [vmem:[%s8651_s27 + $0x8] sm:$0xff]  ;;  %v8664_v6 = vld [vmem:[%s8651_s27 + $0x10] sm:$0xff]  ;;  %s8568_s14 = smov 48   ;;  %s8570_s19 = smov 80  }
  0x13   : > { %v516_v2 = vshrl.u32 %v8654_v0, 16  ;;  %v518_v3 = vshll.u32 %v8654_v0, 16  ;;  %v523_v4 = vshll.u32 %v8657_v1, 16  ;;  %v527_v5 = vshrl.u32 %v8657_v1, 16  ;;  %v8680_v28 = vld [vmem:[%s8651_s27 + $0x18] sm:$0xff]  ;;  %v8698_v47 = vld [vmem:[%s8651_s27 + $0x20] sm:$0xff] }
  0x14   : > { %v531_v15 = vshll.u32 %v8664_v6, 16  ;;  %v795_v21 = vrot.slane %v8654_v0, 2  ;;  %v796_v22 = vrot.slane %v8657_v1, 2  ;;  %v655_v24 = vrot.slane %v8654_v0, 1  ;;  %v8709_v54 = vld [vmem:[%s8651_s27 + $0x28] sm:$0xff]  ;;  %p410_p4 = scmp.lt.s32.totalorder %s8643_s22, 3 }
  0x15   : > { %v711_v7 = vrot.slane %v516_v2, 1  ;;  %v712_v8 = vrot.slane %v518_v3, 2  ;;  %v714_v9 = vrot.slane %v527_v5, 1  ;;  %v715_v10 = vrot.slane %v523_v4, 2 }
  0x16   : > { %v520_v11 = vrot.slane %v518_v3, 1  ;;  %v525_v12 = vrot.slane %v523_v4, 1  ;;  %v533_v19 = vrot.slane %v531_v15, 1  ;;  %v656_v25 = vrot.slane %v8657_v1, 1  ;;  %s12831_s22 = smov (!%p410_p4, %s8643_s22), 3 }
  0x17   : > { %v713_v13 = vor.u32 %v712_v8, %v711_v7  ;;  %v716_v14 = vor.u32 %v715_v10, %v714_v9  ;;  %v535_v26 = vshrl.u32 %v8664_v6, 16  ;;  %v797_v27 = vsel %vm794_vm2, %v795_v21, %v796_v22  ;;  %v6898_v8 = vld [vmem:[%s12627_s1 + $0x70] sm:$0xf]  ;;  %v8046_v9 = vld [vmem:[%s12627_s1 + $0x74] sm:$0xf0]  ;;  %s6783_s17 = sshll.u32 %s12831_s22, 3 }
  0x18   : > { %v521_v16 = vor.u32 %v520_v11, %v516_v2  ;;  %v529_v17 = vor.u32 %v527_v5, %v525_v12  ;;  %v658_v29 = vrot.slane %v8664_v6, 1  ;;  %v657_v30 = vsel %vm654_vm3, %v655_v24, %v656_v25  ;;  %v8045_v10 = vld [vmem:[%s12627_s1 + $0x74] sm:$0xf] }
  0x19   : > { %v717_v18 = vsel %vm710_vm0, %v713_v13, %v716_v14  ;;  %v718_v31 = vrot.slane %v535_v26, 1  ;;  %v719_v32 = vrot.slane %v531_v15, 2  ;;  %v798_v34 = vrot.slane %v8664_v6, 2  ;;  %v6890_v13 = vld [vmem:[%s12627_s1 + $0x60] sm:$0xf] }
  0x1a   : > { %766 = vrot.lane.b32.xlu1 %v717_v18, %s8555_s28  ;;  %v526_v20 = vsel %vm514_vm1, %v521_v16, %v525_v12  ;;  %v534_v23 = vsel %vm514_vm1, %v529_v17, %v533_v19  ;;  %v659_v33 = vsel %vm654_vm3, %v656_v25, %v658_v29  ;;  %v539_v35 = vshll.u32 %v8680_v28, 16  ;;  %v6900_v12 = vld [vmem:[%s12627_s1 + $0x78] sm:$0xf0]  ;;  %v8043_v16 = vld [vmem:[%s12627_s1 + $0x64] sm:$0xf]  ;;  %v8748_v18 = vld [vmem:[%s8651_s27 + $0x30] sm:$0xff] }
  0x1b   : > { %626 = vrot.lane.b32.xlu0 %v526_v20, %s8556_s29  ;;  %628 = vrot.lane.b32.xlu2 %v534_v23, %s8556_s29  ;;  %v543_v36 = vshrl.u32 %v8680_v28, 16  ;;  %v720_v37 = vor.u32 %v719_v32, %v718_v31  ;;  %v537_v38 = vor.u32 %v535_v26, %v533_v19  ;;  %v799_v39 = vsel %vm794_vm2, %v796_v22, %v798_v34  ;;  %v6892_v17 = vld [vmem:[%s12627_s1 + $0x68] sm:$0xf0]  ;;  %v6882_v31 = vld [vmem:[%s12627_s1 + $0x50] sm:$0xf] }
  0x1c   : > { %v723_v41 = vrot.slane %v539_v35, 2  ;;  %v541_v42 = vrot.slane %v539_v35, 1  ;;  %v660_v46 = vrot.slane %v8680_v28, 1  ;;  %v800_v49 = vrot.slane %v8680_v28, 2  ;;  %v8042_v32 = vld [vmem:[%s12627_s1 + $0x54] sm:$0xf0] }
  0x1d   : > { %v722_v40 = vrot.slane %v543_v36, 1  ;;  %v721_v43 = vsel %vm710_vm0, %v716_v14, %v720_v37  ;;  %v547_v51 = vshll.u32 %v8698_v47, 16  ;;  %v551_v53 = vshrl.u32 %v8698_v47, 16  ;;  %v8044_v14 = vld [vmem:[%s12627_s1 + $0x64] sm:$0xf0] }
  0x1e   : > { %v542_v44 = vsel %vm514_vm1, %v537_v38, %v541_v42  ;;  %v661_v50 = vsel %vm654_vm3, %v658_v29, %v660_v46  ;;  %v801_v52 = vsel %vm794_vm2, %v798_v34, %v800_v49  ;;  %v662_v55 = vrot.slane %v8698_v47, 1  ;;  %v8040_v38 = vld [vmem:[%s12627_s1 + $0x44] sm:$0xf0] }
  0x1f   : > { %v724_v45 = vor.u32 %v723_v41, %v722_v40  ;;  %v726_v56 = vrot.slane %v551_v53, 1  ;;  %v727_v57 = vrot.slane %v547_v51, 2  ;;  %v545_v58 = vor.u32 %v543_v36, %v541_v42  ;;  %v6884_v36 = vld [vmem:[%s12627_s1 + $0x58] sm:$0xf0]  ;;  %v8039_v41 = vld [vmem:[%s12627_s1 + $0x44] sm:$0xf] }
  0x20   : > { %v549_v59 = vrot.slane %v547_v51, 1  ;;  %v555_v60 = vshll.u32 %v8709_v54, 16  ;;  %v663_v61 = vsel %vm654_vm3, %v660_v46, %v662_v55  ;;  %v802_v3 = vrot.slane %v8698_v47, 2  ;;  %v6876_v42 = vld [vmem:[%s12627_s1 + $0x48] sm:$0xf0] }
  0x21   : > { %v725_v48 = vsel %vm710_vm0, %v720_v37, %v724_v45  ;;  %v728_v62 = vor.u32 %v727_v57, %v726_v56  ;;  %v559_v5 = vshrl.u32 %v8709_v54, 16  ;;  %v6899_v11 = vor.u32 %v8046_v9, %v6898_v8  ;;  %v6874_v37 = vld [vmem:[%s12627_s1 + $0x40] sm:$0xf]  ;;  %v8038_v51 = vld [vmem:[%s12627_s1 + $0x34] sm:$0xf0] }
  0x22   : > { %822 = vrot.lane.b32.xlu1 %v797_v27, %s8557_s30  ;;  %v550_v63 = vsel %vm514_vm1, %v545_v58, %v549_v59  ;;  %v557_v4 = vrot.slane %v555_v60, 1  ;;  %v553_v7 = vor.u32 %v551_v53, %v549_v59  ;;  %v6903_v15 = vor.u32 %v8045_v10, %v6900_v12  ;;  %v8037_v53 = vld [vmem:[%s12627_s1 + $0x34] sm:$0xf] }
  0x23   : > { %682 = vrot.lane.b32.xlu0 %v657_v30, %s8558_s13  ;;  %684 = vrot.lane.b32.xlu2 %v659_v33, %s8558_s13  ;;  %v729_v2 = vsel %vm710_vm0, %v724_v45, %v728_v62  ;;  %v6891_v19 = vor.u32 %v8044_v14, %v6890_v13  ;;  %v664_v21 = vrot.slane %v8709_v54, 1  ;;  %v6895_v22 = vor.u32 %v8043_v16, %v6892_v17  ;;  %v8041_v33 = vld [vmem:[%s12627_s1 + $0x54] sm:$0xf] }
  0x24   : > { %1127 = vmatpush.bf16.msra.mxu0 %v6899_v11  ;;  %v558_v20 = vsel %vm514_vm1, %v553_v7, %v557_v4  ;;  %1285 = vmatpush.bf16.msra.mxu2 %v6903_v15  ;;  %v803_v23 = vsel %vm794_vm2, %v800_v49, %v802_v3  ;;  %v730_v24 = vrot.slane %v559_v5, 1  ;;  %v731_v25 = vrot.slane %v555_v60, 2  ;;  %v8818_v7 = vld [vmem:[%s8651_s27 + $0x40] sm:$0xff] }
  0x25   : > { %v665_v26 = vsel %vm654_vm3, %v662_v55, %v664_v21  ;;  %v804_v27 = vrot.slane %v8709_v54, 2  ;;  %v563_v29 = vshll.u32 %v8748_v18, 16  ;;  %v567_v30 = vshrl.u32 %v8748_v18, 16  ;;  %v6868_v55 = vld [vmem:[%s12627_s1 + $0x38] sm:$0xf0] }
  0x26   : > { %v732_v34 = vor.u32 %v731_v25, %v730_v24  ;;  %v6883_v35 = vor.u32 %v8042_v32, %v6882_v31  ;;  %v6887_v40 = vor.u32 %v8041_v33, %v6884_v36  ;;  %v6879_v49 = vor.u32 %v8039_v41, %v6876_v42  ;;  %v6858_v25 = vld [vmem:[%s12627_s1 + $0x20] sm:$0xf]  ;;  %v6850_v36 = vld [vmem:[%s12627_s1 + $0x10] sm:$0xf]  ;;  %v6852_v41 = vld [vmem:[%s12627_s1 + $0x18] sm:$0xf0] }
  0x27   : > { %v805_v45 = vsel %vm794_vm2, %v802_v3, %v804_v27  ;;  %v735_v46 = vrot.slane %v563_v29, 2  ;;  %v6871_v59 = vor.u32 %v8037_v53, %v6868_v55  ;;  %v666_v60 = vrot.slane %v8748_v18, 1  ;;  %v6906_v42 = vld [vmem:[%s12627_s1 + $0x80] sm:$0xf]  ;;  %v8032_v53 = vld [vmem:[%s12627_s1 + $0x4] sm:$0xf0] }
  0x28   : > { %1128 = vmatpush.bf16.msra.mxu0 %v6891_v19  ;;  %1286 = vmatpush.bf16.msra.mxu2 %v6895_v22  ;;  %v579_v12 = vshll.u32 %v8818_v7, 16 }
  0x2a   : > { %824 = vrot.lane.b32.xlu1 %v799_v39, %s8557_s30  ;;  %v561_v39 = vor.u32 %v559_v5, %v557_v4  ;;  %v8829_v15 = vrot.slane %v579_v12, 1  ;;  %v743_v24 = vrot.slane %v579_v12, 2 }
  0x2b   : > { %768 = vrot.lane.b32.xlu0 %v721_v43, %s8555_s28  ;;  %630 = vrot.lane.b32.xlu2 %v542_v44, %s8556_s29  ;;  %v734_v43 = vrot.slane %v567_v30, 1  ;;  %v6875_v44 = vor.u32 %v8040_v38, %v6874_v37  ;;  %v8034_v37 = vld [vmem:[%s12627_s1 + $0x14] sm:$0xf0]  ;;  %v8033_v38 = vld [vmem:[%s12627_s1 + $0x14] sm:$0xf] }
  0x2c   : > { %1129 = vmatpush.bf16.msra.mxu0 %v6883_v35  ;;  %1287 = vmatpush.bf16.msra.mxu2 %v6887_v40  ;;  %v6851_v40 = vor.u32 %v8034_v37, %v6850_v36 }
  0x2d   : > { %v8801_v58 = vor.u32 %v735_v46, %v734_v43  ;;  %v8048_v43 = vld [vmem:[%s12627_s1 + $0x84] sm:$0x30]  ;;  %v8047_v46 = vld [vmem:[%s12627_s1 + $0x84] sm:$0xf] }
  0x30   : > { %1130 = vmatpush.bf16.msra.mxu0 %v6875_v44  ;;  %1288 = vmatpush.bf16.msra.mxu2 %v6879_v49  ;;  %v6855_v44 = vor.u32 %v8033_v38, %v6852_v41 }
  0x32   : > { %770 = vrot.lane.b32.xlu1 %v725_v48, %s8555_s28  ;;  %v565_v48 = vrot.slane %v563_v29, 1 }
  0x33   : > { %686 = vrot.lane.b32.xlu0 %v661_v50, %s8558_s13  ;;  %826 = vrot.lane.b32.xlu2 %v801_v52, %s8557_s30  ;;  %v6866_v50 = vld [vmem:[%s12627_s1 + $0x30] sm:$0xf]  ;;  %v733_v52 = vsel %vm710_vm0, %v728_v62, %v732_v34  ;;  %v737_v62 = vsel %vm710_vm0, %v732_v34, %v8801_v58  ;;  %v810_v34 = vrot.slane %v8818_v7, 2 }
  0x34   : > { %v566_v56 = vsel %vm514_vm1, %v561_v39, %v565_v48  ;;  %v6867_v57 = vor.u32 %v8038_v51, %v6866_v50  ;;  %1289 = vmatpush.bf16.msra.mxu2 %v6871_v59  ;;  %v569_v8 = vor.u32 %v567_v30, %v565_v48  ;;  %v6860_v30 = vld [vmem:[%s12627_s1 + $0x28] sm:$0xf0] }
  0x35   : > { %v6908_v48 = vld [vmem:[%s12627_s1 + $0x88] sm:$0x30] }
  0x36   : > { %1131 = vmatpush.bf16.msra.mxu0 %v6867_v57  ;;  %v6911_v49 = vor.u32 %v8047_v46, %v6908_v48  ;;  %v6844_v57 = vld [vmem:[%s12627_s1 + $0x8] sm:$0xf0] }
  0x38   : > { %v1125_v51 = vsel %vm794_vm2, %v6911_v49, 0 }
  0x39   : > { %1371 = vmatpush.bf16.msra.mxu3 %v1125_v51 }
  0x3a   : > { %688 = vrot.lane.b32.xlu1 %v663_v61, %s8558_s13  ;;  %v8805_v61 = vld [vmem:[%s8651_s27 + $0x38] sm:$0xff] }
  0x3b   : > { %632 = vrot.lane.b32.xlu0 %v550_v63, %s8556_s29  ;;  %772 = vrot.lane.b32.xlu2 %v729_v2, %s8555_s28  ;;  %v806_v63 = vrot.slane %v8748_v18, 2  ;;  %v667_v2 = vsel %vm654_vm3, %v664_v21, %v666_v60  ;;  %v571_v3 = vshll.u32 %v8805_v61, 16  ;;  %v668_v5 = vrot.slane %v8805_v61, 1 }
  0x3c   : > { %v575_v11 = vshrl.u32 %v8805_v61, 16  ;;  %v808_v16 = vrot.slane %v8805_v61, 2 }
  0x3d   : > { %v807_v4 = vsel %vm794_vm2, %v804_v27, %v806_v63  ;;  %v573_v9 = vrot.slane %v571_v3, 1  ;;  %v669_v10 = vsel %vm654_vm3, %v666_v60, %v668_v5  ;;  %v739_v22 = vrot.slane %v571_v3, 2  ;;  %v8035_v27 = vld [vmem:[%s12627_s1 + $0x24] sm:$0xf] }
  0x3e   : > { %v809_v19 = vsel %vm794_vm2, %v806_v63, %v808_v16  ;;  %v738_v21 = vrot.slane %v575_v11, 1  ;;  %v6863_v33 = vor.u32 %v8035_v27, %v6860_v30  ;;  %v811_v39 = vsel %vm794_vm2, %v808_v16, %v810_v34 }
  0x3f   : > { %v574_v13 = vsel %vm514_vm1, %v569_v8, %v573_v9  ;;  %v577_v14 = vor.u32 %v575_v11, %v573_v9  ;;  %v670_v3 = vrot.slane %v8818_v7, 1 }
  0x40   : > { %v740_v31 = vor.u32 %v739_v22, %v738_v21  ;;  %1290 = vmatpush.bf16.msra.mxu2 %v6863_v33 }
  0x41   : > { %v582_v17 = vsel %vm514_vm1, %v577_v14, %v8829_v15  ;;  %v671_v12 = vsel %vm654_vm3, %v668_v5, %v670_v3 }
  0x42   : > { %634 = vrot.lane.b32.xlu1 %v558_v20, %s8556_s29  ;;  %v583_v20 = vshrl.u32 %v8818_v7, 16  ;;  %v741_v60 = vsel %vm710_vm0, %v8801_v58, %v740_v31 }
  0x43   : > { %828 = vrot.lane.b32.xlu0 %v803_v23, %s8557_s30  ;;  %690 = vrot.lane.b32.xlu2 %v665_v26, %s8558_s13  ;;  %v8036_v26 = vld [vmem:[%s12627_s1 + $0x24] sm:$0xf0] }
  0x44   : > { %v742_v23 = vrot.slane %v583_v20, 1  ;;  %v6859_v29 = vor.u32 %v8036_v26, %v6858_v25  ;;  %1291 = vmatpush.bf16.msra.mxu2 %v6855_v44  ;;  %v585_v5 = vor.u32 %v583_v20, %v8829_v15  ;;  %v8939_v15 = vld [vmem:[%s8651_s27 + $0x58] sm:$0xff] }
  0x45   : > { %v816_v46 = vrot.slane %v8939_v15, 2 }
  0x46   : > { %v744_v32 = vor.u32 %v743_v24, %v742_v23  ;;  %1132 = vmatpush.bf16.msra.mxu0 %v6859_v29 }
  0x48   : > { %v745_v35 = vsel %vm710_vm0, %v740_v31, %v744_v32  ;;  %v603_v31 = vshll.u32 %v8939_v15, 16 }
  0x4a   : > { %830 = vrot.lane.b32.xlu1 %v805_v45, %s8557_s30  ;;  %v6907_v45 = vor.u32 %v8048_v43, %v6906_v42  ;;  %1133 = vmatpush.bf16.msra.mxu0 %v6851_v40  ;;  %v607_v43 = vshrl.u32 %v8939_v15, 16 }
  0x4b   : > { %774 = vrot.lane.b32.xlu0 %v733_v52, %s8555_s28  ;;  %636 = vrot.lane.b32.xlu2 %v566_v56, %s8556_s29  ;;  %v6842_v52 = vld [vmem:[%s12627_s1] sm:$0xf]  ;;  %v8031_v56 = vld [vmem:[%s12627_s1 + $0x4] sm:$0xf] }
  0x4c   : > { %v1122_v50 = vsel %vm794_vm2, %v6907_v45, 0  ;;  %v6843_v55 = vor.u32 %v8032_v53, %v6842_v52  ;;  %v6847_v59 = vor.u32 %v8031_v56, %v6844_v57  ;;  %v755_v45 = vrot.slane %v603_v31, 2 }
  0x4d   : > { %1213 = vmatpush.bf16.msra.mxu1 %v1122_v50  ;;  %v754_v48 = vrot.slane %v607_v43, 1 }
  0x4e   : > { %1134 = vmatpush.bf16.msra.mxu0 %v6843_v55  ;;  %1292 = vmatpush.bf16.msra.mxu2 %v6847_v59 }
  0x4f   : > { %v756_v50 = vor.u32 %v755_v45, %v754_v48 }
  0x52   : > { %776 = vrot.lane.b32.xlu1 %v737_v62, %s8555_s28  ;;  %v8900_v62 = vld [vmem:[%s8651_s27 + $0x48] sm:$0xff] }
  0x53   : > { %692 = vrot.lane.b32.xlu0 %v667_v2, %s8558_s13  ;;  %832 = vrot.lane.b32.xlu2 %v807_v4, %s8557_s30  ;;  %v587_v63 = vshll.u32 %v8900_v62, 16  ;;  %v591_v2 = vshrl.u32 %v8900_v62, 16  ;;  %v672_v4 = vrot.slane %v8900_v62, 1  ;;  %v812_v23 = vrot.slane %v8900_v62, 2 }
  0x55   : > { %v746_v8 = vrot.slane %v591_v2, 1  ;;  %v747_v9 = vrot.slane %v587_v63, 2  ;;  %v589_v14 = vrot.slane %v587_v63, 1  ;;  %v813_v37 = vsel %vm794_vm2, %v810_v34, %v812_v23 }
  0x57   : > { %v8909_v58 = vor.u32 %v747_v9, %v746_v8  ;;  %v590_v26 = vsel %vm514_vm1, %v585_v5, %v589_v14  ;;  %v676_v8 = vrot.slane %v8939_v15, 1  ;;  %v8998_v5 = vld [vmem:[%s8651_s27 + $0x68] sm:$0xff] }
  0x59   : > { %v749_v11 = vsel %vm710_vm0, %v744_v32, %v8909_v58 }
  0x5a   : > { %694 = vrot.lane.b32.xlu1 %v669_v10, %s8558_s13  ;;  %v673_v10 = vsel %vm654_vm3, %v670_v3, %v672_v4 }
  0x5b   : > { %638 = vrot.lane.b32.xlu0 %v574_v13, %s8556_s29  ;;  %778 = vrot.lane.b32.xlu2 %v741_v60, %s8555_s28  ;;  %v8919_v13 = vld [vmem:[%s8651_s27 + $0x50] sm:$0xff] }
  0x5c   : > { %v595_v16 = vshll.u32 %v8919_v13, 16  ;;  %v674_v22 = vrot.slane %v8919_v13, 1  ;;  %v814_v24 = vrot.slane %v8919_v13, 2  ;;  %v599_v20 = vshrl.u32 %v8919_v13, 16 }
  0x5e   : > { %v675_v25 = vsel %vm654_vm3, %v672_v4, %v674_v22  ;;  %v815_v30 = vsel %vm794_vm2, %v812_v23, %v814_v24  ;;  %v750_v34 = vrot.slane %v599_v20, 1  ;;  %v751_v44 = vrot.slane %v595_v16, 2 }
  0x5f   : > { %v817_v51 = vsel %vm794_vm2, %v814_v24, %v816_v46 }
  0x60   : > { %v752_v49 = vor.u32 %v751_v44, %v750_v34  ;;  %v623_v34 = vshrl.u32 %v8998_v5, 16 }
  0x62   : > { %640 = vrot.lane.b32.xlu1 %v582_v17, %s8556_s29  ;;  %v593_v17 = vor.u32 %v591_v2, %v589_v14  ;;  %v757_v52 = vsel %vm710_vm0, %v752_v49, %v756_v50  ;;  %v753_v63 = vsel %vm710_vm0, %v8909_v58, %v752_v49  ;;  %v677_v14 = vsel %vm654_vm3, %v674_v22, %v676_v8 }
  0x63   : > { %834 = vrot.lane.b32.xlu0 %v809_v19, %s8557_s30  ;;  %696 = vrot.lane.b32.xlu2 %v671_v12, %s8558_s13  ;;  %v597_v19 = vrot.slane %v595_v16, 1  ;;  %v762_v49 = vrot.slane %v623_v34, 1 }
  0x65   : > { %v598_v21 = vsel %vm514_vm1, %v593_v17, %v597_v19  ;;  %v601_v38 = vor.u32 %v599_v20, %v597_v19 }
  0x6a   : > { %836 = vrot.lane.b32.xlu1 %v811_v39, %s8557_s30  ;;  %v8950_v39 = vrot.slane %v603_v31, 1  ;;  %v680_v31 = vrot.slane %v8998_v5, 1 }
  0x6b   : > { %780 = vrot.lane.b32.xlu0 %v745_v35, %s8555_s28  ;;  %642 = vrot.lane.b32.xlu2 %v590_v26, %s8556_s29 }
  0x72   : > { %782 = vrot.lane.b32.xlu1 %v749_v11, %s8555_s28 }
  0x73   : > { %698 = vrot.lane.b32.xlu0 %v673_v10, %s8558_s13  ;;  %838 = vrot.lane.b32.xlu2 %v813_v37, %s8557_s30 }
  0x75   : > { %v629_v36 = vpop.permute.xlu2 %628 }
  0x76   : > { %v854_v53 = vsel %vm850_vm4, %v8657_v1, %v629_v36  ;;  %v8977_v1 = vld [vmem:[%s8651_s27 + $0x60] sm:$0xff] }
  0x77   : > { %v611_v3 = vshll.u32 %v8977_v1, 16  ;;  %v615_v4 = vshrl.u32 %v8977_v1, 16  ;;  %v678_v9 = vrot.slane %v8977_v1, 1 }
  0x79   : > { %v758_v11 = vrot.slane %v615_v4, 1  ;;  %v759_v58 = vrot.slane %v611_v3, 2  ;;  %v679_v12 = vsel %vm654_vm3, %v676_v8, %v678_v9  ;;  %v613_v24 = vrot.slane %v611_v3, 1 }
  0x7a   : > { %700 = vrot.lane.b32.xlu1 %v675_v25, %s8558_s13  ;;  %v619_v25 = vshll.u32 %v8998_v5, 16  ;;  %v681_v37 = vsel %vm654_vm3, %v678_v9, %v680_v31 }
  0x7b   : > { %644 = vrot.lane.b32.xlu0 %v598_v21, %s8556_s29  ;;  %784 = vrot.lane.b32.xlu2 %v753_v63, %s8555_s28  ;;  %v8989_v16 = vor.u32 %v759_v58, %v758_v11 }
  0x7d   : > { %v685_v55 = vpop.permute.xlu2 %684  ;;  %v761_v17 = vsel %vm710_vm0, %v756_v50, %v8989_v16  ;;  %v763_v50 = vrot.slane %v619_v25, 2 }
  0x7e   : > { %v883_v56 = vsel %vm879_vm6, %v854_v53, %v685_v55 }
  0x83   : > { %840 = vrot.lane.b32.xlu0 %v815_v30, %s8557_s30  ;;  %702 = vrot.lane.b32.xlu2 %v677_v14, %s8558_s13 }
  0x85   : > { %v631_v10 = vpop.permute.xlu2 %630 }
  0x86   : > { %v856_v19 = vsel %vm850_vm4, %v8664_v6, %v631_v10  ;;  %v621_v6 = vrot.slane %v619_v25, 1 }
  0x8b   : > { %786 = vrot.lane.b32.xlu0 %v757_v52, %s8555_s28  ;;  %v764_v52 = vor.u32 %v763_v50, %v762_v49 }
  0x8c   : > { %v767_v27 = vpop.permute.xlu1 %766 }
  0x8d   : > { %v627_v29 = vpop.permute.xlu0 %626  ;;  %v827_v26 = vpop.permute.xlu2 %826 }
  0x8e   : > { %v852_v33 = vsel %vm850_vm4, %v8654_v0, %v627_v29  ;;  %v606_v0 = vsel %vm514_vm1, %v601_v38, %v8950_v39  ;;  %v617_v29 = vor.u32 %v615_v4, %v613_v24 }
  0x8f   : > { %646 = vrot.lane.b32.xlu1 %v606_v0, %s8556_s29 }
  0x90   : > { %v622_v30 = vsel %vm514_vm1, %v617_v29, %v621_v6 }
  0x93   : > { %704 = vrot.lane.b32.xlu0 %v679_v12, %s8558_s13 }
  0x94   : > { %v823_v32 = vpop.permute.xlu1 %822 }
  0x95   : > { %v683_v35 = vpop.permute.xlu0 %682  ;;  %6912 = vmatmul.msk.bf16.vlgmr.msra.gmra.mxu1 %vm1091_vm5, %v823_v32  ;;  %6926 = vmatmul.msk.bf16.vlgmr.msra.gmra.mxu3 %vm1091_vm5, %v823_v32 }
  0x96   : > { %v881_v40 = vsel %vm879_vm6, %v852_v33, %v683_v35  ;;  %v818_v33 = vrot.slane %v8977_v1, 2  ;;  %v820_v35 = vrot.slane %v8998_v5, 2 }
  0x97   : > { %v910_v41 = vsel %vm908_vm7, %v881_v40, %v767_v27  ;;  %842 = vrot.lane.b32.xlu1 %v817_v51, %s8557_s30 }
  0x98   : > { %v939_v42 = vsel %vm937_vm8, %v910_v41, %v823_v32  ;;  %v609_v32 = vor.u32 %v607_v43, %v8950_v39  ;;  %v821_v40 = vsel %vm794_vm2, %v818_v33, %v820_v35  ;;  %v819_v45 = vsel %vm794_vm2, %v816_v46, %v818_v33 }
  0x99   : > { %1135 = vmatmul.bf16.vlgmr.msra.gmra.mxu0 %v939_v42  ;;  %1293 = vmatmul.bf16.vlgmr.msra.gmra.mxu2 %v939_v42  ;;  %v773_v42 = vpop.permute.xlu2 %772 }
  0x9a   : > { %v614_v38 = vsel %vm514_vm1, %v609_v32, %v613_v24 }
  0x9b   : > { %650 = vrot.lane.b32.xlu0 %v622_v30, %s8556_s29  ;;  %648 = vrot.lane.b32.xlu2 %v614_v38, %s8556_s29 }
  0x9c   : > { %v825_v59 = vpop.permute.xlu1 %824 }
  0x9d   : > { %v769_v57 = vpop.permute.xlu0 %768 }
  0x9e   : > { %v912_v60 = vsel %vm908_vm7, %v883_v56, %v769_v57 }
  0x9f   : > { %v942_v2 = vsel %vm937_vm8, %v912_v60, %v825_v59  ;;  %788 = vrot.lane.b32.xlu1 %v761_v17, %s8555_s28  ;;  %v765_v60 = vsel %vm710_vm0, %v8989_v16, %v764_v52 }
  0xa1   : > { %v691_v55 = vpop.permute.xlu2 %690 }
  0xa3   : > { %846 = vrot.lane.b32.xlu0 %v821_v40, %s8557_s30  ;;  %844 = vrot.lane.b32.xlu2 %v819_v45, %s8557_s30 }
  0xa4   : > { %v771_v22 = vpop.permute.xlu1 %770 }
  0xa5   : > { %6913 = vmatmul.msk.bf16.gmra.mxu1 %vm1091_vm5, %v825_v59  ;;  %6927 = vmatmul.msk.bf16.gmra.mxu3 %vm1091_vm5, %v825_v59  ;;  %v687_v21 = vpop.permute.xlu0 %686 }
  0xa6   : > { %v885_v23 = vsel %vm879_vm6, %v856_v19, %v687_v21 }
  0xa7   : > { %v914_v27 = vsel %vm908_vm7, %v885_v23, %v771_v22  ;;  %706 = vrot.lane.b32.xlu1 %v681_v37, %s8558_s13 }
  0xa8   : > { %v945_v20 = vsel %vm937_vm8, %v914_v27, %v827_v26 }
  0xa9   : > { %1140 = vmatmul.bf16.gmra.mxu0 %v942_v2  ;;  %1298 = vmatmul.bf16.gmra.mxu2 %v942_v2  ;;  %v637_v63 = vpop.permute.xlu2 %636 }
  0xaa   : > { %v862_v2 = vsel %vm850_vm4, %v8709_v54, %v637_v63 }
  0xab   : > { %792 = vrot.lane.b32.xlu0 %v764_v52, %s8555_s28  ;;  %790 = vrot.lane.b32.xlu2 %v765_v60, %s8555_s28  ;;  %s8563_s28 = smov 76  }
  0xac   : > { %v689_v0 = vpop.permute.xlu1 %688 }
  0xad   : > { %v633_v36 = vpop.permute.xlu0 %632 }
  0xae   : > { %v858_v41 = vsel %vm850_vm4, %v8680_v28, %v633_v36  ;;  %v625_v28 = vor.u32 %v623_v34, %v621_v6 }
  0xaf   : > { %v887_v39 = vsel %vm879_vm6, %v858_v41, %v689_v0 }
  0xb0   : > { %v916_v44 = vsel %vm908_vm7, %v887_v39, %v773_v42  ;;  %652 = vrot.lane.b32.xlu1 %v625_v28, %s8556_s29  ;;  %s8559_s29 = smov 118  }
  0xb1   : > { %v833_v9 = vpop.permute.xlu2 %832 }
  0xb3   : > { %708 = vrot.lane.b32.xlu2 %v680_v31, %s8558_s13 }
  0xb4   : > { %v635_v51 = vpop.permute.xlu1 %634 }
  0xb5   : > { %6914 = vmatmul.msk.bf16.gmra.mxu1 %vm1091_vm5, %v827_v26  ;;  %6928 = vmatmul.msk.bf16.gmra.mxu3 %vm1091_vm5, %v827_v26  ;;  %v829_v43 = vpop.permute.xlu0 %828  ;;  %v860_v53 = vsel %vm850_vm4, %v8698_v47, %v635_v51 }
  0xb6   : > { %v948_v48 = vsel %vm937_vm8, %v916_v44, %v829_v43  ;;  %v889_v46 = vsel %vm879_vm6, %v860_v53, %v691_v55 }
  0xb8   : > { %848 = vrot.lane.b32.xlu1 %v820_v35, %s8557_s30 }
  0xb9   : > { %1145 = vmatmul.bf16.gmra.mxu0 %v945_v20  ;;  %1303 = vmatmul.bf16.gmra.mxu2 %v945_v20  ;;  %v779_v16 = vpop.permute.xlu2 %778  ;;  %v443_v20 = vld [vmem:[%s12637_s11] ss:$8 sm:$0x3] }
  0xba   : > { %v9071_v35 = vperm.slane %v443_v20, 0  ;;  %v9080_v39 = vperm.slane %v443_v20, 1 }
  0xbc   : > { %v831_v57 = vpop.permute.xlu1 %830 }
  0xbd   : > { %v775_v56 = vpop.permute.xlu0 %774 }
  0xbe   : > { %v918_v59 = vsel %vm908_vm7, %v889_v46, %v775_v56 }
  0xbf   : > { %v951_v47 = vsel %vm937_vm8, %v918_v59, %v831_v57 }
  0xc4   : > { %v777_v8 = vpop.permute.xlu1 %776 }
  0xc5   : > { %6915 = vmatmul.msk.bf16.gmra.mxu1 %vm1091_vm5, %v829_v43  ;;  %6929 = vmatmul.msk.bf16.gmra.mxu3 %vm1091_vm5, %v829_v43  ;;  %v693_v3 = vpop.permute.xlu0 %692 }
  0xc6   : > { %v891_v4 = vsel %vm879_vm6, %v862_v2, %v693_v3 }
  0xc7   : > { %v920_v10 = vsel %vm908_vm7, %v891_v4, %v777_v8 }
  0xc8   : > { %v954_v11 = vsel %vm937_vm8, %v920_v10, %v833_v9 }
  0xc9   : > { %1150 = vmatmul.bf16.gmra.mxu0 %v948_v48  ;;  %1308 = vmatmul.bf16.gmra.mxu2 %v948_v48 }
  0xcc   : > { %v695_v54 = vpop.permute.xlu1 %694 }
  0xcd   : > { %v639_v58 = vpop.permute.xlu0 %638 }
  0xce   : > { %v864_v12 = vsel %vm850_vm4, %v8748_v18, %v639_v58  ;;  %v697_v18 = vpop.permute.xlu2 %696 }
  0xcf   : > { %v893_v14 = vsel %vm879_vm6, %v864_v12, %v695_v54 }
  0xd0   : > { %v922_v19 = vsel %vm908_vm7, %v893_v14, %v779_v16 }
  0xd4   : > { %v641_v23 = vpop.permute.xlu1 %640 }
  0xd5   : > { %6916 = vmatmul.msk.bf16.gmra.mxu1 %vm1091_vm5, %v831_v57  ;;  %6930 = vmatmul.msk.bf16.gmra.mxu3 %vm1091_vm5, %v831_v57  ;;  %v835_v17 = vpop.permute.xlu0 %834  ;;  %v866_v22 = vsel %vm850_vm4, %v8805_v61, %v641_v23 }
  0xd6   : > { %v957_v21 = vsel %vm937_vm8, %v922_v19, %v835_v17  ;;  %v895_v24 = vsel %vm879_vm6, %v866_v22, %v697_v18  ;;  %v643_v6 = vpop.permute.xlu2 %642 }
  0xd7   : > { %v868_v30 = vsel %vm850_vm4, %v8818_v7, %v643_v6 }
  0xd9   : > { %1155 = vmatmul.bf16.gmra.mxu0 %v951_v47  ;;  %1313 = vmatmul.bf16.gmra.mxu2 %v951_v47 }
  0xdc   : > { %v837_v26 = vpop.permute.xlu1 %836 }
  0xdd   : > { %v781_v25 = vpop.permute.xlu0 %780 }
  0xde   : > { %v924_v27 = vsel %vm908_vm7, %v895_v24, %v781_v25  ;;  %v839_v36 = vpop.permute.xlu2 %838 }
  0xdf   : > { %v960_v29 = vsel %vm937_vm8, %v924_v27, %v837_v26 }
  0xe4   : > { %v783_v32 = vpop.permute.xlu1 %782 }
  0xe5   : > { %6917 = vmatmul.msk.bf16.gmra.mxu1 %vm1091_vm5, %v833_v9  ;;  %6931 = vmatmul.msk.bf16.gmra.mxu3 %vm1091_vm5, %v833_v9  ;;  %v699_v61 = vpop.permute.xlu0 %698 }
  0xe6   : > { %v897_v31 = vsel %vm879_vm6, %v868_v30, %v699_v61  ;;  %v785_v55 = vpop.permute.xlu2 %784 }
  0xe7   : > { %v926_v37 = vsel %vm908_vm7, %v897_v31, %v783_v32 }
  0xe8   : > { %v963_v40 = vsel %vm937_vm8, %v926_v37, %v839_v36 }
  0xe9   : > { %1160 = vmatmul.bf16.gmra.mxu0 %v954_v11  ;;  %1318 = vmatmul.bf16.gmra.mxu2 %v954_v11 }
  0xec   : > { %v701_v50 = vpop.permute.xlu1 %700 }
  0xed   : > { %v645_v42 = vpop.permute.xlu0 %644 }
  0xee   : > { %v870_v28 = vsel %vm850_vm4, %v8900_v62, %v645_v42  ;;  %v703_v16 = vpop.permute.xlu2 %702 }
  0xef   : > { %v899_v53 = vsel %vm879_vm6, %v870_v28, %v701_v50 }
  0xf0   : > { %v928_v59 = vsel %vm908_vm7, %v899_v53, %v785_v55 }
  0xf5   : > { %6918 = vmatmul.msk.bf16.gmra.mxu1 %vm1091_vm5, %v835_v17  ;;  %6932 = vmatmul.msk.bf16.gmra.mxu3 %vm1091_vm5, %v835_v17  ;;  %v841_v56 = vpop.permute.xlu0 %840 }
  0xf6   : > { %v966_v2 = vsel %vm937_vm8, %v928_v59, %v841_v56  ;;  %v649_v20 = vpop.permute.xlu2 %648 }
  0xf7   : > { %v874_v37 = vsel %vm850_vm4, %v8939_v15, %v649_v20 }
  0xf9   : > { %1165 = vmatmul.bf16.gmra.mxu0 %v957_v21  ;;  %1323 = vmatmul.bf16.gmra.mxu2 %v957_v21 }
  0xfd   : > { %v787_v23 = vpop.permute.xlu0 %786 }
 0x101   : > { %v647_v8 = vpop.permute.xlu1 %646 }
 0x102   : > { %v872_v12 = vsel %vm850_vm4, %v8919_v13, %v647_v8 }
 0x103   : > { %v901_v21 = vsel %vm879_vm6, %v872_v12, %v703_v16 }
 0x104   : > { %v930_v25 = vsel %vm908_vm7, %v901_v21, %v787_v23 }
 0x105   : > { %6919 = vmatmul.msk.bf16.gmra.mxu1 %vm1091_vm5, %v837_v26  ;;  %6933 = vmatmul.msk.bf16.gmra.mxu3 %vm1091_vm5, %v837_v26 }
 0x109   : > { %1170 = vmatmul.bf16.gmra.mxu0 %v960_v29  ;;  %1328 = vmatmul.bf16.gmra.mxu2 %v960_v29  ;;  %v843_v18 = vpop.permute.xlu1 %842 }
 0x10a   : > { %v969_v6 = vsel %vm937_vm8, %v930_v25, %v843_v18 }
 0x111   : > { %v789_v42 = vpop.permute.xlu1 %788 }
 0x112   : > { %v1215_v33 = vpop.f32.mrf.mxu1 }
 0x115   : > { %6920 = vmatmul.msk.bf16.gmra.mxu1 %vm1091_vm5, %v839_v36  ;;  %6934 = vmatmul.msk.bf16.gmra.mxu3 %vm1091_vm5, %v839_v36 }
 0x116   : > { %v1136_v38 = vpop.f32.mrf.mxu0 }
 0x117   : > { %v1137_v7 = vadd.f32 %v1136_v38, %v9071_v35 }
 0x118   : > { %v1373_v41 = vpop.f32.mrf.mxu3 }
 0x119   : > { %v9078_v0 = vadd.f32 %v1215_v33, %v1137_v7  ;;  %1175 = vmatmul.bf16.gmra.mxu0 %v963_v40  ;;  %1333 = vmatmul.bf16.gmra.mxu2 %v963_v40  ;;  %v705_v7 = vpop.permute.xlu0 %704 }
 0x11a   : > { %v1217_v43 = vpop.f32.mrf.mxu1 }
 0x11b   : > { %12700 = vst [vmem:[#allocation2_spill] sm:$0xff] %v9078_v0 }
 0x11c   : > { %v1294_v34 = vpop.f32.mrf.mxu2 }
 0x11d   : > { %v1295_v44 = vadd.f32 %v1294_v34, %v9080_v39  ;;  %v845_v34 = vpop.permute.xlu2 %844 }
 0x11e   : > { %v1138_v45 = vpop.f32.mrf.mxu0 }
 0x11f   : > { %v9085_v48 = vadd.f32 %v1373_v41, %v1295_v44  ;;  %v1139_v49 = vadd.f32 %v1138_v45, %v9071_v35  ;;  %v903_v41 = vsel %vm879_vm6, %v874_v37, %v705_v7 }
 0x120   : > { %v1375_v51 = vpop.f32.mrf.mxu3  ;;  %v932_v45 = vsel %vm908_vm7, %v903_v41, %v789_v42 }
 0x121   : > { %12701 = vst [vmem:[#allocation3_spill] sm:$0xff] %v9085_v48  ;;  %v9088_v52 = vadd.f32 %v1217_v43, %v1139_v49  ;;  %v972_v15 = vsel %vm937_vm8, %v932_v45, %v845_v34  ;;  %v651_v50 = vpop.permute.xlu0 %650 }
 0x122   : > { %v1220_v46 = vpop.f32.mrf.mxu1  ;;  %v876_v59 = vsel %vm850_vm4, %v8977_v1, %v651_v50 }
 0x123   : > { %12702 = vst [vmem:[#allocation4_spill] sm:$0xff] %v9088_v52 }
 0x124   : > { %v1296_v57 = vpop.f32.mrf.mxu2 }
 0x125   : > { %v1297_v60 = vadd.f32 %v1296_v57, %v9080_v39  ;;  %6921 = vmatmul.msk.bf16.gmra.mxu1 %vm1091_vm5, %v841_v56  ;;  %6935 = vmatmul.msk.bf16.gmra.mxu3 %vm1091_vm5, %v841_v56  ;;  %v791_v8 = vpop.permute.xlu2 %790 }
 0x126   : > { %v1141_v62 = vpop.f32.mrf.mxu0 }
 0x127   : > { %v9095_v47 = vadd.f32 %v1375_v51, %v1297_v60  ;;  %v1142_v63 = vadd.f32 %v1141_v62, %v9071_v35  ;;  %v707_v62 = vpop.permute.xlu1 %706 }
 0x128   : > { %v1378_v3 = vpop.f32.mrf.mxu3 }
 0x129   : > { %12703 = vst [vmem:[#allocation5_spill] sm:$0xff] %v9095_v47  ;;  %v9099_v4 = vadd.f32 %v1220_v46, %v1142_v63  ;;  %1180 = vmatmul.bf16.gmra.mxu0 %v966_v2  ;;  %1338 = vmatmul.bf16.gmra.mxu2 %v966_v2 }
 0x12a   : > { %v1222_v9 = vpop.f32.mrf.mxu1 }
 0x12b   : > { %12704 = vst [vmem:[#allocation6_spill] sm:$0xff] %v9099_v4 }
 0x12c   : > { %v1299_v10 = vpop.f32.mrf.mxu2 }
 0x12d   : > { %v1300_v11 = vadd.f32 %v1299_v10, %v9080_v39  ;;  %v847_v10 = vpop.permute.xlu0 %846 }
 0x12e   : > { %v1143_v58 = vpop.f32.mrf.mxu0 }
 0x12f   : > { %v9104_v54 = vadd.f32 %v1378_v3, %v1300_v11  ;;  %v1144_v14 = vadd.f32 %v1143_v58, %v9071_v35  ;;  %v905_v3 = vsel %vm879_vm6, %v876_v59, %v707_v62  ;;  %v653_v16 = vpop.permute.xlu1 %652 }
 0x130   : > { %v1380_v17 = vpop.f32.mrf.mxu3  ;;  %v934_v1 = vsel %vm908_vm7, %v905_v3, %v791_v8  ;;  %v878_v25 = vsel %vm850_vm4, %v8998_v5, %v653_v16  ;;  %vm3688_vm4 = vcmask 1031168  }
 0x131   : > { %v9107_v19 = vadd.f32 %v1222_v9, %v1144_v14  ;;  %v975_v12 = vsel %vm937_vm8, %v934_v1, %v847_v10 }
 0x132   : > { %v1225_v22 = vpop.f32.mrf.mxu1 }
 0x133   : > { %12705 = vst [vmem:[#allocation7_spill] sm:$0xff] %v9107_v19 }
 0x134   : > { %v1301_v24 = vpop.f32.mrf.mxu2 }
 0x135   : > { %v1302_v26 = vadd.f32 %v1301_v24, %v9080_v39  ;;  %6922 = vmatmul.msk.bf16.gmra.mxu1 %vm1091_vm5, %v843_v18  ;;  %6936 = vmatmul.msk.bf16.gmra.mxu3 %vm1091_vm5, %v843_v18  ;;  %v793_v20 = vpop.permute.xlu0 %792 }
 0x136   : > { %v1146_v13 = vpop.f32.mrf.mxu0 }
 0x137   : > { %v9114_v27 = vadd.f32 %v1380_v17, %v1302_v26  ;;  %v1147_v29 = vadd.f32 %v1146_v13, %v9071_v35  ;;  %v709_v13 = vpop.permute.xlu2 %708  ;;  %v849_v37 = vpop.permute.xlu1 %848 }
 0x138   : > { %v1383_v30 = vpop.f32.mrf.mxu3 }
 0x139   : > { %12706 = vst [vmem:[#allocation8_spill] sm:$0xff] %v9114_v27  ;;  %v9118_v61 = vadd.f32 %v1225_v22, %v1147_v29  ;;  %1185 = vmatmul.bf16.gmra.mxu0 %v969_v6  ;;  %1343 = vmatmul.bf16.gmra.mxu2 %v969_v6 }
 0x13a   : > { %v9120_v31 = vpop.f32.mrf.mxu1 }
 0x13c   : > { %v1304_v32 = vpop.f32.mrf.mxu2 }
 0x13d   : > { %v1305_v33 = vadd.f32 %v1304_v32, %v9080_v39 }
 0x13e   : > { %v9123_v36 = vpop.f32.mrf.mxu0 }
 0x13f   : > { %v9127_v38 = vadd.f32 %v1383_v30, %v1305_v33  ;;  %v907_v30 = vsel %vm879_vm6, %v878_v25, %v709_v13  ;;  %vm4487_vm6 = vcmask 883712  }
 0x140   : > { %v9129_v40 = vpop.f32.mrf.mxu3  ;;  %v936_v41 = vsel %vm908_vm7, %v907_v30, %v793_v20  ;;  %vm5006_vm7 = vcmask 293888  }
 0x141   : > { %v978_v45 = vsel %vm937_vm8, %v936_v41, %v849_v37 }
 0x142   : > { %v1230_v43 = vpop.f32.mrf.mxu1 }
 0x144   : > { %v9132_v44 = vpop.f32.mrf.mxu2 }
 0x145   : > { %6923 = vmatmul.msk.bf16.gmra.mxu1 %vm1091_vm5, %v845_v34  ;;  %6937 = vmatmul.msk.bf16.gmra.mxu3 %vm1091_vm5, %v845_v34 }
 0x146   : > { %v1151_v28 = vpop.f32.mrf.mxu0 }
 0x147   : > { %v1152_v53 = vadd.f32 %v1151_v28, %v9071_v35 }
 0x148   : > { %v1388_v49 = vpop.f32.mrf.mxu3 }
 0x149   : > { %1190 = vmatmul.bf16.gmra.mxu0 %v972_v15  ;;  %1348 = vmatmul.bf16.gmra.mxu2 %v972_v15  ;;  %v9144_v57 = vadd.f32 %v1230_v43, %v1152_v53 }
 0x14a   : > { %v9138_v51 = vpop.f32.mrf.mxu1 }
 0x14b   : > { %12707 = vst [vmem:[#allocation9_spill] sm:$0xff] %v9144_v57 }
 0x14c   : > { %v1309_v55 = vpop.f32.mrf.mxu2 }
 0x14d   : > { %v1310_v46 = vadd.f32 %v1309_v55, %v9080_v39 }
 0x14e   : > { %v9142_v56 = vpop.f32.mrf.mxu0 }
 0x14f   : > { %v9148_v60 = vadd.f32 %v1388_v49, %v1310_v46 }
 0x150   : > { %v9150_v63 = vpop.f32.mrf.mxu3 }
 0x151   : > { %12708 = vst [vmem:[#allocation10_spill] sm:$0xff] %v9148_v60  ;;  %v8342_v2 = vpack.i.bf16 %v9148_v60, %v9144_v57 }
 0x152   : > { %v1235_v9 = vpop.f32.mrf.mxu1 }
 0x153   : > { %8343 = vrot.lane.b32.xlu1 %v8342_v2, %s8559_s29 }
 0x154   : > { %v9156_v11 = vpop.f32.mrf.mxu2 }
 0x155   : > { %6924 = vmatmul.msk.bf16.gmra.mxu1 %vm1091_vm5, %v847_v10  ;;  %6938 = vmatmul.msk.bf16.gmra.mxu3 %vm1091_vm5, %v847_v10 }
 0x156   : > { %v1156_v58 = vpop.f32.mrf.mxu0 }
 0x157   : > { %v1157_v21 = vadd.f32 %v1156_v58, %v9071_v35 }
 0x158   : > { %v1393_v14 = vpop.f32.mrf.mxu3 }
 0x159   : > { %1195 = vmatmul.bf16.gmra.mxu0 %v975_v12  ;;  %1353 = vmatmul.bf16.gmra.mxu2 %v975_v12  ;;  %v9164_v24 = vadd.f32 %v1235_v9, %v1157_v21 }
 0x15a   : > { %v1237_v17 = vpop.f32.mrf.mxu1 }
 0x15c   : > { %v1314_v23 = vpop.f32.mrf.mxu2 }
 0x15d   : > { %v1315_v22 = vadd.f32 %v1314_v23, %v9080_v39 }
 0x15e   : > { %v1158_v18 = vpop.f32.mrf.mxu0 }
 0x15f   : > { %v9168_v26 = vadd.f32 %v1393_v14, %v1315_v22  ;;  %v1159_v33 = vadd.f32 %v1158_v18, %v9071_v35 }
 0x160   : > { %v1395_v29 = vpop.f32.mrf.mxu3 }
 0x161   : > { %v8347_v6 = vpack.i.bf16 %v9168_v26, %v9164_v24  ;;  %v9179_v43 = vadd.f32 %v1237_v17, %v1159_v33 }
 0x162   : > { %v1240_v32 = vpop.f32.mrf.mxu1 }
 0x163   : > { %8348 = vrot.lane.b32.xlu0 %v8347_v6, %s8559_s29  ;;  %12709 = vst [vmem:[#allocation11_spill] sm:$0xff] %v9179_v43 }
 0x164   : > { %v1316_v7 = vpop.f32.mrf.mxu2 }
 0x165   : > { %v1317_v5 = vadd.f32 %v1316_v7, %v9080_v39  ;;  %6925 = vmatmul.msk.bf16.gmra.mxu1 %vm1091_vm5, %v849_v37  ;;  %6939 = vmatmul.msk.bf16.gmra.mxu3 %vm1091_vm5, %v849_v37 }
 0x166   : > { %v1161_v42 = vpop.f32.mrf.mxu0 }
 0x167   : > { %v9181_v34 = vadd.f32 %v1395_v29, %v1317_v5  ;;  %v1162_v50 = vadd.f32 %v1161_v42, %v9071_v35 }
 0x168   : > { %v1398_v28 = vpop.f32.mrf.mxu3 }
 0x169   : > { %1200 = vmatmul.bf16.gmra.mxu0 %v978_v45  ;;  %1358 = vmatmul.bf16.gmra.mxu2 %v978_v45  ;;  %v8352_v15 = vpack.i.bf16 %v9181_v34, %v9179_v43  ;;  %v9189_v59 = vadd.f32 %v1240_v32, %v1162_v50 }
 0x16a   : > { %v1242_v49 = vpop.f32.mrf.mxu1 }
 0x16b   : > { %8353 = vrot.lane.b32.xlu1 %v8352_v15, %s8559_s29 }
 0x16c   : > { %v1319_v53 = vpop.f32.mrf.mxu2 }
 0x16d   : > { %v1320_v55 = vadd.f32 %v1319_v53, %v9080_v39 }
 0x16e   : > { %v1163_v46 = vpop.f32.mrf.mxu0 }
 0x16f   : > { %v9191_v62 = vadd.f32 %v1398_v28, %v1320_v55  ;;  %v1164_v9 = vadd.f32 %v1163_v46, %v9071_v35 }
 0x170   : > { %v1400_v2 = vpop.f32.mrf.mxu3 }
 0x171   : > { %v8357_v3 = vpack.i.bf16 %v9191_v62, %v9189_v59  ;;  %v9198_v12 = vadd.f32 %v1242_v49, %v1164_v9 }
 0x172   : > { %v1245_v8 = vpop.f32.mrf.mxu1 }
 0x173   : > { %8358 = vrot.lane.b32.xlu2 %v8357_v3, %s8559_s29 }
 0x174   : > { %v1321_v10 = vpop.f32.mrf.mxu2 }
 0x175   : > { %v1322_v1 = vadd.f32 %v1321_v10, %v9080_v39 }
 0x176   : > { %v1166_v58 = vpop.f32.mrf.mxu0 }
 0x177   : > { %v9200_v14 = vadd.f32 %v1400_v2, %v1322_v1  ;;  %v1167_v23 = vadd.f32 %v1166_v58, %v9071_v35 }
 0x178   : > { %v1403_v16 = vpop.f32.mrf.mxu3 }
 0x179   : > { %v8362_v17 = vpack.i.bf16 %v9200_v14, %v9198_v12  ;;  %v9207_v13 = vadd.f32 %v1245_v8, %v1167_v23 }
 0x17a   : > { %v1247_v21 = vpop.f32.mrf.mxu1 }
 0x17b   : > { %8363 = vrot.lane.b32.xlu0 %v8362_v17, %s8559_s29 }
 0x17c   : > { %v1324_v22 = vpop.f32.mrf.mxu2 }
 0x17d   : > { %v1325_v18 = vadd.f32 %v1324_v22, %v9080_v39 }
 0x17e   : > { %v1168_v25 = vpop.f32.mrf.mxu0 }
 0x17f   : > { %v9209_v29 = vadd.f32 %v1403_v16, %v1325_v18  ;;  %v1169_v32 = vadd.f32 %v1168_v25, %v9071_v35 }
 0x180   : > { %v1405_v6 = vpop.f32.mrf.mxu3 }
 0x181   : > { %v8367_v30 = vpack.i.bf16 %v9209_v29, %v9207_v13  ;;  %v9216_v41 = vadd.f32 %v1247_v21, %v1169_v32 }
 0x182   : > { %v1250_v20 = vpop.f32.mrf.mxu1 }
 0x183   : > { %8368 = vrot.lane.b32.xlu1 %v8367_v30, %s8559_s29 }
 0x184   : > { %v1326_v33 = vpop.f32.mrf.mxu2 }
 0x185   : > { %v1327_v37 = vadd.f32 %v1326_v33, %v9080_v39 }
 0x186   : > { %v1171_v7 = vpop.f32.mrf.mxu0 }
 0x187   : > { %v9218_v5 = vadd.f32 %v1405_v6, %v1327_v37  ;;  %v1172_v15 = vadd.f32 %v1171_v7, %v9071_v35 }
 0x188   : > { %v1408_v42 = vpop.f32.mrf.mxu3 }
 0x189   : > { %v8372_v45 = vpack.i.bf16 %v9218_v5, %v9216_v41  ;;  %v9225_v55 = vadd.f32 %v1250_v20, %v1172_v15 }
 0x18a   : > { %v1252_v28 = vpop.f32.mrf.mxu1 }
 0x18b   : > { %8373 = vrot.lane.b32.xlu2 %v8372_v45, %s8559_s29 }
 0x18c   : > { %v1329_v49 = vpop.f32.mrf.mxu2 }
 0x18d   : > { %v1330_v50 = vadd.f32 %v1329_v49, %v9080_v39 }
 0x18e   : > { %v1173_v53 = vpop.f32.mrf.mxu0 }
 0x18f   : > { %v9227_v46 = vadd.f32 %v1408_v42, %v1330_v50  ;;  %v1174_v9 = vadd.f32 %v1173_v53, %v9071_v35 }
 0x190   : > { %v1410_v2 = vpop.f32.mrf.mxu3 }
 0x191   : > { %v8377_v3 = vpack.i.bf16 %v9227_v46, %v9225_v55  ;;  %v9234_v16 = vadd.f32 %v1252_v28, %v1174_v9 }
 0x192   : > { %v1255_v8 = vpop.f32.mrf.mxu1 }
 0x193   : > { %8378 = vrot.lane.b32.xlu2 %v8377_v3, %s8559_s29 }
 0x194   : > { %v1331_v10 = vpop.f32.mrf.mxu2 }
 0x195   : > { %v1332_v1 = vadd.f32 %v1331_v10, %v9080_v39 }
 0x196   : > { %v1176_v58 = vpop.f32.mrf.mxu0 }
 0x197   : > { %v9236_v17 = vadd.f32 %v1410_v2, %v1332_v1  ;;  %v1177_v18 = vadd.f32 %v1176_v58, %v9071_v35 }
 0x198   : > { %v1413_v21 = vpop.f32.mrf.mxu3 }
 0x199   : > { %v8382_v23 = vpack.i.bf16 %v9236_v17, %v9234_v16  ;;  %v9247_v20 = vadd.f32 %v1255_v8, %v1177_v18 }
 0x19a   : > { %v9240_v22 = vpop.f32.mrf.mxu1 }
 0x19b   : > { %8383 = vrot.lane.b32.xlu0 %v8382_v23, %s8559_s29 }
 0x19c   : > { %v1334_v25 = vpop.f32.mrf.mxu2 }
 0x19d   : > { %v1335_v6 = vadd.f32 %v1334_v25, %v9080_v39 }
 0x19e   : > { %v9245_v30 = vpop.f32.mrf.mxu0 }
 0x19f   : > { %v9249_v32 = vadd.f32 %v1413_v21, %v1335_v6 }
 0x1a0   : > { %v9251_v33 = vpop.f32.mrf.mxu3 }
 0x1a1   : > { %v8387_v37 = vpack.i.bf16 %v9249_v32, %v9247_v20 }
 0x1a2   : > { %v1260_v7 = vpop.f32.mrf.mxu1 }
 0x1a3   : > { %8388 = vrot.lane.b32.xlu1 %v8387_v37, %s8559_s29 }
 0x1a4   : > { %v9256_v42 = vpop.f32.mrf.mxu2 }
 0x1a6   : > { %v1181_v45 = vpop.f32.mrf.mxu0 }
 0x1a7   : > { %v1182_v28 = vadd.f32 %v1181_v45, %v9071_v35 }
 0x1a8   : > { %v1418_v15 = vpop.f32.mrf.mxu3 }
 0x1a9   : > { %v9259_v49 = vadd.f32 %v1260_v7, %v1182_v28 }
 0x1aa   : > { %v9261_v50 = vpop.f32.mrf.mxu1 }
 0x1ab   : > { %12710 = vst [vmem:[#allocation12_spill] sm:$0xff] %v9259_v49 }
 0x1ac   : > { %v1339_v53 = vpop.f32.mrf.mxu2 }
 0x1ad   : > { %v1340_v2 = vadd.f32 %v1339_v53, %v9080_v39 }
 0x1ae   : > { %v9264_v3 = vpop.f32.mrf.mxu0 }
 0x1af   : > { %v9266_v8 = vadd.f32 %v1418_v15, %v1340_v2 }
 0x1b0   : > { %v9268_v9 = vpop.f32.mrf.mxu3 }
 0x1b2   : > { %v1265_v10 = vpop.f32.mrf.mxu1 }
 0x1b4   : > { %v1341_v1 = vpop.f32.mrf.mxu2 }
 0x1b6   : > { %v1186_v58 = vpop.f32.mrf.mxu0 }
 0x1b7   : > { %v1187_v18 = vadd.f32 %v1186_v58, %v9071_v35 }
 0x1b8   : > { %v1423_v21 = vpop.f32.mrf.mxu3 }
 0x1b9   : > { %v9272_v7 = vadd.f32 %v1265_v10, %v1187_v18 }
 0x1ba   : > { %v1267_v23 = vpop.f32.mrf.mxu1 }
 0x1bb   : > { %12711 = vst [vmem:[#allocation13_spill] sm:$0xff] %v9272_v7 }
 0x1bc   : > { %v1344_v25 = vpop.f32.mrf.mxu2 }
 0x1bd   : > { %v1345_v6 = vadd.f32 %v1344_v25, %v9080_v39 }
 0x1be   : > { %v1188_v37 = vpop.f32.mrf.mxu0 }
 0x1bf   : > { %v9274_v45 = vadd.f32 %v1423_v21, %v1345_v6  ;;  %v1189_v53 = vadd.f32 %v1188_v37, %v9071_v35 }
 0x1c0   : > { %v1425_v28 = vpop.f32.mrf.mxu3 }
 0x1c1   : > { %12712 = vst [vmem:[#allocation14_spill] sm:$0xff] %v9274_v45  ;;  %v8392_v15 = vpack.i.bf16 %v9274_v45, %v9272_v7  ;;  %v9281_v43 = vadd.f32 %v1267_v23, %v1189_v53 }
 0x1c2   : > { %v1270_v2 = vpop.f32.mrf.mxu1 }
 0x1c3   : > { %8393 = vrot.lane.b32.xlu2 %v8392_v15, %s8559_s29  ;;  %12713 = vst [vmem:[#allocation15_spill] sm:$0xff] %v9281_v43 }
 0x1c4   : > { %v1346_v57 = vpop.f32.mrf.mxu2 }
 0x1c5   : > { %v1347_v58 = vadd.f32 %v1346_v57, %v9080_v39 }
 0x1c6   : > { %v1191_v60 = vpop.f32.mrf.mxu0 }
 0x1c7   : > { %v9283_v25 = vadd.f32 %v1425_v28, %v1347_v58  ;;  %v1192_v18 = vadd.f32 %v1191_v60, %v9071_v35 }
 0x1c8   : > { %v1428_v10 = vpop.f32.mrf.mxu3 }
 0x1c9   : > { %12714 = vst [vmem:[#allocation16_spill] sm:$0xff] %v9283_v25  ;;  %v8397_v21 = vpack.i.bf16 %v9283_v25, %v9281_v43  ;;  %v9290_v45 = vadd.f32 %v1270_v2, %v1192_v18 }
 0x1ca   : > { %v1272_v37 = vpop.f32.mrf.mxu1 }
 0x1cb   : > { %8398 = vrot.lane.b32.xlu0 %v8397_v21, %s8559_s29  ;;  %12715 = vst [vmem:[#allocation17_spill] sm:$0xff] %v9290_v45 }
 0x1cc   : > { %v1349_v6 = vpop.f32.mrf.mxu2 }
 0x1cd   : > { %v1350_v15 = vadd.f32 %v1349_v6, %v9080_v39 }
 0x1ce   : > { %v1193_v7 = vpop.f32.mrf.mxu0 }
 0x1cf   : > { %v9292_v57 = vadd.f32 %v1428_v10, %v1350_v15  ;;  %v1194_v53 = vadd.f32 %v1193_v7, %v9071_v35 }
 0x1d0   : > { %v1430_v23 = vpop.f32.mrf.mxu3 }
 0x1d1   : > { %v8402_v28 = vpack.i.bf16 %v9292_v57, %v9290_v45  ;;  %v9299_v43 = vadd.f32 %v1272_v37, %v1194_v53 }
 0x1d2   : > { %v1275_v6 = vpop.f32.mrf.mxu1 }
 0x1d3   : > { %8403 = vrot.lane.b32.xlu1 %v8402_v28, %s8559_s29  ;;  %12716 = vst [vmem:[#allocation18_spill] sm:$0xff] %v9299_v43 }
 0x1d4   : > { %v1351_v60 = vpop.f32.mrf.mxu2 }
 0x1d5   : > { %v1352_v58 = vadd.f32 %v1351_v60, %v9080_v39 }
 0x1d6   : > { %v1196_v21 = vpop.f32.mrf.mxu0 }
 0x1d7   : > { %v9301_v25 = vadd.f32 %v1430_v23, %v1352_v58  ;;  %v1197_v18 = vadd.f32 %v1196_v21, %v9071_v35 }
 0x1d8   : > { %v1433_v2 = vpop.f32.mrf.mxu3 }
 0x1d9   : > { %12717 = vst [vmem:[#allocation19_spill] sm:$0xff] %v9301_v25  ;;  %v8407_v10 = vpack.i.bf16 %v9301_v25, %v9299_v43  ;;  %v9308_v45 = vadd.f32 %v1275_v6, %v1197_v18  ;;  %v1342_v6 = vadd.f32 %v1341_v1, %v9080_v39  ;;  %v1184_v18 = vadd.f32 %v9264_v3, %v9071_v35 }
 0x1da   : > { %v1277_v37 = vpop.f32.mrf.mxu1 }
 0x1db   : > { %8408 = vrot.lane.b32.xlu2 %v8407_v10, %s8559_s29  ;;  %v9333_v1 = vadd.f32 %v9261_v50, %v1184_v18  ;;  %v1179_v50 = vadd.f32 %v9245_v30, %v9071_v35 }
 0x1dc   : > { %v1354_v7 = vpop.f32.mrf.mxu2 }
 0x1dd   : > { %v1355_v15 = vadd.f32 %v1354_v7, %v9080_v39 }
 0x1de   : > { %v1198_v28 = vpop.f32.mrf.mxu0 }
 0x1df   : > { %v9310_v60 = vadd.f32 %v1433_v2, %v1355_v15  ;;  %v1199_v58 = vadd.f32 %v1198_v28, %v9071_v35 }
 0x1e0   : > { %v1435_v53 = vpop.f32.mrf.mxu3 }
 0x1e1   : > { %v8412_v23 = vpack.i.bf16 %v9310_v60, %v9308_v45  ;;  %v9317_v25 = vadd.f32 %v1277_v37, %v1199_v58  ;;  %v9329_v37 = vadd.f32 %v9268_v9, %v1342_v6  ;;  %v1312_v6 = vadd.f32 %v9156_v11, %v9080_v39 }
 0x1e2   : > { %v1280_v15 = vpop.f32.mrf.mxu1 }
 0x1e3   : > { %8413 = vrot.lane.b32.xlu0 %v8412_v23, %s8559_s29  ;;  %v9359_v11 = vadd.f32 %v9150_v63, %v1312_v6  ;;  %v9377_v6 = vpop.permute.xlu1 %8343 }
 0x1e4   : > { %v1356_v21 = vpop.f32.mrf.mxu2 }
 0x1e5   : > { %v1357_v10 = vadd.f32 %v1356_v21, %v9080_v39 }
 0x1e6   : > { %v1201_v43 = vpop.f32.mrf.mxu0 }
 0x1e7   : > { %v9319_v7 = vadd.f32 %v1435_v53, %v1357_v10  ;;  %v1202_v28 = vadd.f32 %v1201_v43, %v9071_v35  ;;  %v1337_v43 = vadd.f32 %v9256_v42, %v9080_v39  ;;  %v1154_v42 = vadd.f32 %v9142_v56, %v9071_v35 }
 0x1e8   : > { %v1438_v23 = vpop.f32.mrf.mxu3 }
 0x1e9   : > { %v8417_v2 = vpack.i.bf16 %v9319_v7, %v9317_v25  ;;  %v9335_v58 = vadd.f32 %v1280_v15, %v1202_v28  ;;  %v9355_v28 = vadd.f32 %v9251_v33, %v1337_v43  ;;  %v9369_v56 = vadd.f32 %v9138_v51, %v1154_v42  ;;  %v8349_v51 = vpop.permute.xlu0 %8348 }
 0x1ea   : > { %v8437_v42 = vpack.i.bf16 %v9266_v8, %v9259_v49 }
 0x1eb   : > { %8418 = vrot.lane.b32.xlu1 %v8417_v2, %s8559_s29  ;;  %v8442_v2 = vpack.i.bf16 %v9329_v37, %v9333_v1  ;;  %v8427_v43 = vpack.i.bf16 %v9359_v11, %v9369_v56 }
 0x1ec   : > { %v1359_v21 = vpop.f32.mrf.mxu2 }
 0x1ed   : > { %v1360_v53 = vadd.f32 %v1359_v21, %v9080_v39  ;;  %v1282_v21 = vpop.f32.mrf.mxu1 }
 0x1ee   : > { %v1203_v3 = vpop.f32.mrf.mxu0 }
 0x1ef   : > { %v9337_v10 = vadd.f32 %v1438_v23, %v1360_v53  ;;  %v1204_v18 = vadd.f32 %v1203_v3, %v9071_v35  ;;  %v9362_v53 = vadd.f32 %v9240_v22, %v1179_v50  ;;  %v1307_v50 = vadd.f32 %v9132_v44, %v9080_v39 }
 0x1f0   : > { %v1440_v30 = vpop.f32.mrf.mxu3 }
 0x1f1   : > { %v8422_v9 = vpack.i.bf16 %v9337_v10, %v9335_v58  ;;  %v9364_v3 = vadd.f32 %v1282_v21, %v1204_v18  ;;  %v8457_v33 = vpack.i.bf16 %v9355_v28, %v9362_v53  ;;  %v8472_v18 = vpack.i.bf16 %v9085_v48, %v9078_v0  ;;  %v9392_v21 = vpop.permute.xlu1 %8353  ;;  %v9400_v44 = vpop.permute.xlu0 %8363 }
 0x1f2   : > { %v8350_v48 = vunpack.i.l.bf16 %v8349_v51 }
 0x1f3   : > { %8443 = vrot.lane.b32.xlu1 %v8442_v2, %s8559_s29  ;;  %8423 = vrot.lane.b32.xlu2 %v8422_v9, %s8559_s29  ;;  %v8359_v9 = vpop.permute.xlu2 %8358 }
 0x1f4   : > { %v1361_v15 = vpop.f32.mrf.mxu2 }
 0x1f5   : > { %v1362_v23 = vadd.f32 %v1361_v15, %v9080_v39  ;;  %v8447_v15 = vpack.i.bf16 %v9127_v38, %v9118_v61  ;;  %v9398_v39 = vadd.f32 %v9129_v40, %v1307_v50 }
 0x1f7   : > { %v9366_v2 = vadd.f32 %v1440_v30, %v1362_v23  ;;  %v1149_v23 = vadd.f32 %v9123_v36, %v9071_v35  ;;  %12718 = vst [vmem:[#allocation20_spill] sm:$0xff] %v9398_v39 }
 0x1f9   : > { %v8432_v63 = vpack.i.bf16 %v9366_v2, %v9364_v3  ;;  %v9403_v30 = vadd.f32 %v9120_v31, %v1149_v23 }
 0x1fb   : > { %8458 = vrot.lane.b32.xlu1 %v8457_v33, %s8559_s29  ;;  %8433 = vrot.lane.b32.xlu0 %v8432_v63, %s8559_s29  ;;  %v8374_v22 = vpop.permute.xlu2 %8373  ;;  %12719 = vst [vmem:[#allocation21_spill] sm:$0xff] %v9403_v30  ;;  %v8361_v33 = vunpack.i.h.bf16 %v8359_v9  ;;  %v8360_v63 = vunpack.i.l.bf16 %v8359_v9  ;;  %v8452_v35 = vpack.i.bf16 %v9398_v39, %v9403_v30  ;;  %v8351_v39 = vunpack.i.h.bf16 %v8349_v51 }
 0x1fc   : > { %8428 = vrot.lane.b32.xlu2 %v8427_v43, %s8559_s29  ;;  %v8462_v43 = vpack.i.bf16 %v9104_v54, %v9099_v4  ;;  %v8376_v49 = vunpack.i.h.bf16 %v8374_v22  ;;  %v8375_v4 = vunpack.i.l.bf16 %v8374_v22  ;;  %v8366_v22 = vunpack.i.h.bf16 %v9400_v44 }
 0x1fd   : > { %v9412_v31 = vmax.f32 %v9191_v62, %v8361_v33  ;;  %v1622_v9 = vsel %vm1611_vm9, %v8360_v63, %v8361_v33 }
 0x1fe   : > { %v9421_v62 = vmax.f32 %v9189_v59, %v1622_v9  ;;  %v1625_v59 = vsel %vm1611_vm9, %v8375_v4, %v8376_v49 }
 0x203   : > { %8473 = vrot.lane.b32.xlu1 %v8472_v18, %s8559_s29  ;;  %8438 = vrot.lane.b32.xlu0 %v8437_v42, %s8559_s29  ;;  %v8379_v36 = vpop.permute.xlu2 %8378  ;;  %v8369_v18 = vpop.permute.xlu1 %8368 }
 0x204   : > { %8448 = vrot.lane.b32.xlu2 %v8447_v15, %s8559_s29  ;;  %v8381_v40 = vunpack.i.h.bf16 %v8379_v36  ;;  %v8380_v50 = vunpack.i.l.bf16 %v8379_v36  ;;  %v8371_v15 = vunpack.i.h.bf16 %v8369_v18  ;;  %v8370_v23 = vunpack.i.l.bf16 %v8369_v18 }
 0x205   : > { %v8477_v36 = vpack.i.bf16 %v9095_v47, %v9088_v52 }
 0x206   : > { %v1626_v33 = vsel %vm1611_vm9, %v8380_v50, %v8381_v40  ;;  %v1624_v63 = vsel %vm1611_vm9, %v8370_v23, %v8371_v15  ;;  %v1725_v50 = vmax.f32 %v9227_v46, %v8381_v40  ;;  %v1721_v9 = vmax.f32 %v9209_v29, %v8371_v15 }
 0x207   : > { %v1722_v15 = vmax.f32 %v9216_v41, %v1625_v59  ;;  %v1719_v41 = vmax.f32 %v9200_v14, %v8366_v22  ;;  %v12721_v14 = vld [vmem:[#allocation11_spill] sm:$0xff] }
 0x209   : > { %v1853_v52 = vrot.slane %v1719_v41, 1 }
 0x20b   : > { %8453 = vrot.lane.b32.xlu0 %v8452_v35, %s8559_s29 }
 0x20c   : > { %8463 = vrot.lane.b32.xlu2 %v8462_v43, %s8559_s29  ;;  %v8467_v43 = vpack.i.bf16 %v9114_v27, %v9107_v19  ;;  %v9432_v19 = vmax.f32 %v9168_v26, %v8351_v39  ;;  %v1720_v26 = vmax.f32 %v9207_v13, %v1624_v63 }
 0x20d   : > { %v8384_v42 = vpop.permute.xlu0 %8383 }
 0x20e   : > { %v8386_v0 = vunpack.i.h.bf16 %v8384_v42  ;;  %v8385_v30 = vunpack.i.l.bf16 %v8384_v42 }
 0x210   : > { %v1627_v35 = vsel %vm1611_vm9, %v8385_v30, %v8386_v0  ;;  %v1727_v18 = vmax.f32 %v9236_v17, %v8386_v0  ;;  %v8365_v30 = vunpack.i.l.bf16 %v9400_v44  ;;  %v1620_v0 = vsel %vm1611_vm9, %v8350_v48, %v8351_v39 }
 0x211   : > { %v1726_v42 = vmax.f32 %v9234_v16, %v1627_v35  ;;  %v8356_v17 = vunpack.i.h.bf16 %v9392_v21  ;;  %v8355_v44 = vunpack.i.l.bf16 %v9392_v21  ;;  %v1724_v16 = vmax.f32 %v9225_v55, %v1626_v33 }
 0x212   : > { %v1723_v35 = vmax.f32 %v9218_v5, %v8376_v49  ;;  %v1869_v4 = vrot.slane %v1727_v18, 1  ;;  %v1623_v29 = vsel %vm1611_vm9, %v8365_v30, %v8366_v22  ;;  %v9447_v48 = vmax.f32 %v9164_v24, %v1620_v0 }
 0x213   : > { %8468 = vrot.lane.b32.xlu0 %v8467_v43, %s8559_s29  ;;  %v1867_v40 = vrot.slane %v1726_v42, 1  ;;  %v1865_v39 = vrot.slane %v1725_v50, 1  ;;  %v1857_v21 = vrot.slane %v1721_v9, 1  ;;  %v1621_v5 = vsel %vm1611_vm9, %v8355_v44, %v8356_v17 }
 0x214   : > { %8478 = vrot.lane.b32.xlu2 %v8477_v36, %s8559_s29  ;;  %v1863_v49 = vrot.slane %v1724_v16, 1  ;;  %v1855_v33 = vrot.slane %v1720_v26, 1  ;;  %v1861_v63 = vrot.slane %v1723_v35, 1  ;;  %v1859_v0 = vrot.slane %v1722_v15, 1 }
 0x215   : > { %v8389_v23 = vpop.permute.xlu1 %8388  ;;  %v1870_v30 = vsel %vm654_vm3, %v1865_v39, %v1869_v4  ;;  %v1715_v44 = vmax.f32 %v9181_v34, %v8356_v17  ;;  %v1714_v22 = vmax.f32 %v12721_v14, %v1621_v5 }
 0x216   : > { %v8391_v43 = vunpack.i.h.bf16 %v8389_v23  ;;  %v8390_v46 = vunpack.i.l.bf16 %v8389_v23  ;;  %v1868_v59 = vsel %vm654_vm3, %v1863_v49, %v1867_v40  ;;  %v1718_v23 = vmax.f32 %v9198_v12, %v1623_v29 }
 0x217   : > { %v1860_v27 = vsel %vm654_vm3, %v1855_v33, %v1859_v0  ;;  %v2003_v12 = vmax.f32 %v1724_v16, %v1868_v59  ;;  %v1866_v34 = vsel %vm654_vm3, %v1861_v63, %v1865_v39  ;;  %v1845_v47 = vrot.slane %v1715_v44, 1 }
 0x218   : > { %v9450_v36 = vmax.f32 %v9249_v32, %v8391_v43  ;;  %v1628_v13 = vsel %vm1611_vm9, %v8390_v46, %v8391_v43  ;;  %v1862_v43 = vsel %vm654_vm3, %v1857_v21, %v1861_v63  ;;  %v2004_v46 = vmax.f32 %v1725_v50, %v1870_v30 }
 0x219   : > { %v9455_v55 = vmax.f32 %v9247_v20, %v1628_v13  ;;  %v1999_v50 = vmax.f32 %v1720_v26, %v1860_v27  ;;  %v2002_v30 = vmax.f32 %v1723_v35, %v1866_v34  ;;  %v1843_v16 = vrot.slane %v1714_v22, 1 }
 0x21a   : > { %12720 = vst [vmem:[#allocation22_spill] sm:$0xff] %v9450_v36  ;;  %v12660_v24 = vrot.slane %v9450_v36, 1  ;;  %v2000_v36 = vmax.f32 %v1721_v9, %v1862_v43  ;;  %v1841_v39 = vrot.slane %v9432_v19, 1  ;;  %v1839_v26 = vrot.slane %v9447_v48, 1 }
 0x21b   : > { %v1871_v32 = vrot.slane %v9455_v55, 1 }
 0x21c   : > { %v1874_v20 = vsel %vm654_vm3, %v1869_v4, %v12660_v24  ;;  %v1864_v4 = vsel %vm654_vm3, %v1859_v0, %v1863_v49  ;;  %v1851_v24 = vrot.slane %v1718_v23, 1  ;;  %v2056_v49 = vpack.c.bf16 %v2002_v30, %v2000_v36 }
 0x21d   : > { %v2006_v13 = vmax.f32 %v1727_v18, %v1874_v20  ;;  %v1872_v51 = vsel %vm654_vm3, %v1867_v40, %v1871_v32  ;;  %v1858_v18 = vsel %vm654_vm3, %v1853_v52, %v1857_v21  ;;  %v1847_v40 = vrot.slane %v9421_v62, 1 }
 0x21e   : > { %v2005_v29 = vmax.f32 %v1726_v42, %v1872_v51  ;;  %v1856_v20 = vsel %vm654_vm3, %v1851_v24, %v1855_v33  ;;  %v2001_v51 = vmax.f32 %v1722_v15, %v1864_v4  ;;  %v12722_v42 = vrot.slane %v9412_v31, 1 }
 0x21f   : > { %v2058_v17 = vpack.c.bf16 %v2006_v13, %v2004_v46  ;;  %v1998_v63 = vmax.f32 %v1719_v41, %v1858_v18  ;;  %v1852_v27 = vsel %vm654_vm3, %v1847_v40, %v1851_v24  ;;  %v1997_v21 = vmax.f32 %v1718_v23, %v1856_v20  ;;  %v12724_v20 = vld [vmem:[#allocation10_spill] sm:$0xff] }
 0x220   : > { %v2057_v5 = vpack.c.bf16 %v2005_v29, %v2003_v12  ;;  %v1854_v9 = vsel %vm654_vm3, %v12722_v42, %v1853_v52  ;;  %v2055_v35 = vpack.c.bf16 %v2001_v51, %v1999_v50  ;;  %v1846_v33 = vsel %vm654_vm3, %v1841_v39, %v1845_v47  ;;  %v8394_v12 = vpop.permute.xlu2 %8393  ;;  %v12725_v51 = vld [vmem:[#allocation9_spill] sm:$0xff] }
 0x221   : > { %2231 = vmatpush.bf16.msrb.mxu0 %v2058_v17  ;;  %v12723_v15 = vmov %v12722_v42  ;;  %v1996_v52 = vmax.f32 %v9412_v31, %v1854_v9  ;;  %v1844_v36 = vsel %vm654_vm3, %v1839_v26, %v1843_v16  ;;  %v1848_v41 = vsel %vm654_vm3, %v1843_v16, %v1847_v40 }
 0x222   : > { %2153 = vmatpush.bf16.msrb.mxu1 %v2057_v5  ;;  %v1850_v59 = vsel %vm654_vm3, %v1845_v47, %v12723_v15  ;;  %v1995_v24 = vmax.f32 %v9421_v62, %v1852_v27  ;;  %v1992_v23 = vmax.f32 %v9432_v19, %v1846_v33  ;;  %v1991_v46 = vmax.f32 %v9447_v48, %v1844_v36 }
 0x223   : > { %v2054_v0 = vpack.c.bf16 %v1998_v63, %v1996_v52  ;;  %v1994_v43 = vmax.f32 %v1715_v44, %v1850_v59  ;;  %v1993_v47 = vmax.f32 %v1714_v22, %v1848_v41  ;;  %v8346_v62 = vunpack.i.h.bf16 %v9377_v6 }
 0x224   : > { %v2053_v14 = vpack.c.bf16 %v1997_v21, %v1995_v24  ;;  %v8345_v17 = vunpack.i.l.bf16 %v9377_v6  ;;  %v8396_v50 = vunpack.i.h.bf16 %v8394_v12  ;;  %v8395_v22 = vunpack.i.l.bf16 %v8394_v12  ;;  %v12728_v12 = vld [vmem:[#allocation13_spill] sm:$0xff] }
 0x225   : > { %2232 = vmatpush.bf16.msrb.mxu0 %v2056_v49  ;;  %v2052_v31 = vpack.c.bf16 %v1994_v43, %v1992_v23  ;;  %v2051_v13 = vpack.c.bf16 %v1993_v47, %v1991_v46  ;;  %v9504_v16 = vmax.f32 %v12724_v20, %v8346_v62  ;;  %v12727_v43 = vld [vmem:[#allocation16_spill] sm:$0xff] }
 0x226   : > { %2154 = vmatpush.bf16.msrb.mxu1 %v2055_v35  ;;  %v1618_v5 = vsel %vm1611_vm9, %v8345_v17, %v8346_v62  ;;  %v1632_v21 = vsel %vm1611_vm9, %v8395_v22, %v8396_v50 }
 0x227   : > { %v9507_v42 = vmax.f32 %v12725_v51, %v1618_v5  ;;  %v1833_v36 = vrot.slane %v9504_v16, 1 }
 0x229   : > { %2233 = vmatpush.bf16.msrb.mxu0 %v2054_v0  ;;  %v1831_v24 = vrot.slane %v9507_v42, 1  ;;  %v12726_v0 = vld [vmem:[#allocation14_spill] sm:$0xff] }
 0x22a   : > { %2155 = vmatpush.bf16.msrb.mxu1 %v2053_v14  ;;  %v9517_v23 = vmax.f32 %v12726_v0, %v8396_v50 }
 0x22d   : > { %2234 = vmatpush.bf16.msrb.mxu0 %v2052_v31 }
 0x22e   : > { %2156 = vmatpush.bf16.msrb.mxu1 %v2051_v13 }
 0x235   : > { %v8409_v29 = vpop.permute.xlu2 %8408 }
 0x236   : > { %v8411_v6 = vunpack.i.h.bf16 %v8409_v29  ;;  %v8410_v35 = vunpack.i.l.bf16 %v8409_v29  ;;  %v9525_v29 = vmax.f32 %v12728_v12, %v1632_v21 }
 0x238   : > { %v1635_v47 = vsel %vm1611_vm9, %v8410_v35, %v8411_v6 }
 0x23d   : > { %v8399_v4 = vpop.permute.xlu0 %8398 }
 0x23e   : > { %v8401_v9 = vunpack.i.h.bf16 %v8399_v4  ;;  %v8400_v49 = vunpack.i.l.bf16 %v8399_v4 }
 0x240   : > { %v9520_v14 = vmax.f32 %v12727_v43, %v8401_v9  ;;  %v1633_v46 = vsel %vm1611_vm9, %v8400_v49, %v8401_v9 }
 0x245   : > { %v8404_v44 = vpop.permute.xlu1 %8403 }
 0x246   : > { %v8406_v18 = vunpack.i.h.bf16 %v8404_v44  ;;  %v8405_v30 = vunpack.i.l.bf16 %v8404_v44  ;;  %v12729_v44 = vld [vmem:[#allocation17_spill] sm:$0xff] }
 0x248   : > { %v1634_v52 = vsel %vm1611_vm9, %v8405_v30, %v8406_v18 }
 0x249   : > { %v9537_v5 = vmax.f32 %v12729_v44, %v1634_v52 }
 0x24d   : > { %v9498_v34 = vpop.permute.xlu2 %8423 }
 0x255   : > { %v8414_v59 = vpop.permute.xlu0 %8413 }
 0x256   : > { %v8429_v40 = vpop.permute.xlu2 %8428  ;;  %v8416_v31 = vunpack.i.h.bf16 %v8414_v59  ;;  %v8415_v50 = vunpack.i.l.bf16 %v8414_v59  ;;  %v1895_v59 = vrot.slane %v9537_v5, 1 }
 0x257   : > { %v8431_v63 = vunpack.i.h.bf16 %v8429_v40  ;;  %v8430_v27 = vunpack.i.l.bf16 %v8429_v40  ;;  %v12730_v40 = vld [vmem:[#allocation15_spill] sm:$0xff] }
 0x258   : > { %v1738_v20 = vmax.f32 %v12730_v40, %v1633_v46  ;;  %v9553_v49 = vmax.f32 %v9310_v60, %v8416_v31  ;;  %v1636_v48 = vsel %vm1611_vm9, %v8415_v50, %v8416_v31 }
 0x259   : > { %v1711_v33 = vmax.f32 %v9359_v11, %v8431_v63  ;;  %v1619_v15 = vsel %vm1611_vm9, %v8430_v27, %v8431_v63  ;;  %v9573_v12 = vmax.f32 %v9308_v45, %v1636_v48 }
 0x25a   : > { %v1710_v41 = vmax.f32 %v9369_v56, %v1619_v15  ;;  %v9528_v56 = vmax.f32 %v9292_v57, %v8406_v18  ;;  %v1889_v57 = vrot.slane %v9517_v23, 1  ;;  %v1893_v18 = vrot.slane %v9520_v14, 1 }
 0x25b   : > { %v1837_v11 = vrot.slane %v1711_v33, 1  ;;  %v1905_v31 = vrot.slane %v9553_v49, 1 }
 0x25c   : > { %v1835_v13 = vrot.slane %v1710_v41, 1  ;;  %v1897_v35 = vrot.slane %v9528_v56, 1  ;;  %v1894_v46 = vsel %vm654_vm3, %v1889_v57, %v1893_v18 }
 0x25d   : > { %v8419_v62 = vpop.permute.xlu1 %8418  ;;  %v1838_v17 = vsel %vm654_vm3, %v1833_v36, %v1837_v11  ;;  %v1842_v4 = vsel %vm654_vm3, %v1837_v11, %v1841_v39  ;;  %v12731_v39 = vld [vmem:[#allocation19_spill] sm:$0xff]  ;;  %v8426_v11 = vunpack.i.h.bf16 %v9498_v34 }
 0x25e   : > { %v1988_v22 = vmax.f32 %v9504_v16, %v1838_v17  ;;  %v1990_v30 = vmax.f32 %v1711_v33, %v1842_v4  ;;  %v1836_v51 = vsel %vm654_vm3, %v1831_v24, %v1835_v13  ;;  %v1840_v19 = vsel %vm654_vm3, %v1835_v13, %v1839_v26  ;;  %v12732_v33 = vld [vmem:[#allocation18_spill] sm:$0xff]  ;;  %v8449_v0 = vpop.permute.xlu2 %8448 }
 0x25f   : > { %v9550_v9 = vmax.f32 %v12731_v39, %v8411_v6  ;;  %v1987_v27 = vmax.f32 %v9507_v42, %v1836_v51  ;;  %v1989_v21 = vmax.f32 %v1710_v41, %v1840_v19  ;;  %v9558_v15 = vmax.f32 %v12732_v33, %v1635_v47 }
 0x260   : > { %v2050_v63 = vpack.c.bf16 %v1990_v30, %v1988_v22  ;;  %v1887_v26 = vrot.slane %v9525_v29, 1  ;;  %v1891_v6 = vrot.slane %v1738_v20, 1  ;;  %v8421_v52 = vunpack.i.h.bf16 %v8419_v62 }
 0x261   : > { %v8420_v60 = vunpack.i.l.bf16 %v8419_v62  ;;  %v2049_v43 = vpack.c.bf16 %v1989_v21, %v1987_v27  ;;  %v1901_v41 = vrot.slane %v9550_v9, 1  ;;  %v8425_v47 = vunpack.i.l.bf16 %v9498_v34 }
 0x262   : > { %2235 = vmatpush.bf16.msrb.mxu0 %v2050_v63  ;;  %v1899_v62 = vrot.slane %v9558_v15, 1  ;;  %v1898_v17 = vsel %vm654_vm3, %v1893_v18, %v1897_v35  ;;  %v1896_v4 = vsel %vm654_vm3, %v1891_v6, %v1895_v59  ;;  %v8451_v44 = vunpack.i.h.bf16 %v8449_v0 }
 0x263   : > { %2157 = vmatpush.bf16.msrb.mxu1 %v2049_v43  ;;  %v8450_v50 = vunpack.i.l.bf16 %v8449_v0  ;;  %v2016_v22 = vmax.f32 %v9517_v23, %v1894_v46  ;;  %v1892_v34 = vsel %vm654_vm3, %v1887_v26, %v1891_v6  ;;  %v9583_v30 = vmax.f32 %v9319_v7, %v8421_v52 }
 0x264   : > { %v1637_v45 = vsel %vm1611_vm9, %v8420_v60, %v8421_v52  ;;  %v1902_v40 = vsel %vm654_vm3, %v1897_v35, %v1901_v41  ;;  %v9588_v51 = vsel %vm654_vm3, %v1895_v59, %v1899_v62  ;;  %v1638_v18 = vsel %vm1611_vm9, %v8425_v47, %v8426_v11 }
 0x265   : > { %v9570_v13 = vpop.permute.xlu1 %8443  ;;  %v1906_v19 = vsel %vm654_vm3, %v1901_v41, %v1905_v31  ;;  %v2018_v39 = vmax.f32 %v9520_v14, %v1898_v17  ;;  %v2017_v63 = vmax.f32 %v1738_v20, %v1896_v4  ;;  %v1903_v27 = vrot.slane %v9573_v12, 1 }
 0x266   : > { %v2015_v7 = vmax.f32 %v9525_v29, %v1892_v34  ;;  %v1749_v21 = vmax.f32 %v9337_v10, %v8426_v11  ;;  %v1616_v33 = vsel %vm1611_vm9, %v8450_v50, %v8451_v44  ;;  %v9598_v35 = vmax.f32 %v9317_v25, %v1637_v45  ;;  %v8464_v41 = vpop.permute.xlu2 %8463 }
 0x267   : > { %v2020_v59 = vmax.f32 %v9528_v56, %v1902_v40  ;;  %v9602_v48 = vmax.f32 %v9335_v58, %v1638_v18  ;;  %v1909_v14 = vrot.slane %v9583_v30, 1  ;;  %v2022_v20 = vmax.f32 %v9550_v9, %v1906_v19 }
 0x268   : > { %v2019_v6 = vmax.f32 %v9537_v5, %v9588_v51  ;;  %v9609_v52 = vmax.f32 %v9127_v38, %v8451_v44  ;;  %v12662_v10 = vmov 65535   ;;  %v9613_v60 = vpack.c.bf16 %v2018_v39, %v2016_v22 }
 0x269   : > { %v2145_v25 = vsel %vm2144_vm10, 4294967295, %v12662_v10  ;;  %v9615_v56 = vpack.c.bf16 %v2017_v63, %v2015_v7  ;;  %v8446_v58 = vunpack.i.h.bf16 %v9570_v13  ;;  %v8445_v0 = vunpack.i.l.bf16 %v9570_v13 }
 0x26a   : > { %v9620_v9 = vsel %vm654_vm3, %v1899_v62, %v1903_v27  ;;  %v9623_v46 = vmax.f32 %v9118_v61, %v1616_v33  ;;  %v1913_v38 = vrot.slane %v1749_v21, 1  ;;  %v1907_v4 = vrot.slane %v9598_v35, 1 }
 0x26b   : > { %v1911_v44 = vrot.slane %v9602_v48, 1  ;;  %v9628_v50 = vsel %vm794_vm2, %v2145_v25, 0  ;;  %v1910_v13 = vsel %vm654_vm3, %v1905_v31, %v1909_v14  ;;  %v9631_v22 = vpack.c.bf16 %v2022_v20, %v2020_v59 }
 0x26c   : > { %12733 = vst [vmem:[#allocation11_spill] sm:$0xff] %v9628_v50  ;;  %v1825_v62 = vrot.slane %v9609_v52, 1  ;;  %v2021_v45 = vmax.f32 %v9558_v15, %v9620_v9  ;;  %v1631_v40 = vsel %vm1611_vm9, %v8445_v0, %v8446_v58  ;;  %v1914_v19 = vsel %vm654_vm3, %v1909_v14, %v1913_v38 }
 0x26d   : > { %v8434_v43 = vpop.permute.xlu0 %8433  ;;  %v8459_v11 = vpop.permute.xlu1 %8458  ;;  %v1823_v39 = vrot.slane %v9623_v46, 1  ;;  %v8466_v31 = vunpack.i.h.bf16 %v8464_v41  ;;  %v2024_v7 = vmax.f32 %v9553_v49, %v1910_v13  ;;  %v1908_v33 = vsel %vm654_vm3, %v1903_v27, %v1907_v4 }
 0x26e   : > { %v8436_v47 = vunpack.i.h.bf16 %v8434_v43  ;;  %v8435_v17 = vunpack.i.l.bf16 %v8434_v43  ;;  %v8461_v59 = vunpack.i.h.bf16 %v8459_v11  ;;  %v8460_v20 = vunpack.i.l.bf16 %v8459_v11 }
 0x26f   : > { %v9645_v15 = vmax.f32 %v9329_v37, %v8446_v58  ;;  %v9649_v14 = vmax.f32 %v9333_v1, %v1631_v40  ;;  %v1912_v27 = vsel %vm654_vm3, %v1907_v4, %v1911_v44  ;;  %v2026_v11 = vmax.f32 %v9583_v30, %v1914_v19 }
 0x270   : > { %v1751_v61 = vmax.f32 %v9366_v2, %v8436_v47  ;;  %v1639_v34 = vsel %vm1611_vm9, %v8435_v17, %v8436_v47  ;;  %v8465_v2 = vunpack.i.l.bf16 %v8464_v41  ;;  %v2023_v37 = vmax.f32 %v9573_v12, %v1908_v33 }
 0x271   : > { %v1750_v18 = vmax.f32 %v9364_v3, %v1639_v34  ;;  %v8479_v34 = vpop.permute.xlu2 %8478  ;;  %v1883_v30 = vrot.slane %v9649_v14, 1 }
 0x272   : > { %v1917_v63 = vrot.slane %v1751_v61, 1  ;;  %v1614_v58 = vsel %vm1611_vm9, %v8465_v2, %v8466_v31  ;;  %v8480_v2 = vunpack.i.l.bf16 %v8479_v34 }
 0x273   : > { %v1915_v25 = vrot.slane %v1750_v18, 1  ;;  %v9695_v5 = vsel %vm654_vm3, %v1883_v30, %v1887_v26 }
 0x274   : > { %v1918_v0 = vsel %vm654_vm3, %v1913_v38, %v1917_v63  ;;  %v2030_v3 = vmax.f32 %v1751_v61, %v1917_v63  ;;  %v1629_v38 = vsel %vm1611_vm9, %v8460_v20, %v8461_v59  ;;  %v9660_v61 = vmax.f32 %v9104_v54, %v8466_v31  ;;  %v12734_v31 = vld [vmem:[#allocation6_spill] sm:$0xff] }
 0x275   : > { %v8439_v43 = vpop.permute.xlu0 %8438  ;;  %v2028_v9 = vmax.f32 %v1749_v21, %v1918_v0  ;;  %v1916_v47 = vsel %vm654_vm3, %v1911_v44, %v1915_v25  ;;  %v2029_v49 = vmax.f32 %v1750_v18, %v1915_v25  ;;  %v1885_v21 = vrot.slane %v9645_v15, 1  ;;  %v8474_v4 = vpop.permute.xlu1 %8473 }
 0x276   : > { %v8441_v41 = vunpack.i.h.bf16 %v8439_v43  ;;  %v8440_v17 = vunpack.i.l.bf16 %v8439_v43  ;;  %v2027_v1 = vmax.f32 %v9602_v48, %v1916_v47  ;;  %v2025_v44 = vmax.f32 %v9598_v35, %v1912_v27  ;;  %v12736_v47 = vld [vmem:[#allocation3_spill] sm:$0xff] }
 0x277   : > { %v2070_v13 = vpack.c.bf16 %v2030_v3, %v2028_v9  ;;  %v9670_v48 = vmax.f32 %v9355_v28, %v8461_v59  ;;  %v2068_v63 = vpack.c.bf16 %v2026_v11, %v2024_v7  ;;  %v9673_v54 = vmax.f32 %v9362_v53, %v1629_v38  ;;  %v12735_v53 = vld [vmem:[#allocation12_spill] sm:$0xff] }
 0x278   : > { %v9665_v12 = vmax.f32 %v9266_v8, %v8441_v41  ;;  %v1630_v40 = vsel %vm1611_vm9, %v8440_v17, %v8441_v41  ;;  %v2069_v19 = vpack.c.bf16 %v2029_v49, %v2027_v1  ;;  %v9676_v33 = vmax.f32 %v12734_v31, %v1614_v58  ;;  %v12737_v41 = vld [vmem:[#allocation20_spill] sm:$0xff]  ;;  %v12738_v58 = vld [vmem:[#allocation5_spill] sm:$0xff] }
 0x279   : > { %v2151_v18 = vand.u32 %v9628_v50, %v2070_v13  ;;  %v8481_v35 = vunpack.i.h.bf16 %v8479_v34  ;;  %v8476_v20 = vunpack.i.h.bf16 %v8474_v4  ;;  %v8475_v25 = vunpack.i.l.bf16 %v8474_v4  ;;  %v12739_v13 = vld [vmem:[#allocation21_spill] sm:$0xff] }
 0x27a   : > { %v2148_v8 = vand.u32 %v9628_v50, %v2069_v19  ;;  %v2065_v0 = vpack.c.bf16 %v2021_v45, %v2019_v6  ;;  %v9685_v28 = vsel %vm654_vm3, %v1885_v21, %v1889_v57  ;;  %v9688_v7 = vmax.f32 %v12735_v53, %v1630_v40 }
 0x27b   : > { %2272 = vmatpush.bf16.msrb.mxu2 %v2151_v18  ;;  %v1817_v59 = vrot.slane %v9660_v61, 1  ;;  %v1881_v3 = vrot.slane %v9665_v12, 1  ;;  %v2067_v9 = vpack.c.bf16 %v2025_v44, %v2023_v37  ;;  %v1877_v23 = vrot.slane %v9670_v48, 1  ;;  %v12740_v44 = vld [vmem:[#allocation22_spill] sm:$0xff] }
 0x27c   : > { %2194 = vmatpush.bf16.msrb.mxu3 %v2148_v8  ;;  %v1875_v6 = vrot.slane %v9673_v54, 1  ;;  %v1613_v45 = vsel %vm1611_vm9, %v8480_v2, %v8481_v35  ;;  %v9701_v49 = vmax.f32 %v12736_v47, %v8476_v20  ;;  %v2014_v27 = vmax.f32 %v9645_v15, %v9685_v28  ;;  %v12743_v2 = vld [vmem:[#allocation2_spill] sm:$0xff] }
 0x27d   : > { %v8454_v43 = vpop.permute.xlu0 %8453  ;;  %v1815_v29 = vrot.slane %v9676_v33, 1  ;;  %v1612_v26 = vsel %vm1611_vm9, %v8475_v25, %v8476_v20  ;;  %v1879_v37 = vrot.slane %v9688_v7, 1  ;;  %v9711_v38 = vmax.f32 %v12738_v58, %v8481_v35 }
 0x27e   : > { %v8456_v51 = vunpack.i.h.bf16 %v8454_v43  ;;  %v8455_v57 = vunpack.i.l.bf16 %v8454_v43  ;;  %v1886_v34 = vsel %vm654_vm3, %v1881_v3, %v1885_v21  ;;  %v2013_v15 = vmax.f32 %v9649_v14, %v9695_v5 }
 0x27f   : > { %2273 = vmatpush.bf16.msrb.mxu2 %v2068_v63  ;;  %v12741_v40 = vrot.slane %v12740_v44, 1  ;;  %v9723_v19 = vsel %vm654_vm3, %v1871_v32, %v1875_v6  ;;  %v12742_v63 = vld [vmem:[#allocation4_spill] sm:$0xff]  ;;  %v1812_v35 = vrot.slane %v9701_v49, 1  ;;  %v1882_v14 = vsel %vm654_vm3, %v1877_v23, %v1881_v3 }
 0x280   : > { %v1707_v17 = vmax.f32 %v12737_v41, %v8456_v51  ;;  %v1617_v11 = vsel %vm1611_vm9, %v8455_v57, %v8456_v51  ;;  %2195 = vmatpush.bf16.msrb.mxu3 %v2067_v9  ;;  %v9726_v31 = vmax.f32 %v12742_v63, %v1613_v45  ;;  %v9732_v20 = vmax.f32 %v12743_v2, %v1612_v26  ;;  %v12744_v57 = vld [vmem:[#allocation8_spill] sm:$0xff] }
 0x281   : > { %v1706_v1 = vmax.f32 %v12739_v13, %v1617_v11  ;;  %v1878_v18 = vsel %vm654_vm3, %v12741_v40, %v1877_v23  ;;  %v2012_v25 = vmax.f32 %v9665_v12, %v1886_v34  ;;  %v1884_v28 = vsel %vm654_vm3, %v1879_v37, %v1883_v30  ;;  %v8049_v30 = vld [vmem:[%s12633_s7 + $0x4] sm:$0xf]  ;;  %v12745_v11 = vld [vmem:[#allocation7_spill] sm:$0xff] }
 0x282   : > { %v1829_v4 = vrot.slane %v1707_v17, 1  ;;  %v2011_v42 = vmax.f32 %v9688_v7, %v1884_v28  ;;  %v1809_v51 = vrot.slane %v9732_v20, 1  ;;  %v1880_v41 = vsel %vm654_vm3, %v1875_v6, %v1879_v37  ;;  %v8052_v28 = vld [vmem:[%s12633_s7 + $0x14] sm:$0xf0] }
 0x283   : > { %2274 = vmatpush.bf16.msrb.mxu2 %v9631_v22  ;;  %v1827_v21 = vrot.slane %v1706_v1, 1  ;;  %v1810_v34 = vrot.slane %v9726_v31, 1  ;;  %v2009_v37 = vmax.f32 %v9673_v54, %v1880_v41  ;;  %v8059_v41 = vld [vmem:[%s12633_s7 + $0x54] sm:$0xf] }
 0x284   : > { %v1830_v8 = vsel %vm654_vm3, %v1825_v62, %v1829_v4  ;;  %v1834_v32 = vsel %vm654_vm3, %v1829_v4, %v1833_v36  ;;  %2196 = vmatpush.bf16.msrb.mxu3 %v2065_v0  ;;  %v6944_v0 = vld [vmem:[%s12633_s7 + $0x8] sm:$0xf0]  ;;  %v2061_v6 = vpack.c.bf16 %v2013_v15, %v2011_v42 }
 0x285   : > { %v8469_v22 = vpop.permute.xlu0 %8468  ;;  %v1984_v53 = vmax.f32 %v9609_v52, %v1830_v8  ;;  %v1986_v3 = vmax.f32 %v1707_v17, %v1834_v32  ;;  %v1828_v43 = vsel %vm654_vm3, %v1823_v39, %v1827_v21  ;;  %v1832_v9 = vsel %vm654_vm3, %v1827_v21, %v1831_v24  ;;  %v6952_v32 = vld [vmem:[%s12633_s7 + $0x18] sm:$0xf0] }
 0x286   : > { %v8471_v16 = vunpack.i.h.bf16 %v8469_v22  ;;  %v8470_v5 = vunpack.i.l.bf16 %v8469_v22  ;;  %v1983_v36 = vmax.f32 %v9623_v46, %v1828_v43  ;;  %v1985_v12 = vmax.f32 %v1706_v1, %v1832_v9  ;;  %v6958_v9 = vld [vmem:[%s12633_s7 + $0x20] sm:$0xf] }
 0x287   : > { %2275 = vmatpush.bf16.msrb.mxu2 %v9613_v60  ;;  %v2048_v23 = vpack.c.bf16 %v1986_v3, %v1984_v53  ;;  %v2010_v24 = vmax.f32 %v9670_v48, %v1882_v14  ;;  %v1813_v17 = vrot.slane %v9711_v38, 1  ;;  %v2062_v60 = vpack.c.bf16 %v2014_v27, %v2012_v25  ;;  %v8053_v53 = vld [vmem:[%s12633_s7 + $0x24] sm:$0xf]  ;;  %v6960_v3 = vld [vmem:[%s12633_s7 + $0x28] sm:$0xf0] }
 0x288   : > { %v1703_v45 = vmax.f32 %v12744_v57, %v8471_v16  ;;  %v1615_v47 = vsel %vm1611_vm9, %v8470_v5, %v8471_v16  ;;  %v2047_v26 = vpack.c.bf16 %v1985_v12, %v1983_v36  ;;  %2197 = vmatpush.bf16.msrb.mxu3 %v9615_v56  ;;  %v6947_v7 = vor.u32 %v8049_v30, %v6944_v0  ;;  %v8054_v16 = vld [vmem:[%s12633_s7 + $0x24] sm:$0xf0]  ;;  %v8055_v36 = vld [vmem:[%s12633_s7 + $0x34] sm:$0xf]  ;;  %v6968_v12 = vld [vmem:[%s12633_s7 + $0x38] sm:$0xf0] }
 0x289   : > { %2236 = vmatpush.bf16.msrb.mxu0 %v2048_v23  ;;  %v1702_v58 = vmax.f32 %v12745_v11, %v1615_v47  ;;  %v2008_v48 = vmax.f32 %v12740_v44, %v1878_v18  ;;  %v2007_v1 = vmax.f32 %v9455_v55, %v9723_v19  ;;  %v1814_v56 = vsel %vm654_vm3, %v1812_v35, %v1813_v17  ;;  %v6966_v0 = vld [vmem:[%s12633_s7 + $0x30] sm:$0xf]  ;;  %v8056_v23 = vld [vmem:[%s12633_s7 + $0x34] sm:$0xf0]  ;;  %v8058_v47 = vld [vmem:[%s12633_s7 + $0x44] sm:$0xf0] }
 0x28a   : > { %v1821_v13 = vrot.slane %v1703_v45, 1  ;;  %2158 = vmatpush.bf16.msrb.mxu1 %v2047_v26  ;;  %v1811_v55 = vsel %vm654_vm3, %v1809_v51, %v1810_v34  ;;  %v1818_v52 = vsel %vm654_vm3, %v1813_v17, %v1817_v59  ;;  %v1976_v14 = vmax.f32 %v9701_v49, %v1814_v56  ;;  %v6976_v51 = vld [vmem:[%s12633_s7 + $0x48] sm:$0xf0]  ;;  %v6984_v17 = vld [vmem:[%s12633_s7 + $0x58] sm:$0xf0] }
 0x28b   : > { %2276 = vmatpush.bf16.msrb.mxu2 %v2062_v60  ;;  %v1819_v4 = vrot.slane %v1702_v58, 1  ;;  %v2060_v27 = vpack.c.bf16 %v2010_v24, %v2008_v48  ;;  %v1816_v2 = vsel %vm654_vm3, %v1810_v34, %v1815_v29  ;;  %v1978_v8 = vmax.f32 %v9711_v38, %v1818_v52  ;;  %v8051_v38 = vld [vmem:[%s12633_s7 + $0x14] sm:$0xf]  ;;  %v8057_v24 = vld [vmem:[%s12633_s7 + $0x44] sm:$0xf] }
 0x28c   : > { %v1822_v40 = vsel %vm654_vm3, %v1817_v59, %v1821_v13  ;;  %v1826_v44 = vsel %vm654_vm3, %v1821_v13, %v1825_v62  ;;  %2198 = vmatpush.bf16.msrb.mxu3 %v2061_v6  ;;  %v2059_v62 = vpack.c.bf16 %v2009_v37, %v2007_v1  ;;  %v8050_v59 = vld [vmem:[%s12633_s7 + $0x4] sm:$0xf0]  ;;  %v6955_v25 = vor.u32 %v8051_v38, %v6952_v32  ;;  %v6982_v11 = vld [vmem:[%s12633_s7 + $0x50] sm:$0xf]  ;;  %v8076_v48 = vld [vmem:[%s12628_s2 + $0x74] sm:$0xf0] }
 0x28d   : > { %v1980_v18 = vmax.f32 %v9660_v61, %v1822_v40  ;;  %v1982_v15 = vmax.f32 %v1703_v45, %v1826_v44  ;;  %v1820_v54 = vsel %vm654_vm3, %v1815_v29, %v1819_v4  ;;  %v1824_v19 = vsel %vm654_vm3, %v1819_v4, %v1823_v39  ;;  %v6942_v61 = vld [vmem:[%s12633_s7] sm:$0xf]  ;;  %v7059_v13 = vld [vmem:[%s12628_s2 + $0x70] sm:$0xf]  ;;  %v8074_v6 = vld [vmem:[%s12628_s2 + $0x64] sm:$0xf0] }
 0x28e   : > { %v1979_v63 = vmax.f32 %v9676_v33, %v1820_v54  ;;  %v1981_v35 = vmax.f32 %v1702_v58, %v1824_v19  ;;  %v1975_v39 = vmax.f32 %v9732_v20, %v1811_v55  ;;  %v1977_v33 = vmax.f32 %v9726_v31, %v1816_v2  ;;  %v6950_v31 = vld [vmem:[%s12633_s7 + $0x10] sm:$0xf]  ;;  %v6974_v45 = vld [vmem:[%s12633_s7 + $0x40] sm:$0xf]  ;;  %v8060_v58 = vld [vmem:[%s12633_s7 + $0x54] sm:$0xf0] }
 0x28f   : > { %2277 = vmatpush.bf16.msrb.mxu2 %v2060_v27  ;;  %v2046_v21 = vpack.c.bf16 %v1982_v15, %v1980_v18  ;;  %v2044_v49 = vpack.c.bf16 %v1978_v8, %v1976_v14  ;;  %v6943_v20 = vor.u32 %v8050_v59, %v6942_v61  ;;  %v6951_v22 = vor.u32 %v8052_v28, %v6950_v31  ;;  %v7051_v34 = vld [vmem:[%s12628_s2 + $0x60] sm:$0xf]  ;;  %v7043_v4 = vld [vmem:[%s12628_s2 + $0x50] sm:$0xf]  ;;  %v8072_v56 = vld [vmem:[%s12628_s2 + $0x54] sm:$0xf0] }
 0x290   : > { %v2045_v46 = vpack.c.bf16 %v1981_v35, %v1979_v63  ;;  %2199 = vmatpush.bf16.msrb.mxu3 %v2059_v62  ;;  %v2043_v29 = vpack.c.bf16 %v1977_v33, %v1975_v39  ;;  %v6963_v43 = vor.u32 %v8053_v53, %v6960_v3  ;;  %v6959_v5 = vor.u32 %v8054_v16, %v6958_v9  ;;  %v7035_v40 = vld [vmem:[%s12628_s2 + $0x40] sm:$0xf]  ;;  %v8070_v44 = vld [vmem:[%s12628_s2 + $0x44] sm:$0xf0]  ;;  %v7027_v18 = vld [vmem:[%s12628_s2 + $0x30] sm:$0xf] }
 0x291   : > { %2237 = vmatpush.bf16.msrb.mxu0 %v2046_v21  ;;  %v6971_v30 = vor.u32 %v8055_v36, %v6968_v12  ;;  %v6967_v42 = vor.u32 %v8056_v23, %v6966_v0  ;;  %v6979_v57 = vor.u32 %v8057_v24, %v6976_v51  ;;  %v6975_v26 = vor.u32 %v8058_v47, %v6974_v45  ;;  %v8068_v15 = vld [vmem:[%s12628_s2 + $0x34] sm:$0xf0]  ;;  %v7019_v19 = vld [vmem:[%s12628_s2 + $0x20] sm:$0xf]  ;;  %v8066_v63 = vld [vmem:[%s12628_s2 + $0x24] sm:$0xf0] }
 0x292   : > { %2159 = vmatpush.bf16.msrb.mxu1 %v2045_v46  ;;  %6994 = vmatmul.msk.bf16.vlgmr.msrb.gmra.mxu2 %vm2125_vm11, %v6947_v7  ;;  %v6987_v60 = vor.u32 %v8059_v41, %v6984_v17  ;;  %v7060_v1 = vor.u32 %v8076_v48, %v7059_v13  ;;  %v7052_v37 = vor.u32 %v8074_v6, %v7051_v34  ;;  %v7011_v52 = vld [vmem:[%s12628_s2 + $0x10] sm:$0xf]  ;;  %v8064_v62 = vld [vmem:[%s12628_s2 + $0x14] sm:$0xf0]  ;;  %v7003_v14 = vld [vmem:[%s12628_s2] sm:$0xf] }
 0x293   : > { %6988 = vmatmul.msk.bf16.vlgmr.msrb.gmra.mxu3 %vm2125_vm11, %v6947_v7  ;;  %v6983_v7 = vor.u32 %v8060_v58, %v6982_v11  ;;  %v7044_v27 = vor.u32 %v8072_v56, %v7043_v4  ;;  %v7036_v55 = vor.u32 %v8070_v44, %v7035_v40  ;;  %v7028_v54 = vor.u32 %v8068_v15, %v7027_v18  ;;  %v8062_v2 = vld [vmem:[%s12628_s2 + $0x4] sm:$0xf0] }
 0x294   : > { %v7020_v35 = vor.u32 %v8066_v63, %v7019_v19  ;;  %v7012_v21 = vor.u32 %v8064_v62, %v7011_v52  ;;  %v7004_v46 = vor.u32 %v8062_v2, %v7003_v14  ;;  %vm5041_vm9 = vcmask 392192  }
 0x295   : > { %2238 = vmatpush.bf16.msrb.mxu0 %v2044_v49 }
 0x296   : > { %2160 = vmatpush.bf16.msrb.mxu1 %v2043_v29 }
 0x298   : > { %2239 = vmatmul.bf16.vlgmr.msrb.gmra.mxu0 %v6943_v20 }
 0x299   : > { %2161 = vmatmul.bf16.vlgmr.msrb.gmra.mxu1 %v6943_v20 }
 0x29a   : > { %3713 = vmatpush.bf16.msra.mxu1 %v7060_v1 }
 0x29e   : > { %3714 = vmatpush.bf16.msra.mxu1 %v7052_v37 }
 0x2a2   : > { %6995 = vmatmul.msk.bf16.gmra.mxu2 %vm2125_vm11, %v6955_v25  ;;  %3715 = vmatpush.bf16.msra.mxu1 %v7044_v27 }
 0x2a3   : > { %6989 = vmatmul.msk.bf16.gmra.mxu3 %vm2125_vm11, %v6955_v25 }
 0x2a6   : > { %3716 = vmatpush.bf16.msra.mxu1 %v7036_v55 }
 0x2a8   : > { %2244 = vmatmul.bf16.gmra.mxu0 %v6951_v22 }
 0x2a9   : > { %2166 = vmatmul.bf16.gmra.mxu1 %v6951_v22 }
 0x2aa   : > { %3717 = vmatpush.bf16.msra.mxu1 %v7028_v54 }
 0x2ae   : > { %3718 = vmatpush.bf16.msra.mxu1 %v7020_v35 }
 0x2b2   : > { %6996 = vmatmul.msk.bf16.gmra.mxu2 %vm2125_vm11, %v6963_v43  ;;  %3719 = vmatpush.bf16.msra.mxu1 %v7012_v21 }
 0x2b3   : > { %6990 = vmatmul.msk.bf16.gmra.mxu3 %vm2125_vm11, %v6963_v43 }
 0x2b6   : > { %3720 = vmatpush.bf16.msra.mxu1 %v7004_v46 }
 0x2b8   : > { %2249 = vmatmul.bf16.gmra.mxu0 %v6959_v5 }
 0x2b9   : > { %2171 = vmatmul.bf16.gmra.mxu1 %v6959_v5 }
 0x2c2   : > { %6997 = vmatmul.msk.bf16.gmra.mxu2 %vm2125_vm11, %v6971_v30 }
 0x2c3   : > { %6991 = vmatmul.msk.bf16.gmra.mxu3 %vm2125_vm11, %v6971_v30 }
 0x2c8   : > { %2254 = vmatmul.bf16.gmra.mxu0 %v6967_v42 }
 0x2c9   : > { %2176 = vmatmul.bf16.gmra.mxu1 %v6967_v42 }
 0x2d2   : > { %6998 = vmatmul.msk.bf16.gmra.mxu2 %vm2125_vm11, %v6979_v57 }
 0x2d3   : > { %6992 = vmatmul.msk.bf16.gmra.mxu3 %vm2125_vm11, %v6979_v57 }
 0x2d8   : > { %2259 = vmatmul.bf16.gmra.mxu0 %v6975_v26 }
 0x2d9   : > { %2181 = vmatmul.bf16.gmra.mxu1 %v6975_v26 }
 0x2e2   : > { %6999 = vmatmul.msk.bf16.gmra.mxu2 %vm2125_vm11, %v6987_v60 }
 0x2e3   : > { %6993 = vmatmul.msk.bf16.gmra.mxu3 %vm2125_vm11, %v6987_v60 }
 0x2e8   : > { %2264 = vmatmul.bf16.gmra.mxu0 %v6983_v7 }
 0x2e9   : > { %2186 = vmatmul.bf16.gmra.mxu1 %v6983_v7 }
 0x315   : > { %v2240_v39 = vpop.f32.mrf.mxu0  ;;  %v2279_v8 = vpop.f32.mrf.mxu2 }
 0x316   : > { %v2162_v61 = vpop.f32.mrf.mxu1  ;;  %v2201_v59 = vpop.f32.mrf.mxu3  ;;  %v2280_v49 = vadd.f32 %v2279_v8, %v2240_v39 }
 0x317   : > { %v2202_v33 = vadd.f32 %v2201_v59, %v2162_v61 }
 0x318   : > { %v2310_v32 = vmax.f32 %v2280_v49, 0.0 }
 0x319   : > { %v2309_v38 = vmax.f32 %v2202_v33, 0.0 }
 0x31b   : > { %v2333_v3 = vpack.c.bf16 %v2310_v32, %v2309_v38 }
 0x31d   : > { %v2242_v29 = vpop.f32.mrf.mxu0  ;;  %v2281_v20 = vpop.f32.mrf.mxu2  ;;  %v2359_v36 = vunpack.c.l.b16 %v2333_v3  ;;  %v2360_v12 = vunpack.c.h.b16 %v2333_v3 }
 0x31e   : > { %v2164_v25 = vpop.f32.mrf.mxu1  ;;  %v2282_v31 = vadd.f32 %v2281_v20, %v2242_v29  ;;  %v2203_v28 = vpop.f32.mrf.mxu3 }
 0x31f   : > { %v2204_v22 = vadd.f32 %v2203_v28, %v2164_v25 }
 0x320   : > { %v2312_v53 = vmax.f32 %v2282_v31, 0.0 }
 0x321   : > { %v2311_v43 = vmax.f32 %v2204_v22, 0.0 }
 0x323   : > { %v2334_v9 = vpack.c.bf16 %v2312_v53, %v2311_v43 }
 0x325   : > { %v2245_v16 = vpop.f32.mrf.mxu0  ;;  %v2284_v5 = vpop.f32.mrf.mxu2  ;;  %v2361_v30 = vunpack.c.l.b16 %v2334_v9  ;;  %v2362_v0 = vunpack.c.h.b16 %v2334_v9 }
 0x326   : > { %v2167_v23 = vpop.f32.mrf.mxu1  ;;  %v2206_v42 = vpop.f32.mrf.mxu3  ;;  %v2285_v45 = vadd.f32 %v2284_v5, %v2245_v16 }
 0x327   : > { %v9923_v24 = vpack.c.b16 %v2361_v30, %v2359_v36  ;;  %v9925_v51 = vpack.c.b16 %v2362_v0, %v2360_v12  ;;  %v2207_v57 = vadd.f32 %v2206_v42, %v2167_v23 }
 0x328   : > { %v2314_v17 = vmax.f32 %v2285_v45, 0.0 }
 0x329   : > { %3721 = vmatmul.bf16.vlgmr.msra.gmra.mxu1 %v9923_v24  ;;  %v2313_v41 = vmax.f32 %v2207_v57, 0.0  ;;  %v2404_v6 = vshll.u32 %v9923_v24, 16  ;;  %v2402_v19 = vshrl.u32 %v9923_v24, 16 }
 0x32b   : > { %v9928_v48 = vpack.c.bf16 %v2314_v17, %v2313_v41  ;;  %v2406_v18 = vrot.slane %v2404_v6, 1 }
 0x32d   : > { %v2247_v47 = vpop.f32.mrf.mxu0  ;;  %v2286_v26 = vpop.f32.mrf.mxu2  ;;  %v2363_v56 = vunpack.c.l.b16 %v9928_v48  ;;  %v2407_v35 = vor.u32 %v2406_v18, %v2402_v19 }
 0x32e   : > { %v2169_v60 = vpop.f32.mrf.mxu1  ;;  %v2287_v11 = vadd.f32 %v2286_v26, %v2247_v47  ;;  %v2208_v58 = vpop.f32.mrf.mxu3 }
 0x32f   : > { %v2209_v7 = vadd.f32 %v2208_v58, %v2169_v60 }
 0x330   : > { %v2316_v13 = vmax.f32 %v2287_v11, 0.0 }
 0x331   : > { %v2315_v1 = vmax.f32 %v2209_v7, 0.0 }
 0x333   : > { %v9930_v34 = vpack.c.bf16 %v2316_v13, %v2315_v1 }
 0x335   : > { %v2250_v37 = vpop.f32.mrf.mxu0  ;;  %v2289_v4 = vpop.f32.mrf.mxu2  ;;  %v2365_v27 = vunpack.c.l.b16 %v9930_v34 }
 0x336   : > { %v2172_v40 = vpop.f32.mrf.mxu1  ;;  %v2211_v44 = vpop.f32.mrf.mxu3  ;;  %v2290_v54 = vadd.f32 %v2289_v4, %v2250_v37 }
 0x337   : > { %v9935_v55 = vpack.c.b16 %v2365_v27, %v2363_v56  ;;  %v2212_v15 = vadd.f32 %v2211_v44, %v2172_v40 }
 0x338   : > { %v2318_v2 = vmax.f32 %v2290_v54, 0.0 }
 0x339   : > { %v2409_v63 = vshll.u32 %v9935_v55, 16  ;;  %3726 = vmatmul.bf16.gmra.mxu1 %v9935_v55  ;;  %v2317_v14 = vmax.f32 %v2212_v15, 0.0  ;;  %v2425_v9 = vshrl.u32 %v9935_v55, 16 }
 0x33b   : > { %v2411_v52 = vrot.slane %v2409_v63, 1  ;;  %v9948_v49 = vpack.c.bf16 %v2318_v2, %v2317_v14 }
 0x33d   : > { %v2252_v62 = vpop.f32.mrf.mxu0  ;;  %v2291_v21 = vpop.f32.mrf.mxu2  ;;  %v2412_v39 = vsel %vm514_vm1, %v2407_v35, %v2411_v52  ;;  %v2367_v25 = vunpack.c.l.b16 %v9948_v49  ;;  %v2427_v5 = vor.u32 %v2425_v9, %v2411_v52 }
 0x33e   : > { %v2292_v46 = vadd.f32 %v2291_v21, %v2252_v62  ;;  %v2174_v8 = vpop.f32.mrf.mxu1  ;;  %v2213_v61 = vpop.f32.mrf.mxu3  ;;  %2495 = vrot.lane.b32.xlu0 %v2412_v39, %s8561_s26 }
 0x33f   : > { %v2214_v33 = vadd.f32 %v2213_v61, %v2174_v8 }
 0x340   : > { %v2320_v59 = vmax.f32 %v2292_v46, 0.0 }
 0x341   : > { %v2319_v29 = vmax.f32 %v2214_v33, 0.0 }
 0x343   : > { %v9950_v20 = vpack.c.bf16 %v2320_v59, %v2319_v29 }
 0x345   : > { %v2255_v38 = vpop.f32.mrf.mxu0  ;;  %v2294_v32 = vpop.f32.mrf.mxu2  ;;  %v2369_v31 = vunpack.c.l.b16 %v9950_v20 }
 0x346   : > { %v2177_v28 = vpop.f32.mrf.mxu1  ;;  %v2216_v22 = vpop.f32.mrf.mxu3  ;;  %v2295_v43 = vadd.f32 %v2294_v32, %v2255_v38  ;;  %v2366_v38 = vunpack.c.h.b16 %v9930_v34 }
 0x347   : > { %v9954_v53 = vpack.c.b16 %v2369_v31, %v2367_v25  ;;  %v2217_v3 = vadd.f32 %v2216_v22, %v2177_v28 }
 0x348   : > { %v2322_v23 = vmax.f32 %v2295_v43, 0.0 }
 0x349   : > { %v2429_v16 = vshll.u32 %v9954_v53, 16  ;;  %3731 = vmatmul.bf16.gmra.mxu1 %v9954_v53  ;;  %v2321_v0 = vmax.f32 %v2217_v3, 0.0  ;;  %v2441_v44 = vshrl.u32 %v9954_v53, 16  ;;  %v2364_v3 = vunpack.c.h.b16 %v9928_v48 }
 0x34a   : > { %v2416_v48 = vshll.u32 %v9925_v51, 16 }
 0x34b   : > { %v2431_v36 = vrot.slane %v2429_v16, 1  ;;  %v9965_v17 = vpack.c.bf16 %v2322_v23, %v2321_v0 }
 0x34d   : > { %v2257_v12 = vpop.f32.mrf.mxu0  ;;  %v2296_v30 = vpop.f32.mrf.mxu2  ;;  %v2432_v57 = vsel %vm514_vm1, %v2427_v5, %v2431_v36  ;;  %v2371_v13 = vunpack.c.l.b16 %v9965_v17  ;;  %v2443_v15 = vor.u32 %v2441_v44, %v2431_v36  ;;  %v9992_v36 = vpack.c.b16 %v2366_v38, %v2364_v3 }
 0x34e   : > { %v2297_v42 = vadd.f32 %v2296_v30, %v2257_v12  ;;  %v2179_v45 = vpop.f32.mrf.mxu1  ;;  %v2218_v47 = vpop.f32.mrf.mxu3  ;;  %2499 = vrot.lane.b32.xlu1 %v2432_v57, %s8561_s26  ;;  %v2592_v38 = vrot.slane %v2404_v6, 2 }
 0x34f   : > { %v2219_v41 = vadd.f32 %v2218_v47, %v2179_v45  ;;  %v2421_v47 = vshll.u32 %v9992_v36, 16 }
 0x350   : > { %v2324_v26 = vmax.f32 %v2297_v42, 0.0 }
 0x351   : > { %v2323_v60 = vmax.f32 %v2219_v41, 0.0 }
 0x353   : > { %v9967_v11 = vpack.c.bf16 %v2324_v26, %v2323_v60 }
 0x355   : > { %v2260_v58 = vpop.f32.mrf.mxu0  ;;  %v2299_v7 = vpop.f32.mrf.mxu2  ;;  %v2373_v1 = vunpack.c.l.b16 %v9967_v11 }
 0x356   : > { %v2182_v37 = vpop.f32.mrf.mxu1  ;;  %v2221_v4 = vpop.f32.mrf.mxu3  ;;  %v2300_v40 = vadd.f32 %v2299_v7, %v2260_v58 }
 0x357   : > { %v9971_v56 = vpack.c.b16 %v2373_v1, %v2371_v13  ;;  %v2222_v27 = vadd.f32 %v2221_v4, %v2182_v37  ;;  %v2418_v4 = vrot.slane %v2416_v48, 1 }
 0x358   : > { %v2326_v21 = vmax.f32 %v2300_v40, 0.0  ;;  %v8092_v40 = vld [vmem:[%s12628_s2 + $0xf4] sm:$0xf0] }
 0x359   : > { %v2445_v18 = vshll.u32 %v9971_v56, 16  ;;  %3736 = vmatmul.bf16.gmra.mxu1 %v9971_v56  ;;  %v2325_v62 = vmax.f32 %v2222_v27, 0.0  ;;  %v2457_v0 = vshrl.u32 %v9971_v56, 16  ;;  %v7123_v27 = vld [vmem:[%s12628_s2 + $0xf0] sm:$0xf] }
 0x35b   : > { %v2447_v54 = vrot.slane %v2445_v18, 1  ;;  %v9982_v59 = vpack.c.bf16 %v2326_v21, %v2325_v62  ;;  %v10018_v62 = vrot.slane %v2421_v47, 1 }
 0x35d   : > { %v2262_v35 = vpop.f32.mrf.mxu0  ;;  %v2301_v52 = vpop.f32.mrf.mxu2  ;;  %v2448_v46 = vsel %vm514_vm1, %v2443_v15, %v2447_v54  ;;  %v2375_v31 = vunpack.c.l.b16 %v9982_v59  ;;  %v2459_v23 = vor.u32 %v2457_v0, %v2447_v54  ;;  %v7124_v15 = vor.u32 %v8092_v40, %v7123_v27 }
 0x35e   : > { %v2184_v14 = vpop.f32.mrf.mxu1  ;;  %v2302_v2 = vadd.f32 %v2301_v52, %v2262_v35  ;;  %v2223_v39 = vpop.f32.mrf.mxu3  ;;  %2503 = vrot.lane.b32.xlu2 %v2448_v46, %s8561_s26  ;;  %v2414_v52 = vshrl.u32 %v9925_v51, 16  ;;  %v2595_v46 = vrot.slane %v2409_v63, 2  ;;  %v8090_v63 = vld [vmem:[%s12628_s2 + $0xe4] sm:$0xf0]  ;;  %v2536_v27 = vrot.slane %v9992_v36, 1 }
 0x35f   : > { %v2224_v8 = vadd.f32 %v2223_v39, %v2184_v14  ;;  %3752 = vmatpush.bf16.msra.mxu3 %v7124_v15  ;;  %v2532_v40 = vrot.slane %v9923_v24, 1  ;;  %v2374_v15 = vunpack.c.h.b16 %v9967_v11 }
 0x360   : > { %v2328_v61 = vmax.f32 %v2302_v2, 0.0  ;;  %v2419_v14 = vor.u32 %v2418_v4, %v2414_v52  ;;  %v2594_v2 = vrot.slane %v2425_v9, 1  ;;  %v7115_v9 = vld [vmem:[%s12628_s2 + $0xe0] sm:$0xf] }
 0x361   : > { %v2327_v33 = vmax.f32 %v2224_v8, 0.0 }
 0x362   : > { %v10051_v6 = vor.u32 %v2595_v46, %v2594_v2  ;;  %v2372_v2 = vunpack.c.h.b16 %v9965_v17  ;;  %v7083_v17 = vld [vmem:[%s12628_s2 + $0xa0] sm:$0xf] }
 0x363   : > { %v9984_v29 = vpack.c.bf16 %v2328_v61, %v2327_v33  ;;  %v2424_v61 = vsel %vm514_vm1, %v2419_v14, %v10018_v62  ;;  %v2591_v33 = vrot.slane %v2402_v19, 1  ;;  %v8088_v19 = vld [vmem:[%s12628_s2 + $0xd4] sm:$0xf0]  ;;  %v2535_v14 = vrot.slane %v9925_v51, 1 }
 0x365   : > { %v2265_v32 = vpop.f32.mrf.mxu0  ;;  %v2304_v25 = vpop.f32.mrf.mxu2  ;;  %v2377_v28 = vunpack.c.l.b16 %v9984_v29  ;;  %v2378_v46 = vunpack.c.h.b16 %v9984_v29  ;;  %v2537_v11 = vsel %vm654_vm3, %v2535_v14, %v2536_v27  ;;  %v8082_v29 = vld [vmem:[%s12628_s2 + $0xa4] sm:$0xf0] }
 0x366   : > { %v2187_v22 = vpop.f32.mrf.mxu1  ;;  %v2226_v43 = vpop.f32.mrf.mxu3  ;;  %v2305_v30 = vadd.f32 %v2304_v25, %v2265_v32  ;;  %v7116_v25 = vor.u32 %v8090_v63, %v7115_v9  ;;  %v7075_v9 = vld [vmem:[%s12628_s2 + $0x90] sm:$0xf]  ;;  %v8080_v63 = vld [vmem:[%s12628_s2 + $0x94] sm:$0xf0] }
 0x367   : > { %v9990_v5 = vpack.c.b16 %v2377_v28, %v2375_v31  ;;  %v2227_v12 = vadd.f32 %v2226_v43, %v2187_v22  ;;  %v7107_v31 = vld [vmem:[%s12628_s2 + $0xd0] sm:$0xf]  ;;  %v2370_v28 = vunpack.c.h.b16 %v9950_v20 }
 0x368   : > { %v2330_v41 = vmax.f32 %v2305_v30, 0.0  ;;  %3753 = vmatpush.bf16.msra.mxu3 %v7116_v25  ;;  %v7108_v43 = vor.u32 %v8088_v19, %v7107_v31  ;;  %v2368_v30 = vunpack.c.h.b16 %v9948_v49  ;;  %v7099_v49 = vld [vmem:[%s12628_s2 + $0xc0] sm:$0xf]  ;;  %v2433_v25 = vshrl.u32 %v9992_v36, 16 }
 0x369   : > { %v2461_v34 = vshll.u32 %v9990_v5, 16  ;;  %3741 = vmatmul.bf16.gmra.mxu1 %v9990_v5  ;;  %v2329_v26 = vmax.f32 %v2227_v12, 0.0  ;;  %v2473_v22 = vshrl.u32 %v9990_v5, 16  ;;  %v2593_v12 = vor.u32 %v2592_v38, %v2591_v33 }
 0x36a   : > { %v10063_v20 = vpack.c.b16 %v2370_v28, %v2368_v30  ;;  %v2376_v33 = vunpack.c.h.b16 %v9982_v59  ;;  %v7084_v38 = vor.u32 %v8082_v29, %v7083_v17  ;;  %v2542_v19 = vrot.slane %v9971_v56, 1 }
 0x36b   : > { %v2463_v42 = vrot.slane %v2461_v34, 1  ;;  %v10013_v54 = vpack.c.bf16 %v2330_v41, %v2329_v26  ;;  %v2597_v26 = vsel %vm710_vm0, %v2593_v12, %v10051_v6  ;;  %v7076_v28 = vor.u32 %v8080_v63, %v7075_v9 }
 0x36c   : > { %3754 = vmatpush.bf16.msra.mxu3 %v7108_v43  ;;  %v10118_v31 = vpack.c.b16 %v2378_v46, %v2376_v33  ;;  %v2538_v43 = vrot.slane %v9954_v53, 1  ;;  %v2435_v12 = vor.u32 %v2433_v25, %v10018_v62  ;;  %v2622_v14 = vrot.slane %v2461_v34, 2 }
 0x36d   : > { %v2267_v57 = vpop.f32.mrf.mxu0  ;;  %v2306_v45 = vpop.f32.mrf.mxu2  ;;  %v2464_v58 = vsel %vm514_vm1, %v2459_v23, %v2463_v42  ;;  %v2379_v39 = vunpack.c.l.b16 %v10013_v54  ;;  %v2475_v23 = vor.u32 %v2473_v22, %v2463_v42  ;;  %v8086_v42 = vld [vmem:[%s12628_s2 + $0xc4] sm:$0xf0]  ;;  %v2613_v46 = vrot.slane %v2457_v0, 1 }
 0x36e   : > { %v2307_v60 = vadd.f32 %v2306_v45, %v2267_v57  ;;  %v2189_v7 = vpop.f32.mrf.mxu1  ;;  %v2228_v13 = vpop.f32.mrf.mxu3  ;;  %2507 = vrot.lane.b32.xlu0 %v2464_v58, %s8561_s26  ;;  %v7100_v58 = vor.u32 %v8086_v42, %v7099_v49  ;;  %v8078_v49 = vld [vmem:[%s12628_s2 + $0x84] sm:$0xf0]  ;;  %v2380_v17 = vunpack.c.h.b16 %v10013_v54  ;;  %v2546_v54 = vrot.slane %v9990_v5, 1 }
 0x36f   : > { %v2229_v37 = vadd.f32 %v2228_v13, %v2189_v7  ;;  %v7091_v7 = vld [vmem:[%s12628_s2 + $0xb0] sm:$0xf]  ;;  %v8084_v13 = vld [vmem:[%s12628_s2 + $0xb4] sm:$0xf0] }
 0x370   : > { %v2332_v1 = vmax.f32 %v2307_v60, 0.0  ;;  %3755 = vmatpush.bf16.msra.mxu3 %v7100_v58  ;;  %v7092_v4 = vor.u32 %v8084_v13, %v7091_v7 }
 0x371   : > { %v2331_v35 = vmax.f32 %v2229_v37, 0.0  ;;  %v2540_v37 = vrot.slane %v10063_v20, 1 }
 0x373   : > { %v10020_v21 = vpack.c.bf16 %v2332_v1, %v2331_v35  ;;  %v2533_v1 = vrot.slane %v9935_v55, 1 }
 0x374   : > { %3756 = vmatpush.bf16.msra.mxu3 %v7092_v4 }
 0x375   : > { %v2381_v8 = vunpack.c.l.b16 %v10020_v21  ;;  %v2534_v35 = vsel %vm654_vm3, %v2532_v40, %v2533_v1  ;;  %v2539_v62 = vsel %vm654_vm3, %v2533_v1, %v2538_v43  ;;  %v2449_v1 = vshrl.u32 %v10063_v20, 16 }
 0x376   : > { %2497 = vrot.lane.b32.xlu0 %v2424_v61, %s8561_s26  ;;  %v10107_v61 = vpack.c.b16 %v2374_v15, %v2372_v2 }
 0x377   : > { %v10043_v32 = vpack.c.b16 %v2381_v8, %v2379_v39  ;;  %v2541_v39 = vsel %vm654_vm3, %v2536_v27, %v2540_v37  ;;  %v2437_v8 = vshll.u32 %v10063_v20, 16 }
 0x378   : > { %3757 = vmatpush.bf16.msra.mxu3 %v7084_v38  ;;  %v2453_v30 = vshll.u32 %v10107_v61, 16  ;;  %v2465_v58 = vshrl.u32 %v10107_v61, 16  ;;  %v2548_v38 = vrot.slane %v10118_v31, 1 }
 0x379   : > { %v2477_v3 = vshll.u32 %v10043_v32, 16  ;;  %3746 = vmatmul.bf16.gmra.mxu1 %v10043_v32  ;;  %v2489_v45 = vshrl.u32 %v10043_v32, 16  ;;  %v2439_v59 = vrot.slane %v2437_v8, 1 }
 0x37b   : > { %v2479_v57 = vrot.slane %v2477_v3, 1  ;;  %v2451_v27 = vor.u32 %v2449_v1, %v2439_v59 }
 0x37c   : > { %3758 = vmatpush.bf16.msra.mxu3 %v7076_v28  ;;  %v7187_v28 = vld [vmem:[%s12628_s2 + $0x170] sm:$0xf] }
 0x37d   : > { %v2480_v41 = vsel %vm514_vm1, %v2475_v23, %v2479_v57  ;;  %v2491_v60 = vor.u32 %v2489_v45, %v2479_v57  ;;  %v2605_v23 = vrot.slane %v2441_v44, 1  ;;  %v2543_v57 = vsel %vm654_vm3, %v2538_v43, %v2542_v19  ;;  %v7067_v44 = vld [vmem:[%s12628_s2 + $0x80] sm:$0xf]  ;;  %v8108_v43 = vld [vmem:[%s12628_s2 + $0x174] sm:$0xf0] }
 0x37e   : > { %2637 = vrot.lane.b32.xlu0 %v2597_v26, %s8562_s24  ;;  %2511 = vrot.lane.b32.xlu1 %v2480_v41, %s8561_s26  ;;  %v2440_v26 = vsel %vm514_vm1, %v2435_v12, %v2439_v59  ;;  %v2469_v41 = vshll.u32 %v10118_v31, 16  ;;  %v7068_v42 = vor.u32 %v8078_v49, %v7067_v44  ;;  %v7188_v12 = vor.u32 %v8108_v43, %v7187_v28 }
 0x37f   : > { %2515 = vrot.lane.b32.xlu2 %v2491_v60, %s8561_s26  ;;  %v2606_v60 = vrot.slane %v2429_v16, 2  ;;  %v2455_v16 = vrot.slane %v2453_v30, 1  ;;  %v2629_v44 = vrot.slane %v2489_v45, 1  ;;  %v7179_v45 = vld [vmem:[%s12628_s2 + $0x160] sm:$0xf]  ;;  %v2617_v43 = vrot.slane %v2465_v58, 1 }
 0x380   : > { %v2471_v7 = vrot.slane %v2469_v41, 1  ;;  %3759 = vmatpush.bf16.msra.mxu3 %v7068_v42  ;;  %3791 = vmatpush.bf16.msra.mxu0 %v7188_v12  ;;  %v2630_v42 = vrot.slane %v2477_v3, 2  ;;  %v2618_v12 = vrot.slane %v2453_v30, 2 }
 0x381   : > { %v2607_v13 = vor.u32 %v2606_v60, %v2605_v23  ;;  %v2467_v4 = vor.u32 %v2465_v58, %v2455_v16  ;;  %v2456_v2 = vsel %vm514_vm1, %v2451_v27, %v2455_v16  ;;  %v2601_v60 = vrot.slane %v2433_v25, 1  ;;  %v7243_v58 = vld [vmem:[%s12628_s2 + $0x1e0] sm:$0xf] }
 0x382   : > { %v2598_v16 = vrot.slane %v2414_v52, 1  ;;  %v8106_v52 = vld [vmem:[%s12628_s2 + $0x164] sm:$0xf0] }
 0x383   : > { %v2472_v40 = vsel %vm514_vm1, %v2467_v4, %v2471_v7  ;;  %v2608_v15 = vsel %vm710_vm0, %v10051_v6, %v2607_v13  ;;  %v2382_v6 = vunpack.c.h.b16 %v10020_v21  ;;  %v7180_v3 = vor.u32 %v8106_v52, %v7179_v45  ;;  %v7139_v52 = vld [vmem:[%s12628_s2 + $0x110] sm:$0xf] }
 0x385   : > { %v10173_v29 = vpack.c.b16 %v2382_v6, %v2380_v17  ;;  %3792 = vmatpush.bf16.msra.mxu0 %v7180_v3  ;;  %v2609_v6 = vrot.slane %v2449_v1, 1  ;;  %v8096_v3 = vld [vmem:[%s12628_s2 + $0x114] sm:$0xf0] }
 0x386   : > { %2560 = vrot.lane.b32.xlu0 %v2541_v39, %s8563_s28  ;;  %2554 = vrot.lane.b32.xlu1 %v2534_v35, %s8563_s28  ;;  %v2621_v35 = vrot.slane %v2473_v22, 1  ;;  %v2614_v39 = vrot.slane %v2445_v18, 2 }
 0x387   : > { %2556 = vrot.lane.b32.xlu2 %v2537_v11, %s8563_s28  ;;  %v2544_v11 = vrot.slane %v10107_v61, 1  ;;  %v2552_v21 = vrot.slane %v10173_v29, 1  ;;  %v2485_v63 = vshll.u32 %v10173_v29, 16 }
 0x388   : > { %v2623_v22 = vor.u32 %v2622_v14, %v2621_v35  ;;  %v2615_v34 = vor.u32 %v2614_v39, %v2613_v46  ;;  %v2492_v35 = vshrl.u32 %v10173_v29, 16 }
 0x389   : > { %v2545_v0 = vsel %vm654_vm3, %v2540_v37, %v2544_v11  ;;  %v2553_v9 = vsel %vm654_vm3, %v2548_v38, %v2552_v21  ;;  %v2547_v37 = vsel %vm654_vm3, %v2542_v19, %v2546_v54  ;;  %v2549_v59 = vsel %vm654_vm3, %v2544_v11, %v2548_v38  ;;  %v7315_v38 = vld [vmem:[%s12628_s2 + $0x270] sm:$0xf] }
 0x38a   : > { %v2624_v33 = vsel %vm710_vm0, %v2615_v34, %v2623_v22  ;;  %v2616_v18 = vsel %vm710_vm0, %v2607_v13, %v2615_v34  ;;  %v2481_v19 = vshrl.u32 %v10118_v31, 16  ;;  %v2487_v23 = vrot.slane %v2485_v63, 1  ;;  %v7163_v34 = vld [vmem:[%s12628_s2 + $0x140] sm:$0xf] }
 0x38b   : > { %v2610_v11 = vrot.slane %v2437_v8, 2  ;;  %v7155_v8 = vld [vmem:[%s12628_s2 + $0x130] sm:$0xf] }
 0x38c   : > { %v2494_v39 = vor.u32 %v2492_v35, %v2487_v23 }
 0x38d   : > { %v2611_v1 = vor.u32 %v2610_v11, %v2609_v6  ;;  %v2625_v6 = vrot.slane %v2481_v19, 1  ;;  %v2626_v11 = vrot.slane %v2469_v41, 2 }
 0x38e   : > { %2562 = vrot.lane.b32.xlu0 %v2543_v57, %s8563_s28  ;;  %2501 = vrot.lane.b32.xlu1 %v2440_v26, %s8561_s26  ;;  %v2550_v57 = vrot.slane %v10043_v32, 1  ;;  %v2483_v26 = vor.u32 %v2481_v19, %v2471_v7  ;;  %v7227_v19 = vld [vmem:[%s12628_s2 + $0x1c0] sm:$0xf] }
 0x38f   : > { %2558 = vrot.lane.b32.xlu2 %v2539_v62, %s8563_s28  ;;  %v2602_v62 = vrot.slane %v2421_v47, 2  ;;  %v2599_v47 = vrot.slane %v2416_v48, 2  ;;  %v2631_v48 = vor.u32 %v2630_v42, %v2629_v44  ;;  %v2675_v44 = vrot.slane %v9935_v55, 2 }
 0x390   : > { %v2488_v49 = vsel %vm514_vm1, %v2483_v26, %v2487_v23  ;;  %v2551_v25 = vsel %vm654_vm3, %v2546_v54, %v2550_v57  ;;  %v8124_v54 = vld [vmem:[%s12628_s2 + $0x1f4] sm:$0xf0]  ;;  %v7147_v23 = vld [vmem:[%s12628_s2 + $0x120] sm:$0xf] }
 0x391   : > { %v2603_v13 = vor.u32 %v2602_v62, %v2601_v60  ;;  %v2600_v27 = vor.u32 %v2599_v47, %v2598_v16  ;;  %v2632_v46 = vsel %vm710_vm0, %v2623_v22, %v2631_v48  ;;  %v8102_v22 = vld [vmem:[%s12628_s2 + $0x144] sm:$0xf0]  ;;  %v7307_v26 = vld [vmem:[%s12628_s2 + $0x260] sm:$0xf]  ;;  %v2674_v62 = vrot.slane %v9923_v24, 2 }
 0x392   : > { %v7164_v17 = vor.u32 %v8102_v22, %v7163_v34  ;;  %v8138_v16 = vld [vmem:[%s12628_s2 + $0x264] sm:$0xf0]  ;;  %v2678_v47 = vrot.slane %v9992_v36, 2  ;;  %v7131_v34 = vld [vmem:[%s12628_s2 + $0x100] sm:$0xf] }
 0x393   : > { %v2612_v28 = vsel %vm710_vm0, %v2603_v13, %v2611_v1  ;;  %v7308_v45 = vor.u32 %v8138_v16, %v7307_v26  ;;  %v8094_v22 = vld [vmem:[%s12628_s2 + $0x104] sm:$0xf0] }
 0x394   : > { %v7132_v41 = vor.u32 %v8094_v22, %v7131_v34  ;;  %v7371_v34 = vld [vmem:[%s12628_s2 + $0x2e0] sm:$0xf]  ;;  %v8154_v22 = vld [vmem:[%s12628_s2 + $0x2e4] sm:$0xf0] }
 0x396   : > { %2509 = vrot.lane.b32.xlu0 %v2472_v40, %s8561_s26  ;;  %2641 = vrot.lane.b32.xlu1 %v2608_v15, %s8562_s24  ;;  %v7171_v40 = vld [vmem:[%s12628_s2 + $0x150] sm:$0xf]  ;;  %v8104_v15 = vld [vmem:[%s12628_s2 + $0x154] sm:$0xf0] }
 0x397   : > { %2505 = vrot.lane.b32.xlu2 %v2456_v2, %s8561_s26  ;;  %v7172_v14 = vor.u32 %v8104_v15, %v7171_v40  ;;  %v2604_v2 = vsel %vm710_vm0, %v2600_v27, %v2603_v13  ;;  %v7235_v13 = vld [vmem:[%s12628_s2 + $0x1d0] sm:$0xf]  ;;  %v8136_v40 = vld [vmem:[%s12628_s2 + $0x254] sm:$0xf0]  ;;  %v2677_v15 = vrot.slane %v9925_v51, 2 }
 0x398   : > { %v7299_v27 = vld [vmem:[%s12628_s2 + $0x250] sm:$0xf] }
 0x399   : > { %3793 = vmatpush.bf16.msra.mxu0 %v7172_v14 }
 0x39d   : > { %3794 = vmatpush.bf16.msra.mxu0 %v7164_v17  ;;  %v8118_v17 = vld [vmem:[%s12628_s2 + $0x1c4] sm:$0xf0] }
 0x39e   : > { %2649 = vrot.lane.b32.xlu0 %v2624_v33, %s8562_s24  ;;  %2564 = vrot.lane.b32.xlu1 %v2545_v0, %s8563_s28  ;;  %v8100_v33 = vld [vmem:[%s12628_s2 + $0x134] sm:$0xf0]  ;;  %v7251_v0 = vld [vmem:[%s12628_s2 + $0x1f0] sm:$0xf] }
 0x39f   : > { %2645 = vrot.lane.b32.xlu2 %v2616_v18, %s8562_s24  ;;  %v7156_v18 = vor.u32 %v8100_v33, %v7155_v8  ;;  %v7228_v8 = vor.u32 %v8118_v17, %v7227_v19  ;;  %v8134_v33 = vld [vmem:[%s12628_s2 + $0x244] sm:$0xf0] }
 0x3a1   : > { %3795 = vmatpush.bf16.msra.mxu0 %v7156_v18  ;;  %v2682_v18 = vrot.slane %v10063_v20, 2 }
 0x3a3   : > { %v2683_v26 = vsel %vm794_vm2, %v2678_v47, %v2682_v18 }
 0x3a6   : > { %2572 = vrot.lane.b32.xlu0 %v2553_v9, %s8563_s28  ;;  %2566 = vrot.lane.b32.xlu1 %v2547_v37, %s8563_s28  ;;  %v8140_v9 = vld [vmem:[%s12628_s2 + $0x274] sm:$0xf0]  ;;  %v7252_v37 = vor.u32 %v8124_v54, %v7251_v0  ;;  %v2680_v0 = vrot.slane %v9954_v53, 2  ;;  %v2627_v54 = vor.u32 %v2626_v11, %v2625_v6 }
 0x3a7   : > { %2568 = vrot.lane.b32.xlu2 %v2549_v59, %s8563_s28  ;;  %v7316_v59 = vor.u32 %v8140_v9, %v7315_v38  ;;  %v7219_v9 = vld [vmem:[%s12628_s2 + $0x1b0] sm:$0xf] }
 0x3a8   : > { %3830 = vmatpush.bf16.msra.mxu2 %v7252_v37  ;;  %v8116_v37 = vld [vmem:[%s12628_s2 + $0x1b4] sm:$0xf0] }
 0x3a9   : > { %3869 = vmatpush.bf16.msrb.mxu1 %v7316_v59  ;;  %v7283_v59 = vld [vmem:[%s12628_s2 + $0x230] sm:$0xf] }
 0x3ad   : > { %3870 = vmatpush.bf16.msrb.mxu1 %v7308_v45  ;;  %v2686_v45 = vrot.slane %v10107_v61, 2 }
 0x3ae   : > { %2574 = vrot.lane.b32.xlu0 %v2550_v57, %s8563_s28  ;;  %2513 = vrot.lane.b32.xlu1 %v2488_v49, %s8561_s26  ;;  %v8098_v57 = vld [vmem:[%s12628_s2 + $0x124] sm:$0xf0] }
 0x3af   : > { %2570 = vrot.lane.b32.xlu2 %v2551_v25, %s8563_s28  ;;  %v7148_v30 = vor.u32 %v8098_v57, %v7147_v23  ;;  %v2619_v25 = vor.u32 %v2618_v12, %v2617_v43  ;;  %v8132_v43 = vld [vmem:[%s12628_s2 + $0x234] sm:$0xf0]  ;;  %v2633_v23 = vrot.slane %v2492_v35, 1  ;;  %v2681_v57 = vsel %vm794_vm2, %v2675_v44, %v2680_v0  ;;  %v8114_v35 = vld [vmem:[%s12628_s2 + $0x1a4] sm:$0xf0] }
 0x3b0   : > { %v10230_v7 = vpop.permute.xlu0 %2495  ;;  %v7284_v12 = vor.u32 %v8132_v43, %v7283_v59 }
 0x3b1   : > { %v10235_v4 = vsel %vm2519_vm12, %v9925_v51, %v10230_v7  ;;  %3796 = vmatpush.bf16.msra.mxu0 %v7148_v30  ;;  %v2679_v51 = vsel %vm794_vm2, %v2677_v15, %v2678_v47  ;;  %v2628_v30 = vsel %vm710_vm0, %v2619_v25, %v2627_v54  ;;  %v2684_v47 = vrot.slane %v9971_v56, 2 }
 0x3b2   : > { %3760 = vmatmul.bf16.vlgmr.msra.gmra.mxu3 %v10235_v4 }
 0x3b3   : > { %v2685_v6 = vsel %vm794_vm2, %v2680_v0, %v2684_v47  ;;  %v7363_v0 = vld [vmem:[%s12628_s2 + $0x2d0] sm:$0xf] }
 0x3b6   : > { %2639 = vrot.lane.b32.xlu0 %v2604_v2, %s8562_s24  ;;  %2653 = vrot.lane.b32.xlu1 %v2632_v46, %s8562_s24  ;;  %v7300_v2 = vor.u32 %v8136_v40, %v7299_v27  ;;  %v2620_v46 = vsel %vm710_vm0, %v2611_v1, %v2619_v25  ;;  %v7291_v1 = vld [vmem:[%s12628_s2 + $0x240] sm:$0xf]  ;;  %v7379_v27 = vld [vmem:[%s12628_s2 + $0x2f0] sm:$0xf] }
 0x3b7   : > { %2517 = vrot.lane.b32.xlu2 %v2494_v39, %s8561_s26  ;;  %v2676_v39 = vsel %vm794_vm2, %v2674_v62, %v2675_v44  ;;  %s8564_s26 = smov 24   ;;  %v7292_v38 = vor.u32 %v8134_v33, %v7291_v1  ;;  %v7211_v62 = vld [vmem:[%s12628_s2 + $0x1a0] sm:$0xf]  ;;  %v8156_v40 = vld [vmem:[%s12628_s2 + $0x2f4] sm:$0xf0]  ;;  %v7372_v1 = vor.u32 %v8154_v22, %v7371_v34  ;;  %v2690_v33 = vrot.slane %v10118_v31, 2 }
 0x3b8   : > { %3871 = vmatpush.bf16.msrb.mxu1 %v7300_v2  ;;  %v7275_v44 = vld [vmem:[%s12628_s2 + $0x220] sm:$0xf] }
 0x3b9   : > { %v7195_v2 = vld [vmem:[%s12628_s2 + $0x180] sm:$0xf]  ;;  %v2691_v59 = vsel %vm794_vm2, %v2686_v45, %v2690_v33 }
 0x3bc   : > { %3872 = vmatpush.bf16.msrb.mxu1 %v7292_v38 }
 0x3be   : > { %2643 = vrot.lane.b32.xlu0 %v2612_v28, %s8562_s24  ;;  %2576 = vrot.lane.b32.xlu1 %v2552_v21, %s8563_s28  ;;  %v8122_v21 = vld [vmem:[%s12628_s2 + $0x1e4] sm:$0xf0]  ;;  %v7220_v28 = vor.u32 %v8116_v37, %v7219_v9  ;;  %v7355_v9 = vld [vmem:[%s12628_s2 + $0x2c0] sm:$0xf]  ;;  %s8571_s28 = smov 32  }
 0x3bf   : > { %2657 = vrot.lane.b32.xlu2 %v2631_v48, %s8562_s24  ;;  %v7244_v49 = vor.u32 %v8122_v21, %v7243_v58  ;;  %v7140_v48 = vor.u32 %v8096_v3, %v7139_v52  ;;  %v2634_v58 = vrot.slane %v2485_v63, 2  ;;  %v10386_v21 = vpop.permute.xlu2 %2503  ;;  %v7212_v63 = vor.u32 %v8114_v35, %v7211_v62  ;;  %v7203_v3 = vld [vmem:[%s12628_s2 + $0x190] sm:$0xf]  ;;  %v8150_v37 = vld [vmem:[%s12628_s2 + $0x2c4] sm:$0xf0] }
 0x3c0   : > { %v10305_v60 = vpop.permute.xlu1 %2499  ;;  %3873 = vmatpush.bf16.msrb.mxu1 %v7284_v12  ;;  %v10407_v25 = vsel %vm2519_vm12, %v10063_v20, %v10386_v21  ;;  %v7267_v20 = vld [vmem:[%s12628_s2 + $0x210] sm:$0xf]  ;;  %v7356_v43 = vor.u32 %v8150_v37, %v7355_v9  ;;  %v8146_v35 = vld [vmem:[%s12628_s2 + $0x2a4] sm:$0xf0] }
 0x3c1   : > { %v10315_v42 = vsel %vm2519_vm12, %v9992_v36, %v10305_v60  ;;  %3831 = vmatpush.bf16.msra.mxu2 %v7244_v49  ;;  %v8120_v36 = vld [vmem:[%s12628_s2 + $0x1d4] sm:$0xf0]  ;;  %3797 = vmatpush.bf16.msra.mxu0 %v7140_v48  ;;  %v8130_v49 = vld [vmem:[%s12628_s2 + $0x224] sm:$0xf0]  ;;  %v2635_v52 = vor.u32 %v2634_v58, %v2633_v23  ;;  %v2692_v23 = vrot.slane %v10043_v32, 2 }
 0x3c2   : > { %3765 = vmatmul.bf16.gmra.mxu3 %v10315_v42  ;;  %v7236_v14 = vor.u32 %v8120_v36, %v7235_v13  ;;  %v7276_v16 = vor.u32 %v8130_v49, %v7275_v44  ;;  %v8112_v13 = vld [vmem:[%s12628_s2 + $0x194] sm:$0xf0] }
 0x3c3   : > { %v7204_v48 = vor.u32 %v8112_v13, %v7203_v3  ;;  %v8128_v36 = vld [vmem:[%s12628_s2 + $0x214] sm:$0xf0]  ;;  %v2636_v11 = vsel %vm710_vm0, %v2627_v54, %v2635_v52  ;;  %v7323_v3 = vld [vmem:[%s12628_s2 + $0x280] sm:$0xf] }
 0x3c4   : > { %3874 = vmatpush.bf16.msrb.mxu1 %v7276_v16  ;;  %v7268_v15 = vor.u32 %v8128_v36, %v7267_v20  ;;  %v8148_v58 = vld [vmem:[%s12628_s2 + $0x2b4] sm:$0xf0] }
 0x3c5   : > { %3832 = vmatpush.bf16.msra.mxu2 %v7236_v14  ;;  %3798 = vmatpush.bf16.msra.mxu0 %v7132_v41  ;;  %v7380_v14 = vor.u32 %v8156_v40, %v7379_v27  ;;  %v2687_v41 = vsel %vm794_vm2, %v2682_v18, %v2686_v45  ;;  %v8152_v18 = vld [vmem:[%s12628_s2 + $0x2d4] sm:$0xf0] }
 0x3c6   : > { %2647 = vrot.lane.b32.xlu0 %v2620_v46, %s8562_s24  ;;  %2696 = vrot.lane.b32.xlu1 %v2676_v39, %s8564_s26  ;;  %v8110_v46 = vld [vmem:[%s12628_s2 + $0x184] sm:$0xf0]  ;;  %v7259_v39 = vld [vmem:[%s12628_s2 + $0x200] sm:$0xf]  ;;  %v7364_v54 = vor.u32 %v8152_v18, %v7363_v0 }
 0x3c7   : > { %2698 = vrot.lane.b32.xlu2 %v2679_v51, %s8564_s26  ;;  %v8126_v51 = vld [vmem:[%s12628_s2 + $0x204] sm:$0xf0]  ;;  %v7196_v19 = vor.u32 %v8110_v46, %v7195_v2  ;;  %3908 = vmatpush.bf16.msrb.mxu3 %v7380_v14  ;;  %v8144_v45 = vld [vmem:[%s12628_s2 + $0x294] sm:$0xf0] }
 0x3c8   : > { %3875 = vmatpush.bf16.msrb.mxu1 %v7268_v15  ;;  %v7260_v17 = vor.u32 %v8126_v51, %v7259_v39 }
 0x3c9   : > { %3833 = vmatpush.bf16.msra.mxu2 %v7228_v8  ;;  %v2688_v8 = vrot.slane %v9990_v5, 2 }
 0x3cb   : > { %3909 = vmatpush.bf16.msrb.mxu3 %v7372_v1  ;;  %v2689_v38 = vsel %vm794_vm2, %v2684_v47, %v2688_v8  ;;  %v2693_v62 = vsel %vm794_vm2, %v2688_v8, %v2692_v23  ;;  %v7331_v47 = vld [vmem:[%s12628_s2 + $0x290] sm:$0xf]  ;;  %v8172_v8 = vld [vmem:[%s12628_s2 + $0x374] sm:$0xf0] }
 0x3cc   : > { %3876 = vmatpush.bf16.msrb.mxu1 %v7260_v17  ;;  %v7443_v1 = vld [vmem:[%s12628_s2 + $0x370] sm:$0xf] }
 0x3cd   : > { %3834 = vmatpush.bf16.msra.mxu2 %v7220_v28 }
 0x3ce   : > { %2700 = vrot.lane.b32.xlu1 %v2681_v57, %s8564_s26  ;;  %2651 = vrot.lane.b32.xlu0 %v2628_v30, %s8562_s24  ;;  %v2694_v57 = vrot.slane %v10173_v29, 2  ;;  %v7347_v30 = vld [vmem:[%s12628_s2 + $0x2b0] sm:$0xf] }
 0x3cf   : > { %2702 = vrot.lane.b32.xlu2 %v2683_v26, %s8564_s26  ;;  %3910 = vmatpush.bf16.msrb.mxu3 %v7364_v54  ;;  %v7348_v26 = vor.u32 %v8148_v58, %v7347_v30  ;;  %v8188_v58 = vld [vmem:[%s12628_s2 + $0x3f4] sm:$0xf0] }
 0x3d1   : > { %3835 = vmatpush.bf16.msra.mxu2 %v7212_v63  ;;  %v2695_v63 = vsel %vm794_vm2, %v2690_v33, %v2694_v57  ;;  %v7444_v33 = vor.u32 %v8172_v8, %v7443_v1  ;;  %v7411_v8 = vld [vmem:[%s12628_s2 + $0x330] sm:$0xf] }
 0x3d2   : > { %3770 = vmatmul.bf16.gmra.mxu3 %v10407_v25 }
 0x3d3   : > { %3911 = vmatpush.bf16.msrb.mxu3 %v7356_v43  ;;  %3947 = vmatpush.bf16.msrb.mxu0 %v7444_v33  ;;  %v7427_v43 = vld [vmem:[%s12628_s2 + $0x350] sm:$0xf]  ;;  %v8164_v33 = vld [vmem:[%s12628_s2 + $0x334] sm:$0xf0] }
 0x3d5   : > { %3836 = vmatpush.bf16.msra.mxu2 %v7204_v48 }
 0x3d6   : > { %2704 = vrot.lane.b32.xlu1 %v2685_v6, %s8564_s26  ;;  %2655 = vrot.lane.b32.xlu0 %v2636_v11, %s8562_s24  ;;  %v10547_v6 = vpop.f32.mrf.mxu1 }
 0x3d7   : > { %2706 = vrot.lane.b32.xlu2 %v2687_v41, %s8564_s26  ;;  %3912 = vmatpush.bf16.msrb.mxu3 %v7348_v26  ;;  %v7571_v26 = vld [vmem:[%s12628_s2 + $0x470] sm:$0xf] }
 0x3d9   : > { %3837 = vmatpush.bf16.msra.mxu2 %v7196_v19  ;;  %v10516_v13 = vpop.permute.xlu2 %2515 }
 0x3da   : > { %v10541_v46 = vsel %vm2519_vm12, %v10173_v29, %v10516_v13 }
 0x3db   : > { %12746 = vst [vmem:[#allocation10_spill] sm:$0xff] %v10541_v46 }
 0x3de   : > { %2708 = vrot.lane.b32.xlu1 %v2689_v38, %s8564_s26  ;;  %2659 = vrot.lane.b32.xlu0 %v2635_v52, %s8562_s24  ;;  %v7332_v52 = vor.u32 %v8144_v45, %v7331_v47  ;;  %v10559_v29 = vpop.f32.mrf.mxu1  ;;  %v8170_v38 = vld [vmem:[%s12628_s2 + $0x364] sm:$0xf0]  ;;  %v7419_v47 = vld [vmem:[%s12628_s2 + $0x340] sm:$0xf]  ;;  %s8569_s24 = smov 64  }
 0x3df   : > { %2710 = vrot.lane.b32.xlu2 %v2691_v59, %s8564_s26  ;;  %v8166_v45 = vld [vmem:[%s12628_s2 + $0x344] sm:$0xf0] }
 0x3e0   : > { %v10473_v28 = vpop.permute.xlu0 %2507 }
 0x3e1   : > { %v10478_v12 = vsel %vm2519_vm12, %v10107_v61, %v10473_v28  ;;  %v7339_v61 = vld [vmem:[%s12628_s2 + $0x2a0] sm:$0xf]  ;;  %v2557_v27 = vpop.permute.xlu2 %2556 }
 0x3e2   : > { %3775 = vmatmul.bf16.gmra.mxu3 %v10478_v12  ;;  %v7340_v49 = vor.u32 %v8146_v35, %v7339_v61 }
 0x3e4   : > { %3913 = vmatpush.bf16.msrb.mxu3 %v7340_v49 }
 0x3e6   : > { %2712 = vrot.lane.b32.xlu1 %v2693_v62, %s8564_s26  ;;  %v10579_v18 = vpop.f32.mrf.mxu1  ;;  %v8204_v62 = vld [vmem:[%s12628_s2 + $0x474] sm:$0x70] }
 0x3e7   : > { %2714 = vrot.lane.b32.xlu2 %v2695_v63, %s8564_s26  ;;  %v7572_v35 = vor.u32 %v8204_v62, %v7571_v26  ;;  %v8182_v62 = vld [vmem:[%s12628_s2 + $0x3c4] sm:$0xf0] }
 0x3e8   : > { %v2498_v44 = vpop.permute.xlu0 %2497  ;;  %3914 = vmatpush.bf16.msrb.mxu3 %v7332_v52 }
 0x3e9   : > { %v10501_v16 = vsel %vm2519_vm12, %v10230_v7, %v2498_v44  ;;  %v8142_v7 = vld [vmem:[%s12628_s2 + $0x284] sm:$0xf0]  ;;  %v2559_v11 = vpop.permute.xlu2 %2558  ;;  %v3708_v49 = vsel %vm654_vm3, %v7572_v35, 0 }
 0x3ea   : > { %3799 = vmatmul.bf16.vlgmr.msra.gmra.mxu0 %v10501_v16  ;;  %v7324_v48 = vor.u32 %v8142_v7, %v7323_v3  ;;  %4025 = vmatpush.bf16.msra.mxu1 %v3708_v49  ;;  %v7420_v3 = vor.u32 %v8166_v45, %v7419_v47  ;;  %v7499_v7 = vld [vmem:[%s12628_s2 + $0x3e0] sm:$0xf]  ;;  %v8198_v35 = vld [vmem:[%s12628_s2 + $0x444] sm:$0xf0] }
 0x3ec   : > { %3915 = vmatpush.bf16.msrb.mxu3 %v7324_v48  ;;  %v8186_v48 = vld [vmem:[%s12628_s2 + $0x3e4] sm:$0xf0] }
 0x3ee   : > { %2716 = vrot.lane.b32.xlu1 %v2692_v23, %s8564_s26  ;;  %v8168_v23 = vld [vmem:[%s12628_s2 + $0x354] sm:$0xf0]  ;;  %v10625_v52 = vpop.f32.mrf.mxu1 }
 0x3ef   : > { %2718 = vrot.lane.b32.xlu2 %v2694_v57, %s8564_s26  ;;  %v7507_v57 = vld [vmem:[%s12628_s2 + $0x3f0] sm:$0xf]  ;;  %v7428_v30 = vor.u32 %v8168_v23, %v7427_v43 }
 0x3f0   : > { %v10520_v20 = vpop.permute.xlu1 %2511  ;;  %v10536_v2 = vpop.permute.xlu0 %2637  ;;  %v7508_v61 = vor.u32 %v8188_v58, %v7507_v57  ;;  %v7403_v57 = vld [vmem:[%s12628_s2 + $0x320] sm:$0xf] }
 0x3f1   : > { %v10525_v36 = vsel %vm2519_vm12, %v10118_v31, %v10520_v20  ;;  %v2506_v41 = vpop.permute.xlu2 %2505  ;;  %v10565_v19 = vsel %vm2661_vm14, %v2557_v27, %v10536_v2  ;;  %v7483_v58 = vld [vmem:[%s12628_s2 + $0x3c0] sm:$0xf] }
 0x3f2   : > { %3780 = vmatmul.bf16.gmra.mxu3 %v10525_v36  ;;  %12747 = vst [vmem:[#allocation9_spill] sm:$0xff] %v10565_v19  ;;  %v10569_v17 = vsel %vm2519_vm12, %v10386_v21, %v2506_v41  ;;  %v7435_v21 = vld [vmem:[%s12628_s2 + $0x360] sm:$0xf]  ;;  %3986 = vmatpush.bf16.msrb.mxu2 %v7508_v61  ;;  %v7484_v47 = vor.u32 %v8182_v62, %v7483_v58 }
 0x3f3   : > { %v7436_v9 = vor.u32 %v8170_v38, %v7435_v21  ;;  %v7555_v21 = vld [vmem:[%s12628_s2 + $0x450] sm:$0xf]  ;;  %v8200_v38 = vld [vmem:[%s12628_s2 + $0x454] sm:$0xf0]  ;;  %v7547_v61 = vld [vmem:[%s12628_s2 + $0x440] sm:$0xf] }
 0x3f4   : > { %v7556_v23 = vor.u32 %v8200_v38, %v7555_v21  ;;  %v7548_v45 = vor.u32 %v8198_v35, %v7547_v61  ;;  %v7000_v21 = vld [vmem:[%s12637_s11 + $0x1] ss:$8 sm:$0x3] }
 0x3f5   : > { %3948 = vmatpush.bf16.msrb.mxu0 %v7436_v9  ;;  %v7531_v58 = vld [vmem:[%s12628_s2 + $0x420] sm:$0xf]  ;;  %v10739_v62 = vperm.slane %v7000_v21, 0 }
 0x3f8   : > { %v2555_v40 = vpop.permute.xlu1 %2554  ;;  %v2561_v51 = vpop.permute.xlu0 %2560 }
 0x3f9   : > { %v10529_v15 = vsel %vm2578_vm13, %v2555_v40, %v2557_v27  ;;  %v10532_v14 = vsel %vm2578_vm13, %v2498_v44, %v2555_v40  ;;  %v10555_v22 = vsel %vm2578_vm13, %v2559_v11, %v2561_v51  ;;  %3949 = vmatpush.bf16.msrb.mxu0 %v7428_v30  ;;  %v10616_v63 = vpop.permute.xlu2 %2645  ;;  %v7563_v27 = vld [vmem:[%s12628_s2 + $0x460] sm:$0xf]  ;;  %v7500_v40 = vor.u32 %v8186_v48, %v7499_v7  ;;  %v8162_v30 = vld [vmem:[%s12628_s2 + $0x324] sm:$0xf0]  ;;  %v10694_v48 = vpop.f32.mrf.mxu1 }
 0x3fa   : > { %3838 = vmatmul.bf16.vlgmr.msra.gmra.mxu2 %v10532_v14  ;;  %3877 = vmatmul.bf16.vlgmr.msrb.gmra.mxu1 %v10529_v15  ;;  %v7404_v26 = vor.u32 %v8162_v30, %v7403_v57  ;;  %v8178_v30 = vld [vmem:[%s12628_s2 + $0x3a4] sm:$0xf0] }
 0x3fb   : > { %3987 = vmatpush.bf16.msrb.mxu2 %v7500_v40  ;;  %v7475_v40 = vld [vmem:[%s12628_s2 + $0x3b0] sm:$0xf] }
 0x3fd   : > { %3950 = vmatpush.bf16.msrb.mxu0 %v7420_v3 }
 0x400   : > { %v2502_v31 = vpop.permute.xlu1 %2501  ;;  %v2563_v0 = vpop.permute.xlu0 %2562 }
 0x401   : > { %v10545_v39 = vsel %vm2519_vm12, %v10305_v60, %v2502_v31  ;;  %v10552_v34 = vsel %vm2578_vm13, %v2502_v31, %v2559_v11  ;;  %v10590_v37 = vsel %vm2578_vm13, %v2506_v41, %v2563_v0  ;;  %v8202_v31 = vld [vmem:[%s12628_s2 + $0x464] sm:$0xf0]  ;;  %v10685_v49 = vpop.permute.xlu2 %2568 }
 0x402   : > { %3785 = vmatmul.bf16.gmra.mxu3 %v10541_v46  ;;  %3804 = vmatmul.bf16.gmra.mxu0 %v10545_v39  ;;  %v7564_v1 = vor.u32 %v8202_v31, %v7563_v27  ;;  %v7395_v27 = vld [vmem:[%s12628_s2 + $0x310] sm:$0xf] }
 0x404   : > { %4026 = vmatpush.bf16.msra.mxu1 %v7564_v1  ;;  %v8180_v1 = vld [vmem:[%s12628_s2 + $0x3b4] sm:$0xf0] }
 0x408   : > { %v10561_v60 = vpop.permute.xlu1 %2641  ;;  %v2510_v44 = vpop.permute.xlu0 %2509  ;;  %4027 = vmatpush.bf16.msra.mxu1 %v7556_v23  ;;  %v7467_v23 = vld [vmem:[%s12628_s2 + $0x3a0] sm:$0xf] }
 0x409   : > { %v10641_v11 = vsel %vm2519_vm12, %v10473_v28, %v2510_v44  ;;  %v10645_v41 = vsel %vm2661_vm14, %v2561_v51, %v10561_v60  ;;  %v7491_v28 = vld [vmem:[%s12628_s2 + $0x3d0] sm:$0xf]  ;;  %v7412_v51 = vor.u32 %v8164_v33, %v7411_v8  ;;  %v8196_v33 = vld [vmem:[%s12628_s2 + $0x434] sm:$0xf0]  ;;  %v7468_v61 = vor.u32 %v8178_v30, %v7467_v23  ;;  %v8174_v30 = vld [vmem:[%s12628_s2 + $0x384] sm:$0xf0] }
 0x40a   : > { %3843 = vmatmul.bf16.gmra.mxu2 %v10552_v34  ;;  %3882 = vmatmul.bf16.gmra.mxu1 %v10555_v22  ;;  %12748 = vst [vmem:[#allocation14_spill] sm:$0xff] %v10645_v41  ;;  %v7539_v8 = vld [vmem:[%s12628_s2 + $0x430] sm:$0xf] }
 0x40b   : > { %3951 = vmatpush.bf16.msrb.mxu0 %v7412_v51  ;;  %v7476_v51 = vor.u32 %v8180_v1, %v7475_v40  ;;  %v10761_v40 = vpop.f32.mrf.mxu1  ;;  %v8075_v1 = vld [vmem:[%s12628_s2 + $0x74] sm:$0xf] }
 0x40c   : > { %4028 = vmatpush.bf16.msra.mxu1 %v7548_v45 }
 0x40f   : > { %3952 = vmatpush.bf16.msrb.mxu0 %v7404_v26  ;;  %v8194_v26 = vld [vmem:[%s12628_s2 + $0x424] sm:$0xf0] }
 0x410   : > { %v10581_v54 = vpop.permute.xlu1 %2564  ;;  %v7532_v35 = vor.u32 %v8194_v26, %v7531_v58  ;;  %v8190_v26 = vld [vmem:[%s12628_s2 + $0x404] sm:$0xf0] }
 0x411   : > { %v10594_v59 = vsel %vm2578_vm13, %v2563_v0, %v10581_v54  ;;  %v8184_v0 = vld [vmem:[%s12628_s2 + $0x3d4] sm:$0xf0]  ;;  %v10748_v45 = vsel %vm2661_vm14, %v10581_v54, %v10616_v63 }
 0x412   : > { %3809 = vmatmul.bf16.gmra.mxu0 %v10569_v17  ;;  %3916 = vmatmul.bf16.vlgmr.msrb.gmra.mxu3 %v10565_v19  ;;  %v7492_v43 = vor.u32 %v8184_v0, %v7491_v28  ;;  %v10716_v28 = vpop.permute.xlu0 %2649  ;;  %v7540_v0 = vor.u32 %v8196_v33, %v7539_v8  ;;  %12750 = vst [vmem:[#allocation13_spill] sm:$0xff] %v10748_v45  ;;  %v7061_v8 = vld [vmem:[%s12628_s2 + $0x78] sm:$0xf0]  ;;  %v2571_v33 = vpop.permute.xlu2 %2570 }
 0x413   : > { %v7064_v21 = vor.u32 %v8075_v1, %v7061_v8  ;;  %v7045_v1 = vld [vmem:[%s12628_s2 + $0x58] sm:$0xf0]  ;;  %v3725_v19 = vadd.f32 %v10559_v29, %v10739_v62 }
 0x414   : > { %3988 = vmatpush.bf16.msrb.mxu2 %v7492_v43  ;;  %v8158_v43 = vld [vmem:[%s12628_s2 + $0x304] sm:$0xf0]  ;;  %4029 = vmatpush.bf16.msra.mxu1 %v7540_v0 }
 0x415   : > { %4064 = vmatpush.bf16.msra.mxu3 %v7064_v21  ;;  %v8069_v21 = vld [vmem:[%s12628_s2 + $0x44] sm:$0xf] }
 0x418   : > { %v2567_v9 = vpop.permute.xlu1 %2566  ;;  %3989 = vmatpush.bf16.msrb.mxu2 %v7484_v47  ;;  %4030 = vmatpush.bf16.msra.mxu1 %v7532_v35  ;;  %v7053_v35 = vld [vmem:[%s12628_s2 + $0x68] sm:$0xf0] }
 0x419   : > { %v10688_v3 = vsel %vm2578_vm13, %v2510_v44, %v2567_v9  ;;  %v10692_v7 = vsel %vm2578_vm13, %v2567_v9, %v10685_v49  ;;  %v8160_v44 = vld [vmem:[%s12628_s2 + $0x314] sm:$0xf0]  ;;  %v7387_v9 = vld [vmem:[%s12628_s2 + $0x300] sm:$0xf] }
 0x41a   : > { %3848 = vmatmul.bf16.gmra.mxu2 %v10590_v37  ;;  %3887 = vmatmul.bf16.gmra.mxu1 %v10594_v59  ;;  %12749 = vst [vmem:[#allocation16_spill] sm:$0xff] %v10692_v7  ;;  %v7396_v31 = vor.u32 %v8160_v44, %v7395_v27  ;;  %v7388_v57 = vor.u32 %v8158_v43, %v7387_v9  ;;  %v7459_v27 = vld [vmem:[%s12628_s2 + $0x390] sm:$0xf]  ;;  %v8176_v44 = vld [vmem:[%s12628_s2 + $0x394] sm:$0xf0]  ;;  %v10774_v43 = vpop.permute.xlu0 %2572 }
 0x41b   : > { %v7460_v54 = vor.u32 %v8176_v44, %v7459_v27 }
 0x41c   : > { %3953 = vmatpush.bf16.msrb.mxu0 %v7396_v31  ;;  %3990 = vmatpush.bf16.msrb.mxu2 %v7476_v51  ;;  %v8192_v31 = vld [vmem:[%s12628_s2 + $0x414] sm:$0xf0]  ;;  %v3723_v51 = vadd.f32 %v10547_v6, %v10739_v62  ;;  %v7515_v6 = vld [vmem:[%s12628_s2 + $0x400] sm:$0xf] }
 0x41d   : > { %v7516_v27 = vor.u32 %v8190_v26, %v7515_v6  ;;  %v10830_v6 = vsel %vm2661_vm14, %v10685_v49, %v10716_v28  ;;  %v7029_v26 = vld [vmem:[%s12628_s2 + $0x38] sm:$0xf0] }
 0x41e   : > { %12754 = vst [vmem:[#allocation18_spill] sm:$0xff] %v10830_v6 }
 0x420   : > { %v2514_v38 = vpop.permute.xlu1 %2513  ;;  %3954 = vmatpush.bf16.msrb.mxu0 %v7388_v57  ;;  %3991 = vmatpush.bf16.msrb.mxu2 %v7468_v61  ;;  %v7451_v57 = vld [vmem:[%s12628_s2 + $0x380] sm:$0xf]  ;;  %v8073_v61 = vld [vmem:[%s12628_s2 + $0x64] sm:$0xf] }
 0x421   : > { %v10743_v47 = vsel %vm2519_vm12, %v10520_v20, %v2514_v38  ;;  %v7523_v20 = vld [vmem:[%s12628_s2 + $0x410] sm:$0xf]  ;;  %v7452_v58 = vor.u32 %v8174_v30, %v7451_v57  ;;  %v7056_v44 = vor.u32 %v8073_v61, %v7053_v35 }
 0x422   : > { %3814 = vmatmul.bf16.gmra.mxu0 %v10641_v11  ;;  %3921 = vmatmul.bf16.gmra.mxu3 %v10645_v41  ;;  %v7524_v0 = vor.u32 %v8192_v31, %v7523_v20  ;;  %v10797_v20 = vsel %vm2578_vm13, %v2514_v38, %v2571_v33  ;;  %v8071_v31 = vld [vmem:[%s12628_s2 + $0x54] sm:$0xf]  ;;  %v2575_v61 = vpop.permute.xlu0 %2574 }
 0x423   : > { %12751 = vst [vmem:[#allocation17_spill] sm:$0xff] %v10797_v20  ;;  %4065 = vmatpush.bf16.msra.mxu3 %v7056_v44  ;;  %v7048_v8 = vor.u32 %v8071_v31, %v7045_v1  ;;  %v8065_v1 = vld [vmem:[%s12628_s2 + $0x24] sm:$0xf] }
 0x424   : > { %3992 = vmatpush.bf16.msrb.mxu2 %v7460_v54  ;;  %4031 = vmatpush.bf16.msra.mxu1 %v7524_v0  ;;  %v10801_v54 = vsel %vm2578_vm13, %v2571_v33, %v10774_v43  ;;  %v2518_v0 = vpop.permute.xlu2 %2517 }
 0x425   : > { %12752 = vst [vmem:[#allocation15_spill] sm:$0xff] %v10801_v54  ;;  %v10825_v30 = vsel %vm2519_vm12, %v10516_v13, %v2518_v0  ;;  %v3728_v13 = vadd.f32 %v10579_v18, %v10739_v62  ;;  %vm5867_vm12 = vcmask 261120  }
 0x426   : > { %12753 = vst [vmem:[#allocation19_spill] sm:$0xff] %v10825_v30 }
 0x427   : > { %4066 = vmatpush.bf16.msra.mxu3 %v7048_v8  ;;  %v7021_v8 = vld [vmem:[%s12628_s2 + $0x28] sm:$0xf0] }
 0x428   : > { %3993 = vmatpush.bf16.msrb.mxu2 %v7452_v58  ;;  %4032 = vmatpush.bf16.msra.mxu1 %v7516_v27  ;;  %v10811_v38 = vpop.permute.xlu1 %2653  ;;  %v8067_v58 = vld [vmem:[%s12628_s2 + $0x34] sm:$0xf] }
 0x429   : > { %v7032_v35 = vor.u32 %v8067_v58, %v7029_v26  ;;  %v7013_v58 = vld [vmem:[%s12628_s2 + $0x18] sm:$0xf0] }
 0x42a   : > { %3853 = vmatmul.bf16.gmra.mxu2 %v10688_v3  ;;  %3892 = vmatmul.bf16.gmra.mxu1 %v10692_v7 }
 0x430   : > { %v2577_v27 = vpop.permute.xlu1 %2576 }
 0x431   : > { %v10856_v18 = vsel %vm2578_vm13, %v2575_v61, %v2577_v27 }
 0x432   : > { %3819 = vmatmul.bf16.gmra.mxu0 %v10743_v47  ;;  %3926 = vmatmul.bf16.gmra.mxu3 %v10748_v45  ;;  %12756 = vst [vmem:[#allocation12_spill] sm:$0xff] %v10856_v18 }
 0x435   : > { %v3761_v9 = vpop.f32.mrf.mxu3 }
 0x436   : > { %v10776_v23 = vadd.f32 %v3761_v9, %v3723_v51  ;;  %v10815_v51 = vpop.f32.mrf.mxu1  ;;  %v7037_v9 = vld [vmem:[%s12628_s2 + $0x48] sm:$0xf0] }
 0x437   : > { %v7040_v57 = vor.u32 %v8069_v21, %v7037_v9  ;;  %v10853_v21 = vsel %vm2578_vm13, %v2518_v0, %v2575_v61  ;;  %v7024_v9 = vor.u32 %v8065_v1, %v7021_v8  ;;  %v2640_v61 = vpop.permute.xlu0 %2639  ;;  %v10883_v8 = vsel %vm2661_vm14, %v10774_v43, %v10811_v38 }
 0x438   : > { %12755 = vst [vmem:[#allocation6_spill] sm:$0xff] %v10853_v21  ;;  %v10878_v1 = vsel %vm2661_vm14, %v10536_v2, %v2640_v61  ;;  %v2697_v10 = vpop.permute.xlu1 %2696  ;;  %vm5888_vm13 = vcmask 523264  }
 0x439   : > { %4067 = vmatpush.bf16.msra.mxu3 %v7040_v57  ;;  %v8063_v57 = vld [vmem:[%s12628_s2 + $0x14] sm:$0xf]  ;;  %12757 = vst [vmem:[#allocation3_spill] sm:$0xff] %v10878_v1 }
 0x43a   : > { %3858 = vmatmul.bf16.gmra.mxu2 %v10797_v20  ;;  %3897 = vmatmul.bf16.gmra.mxu1 %v10801_v54  ;;  %v7016_v26 = vor.u32 %v8063_v57, %v7013_v58  ;;  %12758 = vst [vmem:[#allocation20_spill] sm:$0xff] %v10883_v8  ;;  %v3733_v58 = vadd.f32 %v10694_v48, %v10739_v62 }
 0x43d   : > { %v10813_v33 = vpop.f32.mrf.mxu3  ;;  %4068 = vmatpush.bf16.msra.mxu3 %v7032_v35  ;;  %v8061_v35 = vld [vmem:[%s12628_s2 + $0x4] sm:$0xf] }
 0x43e   : > { %v10844_v31 = vpop.f32.mrf.mxu1 }
 0x441   : > { %4069 = vmatpush.bf16.msra.mxu3 %v7024_v9 }
 0x442   : > { %3824 = vmatmul.bf16.gmra.mxu0 %v10825_v30  ;;  %3931 = vmatmul.bf16.gmra.mxu3 %v10830_v6 }
 0x445   : > { %v3766_v49 = vpop.f32.mrf.mxu3  ;;  %4070 = vmatpush.bf16.msra.mxu3 %v7016_v26 }
 0x446   : > { %v10842_v44 = vadd.f32 %v3766_v49, %v3728_v13  ;;  %v10868_v13 = vpop.permute.xlu2 %2657  ;;  %v7005_v49 = vld [vmem:[%s12628_s2 + $0x8] sm:$0xf0]  ;;  %v3742_v9 = vpop.f32.mrf.mxu1 }
 0x447   : > { %v7008_v57 = vor.u32 %v8061_v35, %v7005_v49  ;;  %v10895_v35 = vsel %vm2720_vm15, %v2640_v61, %v2697_v10 }
 0x448   : > { %12760 = vst [vmem:[#allocation21_spill] sm:$0xff] %v10895_v35 }
 0x449   : > { %4071 = vmatpush.bf16.msra.mxu3 %v7008_v57  ;;  %v2644_v57 = vpop.permute.xlu0 %2643 }
 0x44a   : > { %3863 = vmatmul.bf16.gmra.mxu2 %v10853_v21  ;;  %3902 = vmatmul.bf16.gmra.mxu1 %v10856_v18  ;;  %v7117_v18 = vld [vmem:[%s12628_s2 + $0xe8] sm:$0xf0] }
 0x44d   : > { %v10866_v0 = vpop.f32.mrf.mxu3 }
 0x44e   : > { %v2699_v50 = vpop.permute.xlu2 %2698  ;;  %v10900_v48 = vpop.f32.mrf.mxu1 }
 0x44f   : > { %v10892_v43 = vsel %vm2720_vm15, %v2697_v10, %v2699_v50  ;;  %v10910_v50 = vsel %vm2661_vm14, %v10561_v60, %v2644_v57  ;;  %v3738_v10 = vadd.f32 %v10815_v51, %v10739_v62 }
 0x450   : > { %12759 = vst [vmem:[#allocation5_spill] sm:$0xff] %v10892_v43 }
 0x451   : > { %12762 = vst [vmem:[#allocation4_spill] sm:$0xff] %v10910_v50 }
 0x452   : > { %3936 = vmatmul.bf16.gmra.mxu3 %v10883_v8  ;;  %3955 = vmatmul.bf16.vlgmr.msrb.gmra.mxu0 %v10878_v1  ;;  %v2701_v8 = vpop.permute.xlu1 %2700 }
 0x455   : > { %v3771_v26 = vpop.f32.mrf.mxu3 }
 0x456   : > { %v10889_v2 = vadd.f32 %v3771_v26, %v3733_v58  ;;  %v10906_v58 = vsel %vm2661_vm14, %v2577_v27, %v10868_v13  ;;  %v10916_v26 = vpop.f32.mrf.mxu1  ;;  %v2703_v27 = vpop.permute.xlu2 %2702 }
 0x457   : > { %12761 = vst [vmem:[#allocation22_spill] sm:$0xff] %v10906_v58  ;;  %v10922_v60 = vsel %vm2720_vm15, %v2701_v8, %v2703_v27 }
 0x458   : > { %12763 = vst [vmem:[#allocation2_spill] sm:$0xff] %v10922_v60 }
 0x45a   : > { %3994 = vmatmul.bf16.vlgmr.msrb.gmra.mxu2 %v10895_v35  ;;  %7577 = vmatmul.msk.bf16.vlgmr.msra.gmra.mxu1 %vm3688_vm4, %v10892_v43 }
 0x45d   : > { %v10902_v49 = vpop.f32.mrf.mxu3 }
 0x45e   : > { %v2707_v41 = vpop.permute.xlu2 %2706 }
 0x462   : > { %3941 = vmatmul.bf16.gmra.mxu3 %v10906_v58  ;;  %3960 = vmatmul.bf16.gmra.mxu0 %v10910_v50  ;;  %v10925_v58 = vsel %vm2720_vm15, %v2644_v57, %v2701_v8  ;;  %v2648_v50 = vpop.permute.xlu0 %2647  ;;  %v7125_v8 = vld [vmem:[%s12628_s2 + $0xf8] sm:$0xf0]  ;;  %v3743_v57 = vadd.f32 %v3742_v9, %v10739_v62 }
 0x463   : > { %12764 = vst [vmem:[#allocation8_spill] sm:$0xff] %v10925_v58 }
 0x465   : > { %v3776_v61 = vpop.f32.mrf.mxu3 }
 0x466   : > { %v10918_v6 = vadd.f32 %v3776_v61, %v3738_v10  ;;  %v10932_v10 = vpop.f32.mrf.mxu1  ;;  %v10936_v61 = vsel %vm2661_vm14, %v10616_v63, %v2648_v50  ;;  %v2711_v7 = vpop.permute.xlu2 %2710 }
 0x467   : > { %v3800_v43 = vpop.f32.mrf.mxu0  ;;  %12765 = vst [vmem:[#allocation7_spill] sm:$0xff] %v10936_v61 }
 0x468   : > { %v3801_v45 = vadd.f32 %v3800_v43, %v10776_v23  ;;  %v8091_v23 = vld [vmem:[%s12628_s2 + $0xf4] sm:$0xf] }
 0x469   : > { %v7128_v43 = vor.u32 %v8091_v23, %v7125_v8 }
 0x46a   : > { %3999 = vmatmul.bf16.gmra.mxu2 %v10925_v58  ;;  %7578 = vmatmul.msk.bf16.gmra.mxu1 %vm3688_vm4, %v10922_v60  ;;  %v2705_v60 = vpop.permute.xlu1 %2704  ;;  %v2652_v1 = vpop.permute.xlu0 %2651 }
 0x46b   : > { %4103 = vmatpush.bf16.msra.mxu0 %v7128_v43  ;;  %v10956_v23 = vsel %vm2720_vm15, %v2705_v60, %v2707_v41  ;;  %v10959_v9 = vsel %vm2720_vm15, %v2648_v50, %v2705_v60  ;;  %v8087_v43 = vld [vmem:[%s12628_s2 + $0xd4] sm:$0xf]  ;;  %v11002_v29 = vsel %vm2661_vm14, %v10716_v28, %v2652_v1 }
 0x46c   : > { %12766 = vst [vmem:[#allocation23_spill] sm:$0xff] %v10956_v23  ;;  %v8107_v41 = vld [vmem:[%s12628_s2 + $0x174] sm:$0xf] }
 0x46d   : > { %v10930_v51 = vpop.f32.mrf.mxu3  ;;  %12767 = vst [vmem:[#allocation24_spill] sm:$0xff] %v10959_v9  ;;  %v8123_v60 = vld [vmem:[%s12628_s2 + $0x1f4] sm:$0xf] }
 0x46e   : > { %12768 = vst [vmem:[#allocation25_spill] sm:$0xff] %v11002_v29 }
 0x46f   : > { %v3802_v58 = vpop.f32.mrf.mxu0 }
 0x472   : > { %3965 = vmatmul.bf16.gmra.mxu0 %v10936_v61  ;;  %4072 = vmatmul.bf16.vlgmr.msra.gmra.mxu3 %v9923_v24  ;;  %v8089_v24 = vld [vmem:[%s12628_s2 + $0xe4] sm:$0xf] }
 0x473   : > { %v7120_v8 = vor.u32 %v8089_v24, %v7117_v18  ;;  %v7189_v18 = vld [vmem:[%s12628_s2 + $0x178] sm:$0xf0] }
 0x474   : > { %v7192_v24 = vor.u32 %v8107_v41, %v7189_v18  ;;  %v8085_v41 = vld [vmem:[%s12628_s2 + $0xc4] sm:$0xf]  ;;  %v3764_v18 = vadd.f32 %v10813_v33, %v3725_v19  ;;  %v3730_v19 = vadd.f32 %v10625_v52, %v10739_v62 }
 0x475   : > { %v3781_v27 = vpop.f32.mrf.mxu3  ;;  %4104 = vmatpush.bf16.msra.mxu0 %v7120_v8 }
 0x476   : > { %v10947_v63 = vadd.f32 %v3781_v27, %v3743_v57  ;;  %v7109_v57 = vld [vmem:[%s12628_s2 + $0xd8] sm:$0xf0]  ;;  %4142 = vmatpush.bf16.msra.mxu2 %v7192_v24 }
 0x477   : > { %v3878_v61 = vpop.f32.mrf.mxu1  ;;  %v7112_v50 = vor.u32 %v8087_v43, %v7109_v57  ;;  %v7253_v27 = vld [vmem:[%s12628_s2 + $0x1f8] sm:$0xf0] }
 0x478   : > { %v7093_v24 = vld [vmem:[%s12628_s2 + $0xb8] sm:$0xf0] }
 0x479   : > { %4105 = vmatpush.bf16.msra.mxu0 %v7112_v50  ;;  %v7245_v50 = vld [vmem:[%s12628_s2 + $0x1e8] sm:$0xf0] }
 0x47a   : > { %4004 = vmatmul.bf16.gmra.mxu2 %v10959_v9  ;;  %7579 = vmatmul.msk.bf16.gmra.mxu1 %vm3688_vm4, %v10956_v23  ;;  %v7256_v23 = vor.u32 %v8123_v60, %v7253_v27  ;;  %v8083_v27 = vld [vmem:[%s12628_s2 + $0xb4] sm:$0xf] }
 0x47b   : > { %v7096_v33 = vor.u32 %v8083_v27, %v7093_v24 }
 0x47c   : > { %4181 = vmatpush.bf16.msrb.mxu1 %v7256_v23  ;;  %v8121_v23 = vld [vmem:[%s12628_s2 + $0x1e4] sm:$0xf] }
 0x47d   : > { %v10982_v9 = vpop.f32.mrf.mxu3  ;;  %v3839_v35 = vpop.f32.mrf.mxu2  ;;  %v7248_v60 = vor.u32 %v8121_v23, %v7245_v50  ;;  %v3769_v23 = vadd.f32 %v10866_v0, %v3730_v19  ;;  %v7085_v0 = vld [vmem:[%s12628_s2 + $0xa8] sm:$0xf0] }
 0x47e   : > { %v3840_v8 = vadd.f32 %v3839_v35, %v3801_v45  ;;  %v7101_v45 = vld [vmem:[%s12628_s2 + $0xc8] sm:$0xf0]  ;;  %v8105_v35 = vld [vmem:[%s12628_s2 + $0x164] sm:$0xf]  ;;  %v2709_v50 = vpop.permute.xlu1 %2708 }
 0x47f   : > { %v3805_v43 = vpop.f32.mrf.mxu0  ;;  %v3880_v57 = vpop.f32.mrf.mxu1  ;;  %v7229_v19 = vld [vmem:[%s12628_s2 + $0x1c8] sm:$0xf0] }
 0x480   : > { %v10987_v54 = vadd.f32 %v3805_v43, %v10842_v44  ;;  %v10989_v21 = vadd.f32 %v3878_v61, %v3840_v8  ;;  %v7104_v44 = vor.u32 %v8085_v41, %v7101_v45  ;;  %v7181_v61 = vld [vmem:[%s12628_s2 + $0x168] sm:$0xf0]  ;;  %v8103_v8 = vld [vmem:[%s12628_s2 + $0x154] sm:$0xf]  ;;  %v7173_v43 = vld [vmem:[%s12628_s2 + $0x158] sm:$0xf0]  ;;  %4182 = vmatpush.bf16.msrb.mxu1 %v7248_v60 }
 0x481   : > { %v7184_v28 = vor.u32 %v8105_v35, %v7181_v61  ;;  %v8119_v41 = vld [vmem:[%s12628_s2 + $0x1d4] sm:$0xf]  ;;  %v7237_v45 = vld [vmem:[%s12628_s2 + $0x1d8] sm:$0xf0]  ;;  %v3803_v35 = vadd.f32 %v3802_v58, %v3764_v18  ;;  %v7176_v52 = vor.u32 %v8103_v8, %v7173_v43  ;;  %v8081_v58 = vld [vmem:[%s12628_s2 + $0xa4] sm:$0xf] }
 0x482   : > { %3970 = vmatmul.bf16.gmra.mxu0 %v11002_v29  ;;  %4077 = vmatmul.bf16.gmra.mxu3 %v9935_v55  ;;  %v3748_v55 = vadd.f32 %v10916_v26, %v10739_v62  ;;  %v7240_v61 = vor.u32 %v8119_v41, %v7237_v45  ;;  %v8101_v18 = vld [vmem:[%s12628_s2 + $0x144] sm:$0xf]  ;;  %v7165_v60 = vld [vmem:[%s12628_s2 + $0x148] sm:$0xf0]  ;;  %v8099_v43 = vld [vmem:[%s12628_s2 + $0x134] sm:$0xf] }
 0x483   : > { %4106 = vmatpush.bf16.msra.mxu0 %v7104_v44  ;;  %4143 = vmatpush.bf16.msra.mxu2 %v7184_v28  ;;  %v11055_v28 = vsel %vm2720_vm15, %v2709_v50, %v2711_v7  ;;  %v8117_v8 = vld [vmem:[%s12628_s2 + $0x1c4] sm:$0xf]  ;;  %v7168_v7 = vor.u32 %v8101_v18, %v7165_v60  ;;  %v7157_v45 = vld [vmem:[%s12628_s2 + $0x138] sm:$0xf0] }
 0x484   : > { %4183 = vmatpush.bf16.msrb.mxu1 %v7240_v61  ;;  %v7160_v61 = vor.u32 %v8099_v43, %v7157_v45  ;;  %v8077_v60 = vld [vmem:[%s12628_s2 + $0x84] sm:$0xf]  ;;  %v7141_v43 = vld [vmem:[%s12628_s2 + $0x118] sm:$0xf0]  ;;  %v3735_v45 = vadd.f32 %v10761_v40, %v10739_v62 }
 0x485   : > { %v3786_v26 = vpop.f32.mrf.mxu3  ;;  %v3841_v44 = vpop.f32.mrf.mxu2 }
 0x486   : > { %v11039_v27 = vadd.f32 %v3786_v26, %v3748_v55  ;;  %v3842_v24 = vadd.f32 %v3841_v44, %v3803_v35  ;;  %v8079_v55 = vld [vmem:[%s12628_s2 + $0x94] sm:$0xf] }
 0x487   : > { %v3807_v29 = vpop.f32.mrf.mxu0  ;;  %v3883_v30 = vpop.f32.mrf.mxu1  ;;  %4107 = vmatpush.bf16.msra.mxu0 %v7096_v33  ;;  %4144 = vmatpush.bf16.msra.mxu2 %v7176_v52  ;;  %v7077_v33 = vld [vmem:[%s12628_s2 + $0x98] sm:$0xf0]  ;;  %v8115_v35 = vld [vmem:[%s12628_s2 + $0x1b4] sm:$0xf] }
 0x488   : > { %v11041_v46 = vadd.f32 %v3807_v29, %v3769_v23  ;;  %v11043_v20 = vadd.f32 %v3880_v57, %v3842_v24  ;;  %v11058_v57 = vsel %vm2720_vm15, %v2652_v1, %v2709_v50  ;;  %v7088_v29 = vor.u32 %v8081_v58, %v7085_v0  ;;  %v7221_v52 = vld [vmem:[%s12628_s2 + $0x1b8] sm:$0xf0]  ;;  %v2656_v50 = vpop.permute.xlu0 %2655 }
 0x489   : > { %v7232_v1 = vor.u32 %v8117_v8, %v7229_v19  ;;  %v7080_v41 = vor.u32 %v8079_v55, %v7077_v33  ;;  %v7224_v26 = vor.u32 %v8115_v35, %v7221_v52  ;;  %v7069_v8 = vld [vmem:[%s12628_s2 + $0x88] sm:$0xf0]  ;;  %v8095_v33 = vld [vmem:[%s12628_s2 + $0x114] sm:$0xf]  ;;  %v7317_v52 = vld [vmem:[%s12628_s2 + $0x278] sm:$0xf0] }
 0x48a   : > { %4009 = vmatmul.bf16.gmra.mxu2 %v11058_v57  ;;  %7580 = vmatmul.msk.bf16.gmra.mxu1 %vm3688_vm4, %v11055_v28  ;;  %v7149_v19 = vld [vmem:[%s12628_s2 + $0x128] sm:$0xf0]  ;;  %v8139_v35 = vld [vmem:[%s12628_s2 + $0x274] sm:$0xf] }
 0x48b   : > { %4108 = vmatpush.bf16.msra.mxu0 %v7088_v29  ;;  %4145 = vmatpush.bf16.msra.mxu2 %v7168_v7  ;;  %v8113_v7 = vld [vmem:[%s12628_s2 + $0x1a4] sm:$0xf] }
 0x48c   : > { %4184 = vmatpush.bf16.msrb.mxu1 %v7232_v1  ;;  %v7213_v1 = vld [vmem:[%s12628_s2 + $0x1a8] sm:$0xf0] }
 0x48d   : > { %v11090_v44 = vpop.f32.mrf.mxu3  ;;  %v3844_v23 = vpop.f32.mrf.mxu2 }
 0x48e   : > { %v3845_v24 = vadd.f32 %v3844_v23, %v10987_v54  ;;  %v8097_v54 = vld [vmem:[%s12628_s2 + $0x124] sm:$0xf]  ;;  %v7320_v23 = vor.u32 %v8139_v35, %v7317_v52  ;;  %v8135_v35 = vld [vmem:[%s12628_s2 + $0x254] sm:$0xf]  ;;  %v7301_v52 = vld [vmem:[%s12628_s2 + $0x258] sm:$0xf0] }
 0x48f   : > { %v3810_v58 = vpop.f32.mrf.mxu0  ;;  %v3885_v0 = vpop.f32.mrf.mxu1  ;;  %4109 = vmatpush.bf16.msra.mxu0 %v7080_v41  ;;  %4146 = vmatpush.bf16.msra.mxu2 %v7160_v61  ;;  %v7152_v55 = vor.u32 %v8097_v54, %v7149_v19  ;;  %v8111_v41 = vld [vmem:[%s12628_s2 + $0x194] sm:$0xf]  ;;  %v7144_v61 = vor.u32 %v8095_v33, %v7141_v43  ;;  %v7197_v43 = vld [vmem:[%s12628_s2 + $0x188] sm:$0xf0] }
 0x490   : > { %v11094_v18 = vadd.f32 %v3810_v58, %v10889_v2  ;;  %v11096_v29 = vadd.f32 %v3883_v30, %v3845_v24  ;;  %4185 = vmatpush.bf16.msrb.mxu1 %v7224_v26  ;;  %v11109_v2 = vsel %vm2661_vm14, %v10811_v38, %v2656_v50  ;;  %v7072_v30 = vor.u32 %v8077_v60, %v7069_v8  ;;  %v2713_v58 = vpop.permute.xlu1 %2712 }
 0x491   : > { %v7216_v38 = vor.u32 %v8113_v7, %v7213_v1  ;;  %v3774_v60 = vadd.f32 %v10902_v49, %v3735_v45  ;;  %4220 = vmatpush.bf16.msrb.mxu3 %v7320_v23  ;;  %v2715_v7 = vpop.permute.xlu2 %2714  ;;  %v7309_v45 = vld [vmem:[%s12628_s2 + $0x268] sm:$0xf0]  ;;  %v7304_v23 = vor.u32 %v8135_v35, %v7301_v52 }
 0x492   : > { %3975 = vmatmul.bf16.gmra.mxu0 %v11109_v2  ;;  %4082 = vmatmul.bf16.gmra.mxu3 %v9954_v53  ;;  %v7205_v53 = vld [vmem:[%s12628_s2 + $0x198] sm:$0xf0]  ;;  %v11159_v49 = vsel %vm2720_vm15, %v2713_v58, %v2715_v7 }
 0x493   : > { %4110 = vmatpush.bf16.msra.mxu0 %v7072_v30  ;;  %4147 = vmatpush.bf16.msra.mxu2 %v7152_v55  ;;  %v7208_v26 = vor.u32 %v8111_v41, %v7205_v53  ;;  %v8137_v41 = vld [vmem:[%s12628_s2 + $0x264] sm:$0xf] }
 0x494   : > { %4186 = vmatpush.bf16.msrb.mxu1 %v7216_v38  ;;  %v8093_v38 = vld [vmem:[%s12628_s2 + $0x104] sm:$0xf]  ;;  %v7312_v53 = vor.u32 %v8137_v41, %v7309_v45 }
 0x495   : > { %v3846_v24 = vpop.f32.mrf.mxu2  ;;  %v3917_v40 = vpop.f32.mrf.mxu3 }
 0x496   : > { %v3847_v8 = vadd.f32 %v3846_v24, %v11041_v46  ;;  %v11145_v54 = vadd.f32 %v3917_v40, %v10989_v21  ;;  %v7133_v46 = vld [vmem:[%s12628_s2 + $0x108] sm:$0xf0]  ;;  %v8109_v21 = vld [vmem:[%s12628_s2 + $0x184] sm:$0xf]  ;;  %4221 = vmatpush.bf16.msrb.mxu3 %v7312_v53  ;;  %v2660_v24 = vpop.permute.xlu0 %2659 }
 0x497   : > { %v3812_v30 = vpop.f32.mrf.mxu0  ;;  %v3888_v19 = vpop.f32.mrf.mxu1  ;;  %4148 = vmatpush.bf16.msra.mxu2 %v7144_v61  ;;  %v7136_v33 = vor.u32 %v8093_v38, %v7133_v46  ;;  %v8133_v38 = vld [vmem:[%s12628_s2 + $0x244] sm:$0xf]  ;;  %v7293_v46 = vld [vmem:[%s12628_s2 + $0x248] sm:$0xf0] }
 0x498   : > { %v3813_v1 = vadd.f32 %v3812_v30, %v3774_v60  ;;  %v11147_v55 = vadd.f32 %v3885_v0, %v3847_v8  ;;  %4187 = vmatpush.bf16.msrb.mxu1 %v7208_v26  ;;  %v11162_v0 = vsel %vm2720_vm15, %v2656_v50, %v2713_v58  ;;  %v7200_v50 = vor.u32 %v8109_v21, %v7197_v43  ;;  %v2717_v41 = vpop.permute.xlu1 %2716 }
 0x499   : > { %v11195_v21 = vsel %vm2661_vm14, %v10868_v13, %v2660_v24  ;;  %v2719_v52 = vpop.permute.xlu2 %2718 }
 0x49a   : > { %4014 = vmatmul.bf16.gmra.mxu2 %v11162_v0  ;;  %7581 = vmatmul.msk.bf16.gmra.mxu1 %vm3688_vm4, %v11159_v49 }
 0x49b   : > { %4149 = vmatpush.bf16.msra.mxu2 %v7136_v33  ;;  %4222 = vmatpush.bf16.msrb.mxu3 %v7304_v23  ;;  %v7277_v23 = vld [vmem:[%s12628_s2 + $0x228] sm:$0xf0] }
 0x49c   : > { %4188 = vmatpush.bf16.msrb.mxu1 %v7200_v50 }
 0x49d   : > { %v3849_v61 = vpop.f32.mrf.mxu2  ;;  %v3919_v26 = vpop.f32.mrf.mxu3 }
 0x49e   : > { %v3850_v40 = vadd.f32 %v3849_v61, %v11094_v18  ;;  %v11184_v58 = vadd.f32 %v3919_v26, %v11043_v20  ;;  %v7296_v20 = vor.u32 %v8133_v38, %v7293_v46  ;;  %v7285_v18 = vld [vmem:[%s12628_s2 + $0x238] sm:$0xf0] }
 0x49f   : > { %v3815_v60 = vpop.f32.mrf.mxu0  ;;  %v3890_v8 = vpop.f32.mrf.mxu1 }
 0x4a0   : > { %v3816_v30 = vadd.f32 %v3815_v60, %v10918_v6  ;;  %v3889_v7 = vadd.f32 %v3888_v19, %v3850_v40  ;;  %v8131_v6 = vld [vmem:[%s12628_s2 + $0x234] sm:$0xf]  ;;  %v3740_v19 = vadd.f32 %v10844_v31, %v10739_v62  ;;  %4223 = vmatpush.bf16.msrb.mxu3 %v7296_v20  ;;  %v8129_v31 = vld [vmem:[%s12628_s2 + $0x224] sm:$0xf]  ;;  %v11218_v40 = vsel %vm2720_vm15, %v2717_v41, %v2719_v52  ;;  %v7269_v60 = vld [vmem:[%s12628_s2 + $0x218] sm:$0xf0] }
 0x4a1   : > { %v7288_v43 = vor.u32 %v8131_v6, %v7285_v18 }
 0x4a2   : > { %3980 = vmatmul.bf16.gmra.mxu0 %v11195_v21  ;;  %4087 = vmatmul.bf16.gmra.mxu3 %v9971_v56  ;;  %v3779_v45 = vadd.f32 %v10930_v51, %v3740_v19  ;;  %v11221_v51 = vsel %vm2720_vm15, %v2660_v24, %v2717_v41 }
 0x4a4   : > { %4224 = vmatpush.bf16.msrb.mxu3 %v7288_v43  ;;  %v7261_v43 = vld [vmem:[%s12628_s2 + $0x208] sm:$0xf0] }
 0x4a5   : > { %v3851_v33 = vpop.f32.mrf.mxu2  ;;  %v3922_v13 = vpop.f32.mrf.mxu3 }
 0x4a6   : > { %v3852_v50 = vadd.f32 %v3851_v33, %v3813_v1  ;;  %v11209_v56 = vadd.f32 %v3922_v13, %v11096_v29  ;;  %v7280_v29 = vor.u32 %v8129_v31, %v7277_v23  ;;  %v8127_v1 = vld [vmem:[%s12628_s2 + $0x214] sm:$0xf]  ;;  %v8125_v13 = vld [vmem:[%s12628_s2 + $0x204] sm:$0xf] }
 0x4a7   : > { %v3817_v53 = vpop.f32.mrf.mxu0  ;;  %v3893_v35 = vpop.f32.mrf.mxu1  ;;  %v7272_v24 = vor.u32 %v8127_v1, %v7269_v60  ;;  %v7264_v41 = vor.u32 %v8125_v13, %v7261_v43 }
 0x4a8   : > { %v3818_v61 = vadd.f32 %v3817_v53, %v3779_v45  ;;  %v3891_v26 = vadd.f32 %v3890_v8, %v3852_v50  ;;  %4225 = vmatpush.bf16.msrb.mxu3 %v7280_v29 }
 0x4aa   : > { %4019 = vmatmul.bf16.gmra.mxu2 %v11221_v51  ;;  %7582 = vmatmul.msk.bf16.gmra.mxu1 %vm3688_vm4, %v11218_v40 }
 0x4ac   : > { %4226 = vmatpush.bf16.msrb.mxu3 %v7272_v24 }
 0x4ad   : > { %v3854_v8 = vpop.f32.mrf.mxu2  ;;  %v3924_v38 = vpop.f32.mrf.mxu3 }
 0x4ae   : > { %v3855_v46 = vadd.f32 %v3854_v8, %v3816_v30  ;;  %v11233_v20 = vadd.f32 %v3924_v38, %v11147_v55  ;;  %v3745_v55 = vadd.f32 %v10900_v48, %v10739_v62 }
 0x4af   : > { %v3820_v6 = vpop.f32.mrf.mxu0  ;;  %v3895_v18 = vpop.f32.mrf.mxu1 }
 0x4b0   : > { %v3821_v19 = vadd.f32 %v3820_v6, %v10947_v63  ;;  %v3894_v33 = vadd.f32 %v3893_v35, %v3855_v46  ;;  %4227 = vmatpush.bf16.msrb.mxu3 %v7264_v41  ;;  %v3784_v45 = vadd.f32 %v10982_v9, %v3745_v55 }
 0x4b2   : > { %4092 = vmatmul.bf16.gmra.mxu3 %v9990_v5  ;;  %4111 = vmatmul.bf16.vlgmr.msra.gmra.mxu0 %v10235_v4 }
 0x4b5   : > { %v3856_v30 = vpop.f32.mrf.mxu2  ;;  %v3927_v63 = vpop.f32.mrf.mxu3 }
 0x4b6   : > { %v3857_v50 = vadd.f32 %v3856_v30, %v3818_v61  ;;  %v11247_v53 = vadd.f32 %v3927_v63, %v3889_v7  ;;  %v3750_v7 = vadd.f32 %v10932_v10, %v10739_v62 }
 0x4b7   : > { %v3822_v35 = vpop.f32.mrf.mxu0  ;;  %v3898_v52 = vpop.f32.mrf.mxu1 }
 0x4b8   : > { %v3823_v31 = vadd.f32 %v3822_v35, %v3784_v45  ;;  %v3896_v23 = vadd.f32 %v3895_v18, %v3857_v50  ;;  %v8153_v45 = vld [vmem:[%s12628_s2 + $0x2e4] sm:$0xf]  ;;  %v7373_v50 = vld [vmem:[%s12628_s2 + $0x2e8] sm:$0xf0] }
 0x4b9   : > { %v7376_v35 = vor.u32 %v8153_v45, %v7373_v50 }
 0x4ba   : > { %4150 = vmatmul.bf16.vlgmr.msra.gmra.mxu2 %v10501_v16  ;;  %4189 = vmatmul.bf16.vlgmr.msrb.gmra.mxu1 %v10532_v14  ;;  %v3789_v14 = vadd.f32 %v11090_v44, %v3750_v7 }
 0x4bd   : > { %v3859_v5 = vpop.f32.mrf.mxu2  ;;  %v3929_v4 = vpop.f32.mrf.mxu3 }
 0x4be   : > { %v3860_v29 = vadd.f32 %v3859_v5, %v3821_v19  ;;  %v11251_v48 = vadd.f32 %v3929_v4, %v3891_v26  ;;  %v7509_v5 = vld [vmem:[%s12628_s2 + $0x3f8] sm:$0xf0] }
 0x4bf   : > { %v3825_v1 = vpop.f32.mrf.mxu0  ;;  %v3900_v60 = vpop.f32.mrf.mxu1 }
 0x4c0   : > { %v3826_v9 = vadd.f32 %v3825_v1, %v11039_v27  ;;  %v3899_v61 = vadd.f32 %v3898_v52, %v3860_v29  ;;  %v8151_v52 = vld [vmem:[%s12628_s2 + $0x2d4] sm:$0xf] }
 0x4c2   : > { %4097 = vmatmul.bf16.gmra.mxu3 %v10043_v32  ;;  %4116 = vmatmul.bf16.gmra.mxu0 %v10315_v42 }
 0x4c5   : > { %v3861_v16 = vpop.f32.mrf.mxu2  ;;  %v3932_v8 = vpop.f32.mrf.mxu3 }
 0x4c6   : > { %v3862_v38 = vadd.f32 %v3861_v16, %v3823_v31  ;;  %v11259_v24 = vadd.f32 %v3932_v8, %v3894_v33  ;;  %v8171_v31 = vld [vmem:[%s12628_s2 + $0x374] sm:$0xf] }
 0x4c7   : > { %v3827_v26 = vpop.f32.mrf.mxu0  ;;  %v3903_v46 = vpop.f32.mrf.mxu1 }
 0x4c8   : > { %v3828_v6 = vadd.f32 %v3827_v26, %v3789_v14  ;;  %v3901_v18 = vadd.f32 %v3900_v60, %v3862_v38  ;;  %v8149_v38 = vld [vmem:[%s12628_s2 + $0x2c4] sm:$0xf]  ;;  %v7357_v26 = vld [vmem:[%s12628_s2 + $0x2c8] sm:$0xf0] }
 0x4ca   : > { %4155 = vmatmul.bf16.gmra.mxu2 %v10545_v39  ;;  %4194 = vmatmul.bf16.gmra.mxu1 %v10552_v34  ;;  %v8155_v39 = vld [vmem:[%s12628_s2 + $0x2f4] sm:$0xf]  ;;  %v7381_v34 = vld [vmem:[%s12628_s2 + $0x2f8] sm:$0xf0] }
 0x4cb   : > { %v7384_v33 = vor.u32 %v8155_v39, %v7381_v34  ;;  %v7493_v34 = vld [vmem:[%s12628_s2 + $0x3d8] sm:$0xf0] }
 0x4cd   : > { %v3864_v32 = vpop.f32.mrf.mxu2  ;;  %v3934_v42 = vpop.f32.mrf.mxu3  ;;  %4259 = vmatpush.bf16.msrb.mxu0 %v7384_v33 }
 0x4ce   : > { %v3865_v27 = vadd.f32 %v3864_v32, %v3826_v9  ;;  %v11263_v19 = vadd.f32 %v3934_v42, %v3896_v23  ;;  %v7501_v32 = vld [vmem:[%s12628_s2 + $0x3e8] sm:$0xf0] }
 0x4cf   : > { %v3905_v62 = vpop.f32.mrf.mxu1  ;;  %v3956_v10 = vpop.f32.mrf.mxu0 }
 0x4d0   : > { %v3957_v44 = vadd.f32 %v3956_v10, %v11145_v54  ;;  %v11266_v13 = vadd.f32 %v3903_v46, %v3865_v27  ;;  %v8169_v46 = vld [vmem:[%s12628_s2 + $0x364] sm:$0xf]  ;;  %v7349_v10 = vld [vmem:[%s12628_s2 + $0x2b8] sm:$0xf0] }
 0x4d1   : > { %4260 = vmatpush.bf16.msrb.mxu0 %v7376_v35 }
 0x4d2   : > { %4121 = vmatmul.bf16.gmra.mxu0 %v10407_v25  ;;  %4228 = vmatmul.bf16.vlgmr.msrb.gmra.mxu3 %v10529_v15 }
 0x4d5   : > { %v3866_v43 = vpop.f32.mrf.mxu2  ;;  %v3937_v41 = vpop.f32.mrf.mxu3 }
 0x4d6   : > { %v3867_v55 = vadd.f32 %v3866_v43, %v3828_v6  ;;  %v11276_v54 = vadd.f32 %v3937_v41, %v3899_v61  ;;  %v7360_v6 = vor.u32 %v8149_v38, %v7357_v26 }
 0x4d7   : > { %v3958_v30 = vpop.f32.mrf.mxu0  ;;  %v4034_v63 = vpop.f32.mrf.mxu1 }
 0x4d8   : > { %v3959_v25 = vadd.f32 %v3958_v30, %v11184_v58  ;;  %v11279_v15 = vadd.f32 %v3905_v62, %v3867_v55  ;;  %v7365_v58 = vld [vmem:[%s12628_s2 + $0x2d8] sm:$0xf0]  ;;  %v8147_v62 = vld [vmem:[%s12628_s2 + $0x2b4] sm:$0xf] }
 0x4d9   : > { %v7368_v23 = vor.u32 %v8151_v52, %v7365_v58  ;;  %v7352_v39 = vor.u32 %v8147_v62, %v7349_v10  ;;  %v8145_v58 = vld [vmem:[%s12628_s2 + $0x2a4] sm:$0xf]  ;;  %v7325_v62 = vld [vmem:[%s12628_s2 + $0x288] sm:$0xf0] }
 0x4da   : > { %4160 = vmatmul.bf16.gmra.mxu2 %v10569_v17  ;;  %4199 = vmatmul.bf16.gmra.mxu1 %v10590_v37  ;;  %v7445_v17 = vld [vmem:[%s12628_s2 + $0x378] sm:$0xf0]  ;;  %v8187_v37 = vld [vmem:[%s12628_s2 + $0x3f4] sm:$0xf]  ;;  %v7405_v10 = vld [vmem:[%s12628_s2 + $0x328] sm:$0xf0] }
 0x4db   : > { %v7448_v4 = vor.u32 %v8171_v31, %v7445_v17  ;;  %v7512_v29 = vor.u32 %v8187_v37, %v7509_v5  ;;  %4261 = vmatpush.bf16.msrb.mxu0 %v7368_v23  ;;  %v7341_v31 = vld [vmem:[%s12628_s2 + $0x2a8] sm:$0xf0] }
 0x4dc   : > { %v7421_v23 = vld [vmem:[%s12628_s2 + $0x348] sm:$0xf0] }
 0x4dd   : > { %v3939_v1 = vpop.f32.mrf.mxu3  ;;  %v3995_v60 = vpop.f32.mrf.mxu2  ;;  %4298 = vmatpush.bf16.msrb.mxu2 %v7448_v4  ;;  %4337 = vmatpush.bf16.msra.mxu1 %v7512_v29  ;;  %v7485_v17 = vld [vmem:[%s12628_s2 + $0x3c8] sm:$0xf0]  ;;  %v8143_v4 = vld [vmem:[%s12628_s2 + $0x294] sm:$0xf]  ;;  %v7333_v29 = vld [vmem:[%s12628_s2 + $0x298] sm:$0xf0] }
 0x4de   : > { %v11307_v9 = vadd.f32 %v3939_v1, %v3901_v18  ;;  %v3996_v61 = vadd.f32 %v3995_v60, %v3957_v44  ;;  %v7437_v18 = vld [vmem:[%s12628_s2 + $0x368] sm:$0xf0]  ;;  %v8167_v44 = vld [vmem:[%s12628_s2 + $0x354] sm:$0xf]  ;;  %v7336_v60 = vor.u32 %v8143_v4, %v7333_v29 }
 0x4df   : > { %v3961_v7 = vpop.f32.mrf.mxu0  ;;  %v4036_v16 = vpop.f32.mrf.mxu1  ;;  %v7440_v42 = vor.u32 %v8169_v46, %v7437_v18  ;;  %4262 = vmatpush.bf16.msrb.mxu0 %v7360_v6  ;;  %v8163_v1 = vld [vmem:[%s12628_s2 + $0x334] sm:$0xf]  ;;  %v7453_v4 = vld [vmem:[%s12628_s2 + $0x388] sm:$0xf0] }
 0x4e0   : > { %v11309_v8 = vadd.f32 %v4034_v63, %v3996_v61  ;;  %v3962_v14 = vadd.f32 %v3961_v7, %v11209_v56  ;;  %v8185_v56 = vld [vmem:[%s12628_s2 + $0x3e4] sm:$0xf]  ;;  %v7477_v61 = vld [vmem:[%s12628_s2 + $0x3b8] sm:$0xf0]  ;;  %v7565_v29 = vld [vmem:[%s12628_s2 + $0x468] sm:$0xf0] }
 0x4e1   : > { %v7504_v27 = vor.u32 %v8185_v56, %v7501_v32  ;;  %4299 = vmatpush.bf16.msrb.mxu2 %v7440_v42 }
 0x4e2   : > { %4126 = vmatmul.bf16.gmra.mxu0 %v10478_v12  ;;  %4233 = vmatmul.bf16.gmra.mxu3 %v10555_v22  ;;  %v7429_v12 = vld [vmem:[%s12628_s2 + $0x358] sm:$0xf0]  ;;  %v8183_v22 = vld [vmem:[%s12628_s2 + $0x3d4] sm:$0xf] }
 0x4e3   : > { %4338 = vmatpush.bf16.msra.mxu1 %v7504_v27  ;;  %v7432_v33 = vor.u32 %v8167_v44, %v7429_v12  ;;  %v7496_v43 = vor.u32 %v8183_v22, %v7493_v34  ;;  %4263 = vmatpush.bf16.msrb.mxu0 %v7352_v39  ;;  %v8141_v27 = vld [vmem:[%s12628_s2 + $0x284] sm:$0xf]  ;;  %v7469_v44 = vld [vmem:[%s12628_s2 + $0x3a8] sm:$0xf0]  ;;  %v8159_v22 = vld [vmem:[%s12628_s2 + $0x314] sm:$0xf] }
 0x4e4   : > { %v7397_v34 = vld [vmem:[%s12628_s2 + $0x318] sm:$0xf0] }
 0x4e5   : > { %v3942_v41 = vpop.f32.mrf.mxu3  ;;  %v3997_v55 = vpop.f32.mrf.mxu2  ;;  %4300 = vmatpush.bf16.msrb.mxu2 %v7432_v33  ;;  %v8175_v33 = vld [vmem:[%s12628_s2 + $0x394] sm:$0xf] }
 0x4e6   : > { %v11351_v30 = vadd.f32 %v3942_v41, %v11266_v13  ;;  %v3998_v63 = vadd.f32 %v3997_v55, %v3959_v25  ;;  %v8165_v13 = vld [vmem:[%s12628_s2 + $0x344] sm:$0xf]  ;;  %v7344_v25 = vor.u32 %v8145_v58, %v7341_v31  ;;  %v7400_v41 = vor.u32 %v8159_v22, %v7397_v34 }
 0x4e7   : > { %v3963_v45 = vpop.f32.mrf.mxu0  ;;  %v4039_v50 = vpop.f32.mrf.mxu1  ;;  %4339 = vmatpush.bf16.msra.mxu1 %v7496_v43  ;;  %v7424_v37 = vor.u32 %v8165_v13, %v7421_v23  ;;  %v7573_v43 = vld [vmem:[%s12628_s2 + $0x478] sm:$0x70] }
 0x4e8   : > { %v11353_v35 = vadd.f32 %v4036_v16, %v3998_v63  ;;  %v3964_v52 = vadd.f32 %v3963_v45, %v11233_v20  ;;  %v8181_v20 = vld [vmem:[%s12628_s2 + $0x3c4] sm:$0xf]  ;;  %4264 = vmatpush.bf16.msrb.mxu0 %v7344_v25 }
 0x4e9   : > { %v7488_v5 = vor.u32 %v8181_v20, %v7485_v17  ;;  %4301 = vmatpush.bf16.msrb.mxu2 %v7424_v37  ;;  %v8157_v17 = vld [vmem:[%s12628_s2 + $0x304] sm:$0xf]  ;;  %v7389_v37 = vld [vmem:[%s12628_s2 + $0x308] sm:$0xf0] }
 0x4ea   : > { %12769 = vst [vmem:[#allocation26_spill] sm:$0xff] %v11353_v35  ;;  %4165 = vmatmul.bf16.gmra.mxu2 %v10641_v11  ;;  %4204 = vmatmul.bf16.gmra.mxu1 %v10688_v3  ;;  %v7413_v11 = vld [vmem:[%s12628_s2 + $0x338] sm:$0xf0]  ;;  %v8179_v3 = vld [vmem:[%s12628_s2 + $0x3b4] sm:$0xf] }
 0x4eb   : > { %4340 = vmatpush.bf16.msra.mxu1 %v7488_v5  ;;  %v7416_v7 = vor.u32 %v8163_v1, %v7413_v11  ;;  %v7480_v16 = vor.u32 %v8179_v3, %v7477_v61  ;;  %v7392_v5 = vor.u32 %v8157_v17, %v7389_v37  ;;  %v12772_v1 = vld [vmem:[#allocation17_spill] sm:$0xff]  ;;  %v8199_v3 = vld [vmem:[%s12628_s2 + $0x454] sm:$0xf] }
 0x4ec   : > { %4265 = vmatpush.bf16.msrb.mxu0 %v7336_v60  ;;  %v7557_v61 = vld [vmem:[%s12628_s2 + $0x458] sm:$0xf0] }
 0x4ed   : > { %v3944_v38 = vpop.f32.mrf.mxu3  ;;  %v4000_v26 = vpop.f32.mrf.mxu2  ;;  %4302 = vmatpush.bf16.msrb.mxu2 %v7416_v7 }
 0x4ee   : > { %v11395_v46 = vadd.f32 %v3944_v38, %v11279_v15  ;;  %v4001_v6 = vadd.f32 %v4000_v26, %v3962_v14  ;;  %v8161_v15 = vld [vmem:[%s12628_s2 + $0x324] sm:$0xf]  ;;  %v7328_v14 = vor.u32 %v8141_v27, %v7325_v62  ;;  %v7560_v38 = vor.u32 %v8199_v3, %v7557_v61  ;;  %v7549_v62 = vld [vmem:[%s12628_s2 + $0x448] sm:$0xf0] }
 0x4ef   : > { %v3966_v18 = vpop.f32.mrf.mxu0  ;;  %v4041_v56 = vpop.f32.mrf.mxu1  ;;  %4341 = vmatpush.bf16.msra.mxu1 %v7480_v16  ;;  %v7408_v39 = vor.u32 %v8161_v15, %v7405_v10  ;;  %v8197_v27 = vld [vmem:[%s12628_s2 + $0x444] sm:$0xf]  ;;  %v12774_v10 = vld [vmem:[#allocation16_spill] sm:$0xff] }
 0x4f0   : > { %v11397_v32 = vadd.f32 %v4039_v50, %v4001_v6  ;;  %v3967_v42 = vadd.f32 %v3966_v18, %v11247_v53  ;;  %v8177_v53 = vld [vmem:[%s12628_s2 + $0x3a4] sm:$0xf]  ;;  %4266 = vmatpush.bf16.msrb.mxu0 %v7328_v14  ;;  %v7552_v15 = vor.u32 %v8197_v27, %v7549_v62  ;;  %v12783_v62 = vld [vmem:[#allocation12_spill] sm:$0xff] }
 0x4f1   : > { %v7472_v12 = vor.u32 %v8177_v53, %v7469_v44  ;;  %4303 = vmatpush.bf16.msrb.mxu2 %v7408_v39  ;;  %v12773_v14 = vld [vmem:[#allocation10_spill] sm:$0xff] }
 0x4f2   : > { %12770 = vst [vmem:[#allocation27_spill] sm:$0xff] %v11397_v32  ;;  %4131 = vmatmul.bf16.gmra.mxu0 %v10525_v36  ;;  %4238 = vmatmul.bf16.gmra.mxu3 %v10594_v59  ;;  %v7461_v36 = vld [vmem:[%s12628_s2 + $0x398] sm:$0xf0]  ;;  %v8203_v59 = vld [vmem:[%s12628_s2 + $0x474] sm:$0xf] }
 0x4f3   : > { %4342 = vmatpush.bf16.msra.mxu1 %v7472_v12  ;;  %v7464_v55 = vor.u32 %v8175_v33, %v7461_v36  ;;  %v7576_v63 = vor.u32 %v8203_v59, %v7573_v43  ;;  %v8193_v59 = vld [vmem:[%s12628_s2 + $0x424] sm:$0xf]  ;;  %v7533_v43 = vld [vmem:[%s12628_s2 + $0x428] sm:$0xf0] }
 0x4f5   : > { %v4002_v45 = vpop.f32.mrf.mxu2  ;;  %v11438_v50 = vpop.f32.mrf.mxu3  ;;  %v3711_v31 = vsel %vm654_vm3, %v7576_v63, 0  ;;  %4304 = vmatpush.bf16.msrb.mxu2 %v7400_v41  ;;  %v7536_v41 = vor.u32 %v8193_v59, %v7533_v43  ;;  %v12776_v63 = vld [vmem:[#allocation6_spill] sm:$0xff] }
 0x4f6   : > { %v4003_v58 = vadd.f32 %v4002_v45, %v3964_v52  ;;  %4376 = vmatpush.bf16.msra.mxu3 %v3711_v31  ;;  %v8173_v52 = vld [vmem:[%s12628_s2 + $0x384] sm:$0xf]  ;;  %v8191_v45 = vld [vmem:[%s12628_s2 + $0x414] sm:$0xf] }
 0x4f7   : > { %v3968_v13 = vpop.f32.mrf.mxu0  ;;  %v4044_v25 = vpop.f32.mrf.mxu1  ;;  %4343 = vmatpush.bf16.msra.mxu1 %v7464_v55  ;;  %v7456_v60 = vor.u32 %v8173_v52, %v7453_v4  ;;  %v12775_v55 = vld [vmem:[#allocation19_spill] sm:$0xff]  ;;  %v8189_v52 = vld [vmem:[%s12628_s2 + $0x404] sm:$0xf] }
 0x4f8   : > { %v11441_v23 = vadd.f32 %v4041_v56, %v4003_v58  ;;  %v3969_v20 = vadd.f32 %v3968_v13, %v11251_v48  ;;  %v8201_v48 = vld [vmem:[%s12628_s2 + $0x464] sm:$0xf] }
 0x4f9   : > { %v7568_v11 = vor.u32 %v8201_v48, %v7565_v29  ;;  %4305 = vmatpush.bf16.msrb.mxu2 %v7392_v5  ;;  %v7517_v5 = vld [vmem:[%s12628_s2 + $0x408] sm:$0xf0]  ;;  %v12779_v29 = vld [vmem:[#allocation9_spill] sm:$0xff] }
 0x4fa   : > { %12771 = vst [vmem:[#allocation28_spill] sm:$0xff] %v11441_v23  ;;  %4170 = vmatmul.bf16.gmra.mxu2 %v10743_v47  ;;  %4209 = vmatmul.bf16.gmra.mxu1 %v12772_v1  ;;  %v7520_v4 = vor.u32 %v8189_v52, %v7517_v5  ;;  %v12778_v48 = vld [vmem:[#allocation15_spill] sm:$0xff] }
 0x4fb   : > { %4344 = vmatpush.bf16.msra.mxu1 %v7456_v60  ;;  %4377 = vmatpush.bf16.msra.mxu3 %v7568_v11 }
 0x4fd   : > { %v4005_v7 = vpop.f32.mrf.mxu2  ;;  %v11470_v16 = vpop.f32.mrf.mxu3 }
 0x4fe   : > { %v4006_v47 = vadd.f32 %v4005_v7, %v3967_v42  ;;  %v8195_v42 = vld [vmem:[%s12628_s2 + $0x434] sm:$0xf] }
 0x4ff   : > { %v3971_v26 = vpop.f32.mrf.mxu0  ;;  %v4046_v6 = vpop.f32.mrf.mxu1  ;;  %4378 = vmatpush.bf16.msra.mxu3 %v7560_v38  ;;  %v12781_v38 = vld [vmem:[#allocation3_spill] sm:$0xff] }
 0x500   : > { %v11472_v18 = vadd.f32 %v4044_v25, %v4006_v47  ;;  %v3972_v56 = vadd.f32 %v3971_v26, %v11259_v24  ;;  %v7541_v24 = vld [vmem:[%s12628_s2 + $0x438] sm:$0xf0] }
 0x501   : > { %v7544_v39 = vor.u32 %v8195_v42, %v7541_v24  ;;  %v12782_v47 = vld [vmem:[#allocation21_spill] sm:$0xff] }
 0x502   : > { %4136 = vmatmul.bf16.gmra.mxu0 %v12773_v14  ;;  %4243 = vmatmul.bf16.gmra.mxu3 %v12774_v10 }
 0x503   : > { %4379 = vmatpush.bf16.msra.mxu3 %v7552_v15  ;;  %v12784_v15 = vld [vmem:[#allocation14_spill] sm:$0xff] }
 0x505   : > { %v4007_v53 = vpop.f32.mrf.mxu2  ;;  %v11489_v44 = vpop.f32.mrf.mxu3 }
 0x506   : > { %v4008_v12 = vadd.f32 %v4007_v53, %v3969_v20  ;;  %v8546_v53 = vld [vmem:[%s12637_s11 + $0x1] ss:$8 sm:$0x3] }
 0x507   : > { %v3973_v22 = vpop.f32.mrf.mxu0  ;;  %v4049_v34 = vpop.f32.mrf.mxu1  ;;  %4380 = vmatpush.bf16.msra.mxu3 %v7544_v39  ;;  %v11535_v39 = vperm.slane %v8546_v53, 1  ;;  %v12796_v53 = vld [vmem:[#allocation2_spill] sm:$0xff] }
 0x508   : > { %v11491_v33 = vadd.f32 %v4046_v6, %v4008_v12  ;;  %v3974_v36 = vadd.f32 %v3973_v22, %v11263_v19  ;;  %v7525_v19 = vld [vmem:[%s12628_s2 + $0x418] sm:$0xf0]  ;;  %v12785_v12 = vld [vmem:[#allocation4_spill] sm:$0xff] }
 0x509   : > { %v7528_v13 = vor.u32 %v8191_v45, %v7525_v19  ;;  %v12786_v22 = vld [vmem:[#allocation8_spill] sm:$0xff]  ;;  %v4074_v59 = vadd.f32 %v11438_v50, %v11535_v39  ;;  %v12787_v45 = vld [vmem:[#allocation13_spill] sm:$0xff] }
 0x50a   : > { %4175 = vmatmul.bf16.gmra.mxu2 %v12775_v55  ;;  %4214 = vmatmul.bf16.gmra.mxu1 %v12776_v63  ;;  %v12788_v19 = vld [vmem:[#allocation5_spill] sm:$0xff] }
 0x50b   : > { %4381 = vmatpush.bf16.msra.mxu3 %v7536_v41 }
 0x50d   : > { %v4010_v58 = vpop.f32.mrf.mxu2  ;;  %v11508_v31 = vpop.f32.mrf.mxu3 }
 0x50e   : > { %v4011_v25 = vadd.f32 %v4010_v58, %v3972_v56 }
 0x50f   : > { %v3976_v20 = vpop.f32.mrf.mxu0  ;;  %v4051_v17 = vpop.f32.mrf.mxu1  ;;  %4382 = vmatpush.bf16.msra.mxu3 %v7528_v13 }
 0x510   : > { %v11510_v37 = vadd.f32 %v4049_v34, %v4011_v25 }
 0x512   : > { %12777 = vst [vmem:[#allocation17_spill] sm:$0xff] %v11510_v37  ;;  %4248 = vmatmul.bf16.gmra.mxu3 %v12778_v48  ;;  %4267 = vmatmul.bf16.vlgmr.msrb.gmra.mxu0 %v12779_v29  ;;  %v3977_v29 = vadd.f32 %v3976_v20, %v11276_v54 }
 0x513   : > { %4383 = vmatpush.bf16.msra.mxu3 %v7520_v4 }
 0x515   : > { %v4012_v1 = vpop.f32.mrf.mxu2  ;;  %v11520_v60 = vpop.f32.mrf.mxu3 }
 0x516   : > { %v4013_v11 = vadd.f32 %v4012_v1, %v3974_v36 }
 0x517   : > { %v3978_v3 = vpop.f32.mrf.mxu0  ;;  %v4054_v61 = vpop.f32.mrf.mxu1 }
 0x518   : > { %v11522_v7 = vadd.f32 %v4051_v17, %v4013_v11  ;;  %v3979_v4 = vadd.f32 %v3978_v3, %v11307_v9  ;;  %v12791_v11 = vld [vmem:[#allocation7_spill] sm:$0xff]  ;;  %v4079_v3 = vadd.f32 %v11489_v44, %v11535_v39 }
 0x51a   : > { %12780 = vst [vmem:[#allocation10_spill] sm:$0xff] %v11522_v7  ;;  %4306 = vmatmul.bf16.vlgmr.msrb.gmra.mxu2 %v12781_v38  ;;  %4345 = vmatmul.bf16.vlgmr.msra.gmra.mxu1 %v12782_v47 }
 0x51d   : > { %v4015_v26 = vpop.f32.mrf.mxu2  ;;  %v11526_v6 = vpop.f32.mrf.mxu3 }
 0x51e   : > { %v4016_v47 = vadd.f32 %v4015_v26, %v3977_v29  ;;  %v12795_v26 = vld [vmem:[#allocation18_spill] sm:$0xff] }
 0x51f   : > { %v3981_v56 = vpop.f32.mrf.mxu0  ;;  %v4056_v27 = vpop.f32.mrf.mxu1 }
 0x520   : > { %v3982_v63 = vadd.f32 %v3981_v56, %v11351_v30 }
 0x522   : > { %4253 = vmatmul.bf16.gmra.mxu3 %v12783_v62  ;;  %4272 = vmatmul.bf16.gmra.mxu0 %v12784_v15 }
 0x525   : > { %v4017_v14 = vpop.f32.mrf.mxu2  ;;  %v11530_v10 = vpop.f32.mrf.mxu3 }
 0x526   : > { %v4018_v1 = vadd.f32 %v4017_v14, %v3979_v4  ;;  %v11571_v14 = vadd.f32 %v4054_v61, %v4016_v47  ;;  %v12797_v61 = vld [vmem:[#allocation25_spill] sm:$0xff] }
 0x527   : > { %v3983_v42 = vpop.f32.mrf.mxu0  ;;  %v4059_v24 = vpop.f32.mrf.mxu1 }
 0x528   : > { %v3984_v58 = vadd.f32 %v3983_v42, %v11395_v46  ;;  %v12792_v46 = vld [vmem:[#allocation24_spill] sm:$0xff]  ;;  %v11567_v62 = vadd.f32 %v4056_v27, %v4018_v1  ;;  %12794 = vst [vmem:[#allocation15_spill] sm:$0xff] %v11571_v14 }
 0x52a   : > { %4311 = vmatmul.bf16.gmra.mxu2 %v12785_v12  ;;  %4350 = vmatmul.bf16.gmra.mxu1 %v12786_v22  ;;  %12793 = vst [vmem:[#allocation6_spill] sm:$0xff] %v11567_v62  ;;  %v8502_v12 = vpack.i.bf16 %v11567_v62, %v11571_v14 }
 0x52d   : > { %v4020_v34 = vpop.f32.mrf.mxu2  ;;  %v11539_v36 = vpop.f32.mrf.mxu3 }
 0x52e   : > { %v4021_v13 = vadd.f32 %v4020_v34, %v3982_v63 }
 0x52f   : > { %v4061_v43 = vpop.f32.mrf.mxu1  ;;  %v4112_v41 = vpop.f32.mrf.mxu0 }
 0x530   : > { %v4113_v55 = vadd.f32 %v4112_v41, %v4074_v59  ;;  %v11553_v48 = vadd.f32 %v4059_v24, %v4021_v13  ;;  %v4084_v41 = vadd.f32 %v11520_v60, %v11535_v39  ;;  %v12798_v13 = vld [vmem:[#allocation20_spill] sm:$0xff] }
 0x532   : > { %4277 = vmatmul.bf16.gmra.mxu0 %v12787_v45  ;;  %7583 = vmatmul.msk.bf16.vlgmr.msra.gmra.mxu3 %vm3688_vm4, %v12788_v19  ;;  %12789 = vst [vmem:[#allocation16_spill] sm:$0xff] %v11553_v48 }
 0x535   : > { %v4022_v25 = vpop.f32.mrf.mxu2  ;;  %v11548_v17 = vpop.f32.mrf.mxu3 }
 0x536   : > { %v4023_v52 = vadd.f32 %v4022_v25, %v3984_v58  ;;  %v12799_v25 = vld [vmem:[#allocation23_spill] sm:$0xff] }
 0x537   : > { %v11550_v5 = vpop.f32.mrf.mxu0  ;;  %v4190_v50 = vpop.f32.mrf.mxu1 }
 0x538   : > { %v11555_v30 = vadd.f32 %v4061_v43, %v4023_v52 }
 0x53a   : > { %12790 = vst [vmem:[#allocation19_spill] sm:$0xff] %v11555_v30  ;;  %4316 = vmatmul.bf16.gmra.mxu2 %v12791_v11  ;;  %4355 = vmatmul.bf16.gmra.mxu1 %v12792_v46  ;;  %v8482_v38 = vpack.i.bf16 %v11555_v30, %v11553_v48  ;;  %v4089_v11 = vadd.f32 %v11530_v10, %v11535_v39 }
 0x53c   : > { %8483 = vrot.lane.b32.xlu1 %v8482_v38, %s8565_s15 }
 0x53d   : > { %v11563_v56 = vpop.f32.mrf.mxu3  ;;  %v4151_v9 = vpop.f32.mrf.mxu2 }
 0x53e   : > { %v4152_v54 = vadd.f32 %v4151_v9, %v4113_v55 }
 0x53f   : > { %v4117_v20 = vpop.f32.mrf.mxu0  ;;  %v11569_v15 = vpop.f32.mrf.mxu1 }
 0x540   : > { %v4118_v42 = vadd.f32 %v4117_v20, %v4079_v3  ;;  %v4191_v24 = vadd.f32 %v4190_v50, %v4152_v54  ;;  %v12801_v54 = vld [vmem:[#allocation22_spill] sm:$0xff] }
 0x542   : > { %4282 = vmatmul.bf16.gmra.mxu0 %v12795_v26  ;;  %7584 = vmatmul.msk.bf16.gmra.mxu3 %vm3688_vm4, %v12796_v53  ;;  %v4094_v53 = vadd.f32 %v11548_v17, %v11535_v39 }
 0x544   : > { %8503 = vrot.lane.b32.xlu1 %v8502_v12, %s8565_s15 }
 0x545   : > { %v4098_v44 = vpop.f32.mrf.mxu3  ;;  %v11579_v27 = vpop.f32.mrf.mxu2 }
 0x546   : > { %v4099_v17 = vadd.f32 %v4098_v44, %v11535_v39 }
 0x547   : > { %v11581_v22 = vpop.f32.mrf.mxu0  ;;  %v4195_v34 = vpop.f32.mrf.mxu1 }
 0x54a   : > { %4321 = vmatmul.bf16.gmra.mxu2 %v12797_v61  ;;  %4360 = vmatmul.bf16.gmra.mxu1 %v11058_v57 }
 0x54d   : > { %v11585_v59 = vpop.f32.mrf.mxu3  ;;  %v4156_v43 = vpop.f32.mrf.mxu2 }
 0x54e   : > { %v4157_v55 = vadd.f32 %v4156_v43, %v4118_v42 }
 0x54f   : > { %v4122_v63 = vpop.f32.mrf.mxu0  ;;  %v11589_v45 = vpop.f32.mrf.mxu1 }
 0x550   : > { %v4123_v19 = vadd.f32 %v4122_v63, %v4084_v41  ;;  %v4196_v58 = vadd.f32 %v4195_v34, %v4157_v55 }
 0x552   : > { %4287 = vmatmul.bf16.gmra.mxu0 %v12798_v13  ;;  %7585 = vmatmul.msk.bf16.gmra.mxu3 %vm3688_vm4, %v12799_v25 }
 0x555   : > { %v11594_v52 = vpop.f32.mrf.mxu2  ;;  %v4229_v57 = vpop.f32.mrf.mxu3 }
 0x556   : > { %v4230_v50 = vadd.f32 %v4229_v57, %v4191_v24 }
 0x557   : > { %v11596_v4 = vpop.f32.mrf.mxu0  ;;  %v4200_v29 = vpop.f32.mrf.mxu1 }
 0x55a   : > { %4326 = vmatmul.bf16.gmra.mxu2 %v11109_v2  ;;  %4365 = vmatmul.bf16.gmra.mxu1 %v11162_v0 }
 0x55d   : > { %v4161_v60 = vpop.f32.mrf.mxu2  ;;  %v11600_v1 = vpop.f32.mrf.mxu3 }
 0x55e   : > { %12800 = vst [vmem:[#allocation9_spill] sm:$0xff] %v11600_v1  ;;  %v4162_v46 = vadd.f32 %v4161_v60, %v4123_v19 }
 0x55f   : > { %v4127_v38 = vpop.f32.mrf.mxu0  ;;  %v11604_v47 = vpop.f32.mrf.mxu1 }
 0x560   : > { %v4128_v9 = vadd.f32 %v4127_v38, %v4089_v11  ;;  %v4201_v3 = vadd.f32 %v4200_v29, %v4162_v46 }
 0x562   : > { %4292 = vmatmul.bf16.gmra.mxu0 %v12801_v54  ;;  %7586 = vmatmul.msk.bf16.gmra.mxu3 %vm3688_vm4, %v11055_v28 }
 0x565   : > { %v11609_v2 = vpop.f32.mrf.mxu2  ;;  %v4234_v0 = vpop.f32.mrf.mxu3 }
 0x566   : > { %v11611_v20 = vadd.f32 %v4234_v0, %v4196_v58 }
 0x567   : > { %v11613_v42 = vpop.f32.mrf.mxu0  ;;  %v4205_v24 = vpop.f32.mrf.mxu1 }
 0x56a   : > { %4331 = vmatmul.bf16.gmra.mxu2 %v11195_v21  ;;  %4370 = vmatmul.bf16.gmra.mxu1 %v11221_v51 }
 0x56d   : > { %v4166_v10 = vpop.f32.mrf.mxu2  ;;  %v11617_v26 = vpop.f32.mrf.mxu3 }
 0x56e   : > { %v4167_v12 = vadd.f32 %v4166_v10, %v4128_v9 }
 0x56f   : > { %v4132_v28 = vpop.f32.mrf.mxu0  ;;  %v11621_v34 = vpop.f32.mrf.mxu1 }
 0x570   : > { %v4133_v61 = vadd.f32 %v4132_v28, %v4094_v53  ;;  %v4206_v43 = vadd.f32 %v4205_v24, %v4167_v12 }
 0x572   : > { %7587 = vmatmul.msk.bf16.gmra.mxu3 %vm3688_vm4, %v11159_v49 }
 0x575   : > { %v11625_v41 = vpop.f32.mrf.mxu2  ;;  %v4239_v21 = vpop.f32.mrf.mxu3 }
 0x576   : > { %v11627_v55 = vadd.f32 %v4239_v21, %v4201_v3 }
 0x577   : > { %v11629_v51 = vpop.f32.mrf.mxu0  ;;  %v4210_v63 = vpop.f32.mrf.mxu1 }
 0x57d   : > { %v4171_v19 = vpop.f32.mrf.mxu2  ;;  %v11631_v58 = vpop.f32.mrf.mxu3 }
 0x57e   : > { %v4172_v13 = vadd.f32 %v4171_v19, %v4133_v61 }
 0x57f   : > { %v4137_v25 = vpop.f32.mrf.mxu0  ;;  %v11634_v57 = vpop.f32.mrf.mxu1 }
 0x580   : > { %v4138_v29 = vadd.f32 %v4137_v25, %v4099_v17  ;;  %v4211_v60 = vadd.f32 %v4210_v63, %v4172_v13 }
 0x582   : > { %7588 = vmatmul.msk.bf16.gmra.mxu3 %vm3688_vm4, %v11218_v40 }
 0x585   : > { %v11638_v49 = vpop.f32.mrf.mxu2  ;;  %v4244_v11 = vpop.f32.mrf.mxu3 }
 0x586   : > { %v11640_v46 = vadd.f32 %v4244_v11, %v4206_v43 }
 0x587   : > { %v11642_v38 = vpop.f32.mrf.mxu0  ;;  %v4215_v9 = vpop.f32.mrf.mxu1 }
 0x58d   : > { %v4176_v3 = vpop.f32.mrf.mxu2  ;;  %v11644_v54 = vpop.f32.mrf.mxu3 }
 0x58e   : > { %v4177_v44 = vadd.f32 %v4176_v3, %v4138_v29 }
 0x58f   : > { %v4268_v0 = vpop.f32.mrf.mxu0  ;;  %v11646_v53 = vpop.f32.mrf.mxu1 }
 0x590   : > { %v4269_v24 = vadd.f32 %v4268_v0, %v4230_v50  ;;  %v4216_v10 = vadd.f32 %v4215_v9, %v4177_v44 }
 0x595   : > { %v11648_v12 = vpop.f32.mrf.mxu2  ;;  %v4249_v40 = vpop.f32.mrf.mxu3 }
 0x596   : > { %v11650_v28 = vadd.f32 %v4249_v40, %v4211_v60 }
 0x597   : > { %v4346_v61 = vpop.f32.mrf.mxu1  ;;  %v11654_v19 = vpop.f32.mrf.mxu0 }
 0x598   : > { %12802 = vst [vmem:[#allocation3_spill] sm:$0xff] %v11654_v19 }
 0x59d   : > { %v11652_v43 = vpop.f32.mrf.mxu3  ;;  %v4307_v21 = vpop.f32.mrf.mxu2 }
 0x59e   : > { %v4308_v63 = vadd.f32 %v4307_v21, %v4269_v24  ;;  %v4081_v24 = vadd.f32 %v11508_v31, %v11535_v39 }
 0x59f   : > { %v11660_v29 = vpop.f32.mrf.mxu1  ;;  %v4273_v11 = vpop.f32.mrf.mxu0 }
 0x5a0   : > { %v4347_v17 = vadd.f32 %v4346_v61, %v4308_v63  ;;  %12804 = vst [vmem:[#allocation12_spill] sm:$0xff] %v11660_v29  ;;  %v4120_v21 = vadd.f32 %v11581_v22, %v4081_v24  ;;  %v4274_v31 = vadd.f32 %v4273_v11, %v11611_v20 }
 0x5a5   : > { %v4254_v13 = vpop.f32.mrf.mxu3  ;;  %v11656_v25 = vpop.f32.mrf.mxu2 }
 0x5a6   : > { %12803 = vst [vmem:[#allocation21_spill] sm:$0xff] %v11656_v25  ;;  %v11658_v50 = vadd.f32 %v4254_v13, %v4216_v10  ;;  %v4159_v13 = vadd.f32 %v11594_v52, %v4120_v21 }
 0x5a7   : > { %v4351_v3 = vpop.f32.mrf.mxu1  ;;  %v4275_v44 = vpop.f32.mrf.mxu0 }
 0x5a8   : > { %v4198_v62 = vadd.f32 %v11589_v45, %v4159_v13 }
 0x5aa   : > { %v4237_v14 = vadd.f32 %v11617_v26, %v4198_v62 }
 0x5ad   : > { %v11662_v9 = vpop.f32.mrf.mxu3  ;;  %v4312_v60 = vpop.f32.mrf.mxu2 }
 0x5ae   : > { %v4313_v22 = vadd.f32 %v4312_v60, %v4274_v31 }
 0x5af   : > { %v4353_v61 = vpop.f32.mrf.mxu1  ;;  %v11669_v10 = vpop.f32.mrf.mxu0 }
 0x5b0   : > { %v4352_v37 = vadd.f32 %v4351_v3, %v4313_v22 }
 0x5b5   : > { %v4314_v0 = vpop.f32.mrf.mxu2  ;;  %v4385_v40 = vpop.f32.mrf.mxu3 }
 0x5b6   : > { %v11664_v30 = vadd.f32 %v4385_v40, %v4347_v17 }
 0x5b7   : > { %v11678_v17 = vpop.f32.mrf.mxu1  ;;  %v4280_v29 = vpop.f32.mrf.mxu0 }
 0x5b8   : > { %12805 = vst [vmem:[#allocation14_spill] sm:$0xff] %v11664_v30  ;;  %v4276_v30 = vadd.f32 %v4275_v44, %v4237_v14 }
 0x5ba   : > { %v4315_v24 = vadd.f32 %v4314_v0, %v4276_v30  ;;  %v8532_v30 = vpack.i.bf16 %v11441_v23, %v11397_v32 }
 0x5bd   : > { %v11671_v63 = vpop.f32.mrf.mxu3  ;;  %v11674_v48 = vpop.f32.mrf.mxu2 }
 0x5be   : > { %12806 = vst [vmem:[#allocation4_spill] sm:$0xff] %v11671_v63  ;;  %v4354_v63 = vadd.f32 %v4353_v61, %v4315_v24 }
 0x5bf   : > { %v4358_v45 = vpop.f32.mrf.mxu1  ;;  %v11687_v26 = vpop.f32.mrf.mxu0 }
 0x5c5   : > { %v4390_v40 = vpop.f32.mrf.mxu3  ;;  %v4319_v7 = vpop.f32.mrf.mxu2 }
 0x5c6   : > { %v11681_v52 = vadd.f32 %v4390_v40, %v4352_v37 }
 0x5c7   : > { %v11694_v11 = vpop.f32.mrf.mxu1  ;;  %v11697_v37 = vpop.f32.mrf.mxu0 }
 0x5c8   : > { %12807 = vst [vmem:[#allocation8_spill] sm:$0xff] %v11681_v52 }
 0x5cd   : > { %v4392_v25 = vpop.f32.mrf.mxu3  ;;  %v11690_v14 = vpop.f32.mrf.mxu2 }
 0x5ce   : > { %v11683_v21 = vadd.f32 %v4392_v25, %v4354_v63  ;;  %v4096_v63 = vadd.f32 %v11563_v56, %v11535_v39 }
 0x5cf   : > { %v11701_v3 = vpop.f32.mrf.mxu1  ;;  %v4288_v44 = vpop.f32.mrf.mxu0 }
 0x5d0   : > { %12808 = vst [vmem:[#allocation13_spill] sm:$0xff] %v11683_v21  ;;  %v8517_v62 = vpack.i.bf16 %v11683_v21, %v11681_v52  ;;  %v4135_v13 = vadd.f32 %v11629_v51, %v4096_v63  ;;  %v4289_v51 = vadd.f32 %v4288_v44, %v11650_v28 }
 0x5d2   : > { %8518 = vrot.lane.b32.xlu1 %v8517_v62, %s8565_s15  ;;  %v4174_v22 = vadd.f32 %v11638_v49, %v4135_v13  ;;  %v4086_v62 = vadd.f32 %v11526_v6, %v11535_v39  ;;  %v4101_v6 = vadd.f32 %v11585_v59, %v11535_v39  ;;  %v4091_v59 = vadd.f32 %v11539_v36, %v11535_v39 }
 0x5d4   : > { %v4125_v23 = vadd.f32 %v11596_v4, %v4086_v62  ;;  %v4213_v32 = vadd.f32 %v11634_v57, %v4174_v22  ;;  %v4140_v57 = vadd.f32 %v11642_v38, %v4101_v6  ;;  %v8522_v6 = vpack.i.bf16 %v11491_v33, %v11472_v18 }
 0x5d5   : > { %v4395_v20 = vpop.f32.mrf.mxu3  ;;  %v11699_v25 = vpop.f32.mrf.mxu2 }
 0x5d6   : > { %v4164_v52 = vadd.f32 %v11609_v2, %v4125_v23  ;;  %v4252_v56 = vadd.f32 %v11652_v43, %v4213_v32  ;;  %v4179_v28 = vadd.f32 %v11648_v12, %v4140_v57  ;;  %v4130_v12 = vadd.f32 %v11613_v42, %v4091_v59  ;;  %v12810_v57 = vld [vmem:[#allocation9_spill] sm:$0xff] }
 0x5d7   : > { %v4366_v40 = vpop.f32.mrf.mxu1  ;;  %v4290_v24 = vpop.f32.mrf.mxu0 }
 0x5d8   : > { %v4291_v63 = vadd.f32 %v4290_v24, %v4252_v56  ;;  %v4203_v49 = vadd.f32 %v11604_v47, %v4164_v52  ;;  %v4279_v47 = vadd.f32 %v11669_v10, %v11627_v55  ;;  %v4169_v55 = vadd.f32 %v11625_v41, %v4130_v12 }
 0x5da   : > { %8533 = vrot.lane.b32.xlu1 %v8532_v30, %s8565_s15  ;;  %v4242_v4 = vadd.f32 %v11631_v58, %v4203_v49  ;;  %v4318_v58 = vadd.f32 %v11674_v48, %v4279_v47  ;;  %v4076_v49 = vadd.f32 %v11470_v16, %v11535_v39 }
 0x5dc   : > { %v4281_v2 = vadd.f32 %v4280_v29, %v4242_v4  ;;  %v4357_v36 = vadd.f32 %v11678_v17, %v4318_v58  ;;  %v8484_v58 = vpop.permute.xlu1 %8483 }
 0x5dd   : > { %v4397_v60 = vpop.f32.mrf.mxu3  ;;  %v4327_v61 = vpop.f32.mrf.mxu2 }
 0x5de   : > { %v4328_v13 = vadd.f32 %v4327_v61, %v4289_v51  ;;  %v4320_v52 = vadd.f32 %v4319_v7, %v4281_v2  ;;  %v11743_v24 = vadd.f32 %v4395_v20, %v4357_v36 }
 0x5df   : > { %v4368_v19 = vpop.f32.mrf.mxu1  ;;  %v4293_v35 = vpop.f32.mrf.mxu0 }
 0x5e0   : > { %v4367_v32 = vadd.f32 %v4366_v40, %v4328_v13  ;;  %v4359_v29 = vadd.f32 %v4358_v45, %v4320_v52  ;;  %v4294_v42 = vadd.f32 %v4293_v35, %v11658_v50  ;;  %v4284_v35 = vadd.f32 %v11687_v26, %v11640_v46  ;;  %v12817_v52 = vld [vmem:[#allocation14_spill] sm:$0xff] }
 0x5e5   : > { %v11703_v0 = vpop.f32.mrf.mxu3  ;;  %v4329_v30 = vpop.f32.mrf.mxu2 }
 0x5e6   : > { %v4330_v1 = vadd.f32 %v4329_v30, %v4291_v63 }
 0x5e7   : > { %v4295_v7 = vpop.f32.mrf.mxu0 }
 0x5e8   : > { %v4369_v43 = vadd.f32 %v4368_v19, %v4330_v1  ;;  %v4371_v1 = vpop.f32.mrf.mxu1  ;;  %v4218_v19 = vadd.f32 %v11646_v53, %v4179_v28  ;;  %v4208_v53 = vadd.f32 %v11621_v34, %v4169_v55 }
 0x5ea   : > { %v4257_v10 = vadd.f32 %v11662_v9, %v4218_v19  ;;  %v4247_v9 = vadd.f32 %v11644_v54, %v4208_v53  ;;  %v4323_v54 = vadd.f32 %v11690_v14, %v4284_v35  ;;  %v12818_v53 = vld [vmem:[#allocation15_spill] sm:$0xff]  ;;  %v12821_v35 = vld [vmem:[#allocation8_spill] sm:$0xff] }
 0x5ec   : > { %v4296_v62 = vadd.f32 %v4295_v7, %v4257_v10  ;;  %v4362_v26 = vadd.f32 %v11694_v11, %v4323_v54 }
 0x5ed   : > { %v11708_v31 = vpop.f32.mrf.mxu3  ;;  %v4332_v23 = vpop.f32.mrf.mxu2 }
 0x5ee   : > { %v4333_v30 = vadd.f32 %v4332_v23, %v4294_v42  ;;  %v11770_v39 = vadd.f32 %v11703_v0, %v4362_v26  ;;  %v12813_v0 = vld [vmem:[#allocation17_spill] sm:$0xff] }
 0x5f0   : > { %v4373_v17 = vpop.f32.mrf.mxu1  ;;  %v4372_v56 = vadd.f32 %v4371_v1, %v4333_v30 }
 0x5f5   : > { %v4405_v21 = vpop.f32.mrf.mxu3  ;;  %v4334_v48 = vpop.f32.mrf.mxu2 }
 0x5f6   : > { %v11726_v61 = vadd.f32 %v4405_v21, %v4367_v32  ;;  %v11741_v21 = vadd.f32 %v4397_v60, %v4359_v29  ;;  %v4335_v41 = vadd.f32 %v4334_v48, %v4296_v62  ;;  %v4286_v60 = vadd.f32 %v11697_v37, %v4247_v9  ;;  %v12814_v32 = vld [vmem:[#allocation10_spill] sm:$0xff] }
 0x5f7   : > { %v4115_v37 = vadd.f32 %v11550_v5, %v4076_v49 }
 0x5f8   : > { %v8507_v45 = vpack.i.bf16 %v11741_v21, %v11743_v24  ;;  %v4374_v20 = vadd.f32 %v4373_v17, %v4335_v41  ;;  %v4325_v34 = vadd.f32 %v11699_v25, %v4286_v60  ;;  %v12809_v25 = vld [vmem:[#allocation26_spill] sm:$0xff]  ;;  %v8486_v17 = vunpack.i.h.bf16 %v8484_v58 }
 0x5f9   : > { %v4154_v46 = vadd.f32 %v11579_v27, %v4115_v37  ;;  %v12811_v27 = vld [vmem:[#allocation3_spill] sm:$0xff]  ;;  %v12819_v41 = vld [vmem:[#allocation6_spill] sm:$0xff]  ;;  %v8485_v60 = vunpack.i.l.bf16 %v8484_v58 }
 0x5fa   : > { %v4364_v4 = vadd.f32 %v11701_v3, %v4325_v34  ;;  %v8537_v3 = vpack.i.bf16 %v12809_v25, %v11309_v8 }
 0x5fb   : > { %v4193_v14 = vadd.f32 %v11569_v15, %v4154_v46  ;;  %v12815_v15 = vld [vmem:[#allocation12_spill] sm:$0xff] }
 0x5fc   : > { %v11767_v16 = vadd.f32 %v11708_v31, %v4364_v4  ;;  %v12812_v31 = vld [vmem:[#allocation21_spill] sm:$0xff] }
 0x5fd   : > { %v4407_v44 = vpop.f32.mrf.mxu3  ;;  %v4232_v23 = vadd.f32 %v12810_v57, %v4193_v14 }
 0x5fe   : > { %v11728_v22 = vadd.f32 %v4407_v44, %v4369_v43  ;;  %v8497_v5 = vpack.i.bf16 %v11767_v16, %v11770_v39  ;;  %v8512_v43 = vpack.i.bf16 %v12814_v32, %v12813_v0  ;;  %v12816_v44 = vld [vmem:[#allocation4_spill] sm:$0xff] }
 0x5ff   : > { %v4271_v11 = vadd.f32 %v12811_v27, %v4232_v23  ;;  %v12823_v23 = vld [vmem:[#allocation19_spill] sm:$0xff] }
 0x600   : > { %v8487_v38 = vpack.i.bf16 %v11728_v22, %v11726_v61 }
 0x601   : > { %v4310_v2 = vadd.f32 %v12812_v31, %v4271_v11 }
 0x602   : > { %8488 = vrot.lane.b32.xlu2 %v8487_v38, %s8565_s15  ;;  %v8504_v38 = vpop.permute.xlu1 %8503 }
 0x603   : > { %v4349_v28 = vadd.f32 %v12815_v15, %v4310_v2  ;;  %v8506_v29 = vunpack.i.h.bf16 %v8504_v38  ;;  %v8505_v7 = vunpack.i.l.bf16 %v8504_v38 }
 0x605   : > { %v4410_v40 = vpop.f32.mrf.mxu3  ;;  %v11787_v47 = vadd.f32 %v12816_v44, %v4349_v28 }
 0x606   : > { %v4411_v50 = vadd.f32 %v4410_v40, %v4372_v56 }
 0x607   : > { %v8527_v59 = vpack.i.bf16 %v11787_v47, %v12817_v52 }
 0x60a   : > { %8508 = vrot.lane.b32.xlu2 %v8507_v45, %s8565_s15 }
 0x60d   : > { %v4412_v51 = vpop.f32.mrf.mxu3 }
 0x60e   : > { %v4413_v63 = vadd.f32 %v4412_v51, %v4374_v20  ;;  %v12820_v20 = vld [vmem:[#allocation13_spill] sm:$0xff] }
 0x610   : > { %v8492_v13 = vpack.i.bf16 %v4413_v63, %v4411_v50 }
 0x612   : > { %8493 = vrot.lane.b32.xlu0 %v8492_v13, %s8565_s15  ;;  %8523 = vrot.lane.b32.xlu2 %v8522_v6, %s8565_s15 }
 0x61a   : > { %8498 = vrot.lane.b32.xlu0 %v8497_v5, %s8565_s15  ;;  %8538 = vrot.lane.b32.xlu2 %v8537_v3, %s8565_s15  ;;  %v12822_v3 = vld [vmem:[#allocation16_spill] sm:$0xff] }
 0x622   : > { %8513 = vrot.lane.b32.xlu0 %v8512_v43, %s8565_s15 }
 0x62a   : > { %8528 = vrot.lane.b32.xlu0 %v8527_v59, %s8565_s15 }
 0x644   : > { %v11792_v55 = vpop.permute.xlu1 %8518 }
 0x645   : > { %v8521_v48 = vunpack.i.h.bf16 %v11792_v55  ;;  %v8520_v40 = vunpack.i.l.bf16 %v11792_v55 }
 0x647   : > { %v11815_v51 = vmax.f32 %v12820_v20, %v8521_v48 }
 0x649   : > { %v4584_v11 = vrot.slane %v11815_v51, 1 }
 0x64c   : > { %v8534_v37 = vpop.permute.xlu1 %8533 }
 0x64d   : > { %v8535_v15 = vunpack.i.l.bf16 %v8534_v37 }
 0x65c   : > { %v8489_v1 = vpop.permute.xlu2 %8488 }
 0x65d   : > { %v8491_v12 = vunpack.i.h.bf16 %v8489_v1  ;;  %v8490_v19 = vunpack.i.l.bf16 %v8489_v1 }
 0x65f   : > { %v4496_v10 = vsel %vm4487_vm6, %v8505_v7, %v8490_v19  ;;  %v4497_v36 = vsel %vm4487_vm6, %v8506_v29, %v8491_v12  ;;  %v11801_v62 = vmax.f32 %v11728_v22, %v8491_v12  ;;  %v11807_v30 = vmax.f32 %v11726_v61, %v8490_v19 }
 0x660   : > { %v11804_v45 = vmax.f32 %v12818_v53, %v4496_v10  ;;  %v11810_v9 = vmax.f32 %v12819_v41, %v4497_v36  ;;  %v11818_v22 = vmax.f32 %v12821_v35, %v8520_v40 }
 0x661   : > { %v4608_v54 = vrot.slane %v11801_v62, 1  ;;  %v4604_v13 = vrot.slane %v11807_v30, 1 }
 0x662   : > { %v4602_v61 = vrot.slane %v11804_v45, 1  ;;  %v4606_v6 = vrot.slane %v11810_v9, 1  ;;  %v4580_v31 = vrot.slane %v11818_v22, 1 }
 0x663   : > { %v4609_v59 = vsel %vm654_vm3, %v4604_v13, %v4608_v54 }
 0x664   : > { %v11798_v42 = vpop.permute.xlu2 %8508  ;;  %v4607_v1 = vsel %vm654_vm3, %v4602_v61, %v4606_v6 }
 0x665   : > { %v8511_v5 = vunpack.i.h.bf16 %v11798_v42 }
 0x667   : > { %v11838_v12 = vmax.f32 %v11741_v21, %v8511_v5 }
 0x684   : > { %v8494_v56 = vpop.permute.xlu0 %8493 }
 0x685   : > { %v8496_v34 = vunpack.i.h.bf16 %v8494_v56  ;;  %v8495_v49 = vunpack.i.l.bf16 %v8494_v56 }
 0x687   : > { %v4547_v4 = vmax.f32 %v4413_v63, %v8496_v34  ;;  %v4498_v46 = vsel %vm4487_vm6, %v8485_v60, %v8495_v49  ;;  %v4499_v26 = vsel %vm4487_vm6, %v8486_v17, %v8496_v34  ;;  %v4545_v14 = vmax.f32 %v4411_v50, %v8495_v49  ;;  %v8524_v50 = vpop.permute.xlu2 %8523 }
 0x688   : > { %v4544_v57 = vmax.f32 %v12822_v3, %v4498_v46  ;;  %v4546_v27 = vmax.f32 %v12823_v23, %v4499_v26  ;;  %v8510_v63 = vunpack.i.l.bf16 %v11798_v42  ;;  %v8526_v60 = vunpack.i.h.bf16 %v8524_v50  ;;  %v12824_v26 = vld [vmem:[#allocation11_spill] sm:$0xff] }
 0x689   : > { %v4616_v2 = vrot.slane %v4547_v4, 1  ;;  %v4612_v43 = vrot.slane %v4545_v14, 1  ;;  %v8525_v35 = vunpack.i.l.bf16 %v8524_v50  ;;  %v4490_v46 = vsel %vm4487_vm6, %v8535_v15, %v8520_v40 }
 0x68a   : > { %v4610_v28 = vrot.slane %v4544_v57, 1  ;;  %v4614_v44 = vrot.slane %v4546_v27, 1  ;;  %v11843_v17 = vmax.f32 %v11743_v24, %v8510_v63 }
 0x68b   : > { %v4665_v58 = vmax.f32 %v4547_v4, %v4616_v2  ;;  %v4617_v38 = vsel %vm654_vm3, %v4612_v43, %v4616_v2  ;;  %v4613_v41 = vsel %vm654_vm3, %v4608_v54, %v4612_v43  ;;  %v8536_v4 = vunpack.i.h.bf16 %v8534_v37 }
 0x68c   : > { %v4615_v19 = vsel %vm654_vm3, %v4610_v28, %v4614_v44  ;;  %v4663_v29 = vmax.f32 %v4545_v14, %v4617_v38  ;;  %v4664_v7 = vmax.f32 %v4546_v27, %v4614_v44  ;;  %v8499_v10 = vpop.permute.xlu0 %8498  ;;  %v4611_v20 = vsel %vm654_vm3, %v4606_v6, %v4610_v28 }
 0x68d   : > { %v4662_v36 = vmax.f32 %v4544_v57, %v4615_v19  ;;  %v8501_v42 = vunpack.i.h.bf16 %v8499_v10  ;;  %v8500_v53 = vunpack.i.l.bf16 %v8499_v10  ;;  %v4661_v54 = vmax.f32 %v11801_v62, %v4613_v41  ;;  %v12825_v10 = vld [vmem:[#allocation27_spill] sm:$0xff]  ;;  %v12826_v41 = vld [vmem:[#allocation28_spill] sm:$0xff] }
 0x68e   : > { %v4685_v56 = vpack.c.bf16 %v4665_v58, %v4663_v29  ;;  %v4660_v23 = vmax.f32 %v11810_v9, %v4611_v20  ;;  %v4659_v6 = vmax.f32 %v11807_v30, %v4609_v59  ;;  %v4658_v37 = vmax.f32 %v11804_v45, %v4607_v1 }
 0x68f   : > { %v4539_v21 = vmax.f32 %v11767_v16, %v8501_v42  ;;  %v4537_v34 = vmax.f32 %v11770_v39, %v8500_v53  ;;  %v4684_v49 = vpack.c.bf16 %v4664_v7, %v4662_v36  ;;  %v4592_v16 = vrot.slane %v11838_v12, 1  ;;  %v8539_v19 = vpop.permute.xlu2 %8538 }
 0x690   : > { %v4722_v14 = vand.u32 %v4685_v56, %v12824_v26  ;;  %v4588_v39 = vrot.slane %v11843_v17, 1  ;;  %v4492_v40 = vsel %vm4487_vm6, %v8525_v35, %v8510_v63  ;;  %v4493_v27 = vsel %vm4487_vm6, %v8526_v60, %v8511_v5 }
 0x691   : > { %v4600_v3 = vrot.slane %v4539_v21, 1  ;;  %v4596_v24 = vrot.slane %v4537_v34, 1  ;;  %v4719_v57 = vand.u32 %v4684_v49, %v12824_v26  ;;  %v4491_v30 = vsel %vm4487_vm6, %v8536_v4, %v8521_v48 }
 0x692   : > { %4755 = vmatpush.bf16.msra.mxu2 %v4722_v14  ;;  %v4683_v28 = vpack.c.bf16 %v4661_v54, %v4659_v6  ;;  %v4682_v50 = vpack.c.bf16 %v4660_v23, %v4658_v37  ;;  %v4593_v5 = vsel %vm654_vm3, %v4588_v39, %v4592_v16  ;;  %v4534_v58 = vmax.f32 %v11491_v33, %v4493_v27 }
 0x693   : > { %v4605_v62 = vsel %vm654_vm3, %v4600_v3, %v4604_v13  ;;  %v4601_v2 = vsel %vm654_vm3, %v4596_v24, %v4600_v3  ;;  %4726 = vmatpush.bf16.msra.mxu0 %v4719_v57  ;;  %v4597_v63 = vsel %vm654_vm3, %v4592_v16, %v4596_v24  ;;  %v4532_v13 = vmax.f32 %v11472_v18, %v4492_v40 }
 0x694   : > { %v4657_v9 = vmax.f32 %v4539_v21, %v4605_v62  ;;  %v4655_v43 = vmax.f32 %v4537_v34, %v4601_v2  ;;  %v8514_v15 = vpop.permute.xlu0 %8513  ;;  %v4589_v55 = vsel %vm654_vm3, %v4584_v11, %v4588_v39  ;;  %v4585_v48 = vsel %vm654_vm3, %v4580_v31, %v4584_v11 }
 0x695   : > { %v8516_v44 = vunpack.i.h.bf16 %v8514_v15  ;;  %v8515_v59 = vunpack.i.l.bf16 %v8514_v15  ;;  %v4653_v7 = vmax.f32 %v11838_v12, %v4597_v63  ;;  %v4528_v36 = vmax.f32 %v12825_v10, %v4490_v46  ;;  %v8211_v10 = vld [vmem:[%s12629_s3 + $0x10] sm:$0xff] }
 0x696   : > { %4756 = vmatpush.bf16.msra.mxu2 %v4683_v28  ;;  %v4681_v29 = vpack.c.bf16 %v4657_v9, %v4655_v43  ;;  %v4530_v60 = vmax.f32 %v12826_v41, %v4491_v30  ;;  %v4651_v56 = vmax.f32 %v11843_v17, %v4593_v5  ;;  %v4649_v11 = vmax.f32 %v11815_v51, %v4589_v55  ;;  %v8209_v41 = vld [vmem:[%s12629_s3] sm:$0xff] }
 0x697   : > { %v4494_v38 = vsel %vm4487_vm6, %v8515_v59, %v8500_v53  ;;  %v4495_v1 = vsel %vm4487_vm6, %v8516_v44, %v8501_v42  ;;  %4727 = vmatpush.bf16.msra.mxu0 %v4682_v50  ;;  %v4586_v53 = vrot.slane %v4532_v13, 1  ;;  %v4590_v20 = vrot.slane %v4534_v58, 1 }
 0x698   : > { %v4536_v18 = vmax.f32 %v12813_v0, %v4494_v38  ;;  %v4538_v33 = vmax.f32 %v12814_v32, %v4495_v1  ;;  %v4647_v0 = vmax.f32 %v11818_v22, %v4585_v48  ;;  %v8541_v21 = vunpack.i.h.bf16 %v8539_v19  ;;  %v8206_v48 = vld [vmem:[%s12634_s8 + $0x8] sm:$0xff]  ;;  %v8207_v38 = vld [vmem:[%s12634_s8 + $0x10] sm:$0xff]  ;;  %v8208_v1 = vld [vmem:[%s12634_s8 + $0x18] sm:$0xff] }
 0x699   : > { %v8540_v32 = vunpack.i.l.bf16 %v8539_v19  ;;  %v4679_v49 = vpack.c.bf16 %v4653_v7, %v4651_v56  ;;  %v4578_v54 = vrot.slane %v4528_v36, 1  ;;  %v4582_v3 = vrot.slane %v4530_v60, 1  ;;  %v8216_v19 = vld [vmem:[%s12629_s3 + $0x38] sm:$0xff] }
 0x69a   : > { %v4594_v42 = vrot.slane %v4536_v18, 1  ;;  %v4598_v35 = vrot.slane %v4538_v33, 1  ;;  %4757 = vmatpush.bf16.msra.mxu2 %v4681_v29  ;;  %v4677_v24 = vpack.c.bf16 %v4649_v11, %v4647_v0  ;;  %v4591_v57 = vsel %vm654_vm3, %v4586_v53, %v4590_v20  ;;  %v8213_v29 = vld [vmem:[%s12629_s3 + $0x20] sm:$0xff]  ;;  %v8212_v7 = vld [vmem:[%s12629_s3 + $0x18] sm:$0xff] }
 0x69b   : > { %v4587_v2 = vsel %vm654_vm3, %v4582_v3, %v4586_v53  ;;  %v4650_v43 = vmax.f32 %v4532_v13, %v4591_v57  ;;  %v8205_v13 = vld [vmem:[%s12634_s8] sm:$0xff] }
 0x69c   : > { %v8529_v34 = vpop.permute.xlu0 %8528  ;;  %v4599_v12 = vsel %vm654_vm3, %v4594_v42, %v4598_v35  ;;  %v4603_v4 = vsel %vm654_vm3, %v4598_v35, %v4602_v61  ;;  %v4595_v17 = vsel %vm654_vm3, %v4590_v20, %v4594_v42  ;;  %v4648_v44 = vmax.f32 %v4530_v60, %v4587_v2 }
 0x69d   : > { %v8531_v51 = vunpack.i.h.bf16 %v8529_v34  ;;  %v8530_v46 = vunpack.i.l.bf16 %v8529_v34  ;;  %v4654_v26 = vmax.f32 %v4536_v18, %v4599_v12  ;;  %v4656_v14 = vmax.f32 %v4538_v33, %v4603_v4  ;;  %v8215_v18 = vld [vmem:[%s12629_s3 + $0x30] sm:$0xff]  ;;  %v8214_v33 = vld [vmem:[%s12629_s3 + $0x28] sm:$0xff] }
 0x69e   : > { %4758 = vmatpush.bf16.msra.mxu2 %v4679_v49  ;;  %v4652_v40 = vmax.f32 %v4534_v58, %v4595_v17 }
 0x69f   : > { %v4489_v23 = vsel %vm4487_vm6, %v8541_v21, %v8531_v51  ;;  %v4527_v6 = vmax.f32 %v11787_v47, %v8531_v51  ;;  %v4488_v45 = vsel %vm4487_vm6, %v8540_v32, %v8530_v46  ;;  %v4525_v61 = vmax.f32 %v12817_v52, %v8530_v46 }
 0x6a0   : > { %v4526_v16 = vmax.f32 %v12809_v25, %v4489_v23  ;;  %v4524_v39 = vmax.f32 %v11309_v8, %v4488_v45  ;;  %v4680_v37 = vpack.c.bf16 %v4656_v14, %v4654_v26  ;;  %v4583_v25 = vsel %vm654_vm3, %v4578_v54, %v4582_v3 }
 0x6a1   : > { %v4576_v27 = vrot.slane %v4527_v6, 1  ;;  %v4575_v62 = vrot.slane %v4525_v61, 1  ;;  %v4678_v28 = vpack.c.bf16 %v4652_v40, %v4650_v43  ;;  %v4646_v5 = vmax.f32 %v4528_v36, %v4583_v25  ;;  %v8210_v36 = vld [vmem:[%s12629_s3 + $0x8] sm:$0xff] }
 0x6a2   : > { %v4573_v30 = vrot.slane %v4526_v16, 1  ;;  %v4572_v9 = vrot.slane %v4524_v39, 1  ;;  %4728 = vmatpush.bf16.msra.mxu0 %v4680_v37  ;;  %4759 = vmatpush.bf16.msra.mxu2 %v4677_v24 }
 0x6a3   : > { %v4577_v47 = vsel %vm654_vm3, %v4575_v62, %v4576_v27  ;;  %v4581_v52 = vsel %vm654_vm3, %v4576_v27, %v4580_v31  ;;  %v4676_v22 = vpack.c.bf16 %v4648_v44, %v4646_v5 }
 0x6a4   : > { %v4643_v8 = vmax.f32 %v4525_v61, %v4577_v47  ;;  %v4645_v15 = vmax.f32 %v4527_v6, %v4581_v52  ;;  %v4574_v59 = vsel %vm654_vm3, %v4572_v9, %v4573_v30  ;;  %v4579_v50 = vsel %vm654_vm3, %v4573_v30, %v4578_v54 }
 0x6a5   : > { %v4642_v31 = vmax.f32 %v4524_v39, %v4574_v59  ;;  %v4644_v58 = vmax.f32 %v4526_v16, %v4579_v50 }
 0x6a6   : > { %4729 = vmatpush.bf16.msra.mxu0 %v4678_v28  ;;  %v4675_v63 = vpack.c.bf16 %v4645_v15, %v4643_v8 }
 0x6a7   : > { %v4674_v55 = vpack.c.bf16 %v4644_v58, %v4642_v31 }
 0x6a8   : > { %4760 = vmatpush.bf16.msra.mxu2 %v4675_v63 }
 0x6aa   : > { %4730 = vmatpush.bf16.msra.mxu0 %v4676_v22 }
 0x6ab   : > { %7609 = vmatmul.msk.bf16.vlgmr.msra.gmra.mxu2 %vm2125_vm11, %v8205_v13 }
 0x6ae   : > { %4731 = vmatpush.bf16.msra.mxu0 %v4674_v55 }
 0x6b1   : > { %7605 = vmatmul.msk.bf16.vlgmr.msra.gmra.mxu0 %vm2125_vm11, %v8205_v13 }
 0x6b2   : > { %5475 = vmatpush.bf16.msrb.mxu0 %v8216_v19 }
 0x6b6   : > { %5476 = vmatpush.bf16.msrb.mxu0 %v8215_v18 }
 0x6ba   : > { %5477 = vmatpush.bf16.msrb.mxu0 %v8214_v33 }
 0x6bb   : > { %7610 = vmatmul.msk.bf16.gmra.mxu2 %vm2125_vm11, %v8206_v48 }
 0x6be   : > { %5478 = vmatpush.bf16.msrb.mxu0 %v8213_v29 }
 0x6c1   : > { %7606 = vmatmul.msk.bf16.gmra.mxu0 %vm2125_vm11, %v8206_v48 }
 0x6c2   : > { %5479 = vmatpush.bf16.msrb.mxu0 %v8212_v7 }
 0x6c6   : > { %5480 = vmatpush.bf16.msrb.mxu0 %v8211_v10 }
 0x6ca   : > { %5481 = vmatpush.bf16.msrb.mxu0 %v8210_v36 }
 0x6cb   : > { %7611 = vmatmul.msk.bf16.gmra.mxu2 %vm2125_vm11, %v8207_v38 }
 0x6ce   : > { %5482 = vmatpush.bf16.msrb.mxu0 %v8209_v41 }
 0x6d1   : > { %7607 = vmatmul.msk.bf16.gmra.mxu0 %vm2125_vm11, %v8207_v38 }
 0x6db   : > { %7612 = vmatmul.msk.bf16.gmra.mxu2 %vm2125_vm11, %v8208_v1 }
 0x6e1   : > { %7608 = vmatmul.msk.bf16.gmra.mxu0 %vm2125_vm11, %v8208_v1  ;;  %vm5459_vm11 = vcmask 490496  }
 0x72e   : > { %v4733_v60 = vpop.f32.mrf.mxu0  ;;  %v4762_v56 = vpop.f32.mrf.mxu2 }
 0x72f   : > { %v4782_v11 = vmax.f32 %v4733_v60, 0.0  ;;  %v4783_v53 = vmax.f32 %v4762_v56, 0.0 }
 0x731   : > { %v4798_v35 = vpack.c.bf16 %v4783_v53, %v4782_v11 }
 0x733   : > { %v4815_v34 = vunpack.c.l.b16 %v4798_v35  ;;  %v4816_v59 = vunpack.c.h.b16 %v4798_v35 }
 0x736   : > { %v4735_v20 = vpop.f32.mrf.mxu0  ;;  %v4764_v42 = vpop.f32.mrf.mxu2 }
 0x737   : > { %v4784_v0 = vmax.f32 %v4735_v20, 0.0  ;;  %v4785_v21 = vmax.f32 %v4764_v42, 0.0 }
 0x739   : > { %v4799_v32 = vpack.c.bf16 %v4785_v21, %v4784_v0 }
 0x73b   : > { %v4817_v49 = vunpack.c.l.b16 %v4799_v32  ;;  %v4818_v28 = vunpack.c.h.b16 %v4799_v32 }
 0x73d   : > { %v11950_v12 = vpack.c.b16 %v4817_v49, %v4815_v34  ;;  %v11963_v13 = vpack.c.b16 %v4818_v28, %v4816_v59 }
 0x73e   : > { %v4738_v4 = vpop.f32.mrf.mxu0  ;;  %v4767_v17 = vpop.f32.mrf.mxu2 }
 0x73f   : > { %5483 = vmatmul.bf16.vlgmr.msrb.gmra.mxu0 %v11950_v12  ;;  %v4786_v51 = vmax.f32 %v4738_v4, 0.0  ;;  %v4787_v46 = vmax.f32 %v4767_v17, 0.0  ;;  %v4846_v23 = vshll.u32 %v11950_v12, 16  ;;  %v4844_v40 = vshrl.u32 %v11950_v12, 16 }
 0x740   : > { %v4858_v19 = vshll.u32 %v11963_v13, 16  ;;  %v4856_v42 = vshrl.u32 %v11963_v13, 16 }
 0x741   : > { %v4800_v54 = vpack.c.bf16 %v4787_v46, %v4786_v51  ;;  %v4848_v16 = vrot.slane %v4846_v23, 1 }
 0x742   : > { %v4860_v60 = vrot.slane %v4858_v19, 1 }
 0x743   : > { %v4819_v6 = vunpack.c.l.b16 %v4800_v54  ;;  %v4849_v62 = vor.u32 %v4848_v16, %v4844_v40  ;;  %v4820_v22 = vunpack.c.h.b16 %v4800_v54  ;;  %v4961_v54 = vrot.slane %v4846_v23, 2 }
 0x744   : > { %v4861_v32 = vor.u32 %v4860_v60, %v4856_v42  ;;  %v8223_v60 = vld [vmem:[%s12629_s3 + $0x70] sm:$0xff] }
 0x746   : > { %v4740_v26 = vpop.f32.mrf.mxu0  ;;  %v4769_v14 = vpop.f32.mrf.mxu2 }
 0x747   : > { %v4788_v3 = vmax.f32 %v4740_v26, 0.0  ;;  %v4789_v24 = vmax.f32 %v4769_v14, 0.0  ;;  %v4960_v14 = vrot.slane %v4844_v40, 1 }
 0x749   : > { %v4801_v57 = vpack.c.bf16 %v4789_v24, %v4788_v3 }
 0x74b   : > { %v4821_v45 = vunpack.c.l.b16 %v4801_v57  ;;  %v4822_v50 = vunpack.c.h.b16 %v4801_v57 }
 0x74d   : > { %v11954_v61 = vpack.c.b16 %v4821_v45, %v4819_v6  ;;  %v11967_v48 = vpack.c.b16 %v4822_v50, %v4820_v22  ;;  %v4962_v45 = vor.u32 %v4961_v54, %v4960_v14  ;;  %v8220_v14 = vld [vmem:[%s12629_s3 + $0x58] sm:$0xff]  ;;  %v4967_v54 = vrot.slane %v4856_v42, 1 }
 0x74e   : > { %v4743_v39 = vpop.f32.mrf.mxu0  ;;  %v4772_v37 = vpop.f32.mrf.mxu2 }
 0x74f   : > { %v4851_v27 = vshll.u32 %v11954_v61, 16  ;;  %5488 = vmatmul.bf16.gmra.mxu0 %v11954_v61  ;;  %v4790_v30 = vmax.f32 %v4743_v39, 0.0  ;;  %v4791_v9 = vmax.f32 %v4772_v37, 0.0  ;;  %v4867_v38 = vshrl.u32 %v11954_v61, 16 }
 0x750   : > { %v4863_v36 = vshll.u32 %v11967_v48, 16 }
 0x751   : > { %v4853_v2 = vrot.slane %v4851_v27, 1  ;;  %v4802_v25 = vpack.c.bf16 %v4791_v9, %v4790_v30  ;;  %v4963_v34 = vrot.slane %v4867_v38, 1  ;;  %v4964_v51 = vrot.slane %v4851_v27, 2 }
 0x752   : > { %v4865_v35 = vrot.slane %v4863_v36, 1  ;;  %v4875_v30 = vshrl.u32 %v11967_v48, 16 }
 0x753   : > { %v4854_v43 = vsel %vm514_vm1, %v4849_v62, %v4853_v2  ;;  %v4823_v63 = vunpack.c.l.b16 %v4802_v25  ;;  %v4869_v29 = vor.u32 %v4867_v38, %v4853_v2  ;;  %v4824_v46 = vunpack.c.h.b16 %v4802_v25 }
 0x754   : > { %4905 = vrot.lane.b32.xlu0 %v4854_v43, %s8566_s23  ;;  %v4866_v17 = vsel %vm514_vm1, %v4861_v32, %v4865_v35  ;;  %v4965_v24 = vor.u32 %v4964_v51, %v4963_v34  ;;  %v4927_v2 = vrot.slane %v11954_v61, 1  ;;  %v4930_v43 = vrot.slane %v11967_v48, 1  ;;  %v8221_v34 = vld [vmem:[%s12629_s3 + $0x60] sm:$0xff] }
 0x755   : > { %v4929_v25 = vrot.slane %v11963_v13, 1  ;;  %v5011_v38 = vrot.slane %v11950_v12, 2 }
 0x756   : > { %v4745_v47 = vpop.f32.mrf.mxu0  ;;  %v4774_v52 = vpop.f32.mrf.mxu2  ;;  %v4966_v40 = vsel %vm710_vm0, %v4962_v45, %v4965_v24 }
 0x757   : > { %v4792_v8 = vmax.f32 %v4745_v47, 0.0  ;;  %v4793_v15 = vmax.f32 %v4774_v52, 0.0  ;;  %v4926_v47 = vrot.slane %v11950_v12, 1  ;;  %v4877_v52 = vor.u32 %v4875_v30, %v4865_v35  ;;  %v8224_v12 = vld [vmem:[%s12629_s3 + $0x78] sm:$0xff] }
 0x758   : > { %5504 = vmatpush.bf16.msrb.mxu2 %v8224_v12  ;;  %v8237_v12 = vld [vmem:[%s12629_s3 + $0xe0] sm:$0xff] }
 0x759   : > { %v4803_v44 = vpack.c.bf16 %v4793_v15, %v4792_v8  ;;  %v4928_v15 = vsel %vm654_vm3, %v4926_v47, %v4927_v2  ;;  %v8231_v47 = vld [vmem:[%s12629_s3 + $0xb0] sm:$0xff] }
 0x75b   : > { %v4825_v5 = vunpack.c.l.b16 %v4803_v44  ;;  %v4826_v49 = vunpack.c.h.b16 %v4803_v44 }
 0x75c   : > { %5505 = vmatpush.bf16.msrb.mxu2 %v8223_v60 }
 0x75d   : > { %v11965_v31 = vpack.c.b16 %v4825_v5, %v4823_v63  ;;  %v11989_v3 = vpack.c.b16 %v4826_v49, %v4824_v46  ;;  %v4931_v63 = vsel %vm654_vm3, %v4929_v25, %v4930_v43  ;;  %v4970_v46 = vrot.slane %v4875_v30, 1 }
 0x75e   : > { %v4748_v58 = vpop.f32.mrf.mxu0  ;;  %v4777_v55 = vpop.f32.mrf.mxu2 }
 0x75f   : > { %v4871_v1 = vshll.u32 %v11965_v31, 16  ;;  %5493 = vmatmul.bf16.gmra.mxu0 %v11965_v31  ;;  %v4794_v18 = vmax.f32 %v4748_v58, 0.0  ;;  %v4795_v33 = vmax.f32 %v4777_v55, 0.0  ;;  %v4883_v6 = vshrl.u32 %v11965_v31, 16 }
 0x760   : > { %v4879_v27 = vshll.u32 %v11989_v3, 16  ;;  %v5012_v58 = vrot.slane %v11954_v61, 2  ;;  %v5015_v55 = vrot.slane %v11967_v48, 2  ;;  %v4891_v61 = vshrl.u32 %v11989_v3, 16 }
 0x761   : > { %v4873_v7 = vrot.slane %v4871_v1, 1  ;;  %v4804_v41 = vpack.c.bf16 %v4795_v33, %v4794_v18  ;;  %v4975_v8 = vrot.slane %v4871_v1, 2  ;;  %v4974_v50 = vrot.slane %v4883_v6, 1 }
 0x762   : > { %v4881_v9 = vrot.slane %v4879_v27, 1  ;;  %v5014_v1 = vrot.slane %v11963_v13, 2  ;;  %v5017_v32 = vrot.slane %v11965_v31, 2  ;;  %v5019_v49 = vrot.slane %v11989_v3, 2 }
 0x763   : > { %v4874_v10 = vsel %vm514_vm1, %v4869_v29, %v4873_v7  ;;  %v4827_v0 = vunpack.c.l.b16 %v4804_v41  ;;  %v4885_v37 = vor.u32 %v4883_v6, %v4873_v7  ;;  %v4828_v28 = vunpack.c.h.b16 %v4804_v41 }
 0x764   : > { %4909 = vrot.lane.b32.xlu1 %v4874_v10, %s8566_s23  ;;  %v4882_v59 = vsel %vm514_vm1, %v4877_v52, %v4881_v9  ;;  %v12020_v22 = vor.u32 %v4975_v8, %v4974_v50  ;;  %v5013_v29 = vsel %vm794_vm2, %v5011_v38, %v5012_v58  ;;  %v5016_v7 = vsel %vm794_vm2, %v5014_v1, %v5015_v55  ;;  %v8229_v50 = vld [vmem:[%s12629_s3 + $0xa0] sm:$0xff]  ;;  %v8227_v38 = vld [vmem:[%s12629_s3 + $0x90] sm:$0xff] }
 0x765   : > { %v4932_v41 = vrot.slane %v11965_v31, 1  ;;  %v5020_v51 = vsel %vm794_vm2, %v5015_v55, %v5019_v49  ;;  %v4971_v31 = vrot.slane %v4863_v36, 2  ;;  %v8219_v36 = vld [vmem:[%s12629_s3 + $0x50] sm:$0xff] }
 0x766   : > { %v4750_v56 = vpop.f32.mrf.mxu0  ;;  %v4779_v11 = vpop.f32.mrf.mxu2  ;;  %v4977_v18 = vsel %vm710_vm0, %v4965_v24, %v12020_v22  ;;  %v4968_v24 = vrot.slane %v4858_v19, 2 }
 0x767   : > { %v4796_v53 = vmax.f32 %v4750_v56, 0.0  ;;  %v4797_v20 = vmax.f32 %v4779_v11, 0.0  ;;  %v4934_v56 = vrot.slane %v11989_v3, 1  ;;  %v4893_v11 = vor.u32 %v4891_v61, %v4881_v9 }
 0x769   : > { %v4805_v21 = vpack.c.bf16 %v4797_v20, %v4796_v53  ;;  %v4933_v20 = vsel %vm654_vm3, %v4927_v2, %v4932_v41  ;;  %v4935_v35 = vsel %vm654_vm3, %v4930_v43, %v4934_v56 }
 0x76b   : > { %v4829_v4 = vunpack.c.l.b16 %v4805_v21  ;;  %v4830_v44 = vunpack.c.h.b16 %v4805_v21 }
 0x76c   : > { %4907 = vrot.lane.b32.xlu1 %v4866_v17, %s8566_s23  ;;  %v5018_v17 = vsel %vm794_vm2, %v5012_v58, %v5017_v32  ;;  %v8228_v58 = vld [vmem:[%s12629_s3 + $0x98] sm:$0xff] }
 0x76d   : > { %v11985_v26 = vpack.c.b16 %v4829_v4, %v4827_v0  ;;  %v12018_v5 = vpack.c.b16 %v4830_v44, %v4828_v28  ;;  %v8222_v0 = vld [vmem:[%s12629_s3 + $0x68] sm:$0xff]  ;;  %v8240_v44 = vld [vmem:[%s12629_s3 + $0xf8] sm:$0xff] }
 0x76e   : > { %5506 = vmatpush.bf16.msrb.mxu2 %v8222_v0  ;;  %5562 = vmatpush.bf16.msrb.mxu3 %v8240_v44 }
 0x76f   : > { %v4887_v57 = vshll.u32 %v11985_v26, 16  ;;  %5498 = vmatmul.bf16.gmra.mxu0 %v11985_v26  ;;  %v4899_v39 = vshrl.u32 %v11985_v26, 16  ;;  %v4895_v33 = vshll.u32 %v12018_v5, 16  ;;  %v4938_v21 = vrot.slane %v12018_v5, 1 }
 0x770   : > { %v5023_v6 = vrot.slane %v12018_v5, 2  ;;  %v4936_v45 = vrot.slane %v11985_v26, 1  ;;  %v5021_v52 = vrot.slane %v11985_v26, 2  ;;  %v4902_v28 = vshrl.u32 %v12018_v5, 16  ;;  %v8230_v26 = vld [vmem:[%s12629_s3 + $0xa8] sm:$0xff] }
 0x771   : > { %v4889_v16 = vrot.slane %v4887_v57, 1  ;;  %v12040_v10 = vrot.slane %v4895_v33, 1  ;;  %v4939_v4 = vsel %vm654_vm3, %v4934_v56, %v4938_v21  ;;  %v4982_v19 = vrot.slane %v4899_v39, 1  ;;  %v8234_v56 = vld [vmem:[%s12629_s3 + $0xc8] sm:$0xff] }
 0x772   : > { %5507 = vmatpush.bf16.msrb.mxu2 %v8221_v34  ;;  %v5024_v42 = vsel %vm794_vm2, %v5019_v49, %v5023_v6  ;;  %v4983_v2 = vrot.slane %v4887_v57, 2  ;;  %v8217_v57 = vld [vmem:[%s12629_s3 + $0x40] sm:$0xff]  ;;  %v8252_v34 = vld [vmem:[%s12629_s3 + $0x158] sm:$0x30]  ;;  %v8246_v49 = vld [vmem:[%s12629_s3 + $0x128] sm:$0xff] }
 0x773   : > { %v4901_v23 = vor.u32 %v4899_v39, %v4889_v16  ;;  %v4890_v62 = vsel %vm514_vm1, %v4885_v37, %v4889_v16  ;;  %v4898_v53 = vsel %vm514_vm1, %v4893_v11, %v12040_v10  ;;  %v4972_v16 = vor.u32 %v4971_v31, %v4970_v46  ;;  %v8232_v39 = vld [vmem:[%s12629_s3 + $0xb8] sm:$0xff]  ;;  %v8245_v31 = vld [vmem:[%s12629_s3 + $0x120] sm:$0xff] }
 0x774   : > { %4990 = vrot.lane.b32.xlu1 %v4966_v40, %s8567_s25  ;;  %4913 = vrot.lane.b32.xlu2 %v4890_v62, %s8566_s23  ;;  %v4969_v37 = vor.u32 %v4968_v24, %v4967_v54  ;;  %v4978_v40 = vrot.slane %v4891_v61, 1  ;;  %v4937_v62 = vsel %vm654_vm3, %v4932_v41, %v4936_v45  ;;  %v4984_v43 = vor.u32 %v4983_v2, %v4982_v19  ;;  %v8236_v61 = vld [vmem:[%s12629_s3 + $0xd8] sm:$0xff]  ;;  %v8235_v41 = vld [vmem:[%s12629_s3 + $0xd0] sm:$0xff] }
 0x775   : > { %4917 = vrot.lane.b32.xlu0 %v4901_v23, %s8566_s23  ;;  %v4979_v23 = vrot.slane %v4879_v27, 2  ;;  %v8218_v27 = vld [vmem:[%s12629_s3 + $0x48] sm:$0xff]  ;;  %5533 = vmatpush.bf16.msrb.mxu1 %v8232_v39 }
 0x776   : > { %5508 = vmatpush.bf16.msrb.mxu2 %v8220_v14  ;;  %v4973_v30 = vsel %vm710_vm0, %v4969_v37, %v4972_v16  ;;  %v4985_v8 = vsel %vm710_vm0, %v12020_v22, %v4984_v43  ;;  %v4987_v22 = vrot.slane %v4895_v33, 2  ;;  %v8226_v33 = vld [vmem:[%s12629_s3 + $0x88] sm:$0xff] }
 0x777   : > { %v4980_v9 = vor.u32 %v4979_v23, %v4978_v40  ;;  %v8250_v24 = vld [vmem:[%s12629_s3 + $0x148] sm:$0xff] }
 0x778   : > { %v8242_v23 = vld [vmem:[%s12629_s3 + $0x108] sm:$0xff] }
 0x779   : > { %v4981_v25 = vsel %vm710_vm0, %v4972_v16, %v4980_v9  ;;  %5534 = vmatpush.bf16.msrb.mxu1 %v8231_v47 }
 0x77a   : > { %5509 = vmatpush.bf16.msrb.mxu2 %v8219_v36  ;;  %v8243_v36 = vld [vmem:[%s12629_s3 + $0x110] sm:$0xff] }
 0x77c   : > { %4911 = vrot.lane.b32.xlu1 %v4882_v59, %s8566_s23  ;;  %4940 = vrot.lane.b32.xlu2 %v4928_v15, %s8564_s26  ;;  %v5022_v15 = vsel %vm794_vm2, %v5017_v32, %v5021_v52  ;;  %v4904_v59 = vor.u32 %v4902_v28, %v12040_v10  ;;  %v7787_v32 = vld [vmem:[%s12629_s3 + $0x158] sm:$0xf] }
 0x77d   : > { %4942 = vrot.lane.b32.xlu0 %v4931_v63, %s8564_s26  ;;  %5535 = vmatpush.bf16.msrb.mxu1 %v8230_v26  ;;  %v4986_v63 = vrot.slane %v4902_v28, 1 }
 0x77e   : > { %5510 = vmatpush.bf16.msrb.mxu2 %v8218_v27 }
 0x77f   : > { %v4988_v55 = vor.u32 %v4987_v22, %v4986_v63 }
 0x781   : > { %5536 = vmatpush.bf16.msrb.mxu1 %v8229_v50  ;;  %v4989_v1 = vsel %vm710_vm0, %v4980_v9, %v4988_v55 }
 0x782   : > { %5511 = vmatpush.bf16.msrb.mxu2 %v8217_v57 }
 0x784   : > { %4994 = vrot.lane.b32.xlu1 %v4977_v18, %s8567_s25  ;;  %5025 = vrot.lane.b32.xlu2 %v5013_v29, %s8568_s14  ;;  %v8239_v18 = vld [vmem:[%s12629_s3 + $0xf0] sm:$0xff]  ;;  %v8238_v29 = vld [vmem:[%s12629_s3 + $0xe8] sm:$0xff] }
 0x785   : > { %5027 = vrot.lane.b32.xlu0 %v5016_v7, %s8568_s14  ;;  %5537 = vmatpush.bf16.msrb.mxu1 %v8228_v58  ;;  %v8225_v7 = vld [vmem:[%s12629_s3 + $0x80] sm:$0xff] }
 0x786   : > { %5563 = vmatpush.bf16.msrb.mxu3 %v8239_v18 }
 0x789   : > { %5538 = vmatpush.bf16.msrb.mxu1 %v8227_v38 }
 0x78a   : > { %5564 = vmatpush.bf16.msrb.mxu3 %v8238_v29 }
 0x78c   : > { %4915 = vrot.lane.b32.xlu1 %v4898_v53, %s8566_s23  ;;  %4944 = vrot.lane.b32.xlu2 %v4933_v20, %s8564_s26  ;;  %v8233_v53 = vld [vmem:[%s12629_s3 + $0xc0] sm:$0xff]  ;;  %v8248_v20 = vld [vmem:[%s12629_s3 + $0x138] sm:$0xff] }
 0x78d   : > { %4946 = vrot.lane.b32.xlu0 %v4935_v35, %s8564_s26  ;;  %5539 = vmatpush.bf16.msrb.mxu1 %v8226_v33  ;;  %v8247_v35 = vld [vmem:[%s12629_s3 + $0x130] sm:$0xff] }
 0x78e   : > { %5565 = vmatpush.bf16.msrb.mxu3 %v8237_v12  ;;  %5591 = vmatpush.bf16.msra.mxu0 %v8248_v20 }
 0x791   : > { %5540 = vmatpush.bf16.msrb.mxu1 %v8225_v7 }
 0x792   : > { %5566 = vmatpush.bf16.msrb.mxu3 %v8236_v61  ;;  %5592 = vmatpush.bf16.msra.mxu0 %v8247_v35 }
 0x794   : > { %4950 = vrot.lane.b32.xlu1 %v4939_v4, %s8564_s26  ;;  %5029 = vrot.lane.b32.xlu2 %v5018_v17, %s8568_s14  ;;  %v7788_v4 = vor.u32 %v8252_v34, %v7787_v32 }
 0x795   : > { %5031 = vrot.lane.b32.xlu0 %v5020_v51, %s8568_s14  ;;  %8305 = vmatpush.bf16.msra.mxu1 %v8248_v20 }
 0x796   : > { %5567 = vmatpush.bf16.msrb.mxu3 %v8235_v41  ;;  %v5473_v17 = vsel %vm794_vm2, %v7788_v4, 0  ;;  %5593 = vmatpush.bf16.msra.mxu0 %v8246_v49 }
 0x797   : > { %5624 = vmatpush.bf16.msra.mxu2 %v5473_v17 }
 0x799   : > { %8306 = vmatpush.bf16.msra.mxu1 %v8247_v35 }
 0x79a   : > { %5568 = vmatpush.bf16.msrb.mxu3 %v8234_v56  ;;  %5594 = vmatpush.bf16.msra.mxu0 %v8245_v31 }
 0x79c   : > { %5035 = vrot.lane.b32.xlu1 %v5024_v42, %s8568_s14  ;;  %4948 = vrot.lane.b32.xlu2 %v4937_v62, %s8564_s26  ;;  %v8241_v62 = vld [vmem:[%s12629_s3 + $0x100] sm:$0xff] }
 0x79d   : > { %4992 = vrot.lane.b32.xlu0 %v4973_v30, %s8567_s25  ;;  %8307 = vmatpush.bf16.msra.mxu1 %v8246_v49 }
 0x79e   : > { %5569 = vmatpush.bf16.msrb.mxu3 %v8233_v53 }
 0x7a1   : > { %8308 = vmatpush.bf16.msra.mxu1 %v8245_v31  ;;  %v12261_v31 = vld [vmem:[%s12637_s11 + $0x2] ss:$0 sm:$0xff] }
 0x7a4   : > { %4996 = vrot.lane.b32.xlu1 %v4981_v25, %s8567_s25  ;;  %4998 = vrot.lane.b32.xlu2 %v4985_v8, %s8567_s25 }
 0x7a5   : > { %5033 = vrot.lane.b32.xlu0 %v5022_v15, %s8568_s14 }
 0x7ac   : > { %5037 = vrot.lane.b32.xlu1 %v5021_v52, %s8568_s14  ;;  %4919 = vrot.lane.b32.xlu2 %v4904_v59, %s8566_s23 }
 0x7ad   : > { %4952 = vrot.lane.b32.xlu0 %v4936_v45, %s8564_s26  ;;  %v8249_v45 = vld [vmem:[%s12629_s3 + $0x140] sm:$0xff] }
 0x7b4   : > { %5000 = vrot.lane.b32.xlu1 %v4989_v1, %s8567_s25  ;;  %4954 = vrot.lane.b32.xlu2 %v4938_v21, %s8564_s26  ;;  %s413_s26 = scalar_lea.vmem %s12638_s12, %s6783_s17 }
 0x7b5   : > { %5002 = vrot.lane.b32.xlu0 %v4984_v43, %s8567_s25 }
 0x7bc   : > { %5039 = vrot.lane.b32.xlu2 %v5023_v6, %s8568_s14  ;;  %v8244_v6 = vld [vmem:[%s12629_s3 + $0x118] sm:$0xff] }
 0x7bd   : > { %5004 = vrot.lane.b32.xlu0 %v4988_v55, %s8567_s25  ;;  %5595 = vmatpush.bf16.msra.mxu0 %v8244_v6 }
 0x7be   : > { %8309 = vmatpush.bf16.msra.mxu1 %v8244_v6 }
 0x7c1   : > { %5596 = vmatpush.bf16.msra.mxu0 %v8243_v36 }
 0x7c2   : > { %8310 = vmatpush.bf16.msra.mxu1 %v8243_v36 }
 0x7c5   : > { %5597 = vmatpush.bf16.msra.mxu0 %v8242_v23 }
 0x7c6   : > { %v4906_v10 = vpop.permute.xlu0 %4905  ;;  %8311 = vmatpush.bf16.msra.mxu1 %v8242_v23 }
 0x7c7   : > { %v5047_v60 = vsel %vm1091_vm5, %v11963_v13, %v4906_v10 }
 0x7c8   : > { %5512 = vmatmul.bf16.vlgmr.msrb.gmra.mxu2 %v5047_v60 }
 0x7c9   : > { %5598 = vmatpush.bf16.msra.mxu0 %v8241_v62 }
 0x7ca   : > { %8312 = vmatpush.bf16.msra.mxu1 %v8241_v62 }
 0x7ce   : > { %v12173_v11 = vpop.permute.xlu2 %4913 }
 0x7cf   : > { %v5053_v40 = vsel %vm1091_vm5, %v11989_v3, %v12173_v11 }
 0x7d6   : > { %v4910_v13 = vpop.permute.xlu1 %4909  ;;  %v4941_v21 = vpop.permute.xlu2 %4940 }
 0x7d7   : > { %v5050_v0 = vsel %vm1091_vm5, %v11967_v48, %v4910_v13  ;;  %v8251_v48 = vld [vmem:[%s12629_s3 + $0x150] sm:$0xff] }
 0x7d8   : > { %5517 = vmatmul.bf16.gmra.mxu2 %v5050_v0 }
 0x7d9   : > { %5625 = vmatpush.bf16.msra.mxu2 %v8251_v48 }
 0x7dd   : > { %5626 = vmatpush.bf16.msra.mxu2 %v8250_v24 }
 0x7de   : > { %v4908_v51 = vpop.permute.xlu1 %4907  ;;  %v5026_v54 = vpop.permute.xlu2 %5025 }
 0x7df   : > { %v4922_v46 = vsel %vm1091_vm5, %v4906_v10, %v4908_v51 }
 0x7e0   : > { %v5060_v14 = vsel %vm2720_vm15, %v4922_v46, %v4941_v21  ;;  %v5484_v46 = vpop.f32.mrf.mxu0 }
 0x7e1   : > { %5541 = vmatmul.bf16.vlgmr.msrb.gmra.mxu1 %v5060_v14  ;;  %5627 = vmatpush.bf16.msra.mxu2 %v8249_v45 }
 0x7e6   : > { %v4991_v16 = vpop.permute.xlu1 %4990  ;;  %v4945_v42 = vpop.permute.xlu2 %4944 }
 0x7e7   : > { %v4918_v37 = vpop.permute.xlu0 %4917 }
 0x7e8   : > { %5522 = vmatmul.bf16.gmra.mxu2 %v5053_v40  ;;  %v5056_v47 = vsel %vm1091_vm5, %v12018_v5, %v4918_v37  ;;  %v12263_v14 = vpop.f32.mrf.mxu0 }
 0x7ee   : > { %v4912_v19 = vpop.permute.xlu1 %4911  ;;  %v5030_v9 = vpop.permute.xlu2 %5029 }
 0x7ef   : > { %v4923_v2 = vsel %vm1091_vm5, %v4910_v13, %v4912_v19  ;;  %v4943_v3 = vpop.permute.xlu0 %4942 }
 0x7f0   : > { %v4956_v30 = vsel %vm2720_vm15, %v4941_v21, %v4943_v3  ;;  %v5064_v27 = vsel %vm2720_vm15, %v4923_v2, %v4945_v42  ;;  %v5489_v36 = vpop.f32.mrf.mxu0 }
 0x7f1   : > { %v5077_v39 = vsel %vm5006_vm7, %v4956_v30, %v4991_v16  ;;  %5546 = vmatmul.bf16.gmra.mxu1 %v5064_v27 }
 0x7f2   : > { %5570 = vmatmul.bf16.vlgmr.msrb.gmra.mxu3 %v5077_v39 }
 0x7f6   : > { %v4995_v43 = vpop.permute.xlu1 %4994  ;;  %v4949_v15 = vpop.permute.xlu2 %4948 }
 0x7f7   : > { %v5028_v57 = vpop.permute.xlu0 %5027 }
 0x7f8   : > { %5527 = vmatmul.bf16.gmra.mxu2 %v5056_v47  ;;  %v5042_v5 = vsel %vm5041_vm9, %v5026_v54, %v5028_v57  ;;  %v5491_v23 = vpop.f32.mrf.mxu0 }
 0x7fe   : > { %v4916_v52 = vpop.permute.xlu1 %4915  ;;  %v4999_v38 = vpop.permute.xlu2 %4998 }
 0x7ff   : > { %v4924_v25 = vsel %vm1091_vm5, %v12173_v11, %v4916_v52  ;;  %v4947_v8 = vpop.permute.xlu0 %4946 }
 0x800   : > { %v4957_v28 = vsel %vm2720_vm15, %v4945_v42, %v4947_v8  ;;  %v5068_v26 = vsel %vm2720_vm15, %v4924_v25, %v4949_v15  ;;  %v5494_v2 = vpop.f32.mrf.mxu0 }
 0x801   : > { %5551 = vmatmul.bf16.gmra.mxu1 %v5068_v26  ;;  %v5081_v44 = vsel %vm5006_vm7, %v4957_v28, %v4995_v43  ;;  %v5495_v3 = vadd.f32 %v5494_v2, %v12261_v31 }
 0x802   : > { %5575 = vmatmul.bf16.gmra.mxu3 %v5081_v44 }
 0x806   : > { %v4951_v59 = vpop.permute.xlu1 %4950  ;;  %v4920_v12 = vpop.permute.xlu2 %4919 }
 0x807   : > { %v5032_v50 = vpop.permute.xlu0 %5031  ;;  %v4958_v63 = vsel %vm2720_vm15, %v4949_v15, %v4951_v59  ;;  %v4925_v10 = vsel %vm1091_vm5, %v4918_v37, %v4920_v12  ;;  %vm6101_vm5 = vcmask 130048  }
 0x808   : > { %7789 = vmatmul.msk.bf16.vlgmr.msra.gmra.mxu2 %vm5459_vm11, %v5042_v5  ;;  %v5085_v18 = vsel %vm5006_vm7, %v4958_v63, %v4999_v38  ;;  %v5043_v33 = vsel %vm5041_vm9, %v5030_v9, %v5032_v50 }
 0x80e   : > { %v5036_v22 = vpop.permute.xlu1 %5035  ;;  %v4955_v53 = vpop.permute.xlu2 %4954 }
 0x80f   : > { %v4993_v58 = vpop.permute.xlu0 %4992 }
 0x810   : > { %v5007_v55 = vsel %vm5006_vm7, %v4991_v16, %v4993_v58  ;;  %v5490_v16 = vadd.f32 %v5489_v36, %v12261_v31 }
 0x811   : > { %v5094_v1 = vsel %vm5041_vm9, %v5007_v55, %v5026_v54  ;;  %v5485_v54 = vadd.f32 %v5484_v46, %v12261_v31 }
 0x812   : > { %5580 = vmatmul.bf16.gmra.mxu3 %v5085_v18  ;;  %5599 = vmatmul.bf16.vlgmr.msra.gmra.mxu0 %v5094_v1 }
 0x816   : > { %v4997_v7 = vpop.permute.xlu1 %4996  ;;  %v5040_v48 = vpop.permute.xlu2 %5039 }
 0x817   : > { %v5034_v29 = vpop.permute.xlu0 %5033  ;;  %v5008_v61 = vsel %vm5006_vm7, %v4995_v43, %v4997_v7 }
 0x818   : > { %7790 = vmatmul.msk.bf16.gmra.mxu2 %vm5459_vm11, %v5043_v33  ;;  %v5098_v56 = vsel %vm5041_vm9, %v5008_v61, %v5030_v9  ;;  %v5044_v20 = vsel %vm5041_vm9, %v5034_v29, %v5036_v22  ;;  %v5496_v9 = vpop.f32.mrf.mxu0 }
 0x81e   : > { %v5038_v11 = vpop.permute.xlu1 %5037 }
 0x81f   : > { %v4953_v41 = vpop.permute.xlu0 %4952  ;;  %v5045_v51 = vsel %vm5041_vm9, %v5038_v11, %v5040_v48 }
 0x820   : > { %v5072_v60 = vsel %vm2720_vm15, %v4925_v10, %v4953_v41  ;;  %v4959_v13 = vsel %vm2720_vm15, %v4953_v41, %v4955_v53  ;;  %v5499_v8 = vpop.f32.mrf.mxu0 }
 0x821   : > { %5556 = vmatmul.bf16.gmra.mxu1 %v5072_v60 }
 0x822   : > { %5604 = vmatmul.bf16.gmra.mxu0 %v5098_v56 }
 0x826   : > { %v5001_v21 = vpop.permute.xlu1 %5000 }
 0x827   : > { %v5003_v35 = vpop.permute.xlu0 %5002  ;;  %v5009_v32 = vsel %vm5006_vm7, %v4999_v38, %v5001_v21 }
 0x828   : > { %7791 = vmatmul.msk.bf16.gmra.mxu2 %vm5459_vm11, %v5044_v20  ;;  %v5089_v0 = vsel %vm5006_vm7, %v4959_v13, %v5003_v35  ;;  %v5102_v17 = vsel %vm5041_vm9, %v5009_v32, %v5034_v29  ;;  %v5501_v44 = vpop.f32.mrf.mxu0  ;;  %v5497_v32 = vadd.f32 %v5496_v9, %v12261_v31 }
 0x829   : > { %5585 = vmatmul.bf16.gmra.mxu3 %v5089_v0  ;;  %v5502_v0 = vadd.f32 %v5501_v44, %v12261_v31 }
 0x82f   : > { %v5005_v34 = vpop.permute.xlu0 %5004 }
 0x830   : > { %v5010_v49 = vsel %vm5006_vm7, %v5003_v35, %v5005_v34  ;;  %v5500_v35 = vadd.f32 %v5499_v8, %v12261_v31 }
 0x831   : > { %v5106_v4 = vsel %vm5041_vm9, %v5010_v49, %v5038_v11 }
 0x832   : > { %5609 = vmatmul.bf16.gmra.mxu0 %v5102_v17  ;;  %5614 = vmatmul.bf16.vlgmr.msra.gmra.mxu1 %v5106_v4 }
 0x838   : > { %7792 = vmatmul.msk.bf16.gmra.mxu2 %vm5459_vm11, %v5045_v51 }
 0x84b   : > { %v5513_v24 = vpop.f32.mrf.mxu2 }
 0x84c   : > { %v5514_v6 = vadd.f32 %v5513_v24, %v5485_v54  ;;  %v5492_v54 = vadd.f32 %v5491_v23, %v12261_v31 }
 0x853   : > { %v12266_v45 = vpop.f32.mrf.mxu2 }
 0x85b   : > { %v5518_v37 = vpop.f32.mrf.mxu2 }
 0x85c   : > { %v12269_v40 = vadd.f32 %v5518_v37, %v5490_v16 }
 0x85e   : > { %v5542_v42 = vpop.f32.mrf.mxu1 }
 0x85f   : > { %v5543_v62 = vadd.f32 %v5542_v42, %v5514_v6 }
 0x863   : > { %v5520_v19 = vpop.f32.mrf.mxu2 }
 0x864   : > { %v5521_v16 = vadd.f32 %v5520_v19, %v5492_v54 }
 0x866   : > { %v12272_v39 = vpop.f32.mrf.mxu1 }
 0x86b   : > { %v5523_v30 = vpop.f32.mrf.mxu2 }
 0x86c   : > { %v5524_v27 = vadd.f32 %v5523_v30, %v5495_v3  ;;  %v5487_v3 = vadd.f32 %v12263_v14, %v12261_v31 }
 0x86e   : > { %v5547_v52 = vpop.f32.mrf.mxu1 }
 0x86f   : > { %v5548_v23 = vadd.f32 %v5547_v52, %v12269_v40 }
 0x873   : > { %v5525_v43 = vpop.f32.mrf.mxu2 }
 0x874   : > { %v5526_v4 = vadd.f32 %v5525_v43, %v5497_v32 }
 0x875   : > { %v5571_v57 = vpop.f32.mrf.mxu3 }
 0x876   : > { %v5572_v47 = vadd.f32 %v5571_v57, %v5543_v62  ;;  %v5549_v26 = vpop.f32.mrf.mxu1 }
 0x877   : > { %v5550_v30 = vadd.f32 %v5549_v26, %v5521_v16 }
 0x87b   : > { %v5528_v25 = vpop.f32.mrf.mxu2 }
 0x87c   : > { %v5529_v21 = vadd.f32 %v5528_v25, %v5500_v35  ;;  %v5516_v25 = vadd.f32 %v12266_v45, %v5487_v3 }
 0x87d   : > { %v12274_v15 = vpop.f32.mrf.mxu3 }
 0x87e   : > { %v5552_v50 = vpop.f32.mrf.mxu1 }
 0x87f   : > { %v5553_v37 = vadd.f32 %v5552_v50, %v5524_v27  ;;  %v5545_v27 = vadd.f32 %v12272_v39, %v5516_v25 }
 0x881   : > { %v5574_v14 = vadd.f32 %v12274_v15, %v5545_v27 }
 0x883   : > { %v5530_v28 = vpop.f32.mrf.mxu2 }
 0x884   : > { %v5531_v49 = vadd.f32 %v5530_v28, %v5502_v0 }
 0x885   : > { %v5576_v59 = vpop.f32.mrf.mxu3 }
 0x886   : > { %v5554_v18 = vpop.f32.mrf.mxu1 }
 0x887   : > { %v5555_v24 = vadd.f32 %v5554_v18, %v5526_v4 }
 0x88b   : > { %v5629_v5 = vpop.f32.mrf.mxu2 }
 0x88d   : > { %v5578_v38 = vpop.f32.mrf.mxu3 }
 0x88e   : > { %v5579_v8 = vadd.f32 %v5578_v38, %v5550_v30 }
 0x88f   : > { %v5600_v63 = vpop.f32.mrf.mxu0 }
 0x890   : > { %v5601_v22 = vadd.f32 %v5600_v63, %v5572_v47 }
 0x892   : > { %v12276_v58 = vadd.f32 %v5629_v5, %v5601_v22  ;;  %v5577_v5 = vadd.f32 %v5576_v59, %v5548_v23 }
 0x893   : > { %v12278_v55 = vpop.f32.mrf.mxu2 }
 0x894   : > { %v5649_v15 = vmax.f32 %v12276_v58, 0.0  ;;  %v8256_v58 = vld [vmem:[%s12635_s9 + $0x18] sm:$0xff] }
 0x895   : > { %v5581_v29 = vpop.f32.mrf.mxu3 }
 0x896   : > { %v5582_v9 = vadd.f32 %v5581_v29, %v5553_v37 }
 0x897   : > { %v5602_v1 = vpop.f32.mrf.mxu0 }
 0x89b   : > { %v5634_v33 = vpop.f32.mrf.mxu2 }
 0x89d   : > { %v5583_v10 = vpop.f32.mrf.mxu3 }
 0x89e   : > { %v5557_v12 = vpop.f32.mrf.mxu1  ;;  %v5584_v42 = vadd.f32 %v5583_v10, %v5555_v24 }
 0x89f   : > { %v5605_v7 = vpop.f32.mrf.mxu0  ;;  %v5558_v34 = vadd.f32 %v5557_v12, %v5529_v21  ;;  %v5603_v12 = vadd.f32 %v5602_v1, %v5574_v14  ;;  %v8253_v1 = vld [vmem:[%s12635_s9] sm:$0xff] }
 0x8a0   : > { %v5606_v26 = vadd.f32 %v5605_v7, %v5577_v5 }
 0x8a1   : > { %v5632_v39 = vadd.f32 %v12278_v55, %v5603_v12  ;;  %v8254_v55 = vld [vmem:[%s12635_s9 + $0x8] sm:$0xff] }
 0x8a2   : > { %v5635_v52 = vadd.f32 %v5634_v33, %v5606_v26  ;;  %v8255_v33 = vld [vmem:[%s12635_s9 + $0x10] sm:$0xff] }
 0x8a3   : > { %v5636_v61 = vpop.f32.mrf.mxu2 }
 0x8a6   : > { %v5559_v60 = vpop.f32.mrf.mxu1 }
 0x8a7   : > { %v5607_v41 = vpop.f32.mrf.mxu0  ;;  %v5560_v51 = vadd.f32 %v5559_v60, %v5531_v49  ;;  %v5651_v60 = vmax.f32 %v5635_v52, 0.0 }
 0x8a8   : > { %v5608_v50 = vadd.f32 %v5607_v41, %v5579_v8 }
 0x8aa   : > { %v5637_v45 = vadd.f32 %v5636_v61, %v5608_v50 }
 0x8ab   : > { %v5639_v56 = vpop.f32.mrf.mxu2 }
 0x8ac   : > { %v5586_v11 = vpop.f32.mrf.mxu3  ;;  %v5652_v59 = vmax.f32 %v5637_v45, 0.0 }
 0x8ad   : > { %v5587_v46 = vadd.f32 %v5586_v11, %v5558_v34  ;;  %v5650_v11 = vmax.f32 %v5632_v39, 0.0 }
 0x8af   : > { %v5610_v20 = vpop.f32.mrf.mxu0  ;;  %v5615_v13 = vpop.f32.mrf.mxu1  ;;  %v5657_v7 = vpack.c.bf16 %v5650_v11, %v5649_v15  ;;  %v8264_v11 = vld [vmem:[%s12630_s4 + $0x38] sm:$0xff] }
 0x8b0   : > { %v5616_v2 = vadd.f32 %v5615_v13, %v5587_v46  ;;  %v5611_v28 = vadd.f32 %v5610_v20, %v5582_v9  ;;  %6110 = vmatpush.bf16.msra.mxu3 %v8264_v11 }
 0x8b2   : > { %v5640_v18 = vadd.f32 %v5639_v56, %v5611_v28 }
 0x8b3   : > { %v5641_v53 = vpop.f32.mrf.mxu2 }
 0x8b4   : > { %v5588_v17 = vpop.f32.mrf.mxu3  ;;  %v5653_v38 = vmax.f32 %v5640_v18, 0.0 }
 0x8b5   : > { %v5589_v6 = vadd.f32 %v5588_v17, %v5560_v51 }
 0x8b7   : > { %v5612_v36 = vpop.f32.mrf.mxu0  ;;  %v5617_v62 = vpop.f32.mrf.mxu1 }
 0x8b8   : > { %v5613_v43 = vadd.f32 %v5612_v36, %v5584_v42  ;;  %v5618_v57 = vadd.f32 %v5617_v62, %v5589_v6 }
 0x8ba   : > { %v5642_v63 = vadd.f32 %v5641_v53, %v5613_v43  ;;  %v5658_v53 = vpack.c.bf16 %v5652_v59, %v5651_v60 }
 0x8bb   : > { %v5644_v48 = vpop.f32.mrf.mxu2 }
 0x8bc   : > { %v5645_v47 = vadd.f32 %v5644_v48, %v5616_v2  ;;  %v5654_v10 = vmax.f32 %v5642_v63, 0.0 }
 0x8be   : > { %v5655_v22 = vmax.f32 %v5645_v47, 0.0  ;;  %v5659_v41 = vpack.c.bf16 %v5654_v10, %v5653_v38 }
 0x8c3   : > { %v5646_v44 = vpop.f32.mrf.mxu2 }
 0x8c4   : > { %v5647_v19 = vadd.f32 %v5646_v44, %v5618_v57 }
 0x8c6   : > { %v5656_v31 = vmax.f32 %v5647_v19, 0.0 }
 0x8c8   : > { %v5660_v29 = vpack.c.bf16 %v5656_v31, %v5655_v22 }
 0x8ca   : > { %v5702_v40 = vsel %vm794_vm2, %v5660_v29, 0 }
 0x8cb   : > { %5708 = vmatpush.bf16.msrb.mxu1 %v5702_v40 }
 0x8cf   : > { %5709 = vmatpush.bf16.msrb.mxu1 %v5659_v41 }
 0x8d3   : > { %5710 = vmatpush.bf16.msrb.mxu1 %v5658_v53  ;;  %v8280_v53 = vld [vmem:[%s12630_s4 + $0xb8] sm:$0xff] }
 0x8d4   : > { %6168 = vmatpush.bf16.msrb.mxu2 %v8280_v53 }
 0x8d7   : > { %5711 = vmatpush.bf16.msrb.mxu1 %v5657_v7  ;;  %v8272_v7 = vld [vmem:[%s12630_s4 + $0x78] sm:$0xff] }
 0x8d8   : > { %6139 = vmatpush.bf16.msrb.mxu0 %v8272_v7 }
 0x8da   : > { %7809 = vmatmul.msk.bf16.vlgmr.msrb.gmra.mxu1 %vm5459_vm11, %v8253_v1 }
 0x8ea   : > { %7810 = vmatmul.msk.bf16.gmra.mxu1 %vm5459_vm11, %v8254_v55  ;;  %v8263_v55 = vld [vmem:[%s12630_s4 + $0x30] sm:$0xff] }
 0x8eb   : > { %6111 = vmatpush.bf16.msra.mxu3 %v8263_v55 }
 0x8fa   : > { %7811 = vmatmul.msk.bf16.gmra.mxu1 %vm5459_vm11, %v8255_v33  ;;  %v8279_v33 = vld [vmem:[%s12630_s4 + $0xb0] sm:$0xff] }
 0x8fb   : > { %6169 = vmatpush.bf16.msrb.mxu2 %v8279_v33 }
 0x90a   : > { %7812 = vmatmul.msk.bf16.gmra.mxu1 %vm5459_vm11, %v8256_v58  ;;  %v8271_v58 = vld [vmem:[%s12630_s4 + $0x70] sm:$0xff] }
 0x90b   : > { %6140 = vmatpush.bf16.msrb.mxu0 %v8271_v58 }
 0x957   : > { %v5713_v61 = vpop.f32.mrf.mxu1 }
 0x958   : > { %v5733_v13 = vpack.c.bf16 %v5713_v61, %v5713_v61 }
 0x95a   : > { %v5750_v21 = vunpack.c.l.b16 %v5733_v13 }
 0x95f   : > { %v5715_v56 = vpop.f32.mrf.mxu1 }
 0x960   : > { %v5734_v20 = vpack.c.bf16 %v5715_v56, %v5715_v56 }
 0x962   : > { %v5751_v0 = vunpack.c.l.b16 %v5734_v20 }
 0x964   : > { %v12309_v32 = vpack.c.b16 %v5751_v0, %v5750_v21  ;;  %v8278_v0 = vld [vmem:[%s12630_s4 + $0xa8] sm:$0xff] }
 0x965   : > { %v8270_v21 = vld [vmem:[%s12630_s4 + $0x68] sm:$0xff]  ;;  %6170 = vmatpush.bf16.msrb.mxu2 %v8278_v0 }
 0x966   : > { %v5763_v17 = vshrl.u32 %v12309_v32, 16  ;;  %v5765_v48 = vshll.u32 %v12309_v32, 16  ;;  %v5839_v24 = vrot.slane %v12309_v32, 2  ;;  %v5801_v5 = vrot.slane %v12309_v32, 1  ;;  %6141 = vmatpush.bf16.msrb.mxu0 %v8270_v21 }
 0x967   : > { %v5718_v35 = vpop.f32.mrf.mxu1 }
 0x968   : > { %v5735_v34 = vpack.c.bf16 %v5718_v35, %v5718_v35  ;;  %v5816_v6 = vrot.slane %v5763_v17, 1  ;;  %v5767_v36 = vrot.slane %v5765_v48, 1  ;;  %v5817_v62 = vrot.slane %v5765_v48, 2  ;;  %v8262_v35 = vld [vmem:[%s12630_s4 + $0x28] sm:$0xff] }
 0x969   : > { %6112 = vmatpush.bf16.msra.mxu3 %v8262_v35 }
 0x96a   : > { %v5752_v51 = vunpack.c.l.b16 %v5735_v34  ;;  %v5768_v57 = vor.u32 %v5767_v36, %v5763_v17  ;;  %v5818_v47 = vor.u32 %v5817_v62, %v5816_v6  ;;  %v8269_v36 = vld [vmem:[%s12630_s4 + $0x60] sm:$0xff]  ;;  %v8260_v62 = vld [vmem:[%s12630_s4 + $0x18] sm:$0xff] }
 0x96b   : > { %6142 = vmatpush.bf16.msrb.mxu0 %v8269_v36 }
 0x96f   : > { %v5720_v49 = vpop.f32.mrf.mxu1 }
 0x970   : > { %v5736_v4 = vpack.c.bf16 %v5720_v49, %v5720_v49 }
 0x972   : > { %v5753_v46 = vunpack.c.l.b16 %v5736_v4 }
 0x974   : > { %v12313_v54 = vpack.c.b16 %v5753_v46, %v5752_v51  ;;  %v8261_v46 = vld [vmem:[%s12630_s4 + $0x20] sm:$0xff] }
 0x975   : > { %6113 = vmatpush.bf16.msra.mxu3 %v8261_v46 }
 0x976   : > { %v5840_v16 = vrot.slane %v12313_v54, 2  ;;  %v5770_v37 = vshll.u32 %v12313_v54, 16  ;;  %v5774_v42 = vshrl.u32 %v12313_v54, 16  ;;  %v5802_v19 = vrot.slane %v12313_v54, 1 }
 0x977   : > { %v5723_v2 = vpop.f32.mrf.mxu1 }
 0x978   : > { %v5841_v3 = vsel %vm794_vm2, %v5839_v24, %v5840_v16  ;;  %v5819_v30 = vrot.slane %v5774_v42, 1  ;;  %v5820_v9 = vrot.slane %v5770_v37, 2  ;;  %v5772_v43 = vrot.slane %v5770_v37, 1  ;;  %v8277_v24 = vld [vmem:[%s12630_s4 + $0xa0] sm:$0xff] }
 0x979   : > { %5846 = vrot.lane.b32.xlu1 %v5841_v3, %s8569_s24  ;;  %v5737_v28 = vpack.c.bf16 %v5723_v2, %v5723_v2  ;;  %v5803_v22 = vsel %vm654_vm3, %v5801_v5, %v5802_v19  ;;  %6171 = vmatpush.bf16.msrb.mxu2 %v8277_v24  ;;  %v8276_v2 = vld [vmem:[%s12630_s4 + $0x98] sm:$0xff]  ;;  %v8265_v5 = vld [vmem:[%s12630_s4 + $0x40] sm:$0xff] }
 0x97a   : > { %v5821_v25 = vor.u32 %v5820_v9, %v5819_v30  ;;  %v5773_v23 = vsel %vm514_vm1, %v5768_v57, %v5772_v43  ;;  %v5776_v12 = vor.u32 %v5774_v42, %v5772_v43  ;;  %v8268_v30 = vld [vmem:[%s12630_s4 + $0x58] sm:$0xff]  ;;  %6114 = vmatpush.bf16.msra.mxu3 %v8260_v62  ;;  %v8259_v43 = vld [vmem:[%s12630_s4 + $0x10] sm:$0xff] }
 0x97b   : > { %5793 = vrot.lane.b32.xlu2 %v5773_v23, %s8570_s19  ;;  %v5754_v50 = vunpack.c.l.b16 %v5737_v28  ;;  %v8275_v57 = vld [vmem:[%s12630_s4 + $0x90] sm:$0xff]  ;;  %6143 = vmatpush.bf16.msrb.mxu0 %v8268_v30  ;;  %v8274_v28 = vld [vmem:[%s12630_s4 + $0x88] sm:$0xff] }
 0x97c   : > { %v5822_v8 = vsel %vm710_vm0, %v5818_v47, %v5821_v25  ;;  %v8267_v47 = vld [vmem:[%s12630_s4 + $0x50] sm:$0xff] }
 0x97d   : > { %5831 = vrot.lane.b32.xlu0 %v5822_v8, %s8557_s30  ;;  %6172 = vmatpush.bf16.msrb.mxu2 %v8276_v2  ;;  %v8258_v8 = vld [vmem:[%s12630_s4 + $0x8] sm:$0xff] }
 0x97e   : > { %6115 = vmatpush.bf16.msra.mxu3 %v8259_v43 }
 0x97f   : > { %v5725_v44 = vpop.f32.mrf.mxu1  ;;  %6144 = vmatpush.bf16.msrb.mxu0 %v8267_v47 }
 0x980   : > { %v5738_v27 = vpack.c.bf16 %v5725_v44, %v5725_v44  ;;  %v8257_v44 = vld [vmem:[%s12630_s4] sm:$0xff] }
 0x981   : > { %6173 = vmatpush.bf16.msrb.mxu2 %v8275_v57 }
 0x982   : > { %v5755_v63 = vunpack.c.l.b16 %v5738_v27  ;;  %6116 = vmatpush.bf16.msra.mxu3 %v8258_v8  ;;  %v8273_v27 = vld [vmem:[%s12630_s4 + $0x80] sm:$0xff] }
 0x983   : > { %5808 = vrot.lane.b32.xlu2 %v5803_v22, %s8571_s28 }
 0x984   : > { %v12328_v31 = vpack.c.b16 %v5755_v63, %v5754_v50  ;;  %v8281_v50 = vld [vmem:[%s12630_s4 + $0xc0] sm:$0xff] }
 0x985   : > { %6174 = vmatpush.bf16.msrb.mxu2 %v8274_v28  ;;  %6204 = vmatpush.bf16.msra.mxu1 %v8281_v50 }
 0x986   : > { %v5778_v14 = vshll.u32 %v12328_v31, 16  ;;  %v5782_v26 = vshrl.u32 %v12328_v31, 16  ;;  %v5842_v29 = vrot.slane %v12328_v31, 2  ;;  %v5804_v60 = vrot.slane %v12328_v31, 1  ;;  %6117 = vmatpush.bf16.msra.mxu3 %v8257_v44 }
 0x987   : > { %v5728_v18 = vpop.f32.mrf.mxu1 }
 0x988   : > { %v5780_v45 = vrot.slane %v5778_v14, 1  ;;  %v5823_v10 = vrot.slane %v5782_v26, 1  ;;  %v5824_v40 = vrot.slane %v5778_v14, 2  ;;  %v5843_v39 = vsel %vm794_vm2, %v5840_v16, %v5842_v29 }
 0x989   : > { %v5739_v41 = vpack.c.bf16 %v5728_v18, %v5728_v18  ;;  %v5805_v20 = vsel %vm654_vm3, %v5802_v19, %v5804_v60  ;;  %v8266_v19 = vld [vmem:[%s12630_s4 + $0x48] sm:$0xff]  ;;  %6175 = vmatpush.bf16.msrb.mxu2 %v8273_v27 }
 0x98a   : > { %v5781_v52 = vsel %vm514_vm1, %v5776_v12, %v5780_v45  ;;  %v5825_v38 = vor.u32 %v5824_v40, %v5823_v10  ;;  %v5784_v17 = vor.u32 %v5782_v26, %v5780_v45  ;;  %6145 = vmatpush.bf16.msrb.mxu0 %v8266_v19 }
 0x98b   : > { %5795 = vrot.lane.b32.xlu0 %v5781_v52, %s8570_s19  ;;  %5848 = vrot.lane.b32.xlu2 %v5843_v39, %s8569_s24  ;;  %v5756_v61 = vunpack.c.l.b16 %v5739_v41 }
 0x98c   : > { %v5826_v59 = vsel %vm710_vm0, %v5821_v25, %v5825_v38 }
 0x98d   : > { %5833 = vrot.lane.b32.xlu1 %v5826_v59, %s8557_s30 }
 0x98e   : > { %6146 = vmatpush.bf16.msrb.mxu0 %v8265_v5 }
 0x98f   : > { %v5730_v15 = vpop.f32.mrf.mxu1 }
 0x990   : > { %v5740_v1 = vpack.c.bf16 %v5730_v15, %v5730_v15 }
 0x992   : > { %v5757_v56 = vunpack.c.l.b16 %v5740_v1 }
 0x993   : > { %5810 = vrot.lane.b32.xlu0 %v5805_v20, %s8571_s28 }
 0x994   : > { %v12361_v13 = vpack.c.b16 %v5757_v56, %v5756_v61 }
 0x996   : > { %v5786_v34 = vshll.u32 %v12361_v13, 16  ;;  %v5844_v49 = vrot.slane %v12361_v13, 2  ;;  %v5790_v4 = vshrl.u32 %v12361_v13, 16  ;;  %v5806_v9 = vrot.slane %v12361_v13, 1 }
 0x998   : > { %v5788_v48 = vrot.slane %v5786_v34, 1  ;;  %v5827_v51 = vrot.slane %v5790_v4, 1  ;;  %v5828_v6 = vrot.slane %v5786_v34, 2  ;;  %v5845_v37 = vsel %vm794_vm2, %v5842_v29, %v5844_v49 }
 0x999   : > { %v5807_v25 = vsel %vm654_vm3, %v5804_v60, %v5806_v9  ;;  %vm5854_vm2 = vcmask 654336  }
 0x99a   : > { %v5789_v16 = vsel %vm514_vm1, %v5784_v17, %v5788_v48  ;;  %v5829_v42 = vor.u32 %v5828_v6, %v5827_v51  ;;  %v5792_v23 = vor.u32 %v5790_v4, %v5788_v48 }
 0x99b   : > { %5797 = vrot.lane.b32.xlu1 %v5789_v16, %s8570_s19  ;;  %5850 = vrot.lane.b32.xlu0 %v5845_v37, %s8569_s24 }
 0x99c   : > { %v5830_v3 = vsel %vm710_vm0, %v5825_v38, %v5829_v42 }
 0x99d   : > { %5835 = vrot.lane.b32.xlu2 %v5830_v3, %s8557_s30 }
 0x9a3   : > { %5812 = vrot.lane.b32.xlu1 %v5807_v25, %s8571_s28  ;;  %5837 = vrot.lane.b32.xlu0 %v5829_v42, %s8557_s30 }
 0x9a5   : > { %5799 = vrot.lane.b32.xlu2 %v5792_v23, %s8570_s19 }
 0x9ab   : > { %5852 = vrot.lane.b32.xlu1 %v5844_v49, %s8569_s24 }
 0x9ad   : > { %5814 = vrot.lane.b32.xlu2 %v5806_v9, %s8571_s28 }
 0x9d5   : > { %v5794_v63 = vpop.permute.xlu2 %5793 }
 0x9d6   : > { %v5856_v22 = vsel %vm5854_vm2, %v12309_v32, %v5794_v63 }
 0x9d7   : > { %6118 = vmatmul.bf16.vlgmr.msra.gmra.mxu3 %v5856_v22 }
 0x9dd   : > { %v5809_v26 = vpop.permute.xlu2 %5808 }
 0x9de   : > { %v5869_v29 = vsel %vm5867_vm12, %v5794_v63, %v5809_v26 }
 0x9e5   : > { %v5849_v10 = vpop.permute.xlu2 %5848 }
 0x9eb   : > { %v5847_v14 = vpop.permute.xlu1 %5846 }
 0x9ec   : > { %7913 = vmatmul.msk.bf16.vlgmr.msra.gmra.mxu1 %vm6101_vm5, %v5847_v14 }
 0x9ef   : > { %v5832_v18 = vpop.permute.xlu0 %5831 }
 0x9f0   : > { %v5890_v12 = vsel %vm5888_vm13, %v5832_v18, %v5847_v14  ;;  %v5877_v45 = vsel %vm937_vm8, %v5869_v29, %v5832_v18 }
 0x9f1   : > { %6176 = vmatmul.bf16.vlgmr.msrb.gmra.mxu2 %v5890_v12  ;;  %6147 = vmatmul.bf16.vlgmr.msrb.gmra.mxu0 %v5877_v45 }
 0x9fc   : > { %7914 = vmatmul.msk.bf16.gmra.mxu1 %vm6101_vm5, %v5849_v10 }
 0x9fd   : > { %v5796_v32 = vpop.permute.xlu0 %5795 }
 0x9fe   : > { %v5859_v40 = vsel %vm5854_vm2, %v12313_v54, %v5796_v32  ;;  %v5836_v54 = vpop.permute.xlu2 %5835 }
 0x9ff   : > { %6123 = vmatmul.bf16.gmra.mxu3 %v5859_v40  ;;  %v5834_v52 = vpop.permute.xlu1 %5833 }
 0xa00   : > { %v5893_v38 = vsel %vm5888_vm13, %v5834_v52, %v5849_v10 }
 0xa01   : > { %6181 = vmatmul.bf16.gmra.mxu2 %v5893_v38 }
 0xa05   : > { %v5811_v39 = vpop.permute.xlu0 %5810 }
 0xa06   : > { %v5871_v59 = vsel %vm5867_vm12, %v5796_v32, %v5811_v39  ;;  %v5800_v33 = vpop.permute.xlu2 %5799 }
 0xa07   : > { %v5880_v41 = vsel %vm937_vm8, %v5871_v59, %v5834_v52  ;;  %v5865_v61 = vsel %vm5854_vm2, %v12361_v13, %v5800_v33  ;;  %v12463_v13 = vld [vmem:[%s12637_s11 + $0x3] ss:$0 sm:$0xff] }
 0xa08   : > { %6152 = vmatmul.bf16.gmra.mxu0 %v5880_v41 }
 0xa0d   : > { %v5798_v60 = vpop.permute.xlu1 %5797  ;;  %v5851_v11 = vpop.permute.xlu0 %5850 }
 0xa0e   : > { %v5862_v53 = vsel %vm5854_vm2, %v12328_v31, %v5798_v60  ;;  %7915 = vmatmul.msk.bf16.gmra.mxu1 %vm6101_vm5, %v5851_v11  ;;  %v5896_v15 = vsel %vm5888_vm13, %v5836_v54, %v5851_v11  ;;  %v5815_v20 = vpop.permute.xlu2 %5814 }
 0xa0f   : > { %6128 = vmatmul.bf16.gmra.mxu3 %v5862_v53  ;;  %v5875_v35 = vsel %vm5867_vm12, %v5800_v33, %v5815_v20 }
 0xa11   : > { %6186 = vmatmul.bf16.gmra.mxu2 %v5896_v15 }
 0xa15   : > { %v5813_v7 = vpop.permute.xlu1 %5812  ;;  %v5838_v31 = vpop.permute.xlu0 %5837 }
 0xa16   : > { %v5873_v1 = vsel %vm5867_vm12, %v5798_v60, %v5813_v7  ;;  %v5886_v0 = vsel %vm937_vm8, %v5875_v35, %v5838_v31 }
 0xa17   : > { %v5883_v55 = vsel %vm937_vm8, %v5873_v1, %v5836_v54 }
 0xa18   : > { %6157 = vmatmul.bf16.gmra.mxu0 %v5883_v55 }
 0xa1d   : > { %v5853_v58 = vpop.permute.xlu1 %5852 }
 0xa1e   : > { %7916 = vmatmul.msk.bf16.gmra.mxu1 %vm6101_vm5, %v5853_v58  ;;  %v5899_v56 = vsel %vm5888_vm13, %v5838_v31, %v5853_v58 }
 0xa1f   : > { %6133 = vmatmul.bf16.gmra.mxu3 %v5865_v61 }
 0xa21   : > { %6191 = vmatmul.bf16.gmra.mxu2 %v5899_v56 }
 0xa28   : > { %6162 = vmatmul.bf16.gmra.mxu0 %v5886_v0 }
 0xa5a   : > { %v6119_v21 = vpop.f32.mrf.mxu3 }
 0xa5b   : > { %v6120_v24 = vadd.f32 %v6119_v21, %v12463_v13 }
 0xa62   : > { %v6121_v17 = vpop.f32.mrf.mxu3 }
 0xa63   : > { %v6122_v46 = vadd.f32 %v6121_v17, %v12463_v13 }
 0xa69   : > { %v6206_v34 = vpop.f32.mrf.mxu1 }
 0xa6e   : > { %v6148_v49 = vpop.f32.mrf.mxu0 }
 0xa6f   : > { %v6149_v16 = vadd.f32 %v6148_v49, %v6120_v24 }
 0xa71   : > { %v6208_v48 = vpop.f32.mrf.mxu1 }
 0xa74   : > { %v6177_v4 = vpop.f32.mrf.mxu2 }
 0xa75   : > { %v6178_v42 = vadd.f32 %v6177_v4, %v6149_v16 }
 0xa76   : > { %v6150_v51 = vpop.f32.mrf.mxu0 }
 0xa77   : > { %v6151_v6 = vadd.f32 %v6150_v51, %v6122_v46  ;;  %v6207_v9 = vadd.f32 %v6206_v34, %v6178_v42 }
 0xa79   : > { %v6211_v62 = vpop.f32.mrf.mxu1  ;;  %v6226_v23 = vmax.f32 %v6207_v9, 0.0 }
 0xa7b   : > { %v6234_v5 = vpack.c.bf16 %v6226_v23, %v6226_v23 }
 0xa7c   : > { %v6179_v36 = vpop.f32.mrf.mxu2 }
 0xa7d   : > { %v6180_v37 = vadd.f32 %v6179_v36, %v6151_v6  ;;  %v6251_v18 = vunpack.c.l.b16 %v6234_v5 }
 0xa7f   : > { %v6209_v2 = vadd.f32 %v6208_v48, %v6180_v37 }
 0xa81   : > { %v6227_v47 = vmax.f32 %v6209_v2, 0.0  ;;  %v6213_v27 = vpop.f32.mrf.mxu1 }
 0xa82   : > { %v6124_v3 = vpop.f32.mrf.mxu3 }
 0xa83   : > { %v6125_v30 = vadd.f32 %v6124_v3, %v12463_v13  ;;  %v6235_v28 = vpack.c.bf16 %v6227_v47, %v6227_v47 }
 0xa84   : > { %v6182_v43 = vpop.f32.mrf.mxu2 }
 0xa85   : > { %v6153_v57 = vpop.f32.mrf.mxu0  ;;  %v6252_v14 = vunpack.c.l.b16 %v6235_v28 }
 0xa86   : > { %v6154_v25 = vadd.f32 %v6153_v57, %v6125_v30 }
 0xa87   : > { %v12469_v45 = vpack.c.b16 %v6252_v14, %v6251_v18 }
 0xa88   : > { %v6183_v8 = vadd.f32 %v6182_v43, %v6154_v25 }
 0xa89   : > { %v6266_v53 = vshll.u32 %v12469_v45, 16  ;;  %v6302_v31 = vrot.slane %v12469_v45, 1  ;;  %v6264_v35 = vshrl.u32 %v12469_v45, 16 }
 0xa8a   : > { %v6126_v44 = vpop.f32.mrf.mxu3  ;;  %v6212_v50 = vadd.f32 %v6211_v62, %v6183_v8 }
 0xa8b   : > { %v6127_v19 = vadd.f32 %v6126_v44, %v12463_v13  ;;  %v6216_v52 = vpop.f32.mrf.mxu1  ;;  %v6268_v33 = vrot.slane %v6266_v53, 1  ;;  %v6317_v62 = vrot.slane %v6264_v35, 1  ;;  %v6318_v2 = vrot.slane %v6266_v53, 2 }
 0xa8c   : > { %v6184_v63 = vpop.f32.mrf.mxu2  ;;  %v6228_v29 = vmax.f32 %v6212_v50, 0.0 }
 0xa8d   : > { %v6155_v22 = vpop.f32.mrf.mxu0  ;;  %v6269_v48 = vor.u32 %v6268_v33, %v6264_v35  ;;  %v6319_v8 = vor.u32 %v6318_v2, %v6317_v62  ;;  %v8295_v62 = vld [vmem:[%s12631_s5 + $0x68] sm:$0xff]  ;;  %v8285_v2 = vld [vmem:[%s12631_s5 + $0x18] sm:$0xff] }
 0xa8e   : > { %v6156_v26 = vadd.f32 %v6155_v22, %v6127_v19  ;;  %v6236_v38 = vpack.c.bf16 %v6228_v29, %v6228_v29 }
 0xa90   : > { %v6185_v12 = vadd.f32 %v6184_v63, %v6156_v26  ;;  %v6253_v54 = vunpack.c.l.b16 %v6236_v38 }
 0xa92   : > { %v6214_v10 = vadd.f32 %v6213_v27, %v6185_v12  ;;  %v6129_v32 = vpop.f32.mrf.mxu3 }
 0xa93   : > { %v6130_v40 = vadd.f32 %v6129_v32, %v12463_v13  ;;  %v6218_v49 = vpop.f32.mrf.mxu1 }
 0xa94   : > { %v6229_v39 = vmax.f32 %v6214_v10, 0.0  ;;  %v6187_v59 = vpop.f32.mrf.mxu2 }
 0xa95   : > { %v6158_v41 = vpop.f32.mrf.mxu0 }
 0xa96   : > { %v6237_v60 = vpack.c.bf16 %v6229_v39, %v6229_v39  ;;  %v6159_v11 = vadd.f32 %v6158_v41, %v6130_v40 }
 0xa98   : > { %v6254_v15 = vunpack.c.l.b16 %v6237_v60  ;;  %v6188_v7 = vadd.f32 %v6187_v59, %v6159_v11 }
 0xa9a   : > { %v12473_v1 = vpack.c.b16 %v6254_v15, %v6253_v54  ;;  %v6131_v55 = vpop.f32.mrf.mxu3  ;;  %v6217_v58 = vadd.f32 %v6216_v52, %v6188_v7  ;;  %v8289_v54 = vld [vmem:[%s12631_s5 + $0x38] sm:$0xff] }
 0xa9b   : > { %v6132_v61 = vadd.f32 %v6131_v55, %v12463_v13  ;;  %v6221_v28 = vpop.f32.mrf.mxu1  ;;  %6540 = vmatpush.bf16.msrb.mxu3 %v8289_v54  ;;  %v6242_v54 = vld [vmem:[%s12637_s11 + $0x4] ss:$0 sm:$0xff] }
 0xa9c   : > { %v6189_v56 = vpop.f32.mrf.mxu2  ;;  %v6303_v20 = vrot.slane %v12473_v1, 1  ;;  %v6271_v0 = vshll.u32 %v12473_v1, 16  ;;  %v6275_v21 = vshrl.u32 %v12473_v1, 16  ;;  %v6230_v46 = vmax.f32 %v6217_v58, 0.0 }
 0xa9d   : > { %v6160_v34 = vpop.f32.mrf.mxu0 }
 0xa9e   : > { %v6161_v4 = vadd.f32 %v6160_v34, %v6132_v61  ;;  %v6304_v17 = vsel %vm654_vm3, %v6302_v31, %v6303_v20  ;;  %v6273_v51 = vrot.slane %v6271_v0, 1  ;;  %v6320_v36 = vrot.slane %v6275_v21, 1 }
 0xa9f   : > { %6309 = vrot.lane.b32.xlu2 %v6304_v17, %s8571_s28  ;;  %v6321_v16 = vrot.slane %v6271_v0, 2  ;;  %v6238_v30 = vpack.c.bf16 %v6230_v46, %v6230_v46 }
 0xaa0   : > { %v6190_v24 = vadd.f32 %v6189_v56, %v6161_v4  ;;  %v6274_v6 = vsel %vm514_vm1, %v6269_v48, %v6273_v51  ;;  %v6277_v40 = vor.u32 %v6275_v21, %v6273_v51 }
 0xaa1   : > { %6294 = vrot.lane.b32.xlu0 %v6274_v6, %s8570_s19  ;;  %v6322_v43 = vor.u32 %v6321_v16, %v6320_v36  ;;  %v6255_v44 = vunpack.c.l.b16 %v6238_v30  ;;  %v8288_v6 = vld [vmem:[%s12631_s5 + $0x30] sm:$0xff]  ;;  %v8297_v36 = vld [vmem:[%s12631_s5 + $0x78] sm:$0xff]  ;;  %v8287_v16 = vld [vmem:[%s12631_s5 + $0x28] sm:$0xff] }
 0xaa2   : > { %v6219_v37 = vadd.f32 %v6218_v49, %v6190_v24  ;;  %v6134_v42 = vpop.f32.mrf.mxu3  ;;  %6541 = vmatpush.bf16.msrb.mxu3 %v8288_v6  ;;  %6569 = vmatpush.bf16.msra.mxu0 %v8297_v36  ;;  %v8294_v30 = vld [vmem:[%s12631_s5 + $0x60] sm:$0xff] }
 0xaa3   : > { %v6135_v3 = vadd.f32 %v6134_v42, %v12463_v13  ;;  %v6323_v5 = vsel %vm710_vm0, %v6319_v8, %v6322_v43  ;;  %v6223_v11 = vpop.f32.mrf.mxu1  ;;  %v8286_v42 = vld [vmem:[%s12631_s5 + $0x20] sm:$0xff]  ;;  %v8299_v8 = vld [vmem:[%s12631_s5 + $0x88] sm:$0xff] }
 0xaa4   : > { %v6231_v9 = vmax.f32 %v6219_v37, 0.0  ;;  %v6192_v47 = vpop.f32.mrf.mxu2  ;;  %v8296_v37 = vld [vmem:[%s12631_s5 + $0x70] sm:$0xff] }
 0xaa5   : > { %v6163_v57 = vpop.f32.mrf.mxu0 }
 0xaa6   : > { %v6239_v25 = vpack.c.bf16 %v6231_v9, %v6231_v9  ;;  %v6164_v23 = vadd.f32 %v6163_v57, %v6135_v3  ;;  %6542 = vmatpush.bf16.msrb.mxu3 %v8287_v16  ;;  %6570 = vmatpush.bf16.msra.mxu0 %v8296_v37  ;;  %v8284_v3 = vld [vmem:[%s12631_s5 + $0x10] sm:$0xff]  ;;  %v8301_v9 = vld [vmem:[%s12631_s5 + $0x98] sm:$0xff] }
 0xaa7   : > { %v8293_v57 = vld [vmem:[%s12631_s5 + $0x58] sm:$0xff]  ;;  %6602 = vmatpush.bf16.msra.mxu2 %v8301_v9 }
 0xaa8   : > { %v6256_v19 = vunpack.c.l.b16 %v6239_v25  ;;  %v6193_v27 = vadd.f32 %v6192_v47, %v6164_v23  ;;  %v8300_v47 = vld [vmem:[%s12631_s5 + $0x90] sm:$0xff]  ;;  %v8282_v25 = vld [vmem:[%s12631_s5] sm:$0xff] }
 0xaa9   : > { %6332 = vrot.lane.b32.xlu0 %v6323_v5, %s8557_s30  ;;  %v8292_v23 = vld [vmem:[%s12631_s5 + $0x50] sm:$0xff] }
 0xaaa   : > { %v12488_v50 = vpack.c.b16 %v6256_v19, %v6255_v44  ;;  %v6136_v63 = vpop.f32.mrf.mxu3  ;;  %v6222_v14 = vadd.f32 %v6221_v28, %v6193_v27  ;;  %6543 = vmatpush.bf16.msrb.mxu3 %v8286_v42  ;;  %6571 = vmatpush.bf16.msra.mxu0 %v8295_v62  ;;  %v8291_v28 = vld [vmem:[%s12631_s5 + $0x48] sm:$0xff]  ;;  %v8298_v44 = vld [vmem:[%s12631_s5 + $0x80] sm:$0xff] }
 0xaab   : > { %v6137_v22 = vadd.f32 %v6136_v63, %v12463_v13  ;;  %6603 = vmatpush.bf16.msra.mxu2 %v8300_v47  ;;  %v8290_v19 = vld [vmem:[%s12631_s5 + $0x40] sm:$0xff] }
 0xaac   : > { %v6305_v26 = vrot.slane %v12488_v50, 1  ;;  %v6279_v18 = vshll.u32 %v12488_v50, 16  ;;  %v6283_v29 = vshrl.u32 %v12488_v50, 16  ;;  %v6194_v38 = vpop.f32.mrf.mxu2  ;;  %v6232_v41 = vmax.f32 %v6222_v14, 0.0 }
 0xaad   : > { %v6165_v12 = vpop.f32.mrf.mxu0 }
 0xaae   : > { %v6166_v10 = vadd.f32 %v6165_v12, %v6137_v22  ;;  %v6306_v32 = vsel %vm654_vm3, %v6303_v20, %v6305_v26  ;;  %v6281_v52 = vrot.slane %v6279_v18, 1  ;;  %v6324_v39 = vrot.slane %v6283_v29, 1  ;;  %6544 = vmatpush.bf16.msrb.mxu3 %v8285_v2  ;;  %6572 = vmatpush.bf16.msra.mxu0 %v8294_v30 }
 0xaaf   : > { %6311 = vrot.lane.b32.xlu2 %v6306_v32, %s8571_s28  ;;  %v6325_v59 = vrot.slane %v6279_v18, 2  ;;  %v6240_v55 = vpack.c.bf16 %v6232_v41, %v6232_v41  ;;  %6604 = vmatpush.bf16.msra.mxu2 %v8299_v8 }
 0xab0   : > { %v6195_v13 = vadd.f32 %v6194_v38, %v6166_v10  ;;  %v6282_v60 = vsel %vm514_vm1, %v6277_v40, %v6281_v52  ;;  %v6285_v21 = vor.u32 %v6283_v29, %v6281_v52 }
 0xab1   : > { %6296 = vrot.lane.b32.xlu1 %v6282_v60, %s8570_s19  ;;  %v6326_v53 = vor.u32 %v6325_v59, %v6324_v39  ;;  %v6257_v61 = vunpack.c.l.b16 %v6240_v55 }
 0xab2   : > { %v6224_v15 = vadd.f32 %v6223_v11, %v6195_v13  ;;  %6545 = vmatpush.bf16.msrb.mxu3 %v8284_v3  ;;  %6573 = vmatpush.bf16.msra.mxu0 %v8293_v57 }
 0xab3   : > { %v6327_v7 = vsel %vm710_vm0, %v6322_v43, %v6326_v53  ;;  %v8283_v43 = vld [vmem:[%s12631_s5 + $0x8] sm:$0xff]  ;;  %6605 = vmatpush.bf16.msra.mxu2 %v8298_v44 }
 0xab4   : > { %v6233_v33 = vmax.f32 %v6224_v15, 0.0  ;;  %6334 = vrot.lane.b32.xlu0 %v6327_v7, %s8557_s30 }
 0xab6   : > { %v6241_v58 = vpack.c.bf16 %v6233_v33, %v6233_v33  ;;  %6546 = vmatpush.bf16.msrb.mxu3 %v8283_v43  ;;  %6574 = vmatpush.bf16.msra.mxu0 %v8292_v23  ;;  %v6670_v43 = vld [vmem:[%s12632_s6 + $0x18] sm:$0x1] }
 0xab8   : > { %v6258_v31 = vunpack.c.l.b16 %v6241_v58 }
 0xaba   : > { %v12503_v56 = vpack.c.b16 %v6258_v31, %v6257_v61  ;;  %6547 = vmatpush.bf16.msrb.mxu3 %v8282_v25  ;;  %6575 = vmatpush.bf16.msra.mxu0 %v8291_v28 }
 0xabc   : > { %v6307_v20 = vrot.slane %v12503_v56, 1  ;;  %v6287_v35 = vshll.u32 %v12503_v56, 16  ;;  %v6291_v0 = vshrl.u32 %v12503_v56, 16 }
 0xabe   : > { %v6308_v34 = vsel %vm654_vm3, %v6305_v26, %v6307_v20  ;;  %v6289_v49 = vrot.slane %v6287_v35, 1  ;;  %v6328_v4 = vrot.slane %v6291_v0, 1  ;;  %v6329_v17 = vrot.slane %v6287_v35, 2  ;;  %8313 = vmatpush.bf16.msra.mxu3 %v8301_v9  ;;  %6576 = vmatpush.bf16.msra.mxu0 %v8290_v19 }
 0xabf   : > { %6313 = vrot.lane.b32.xlu2 %v6308_v34, %s8571_s28  ;;  %vm6640_vm3 = vcmask 465920  }
 0xac0   : > { %v6290_v48 = vsel %vm514_vm1, %v6285_v21, %v6289_v49  ;;  %v6330_v51 = vor.u32 %v6329_v17, %v6328_v4  ;;  %v6293_v24 = vor.u32 %v6291_v0, %v6289_v49  ;;  %vm6644_vm1 = vcmask 1043456  }
 0xac1   : > { %6298 = vrot.lane.b32.xlu1 %v6290_v48, %s8570_s19 }
 0xac2   : > { %v6331_v46 = vsel %vm710_vm0, %v6326_v53, %v6330_v51  ;;  %8314 = vmatpush.bf16.msra.mxu3 %v8300_v47  ;;  %v6685_v47 = vunpack.c.l.b16 %v6670_v43  ;;  %vm6696_vm0 = vcmask 1040384  }
 0xac3   : > { %6336 = vrot.lane.b32.xlu0 %v6331_v46, %s8557_s30 }
 0xac4   : > { %v6689_v23 = vpack.c.b16 %v6685_v47, %v6685_v47 }
 0xac6   : > { %8315 = vmatpush.bf16.msra.mxu3 %v8299_v8  ;;  %v6698_v19 = vsel %vm6696_vm0, %v6689_v23, 0 }
 0xac7   : > { %6315 = vrot.lane.b32.xlu2 %v6307_v20, %s8571_s28 }
 0xac9   : > { %6300 = vrot.lane.b32.xlu1 %v6293_v24, %s8570_s19 }
 0xaca   : > { %8316 = vmatpush.bf16.msra.mxu3 %v8298_v44 }
 0xad1   : > { %6338 = vrot.lane.b32.xlu1 %v6330_v51, %s8557_s30 }
 0xaf9   : > { %v6310_v63 = vpop.permute.xlu2 %6309 }
 0xb09   : > { %v6312_v12 = vpop.permute.xlu2 %6311 }
 0xb13   : > { %v6295_v27 = vpop.permute.xlu0 %6294 }
 0xb14   : > { %v6341_v5 = vsel %vm5854_vm2, %v12469_v45, %v6295_v27  ;;  %v6353_v22 = vsel %vm5867_vm12, %v6295_v27, %v6310_v63  ;;  %v8304_v27 = vld [vmem:[%s12632_s6 + $0x10] sm:$0xff] }
 0xb15   : > { %6548 = vmatmul.bf16.vlgmr.msrb.gmra.mxu3 %v6341_v5 }
 0xb16   : > { %6704 = vmatpush.bf16.msrb.mxu3 %v6698_v19 }
 0xb19   : > { %v6314_v38 = vpop.permute.xlu2 %6313 }
 0xb1a   : > { %6705 = vmatpush.bf16.msrb.mxu3 %v8304_v27 }
 0xb1b   : > { %v6333_v14 = vpop.permute.xlu0 %6332 }
 0xb1c   : > { %v6361_v26 = vsel %vm937_vm8, %v6353_v22, %v6333_v14  ;;  %7997 = vmatmul.msk.bf16.vlgmr.msra.gmra.mxu2 %vm5888_vm13, %v6333_v14 }
 0xb1d   : > { %6577 = vmatmul.bf16.vlgmr.msra.gmra.mxu0 %v6361_v26 }
 0xb21   : > { %v6316_v11 = vpop.permute.xlu2 %6315 }
 0xb23   : > { %v6297_v18 = vpop.permute.xlu1 %6296 }
 0xb24   : > { %v6344_v29 = vsel %vm5854_vm2, %v12473_v1, %v6297_v18  ;;  %v6355_v10 = vsel %vm5867_vm12, %v6297_v18, %v6312_v12 }
 0xb25   : > { %6553 = vmatmul.bf16.gmra.mxu3 %v6344_v29 }
 0xb26   : > { %v6335_v32 = vpop.permute.xlu0 %6334 }
 0xb27   : > { %v6364_v45 = vsel %vm937_vm8, %v6355_v10, %v6335_v32  ;;  %v12827_v10 = vmov 65535  }
 0xb2c   : > { %7998 = vmatmul.msk.bf16.gmra.mxu2 %vm5888_vm13, %v6335_v32  ;;  %v6645_v32 = vsel %vm6644_vm1, 4294967295, %v12827_v10 }
 0xb2d   : > { %6582 = vmatmul.bf16.gmra.mxu0 %v6364_v45 }
 0xb33   : > { %v6299_v40 = vpop.permute.xlu1 %6298 }
 0xb34   : > { %v6347_v52 = vsel %vm5854_vm2, %v12488_v50, %v6299_v40  ;;  %v6357_v39 = vsel %vm5867_vm12, %v6299_v40, %v6314_v38  ;;  %v8303_v40 = vld [vmem:[%s12632_s6 + $0x8] sm:$0xff] }
 0xb35   : > { %6558 = vmatmul.bf16.gmra.mxu3 %v6347_v52  ;;  %v6337_v59 = vpop.permute.xlu0 %6336 }
 0xb36   : > { %v6367_v1 = vsel %vm937_vm8, %v6357_v39, %v6337_v59  ;;  %6706 = vmatpush.bf16.msrb.mxu3 %v8303_v40 }
 0xb3b   : > { %v6301_v41 = vpop.permute.xlu1 %6300 }
 0xb3c   : > { %7999 = vmatmul.msk.bf16.gmra.mxu2 %vm5888_vm13, %v6337_v59  ;;  %v6350_v13 = vsel %vm5854_vm2, %v12503_v56, %v6301_v41  ;;  %v6359_v53 = vsel %vm5867_vm12, %v6301_v41, %v6316_v11 }
 0xb3d   : > { %6587 = vmatmul.bf16.gmra.mxu0 %v6367_v1  ;;  %v6646_v1 = vsel %vm2144_vm10, %v6645_v32, 0 }
 0xb43   : > { %v6339_v60 = vpop.permute.xlu1 %6338 }
 0xb44   : > { %v6370_v50 = vsel %vm937_vm8, %v6359_v53, %v6339_v60 }
 0xb45   : > { %6563 = vmatmul.bf16.gmra.mxu3 %v6350_v13 }
 0xb4d   : > { %6592 = vmatmul.bf16.gmra.mxu0 %v6370_v50 }
 0xb55   : > { %8000 = vmatmul.msk.bf16.vlgmr.msra.gmra.mxu3 %vm5888_vm13, %v6339_v60 }
 0xb98   : > { %v6549_v15 = vpop.f32.mrf.mxu3 }
 0xb99   : > { %v6550_v7 = vadd.f32 %v6549_v15, %v6242_v54 }
 0xb9a   : > { %v6578_v55 = vpop.f32.mrf.mxu0 }
 0xb9b   : > { %v6579_v33 = vadd.f32 %v6578_v55, %v6550_v7 }
 0xb9f   : > { %v6607_v58 = vpop.f32.mrf.mxu2 }
 0xba0   : > { %v6551_v61 = vpop.f32.mrf.mxu3  ;;  %v6608_v20 = vadd.f32 %v6607_v58, %v6579_v33 }
 0xba1   : > { %v6552_v31 = vadd.f32 %v6551_v61, %v6242_v54 }
 0xba2   : > { %v6580_v56 = vpop.f32.mrf.mxu0  ;;  %v6627_v49 = vmax.f32 %v6608_v20, 0.0 }
 0xba3   : > { %v6581_v35 = vadd.f32 %v6580_v56, %v6552_v31  ;;  %v6635_v31 = vld [vmem:[%s12636_s10] sm:$0xf] }
 0xba4   : > { %v8302_v56 = vld [vmem:[%s12632_s6] sm:$0xff] }
 0xba5   : > { %6707 = vmatpush.bf16.msrb.mxu3 %v8302_v56 }
 0xba7   : > { %v6609_v0 = vpop.f32.mrf.mxu2 }
 0xba8   : > { %v6610_v21 = vadd.f32 %v6609_v0, %v6581_v35  ;;  %v6554_v34 = vpop.f32.mrf.mxu3 }
 0xba9   : > { %v6555_v45 = vadd.f32 %v6554_v34, %v6242_v54 }
 0xbaa   : > { %v6628_v4 = vmax.f32 %v6610_v21, 0.0  ;;  %v6583_v17 = vpop.f32.mrf.mxu0  ;;  %v6671_v21 = vld [vmem:[%s12637_s11 + $0x5] ss:$0 sm:$0xff] }
 0xbab   : > { %v6584_v11 = vadd.f32 %v6583_v17, %v6555_v45 }
 0xbac   : > { %v6636_v48 = vpack.c.bf16 %v6628_v4, %v6627_v49 }
 0xbaf   : > { %v6612_v16 = vpop.f32.mrf.mxu2 }
 0xbb0   : > { %v6556_v51 = vpop.f32.mrf.mxu3 }
 0xbb1   : > { %v6557_v18 = vadd.f32 %v6556_v51, %v6242_v54 }
 0xbb2   : > { %v6585_v46 = vpop.f32.mrf.mxu0 }
 0xbb3   : > { %v6586_v41 = vadd.f32 %v6585_v46, %v6557_v18 }
 0xbb7   : > { %v6614_v62 = vpop.f32.mrf.mxu2 }
 0xbb8   : > { %v6559_v24 = vpop.f32.mrf.mxu3  ;;  %v6615_v53 = vadd.f32 %v6614_v62, %v6586_v41 }
 0xbb9   : > { %v6560_v5 = vadd.f32 %v6559_v24, %v6242_v54 }
 0xbba   : > { %v6588_v6 = vpop.f32.mrf.mxu0  ;;  %v6630_v55 = vmax.f32 %v6615_v53, 0.0 }
 0xbbb   : > { %v6589_v52 = vadd.f32 %v6588_v6, %v6560_v5 }
 0xbbf   : > { %v6617_v30 = vpop.f32.mrf.mxu2 }
 0xbc0   : > { %v6561_v36 = vpop.f32.mrf.mxu3  ;;  %v6618_v13 = vadd.f32 %v6617_v30, %v6589_v52 }
 0xbc1   : > { %v6562_v28 = vadd.f32 %v6561_v36, %v6242_v54 }
 0xbc2   : > { %v6590_v37 = vpop.f32.mrf.mxu0  ;;  %v6631_v7 = vmax.f32 %v6618_v13, 0.0 }
 0xbc3   : > { %v6591_v29 = vadd.f32 %v6590_v37, %v6562_v28 }
 0xbc7   : > { %v6619_v14 = vpop.f32.mrf.mxu2 }
 0xbc8   : > { %v6564_v42 = vpop.f32.mrf.mxu3  ;;  %v6620_v38 = vadd.f32 %v6619_v14, %v6591_v29 }
 0xbc9   : > { %v6565_v57 = vadd.f32 %v6564_v42, %v6242_v54 }
 0xbca   : > { %v6593_v3 = vpop.f32.mrf.mxu0  ;;  %v6632_v50 = vmax.f32 %v6620_v38, 0.0 }
 0xbcb   : > { %v6594_v44 = vadd.f32 %v6593_v3, %v6565_v57 }
 0xbcc   : > { %v6638_v33 = vpack.c.bf16 %v6632_v50, %v6631_v7 }
 0xbd0   : > { %v6566_v2 = vpop.f32.mrf.mxu3 }
 0xbd1   : > { %v6567_v25 = vadd.f32 %v6566_v2, %v6242_v54  ;;  %v6613_v54 = vadd.f32 %v6612_v16, %v6584_v11 }
 0xbd2   : > { %v6595_v8 = vpop.f32.mrf.mxu0 }
 0xbd3   : > { %v6596_v63 = vadd.f32 %v6595_v8, %v6567_v25  ;;  %v6629_v58 = vmax.f32 %v6613_v54, 0.0 }
 0xbd5   : > { %v6637_v61 = vpack.c.bf16 %v6630_v55, %v6629_v58 }
 0xbd8   : > { %v6622_v9 = vpop.f32.mrf.mxu3 }
 0xbd9   : > { %v6623_v22 = vadd.f32 %v6622_v9, %v6594_v44 }
 0xbdb   : > { %v6633_v39 = vmax.f32 %v6623_v22, 0.0 }
 0xbe0   : > { %v6624_v26 = vpop.f32.mrf.mxu3 }
 0xbe1   : > { %v6625_v12 = vadd.f32 %v6624_v26, %v6596_v63 }
 0xbe3   : > { %v6634_v59 = vmax.f32 %v6625_v12, 0.0 }
 0xbe5   : > { %v6639_v60 = vpack.c.bf16 %v6634_v59, %v6633_v39 }
 0xbe7   : > { %v6648_v15 = vand.u32 %v6646_v1, %v6639_v60 }
 0xbe9   : > { %6654 = vmatpush.bf16.msrb.mxu1 %v6648_v15 }
 0xbed   : > { %6655 = vmatpush.bf16.msrb.mxu1 %v6638_v33 }
 0xbf1   : > { %6656 = vmatpush.bf16.msrb.mxu1 %v6637_v61 }
 0xbf5   : > { %6657 = vmatpush.bf16.msrb.mxu1 %v6636_v48 }
 0xbf8   : > { %8001 = vmatmul.msk.bf16.vlgmr.msrb.gmra.mxu1 %vm6640_vm3, %v6635_v31 }
 0xc75   : > { %v6659_v20 = vpop.f32.mrf.mxu1 }
 0xc76   : > { %v6663_v35 = vpack.c.bf16 %v6659_v20, %v6659_v20 }
 0xc78   : > { %8014 = vmatmul.msk.bf16.vlgmr.msrb.gmra.mxu3 %vm2661_vm14, %v6663_v35 }
 0xc7d   : > { %v6661_v0 = vpop.f32.mrf.mxu1 }
 0xcfb   : > { %v6709_v34 = vpop.f32.mrf.mxu3 }
 0xcfc   : > { %v6710_v49 = vadd.f32 %v6709_v34, %v6671_v21 }
 0xcfe   : > { %6713 = vmax.xlane.f32.xlu0 %v6710_v49 }
 0xd03   : > { %v6711_v4 = vpop.f32.mrf.mxu3 }
 0xd71   : > { %v6714_v17 = vpop.xlane.xlu0 %6713 }
 0xd72   : > { %v6715_v48 = vsub.f32 %v6710_v49, %v6714_v17 }
 0xd74   : > { %v6716_v51 = vmul.f32 1.442695, %v6715_v48 }
 0xd76   : > { %8542 = vpow2.f32 %v6716_v51 }
 0xd7c   : > { %v8543_v46 = vpop.eup %8542 }
 0xd7d   : > { %6718 = vadd.xlane.f32.xlu1 %v8543_v46 }
 0xdf0   : > { %v6719_v24 = vpop.xlane.xlu1 %6718 }
 0xdf1   : > { %8544 = vlog2.f32 %v6719_v24 }
 0xdf7   : > { %v8545_v6 = vpop.eup %8544 }
 0xdf8   : > { %v6721_v36 = vmul.f32 0.6931472, %v8545_v6 }
 0xdfa   : > { %v6722_v16 = vsub.f32 %v6715_v48, %v6721_v36 }
 0xdfc   : > { %6723 = vst [vmem:[%s413_s26] sm:$0xff] %v6722_v16 }
 0xdfd PF: > { %s22_s21 = sadd.s32 1, %s8553_s21  }
 0xdfe   : > { %p19_p5 = scmp.ge.s32.totalorder %s22_s21, 6  }
 0xe00   :  { %21 = sbr.rel (!%p19_p5) target bundleno = 1 (0x1), region = 99 }

</bundles_post_ra>
